<compile_context>
chip_gen: v7x
topology: tpu7x:2x2x1
jax: 0.10.0
libtpu: 0.0.40
codegen_flags: <defaults>
</compile_context>

<pallas_src>
import functools

import jax
import jax.numpy as jnp
from jax.experimental import pallas as pl
from jax.experimental.pallas import tpu as pltpu


# ----------------------------------------------------------------------------
# Pallas kernels
# ----------------------------------------------------------------------------
def _gemm_bias_relu_kernel(x_ref, w_ref, b_ref, o_ref):
    """o = relu(x @ w + b); used for conv1 / conv2 (im2col'd)."""
    acc = jnp.dot(x_ref[...], w_ref[...], preferred_element_type=jnp.float32)
    acc = acc + b_ref[...]                      # b is (1, Cout): row broadcast
    o_ref[...] = jnp.maximum(acc, 0.0).astype(o_ref.dtype)


def _head_kernel(p3_ref, w3_ref, b3_ref, m1_ref, wf1_ref, bf1_ref,
                 m2_ref, wf2_ref, bf2_ref, o_ref):
    """Fused: conv3 GEMM + bias + ReLU + dropout1 + FC1 + bias + ReLU
              + dropout2 + FC2 + bias.

    p3_ref : (S=9, N, 576)   conv3 im2col patches, spatial-major / batch-minor
    w3_ref : (576, 128)      conv3 weight
    m1_ref : (S=9, N, 128)   dropout(p=0.5) keep-mask, pre-scaled by 1/(1-p)
    wf1_ref: (S=9, 128, 1024) fc1 weight split per conv3 spatial position (HWC order)
    m2_ref : (N, 1024)       dropout(p=0.2) keep-mask, pre-scaled
    wf2_ref: (1024, K)
    All intermediates (conv3 activations, the (N,1024) hidden) stay in VMEM.
    """
    s_blocks = p3_ref.shape[0]
    n = p3_ref.shape[1]
    h1 = wf1_ref.shape[2]

    hid = jnp.zeros((n, h1), dtype=jnp.float32)
    for s in range(s_blocks):                   # static unroll: 9 small GEMM pairs
        y3 = jnp.dot(p3_ref[s], w3_ref[...], preferred_element_type=jnp.float32)
        y3 = jnp.maximum(y3 + b3_ref[...], 0.0)         # conv3 + ReLU, (N, 128)
        y3 = y3 * m1_ref[s]                             # dropout p=0.5
        hid = hid + jnp.dot(y3, wf1_ref[s], preferred_element_type=jnp.float32)

    hid = jnp.maximum(hid + bf1_ref[...], 0.0)          # FC1 + ReLU
    hid = hid * m2_ref[...]                             # dropout p=0.2
    out = jnp.dot(hid, wf2_ref[...], preferred_element_type=jnp.float32)
    o_ref[...] = (out + bf2_ref[...]).astype(o_ref.dtype)


# ----------------------------------------------------------------------------
# Pallas wrappers
# ----------------------------------------------------------------------------
_VMEM = pl.BlockSpec(memory_space=pltpu.MemorySpace.VMEM)


def gemm_bias_relu(x, w, b):
    m, k = x.shape
    kw, n = w.shape
    assert k == kw
    return pl.pallas_call(
        _gemm_bias_relu_kernel,
        out_shape=jax.ShapeDtypeStruct((m, n), jnp.float32),
        in_specs=[_VMEM, _VMEM, _VMEM],
        out_specs=_VMEM,
    )(x, w, b.reshape(1, n))


def fused_head(p3, w3m, b3, m1, wf1b, bf1, m2, wf2, bf2):
    s, n, _ = p3.shape
    k = wf2.shape[1]
    return pl.pallas_call(
        _head_kernel,
        out_shape=jax.ShapeDtypeStruct((n, k), jnp.float32),
        in_specs=[_VMEM] * 9,
        out_specs=_VMEM,
    )(p3, w3m, b3.reshape(1, -1), m1, wf1b, bf1.reshape(1, -1),
      m2, wf2, bf2.reshape(1, -1))


# ----------------------------------------------------------------------------
# XLA-side glue (tiny tensors): im2col + reshapes
# ----------------------------------------------------------------------------
# TODO(synk): the strided 3x3 window extraction (im2col) stays as XLA glue;
# expressing it inside the kernel needs strided sublane reads / relayouts that
# are not worth the lowering risk at these shapes.
def _im2col(x, ksize, stride):
    n, h, w, cin = x.shape
    ho = (h - ksize) // stride + 1
    wo = (w - ksize) // stride + 1
    cols = []
    for i in range(ksize):
        for j in range(ksize):
            cols.append(x[:, i:i + stride * ho:stride, j:j + stride * wo:stride, :])
    # feature order (kh, kw, Cin): matches the conv weight reshape in init_params.
    return jnp.concatenate(cols, axis=-1), ho, wo           # (N, Ho, Wo, k*k*Cin)


def conv2d_relu(x, wm, b, *, ksize=3, stride=2):
    n = x.shape[0]
    patches, ho, wo = _im2col(x, ksize, stride)
    cout = wm.shape[1]
    y = gemm_bias_relu(patches.reshape(n * ho * wo, -1), wm, b)   # Pallas GEMM
    return y.reshape(n, ho, wo, cout)


def _conv3_patches_smajor(x, *, ksize=3, stride=2):
    """conv3 im2col arranged (S=Ho*Wo, N, k*k*Cin), spatial-major so the fused
    head kernel can index each spatial position with a static leading index."""
    n = x.shape[0]
    patches, ho, wo = _im2col(x, ksize, stride)              # (N, 3, 3, 576)
    patches = patches.reshape(n, ho * wo, -1)                # (N, 9, 576)
    return jnp.transpose(patches, (1, 0, 2))                 # (9, N, 576)


# ----------------------------------------------------------------------------
# CNN forward (mirrors the torch module)
# ----------------------------------------------------------------------------
@functools.partial(jax.jit, static_argnames=("training",))
def cnn_forward(params, x_nchw, dropout_key, training=True):
    x = jnp.transpose(x_nchw, (0, 2, 3, 1))                  # NCHW -> NHWC
    x = conv2d_relu(x, params["w1m"], params["b1"])          # (N, 15, 15, 32)
    x = conv2d_relu(x, params["w2m"], params["b2"])          # (N, 7, 7, 64)
    p3 = _conv3_patches_smajor(x)                            # (9, N, 576)
    n = x.shape[0]
    h1 = params["wf1b"].shape[2]

    if training:
        # F.dropout defaults training=True in the reference forward.
        k1, k2 = jax.random.split(dropout_key)
        m1 = (jax.random.uniform(k1, (9, n, 128)) >= 0.5).astype(jnp.float32) / 0.5
        m2 = (jax.random.uniform(k2, (n, h1)) >= 0.2).astype(jnp.float32) / 0.8
    else:
        m1 = jnp.ones((9, n, 128), jnp.float32)
        m2 = jnp.ones((n, h1), jnp.float32)

    return fused_head(p3, params["w3m"], params["b3"], m1,
                      params["wf1b"], params["bf1"], m2,
                      params["wf2"], params["bf2"])


# ----------------------------------------------------------------------------
# Deterministic parameter init (PyTorch-style uniform(-1/sqrt(fan_in), +)),
# converted once into kernel-ready layouts.
# ----------------------------------------------------------------------------
def init_params(key, num_classes=10):
    def uniform(k, shape, fan_in):
        bound = 1.0 / float(fan_in) ** 0.5
        return jax.random.uniform(k, shape, jnp.float32, -bound, bound)

    keys = jax.random.split(key, 10)
    # Conv weights built in PyTorch (Cout, Cin, kh, kw) layout.
    w1 = uniform(keys[0], (32, 3, 3, 3), 3 * 9)
    b1 = uniform(keys[1], (32,), 3 * 9)
    w2 = uniform(keys[2], (64, 32, 3, 3), 32 * 9)
    b2 = uniform(keys[3], (64,), 32 * 9)
    w3 = uniform(keys[4], (128, 64, 3, 3), 64 * 9)
    b3 = uniform(keys[5], (128,), 64 * 9)
    # Linear weights built in PyTorch (out, in) layout; fc1's inputs are CHW-ordered.
    wf1 = uniform(keys[6], (1024, 128 * 3 * 3), 128 * 3 * 3)
    bf1 = uniform(keys[7], (1024,), 128 * 3 * 3)
    wf2 = uniform(keys[8], (num_classes, 1024), 1024)
    bf2 = uniform(keys[9], (num_classes,), 1024)

    def conv_w_to_gemm(w):          # (Cout,Cin,kh,kw) -> (kh*kw*Cin, Cout)
        return jnp.transpose(w, (2, 3, 1, 0)).reshape(-1, w.shape[0])

    # fc1 weight: torch consumes CHW-flattened conv3 features (idx = c*9 + s).
    # Permute rows to HWC order (idx = s*128 + c) and pre-split into S=9 blocks
    # of (128, 1024) so the fused head kernel needs no flatten/transpose.
    wf1b = jnp.transpose(wf1.T.reshape(128, 9, 1024), (1, 0, 2))   # (9, 128, 1024)

    return dict(
        w1m=conv_w_to_gemm(w1), b1=b1,
        w2m=conv_w_to_gemm(w2), b2=b2,
        w3m=conv_w_to_gemm(w3), b3=b3,
        wf1b=wf1b, bf1=bf1,
        wf2=wf2.T, bf2=bf2,
    )


if __name__ == "__main__":
    K = 10  # CIFAR-10 classes
    key = jax.random.PRNGKey(0)
    pkey, xkey, dkey = jax.random.split(key, 3)
    params = init_params(pkey, num_classes=K)
    # 32x32 input required by the hard-coded 128*3*3 flatten in the module.
    x = jax.random.normal(xkey, (2, 3, 32, 32), dtype=jnp.float32)
    out = cnn_forward(params, x, dkey, training=True)
    out = jax.block_until_ready(out)
    assert out.shape == (2, K) and out.dtype == jnp.float32
    assert bool(jnp.all(jnp.isfinite(out)))
    print("KERNEL_OK")
</pallas_src>

<mosaic_0001>
module attributes {stable_mosaic.version = 11 : i64} {
  func.func @_gemm_bias_relu_kernel(%arg0: memref<450x27xf32, #tpu.memory_space<vmem>>, %arg1: memref<27x32xf32, #tpu.memory_space<vmem>>, %arg2: memref<1x32xf32, #tpu.memory_space<vmem>>, %arg3: memref<450x32xf32, #tpu.memory_space<vmem>>) attributes {dimension_semantics = [], scalar_prefetch = 0 : i64, scratch_operands = 0 : i64, tpu.core_type = #tpu.core_type<tc>} {
    %c0 = arith.constant 0 : index
    %c0_0 = arith.constant 0 : index
    %0 = vector.load %arg0[%c0, %c0_0] : memref<450x27xf32, #tpu.memory_space<vmem>>, vector<450x27xf32>
    %c0_1 = arith.constant 0 : index
    %c0_2 = arith.constant 0 : index
    %1 = vector.load %arg1[%c0_1, %c0_2] : memref<27x32xf32, #tpu.memory_space<vmem>>, vector<27x32xf32>
    %cst = arith.constant dense<0.000000e+00> : vector<450x32xf32>
    %2 = tpu.matmul %0, %1, %cst {dimension_numbers = #tpu.dot_dimension_numbers<[1], [0], [0], [1], [0, 0, 1, 1], [], []>} : vector<450x27xf32>, vector<27x32xf32>, vector<450x32xf32> -> vector<450x32xf32>
    %c0_3 = arith.constant 0 : index
    %c0_4 = arith.constant 0 : index
    %3 = vector.load %arg2[%c0_3, %c0_4] : memref<1x32xf32, #tpu.memory_space<vmem>>, vector<1x32xf32>
    %4 = vector.broadcast %3 : vector<1x32xf32> to vector<450x32xf32>
    %5 = arith.addf %2, %4 : vector<450x32xf32>
    %cst_5 = arith.constant 0.000000e+00 : f32
    %6 = vector.broadcast %cst_5 : f32 to vector<450x32xf32>
    %7 = arith.maximumf %5, %6 : vector<450x32xf32>
    %c0_6 = arith.constant 0 : index
    %c0_7 = arith.constant 0 : index
    %8 = vector.load %arg3[%c0_6, %c0_7] : memref<450x32xf32, #tpu.memory_space<vmem>>, vector<450x32xf32>
    tpu.vector_store %arg3[%c0_6, %c0_7], %7 {strides = array<i32>} : memref<450x32xf32, #tpu.memory_space<vmem>>, vector<450x32xf32>,
    return
  }
}

module attributes {stable_mosaic.version = 11 : i64} {
  func.func @_gemm_bias_relu_kernel(%arg0: memref<98x288xf32, #tpu.memory_space<vmem>>, %arg1: memref<288x64xf32, #tpu.memory_space<vmem>>, %arg2: memref<1x64xf32, #tpu.memory_space<vmem>>, %arg3: memref<98x64xf32, #tpu.memory_space<vmem>>) attributes {dimension_semantics = [], scalar_prefetch = 0 : i64, scratch_operands = 0 : i64, tpu.core_type = #tpu.core_type<tc>} {
    %c0 = arith.constant 0 : index
    %c0_0 = arith.constant 0 : index
    %0 = vector.load %arg0[%c0, %c0_0] : memref<98x288xf32, #tpu.memory_space<vmem>>, vector<98x288xf32>
    %c0_1 = arith.constant 0 : index
    %c0_2 = arith.constant 0 : index
    %1 = vector.load %arg1[%c0_1, %c0_2] : memref<288x64xf32, #tpu.memory_space<vmem>>, vector<288x64xf32>
    %cst = arith.constant dense<0.000000e+00> : vector<98x64xf32>
    %2 = tpu.matmul %0, %1, %cst {dimension_numbers = #tpu.dot_dimension_numbers<[1], [0], [0], [1], [0, 0, 1, 1], [], []>} : vector<98x288xf32>, vector<288x64xf32>, vector<98x64xf32> -> vector<98x64xf32>
    %c0_3 = arith.constant 0 : index
    %c0_4 = arith.constant 0 : index
    %3 = vector.load %arg2[%c0_3, %c0_4] : memref<1x64xf32, #tpu.memory_space<vmem>>, vector<1x64xf32>
    %4 = vector.broadcast %3 : vector<1x64xf32> to vector<98x64xf32>
    %5 = arith.addf %2, %4 : vector<98x64xf32>
    %cst_5 = arith.constant 0.000000e+00 : f32
    %6 = vector.broadcast %cst_5 : f32 to vector<98x64xf32>
    %7 = arith.maximumf %5, %6 : vector<98x64xf32>
    %c0_6 = arith.constant 0 : index
    %c0_7 = arith.constant 0 : index
    %8 = vector.load %arg3[%c0_6, %c0_7] : memref<98x64xf32, #tpu.memory_space<vmem>>, vector<98x64xf32>
    tpu.vector_store %arg3[%c0_6, %c0_7], %7 {strides = array<i32>} : memref<98x64xf32, #tpu.memory_space<vmem>>, vector<98x64xf32>,
    return
  }
}

module attributes {stable_mosaic.version = 11 : i64} {
  func.func @_head_kernel(%arg0: memref<9x2x576xf32, #tpu.memory_space<vmem>>, %arg1: memref<576x128xf32, #tpu.memory_space<vmem>>, %arg2: memref<1x128xf32, #tpu.memory_space<vmem>>, %arg3: memref<9x2x128xf32, #tpu.memory_space<vmem>>, %arg4: memref<9x128x1024xf32, #tpu.memory_space<vmem>>, %arg5: memref<1x1024xf32, #tpu.memory_space<vmem>>, %arg6: memref<2x1024xf32, #tpu.memory_space<vmem>>, %arg7: memref<1024x10xf32, #tpu.memory_space<vmem>>, %arg8: memref<1x10xf32, #tpu.memory_space<vmem>>, %arg9: memref<2x10xf32, #tpu.memory_space<vmem>>) attributes {dimension_semantics = [], scalar_prefetch = 0 : i64, scratch_operands = 0 : i64, tpu.core_type = #tpu.core_type<tc>} {
    %cst = arith.constant 0.000000e+00 : f32
    %0 = vector.broadcast %cst : f32 to vector<2x1024xf32>
    %c0 = arith.constant 0 : index
    %c0_0 = arith.constant 0 : index
    %c0_1 = arith.constant 0 : index
    %1 = vector.load %arg0[%c0, %c0_0, %c0_1] : memref<9x2x576xf32, #tpu.memory_space<vmem>>, vector<1x2x576xf32>
    %2 = vector.shape_cast %1 : vector<1x2x576xf32> to vector<2x576xf32>
    %c0_2 = arith.constant 0 : index
    %c0_3 = arith.constant 0 : index
    %3 = vector.load %arg1[%c0_2, %c0_3] : memref<576x128xf32, #tpu.memory_space<vmem>>, vector<576x128xf32>
    %cst_4 = arith.constant dense<0.000000e+00> : vector<2x128xf32>
    %4 = tpu.matmul %2, %3, %cst_4 {dimension_numbers = #tpu.dot_dimension_numbers<[1], [0], [0], [1], [0, 0, 1, 1], [], []>} : vector<2x576xf32>, vector<576x128xf32>, vector<2x128xf32> -> vector<2x128xf32>
    %c0_5 = arith.constant 0 : index
    %c0_6 = arith.constant 0 : index
    %5 = vector.load %arg2[%c0_5, %c0_6] : memref<1x128xf32, #tpu.memory_space<vmem>>, vector<1x128xf32>
    %6 = vector.broadcast %5 : vector<1x128xf32> to vector<2x128xf32>
    %7 = arith.addf %4, %6 : vector<2x128xf32>
    %cst_7 = arith.constant 0.000000e+00 : f32
    %8 = vector.broadcast %cst_7 : f32 to vector<2x128xf32>
    %9 = arith.maximumf %7, %8 : vector<2x128xf32>
    %c0_8 = arith.constant 0 : index
    %c0_9 = arith.constant 0 : index
    %c0_10 = arith.constant 0 : index
    %10 = vector.load %arg3[%c0_8, %c0_9, %c0_10] : memref<9x2x128xf32, #tpu.memory_space<vmem>>, vector<1x2x128xf32>
    %11 = vector.shape_cast %10 : vector<1x2x128xf32> to vector<2x128xf32>
    %12 = arith.mulf %9, %11 : vector<2x128xf32>
    %c0_11 = arith.constant 0 : index
    %c0_12 = arith.constant 0 : index
    %c0_13 = arith.constant 0 : index
    %13 = vector.load %arg4[%c0_11, %c0_12, %c0_13] : memref<9x128x1024xf32, #tpu.memory_space<vmem>>, vector<1x128x1024xf32>
    %14 = vector.shape_cast %13 : vector<1x128x1024xf32> to vector<128x1024xf32>
    %cst_14 = arith.constant dense<0.000000e+00> : vector<2x1024xf32>
    %15 = tpu.matmul %12, %14, %cst_14 {dimension_numbers = #tpu.dot_dimension_numbers<[1], [0], [0], [1], [0, 0, 1, 1], [], []>} : vector<2x128xf32>, vector<128x1024xf32>, vector<2x1024xf32> -> vector<2x1024xf32>
    %16 = arith.addf %0, %15 : vector<2x1024xf32>
    %c1 = arith.constant 1 : index
    %c0_15 = arith.constant 0 : index
    %c0_16 = arith.constant 0 : index
    %17 = vector.load %arg0[%c1, %c0_15, %c0_16] : memref<9x2x576xf32, #tpu.memory_space<vmem>>, vector<1x2x576xf32>
    %18 = vector.shape_cast %17 : vector<1x2x576xf32> to vector<2x576xf32>
    %c0_17 = arith.constant 0 : index
    %c0_18 = arith.constant 0 : index
    %19 = vector.load %arg1[%c0_17, %c0_18] : memref<576x128xf32, #tpu.memory_space<vmem>>, vector<576x128xf32>
    %cst_19 = arith.constant dense<0.000000e+00> : vector<2x128xf32>
    %20 = tpu.matmul %18, %19, %cst_19 {dimension_numbers = #tpu.dot_dimension_numbers<[1], [0], [0], [1], [0, 0, 1, 1], [], []>} : vector<2x576xf32>, vector<576x128xf32>, vector<2x128xf32> -> vector<2x128xf32>
    %c0_20 = arith.constant 0 : index
    %c0_21 = arith.constant 0 : index
    %21 = vector.load %arg2[%c0_20, %c0_21] : memref<1x128xf32, #tpu.memory_space<vmem>>, vector<1x128xf32>
    %22 = vector.broadcast %21 : vector<1x128xf32> to vector<2x128xf32>
    %23 = arith.addf %20, %22 : vector<2x128xf32>
    %cst_22 = arith.constant 0.000000e+00 : f32
    %24 = vector.broadcast %cst_22 : f32 to vector<2x128xf32>
    %25 = arith.maximumf %23, %24 : vector<2x128xf32>
    %c1_23 = arith.constant 1 : index
    %c0_24 = arith.constant 0 : index
    %c0_25 = arith.constant 0 : index
    %26 = vector.load %arg3[%c1_23, %c0_24, %c0_25] : memref<9x2x128xf32, #tpu.memory_space<vmem>>, vector<1x2x128xf32>
    %27 = vector.shape_cast %26 : vector<1x2x128xf32> to vector<2x128xf32>
    %28 = arith.mulf %25, %27 : vector<2x128xf32>
    %c1_26 = arith.constant 1 : index
    %c0_27 = arith.constant 0 : index
    %c0_28 = arith.constant 0 : index
    %29 = vector.load %arg4[%c1_26, %c0_27, %c0_28] : memref<9x128x1024xf32, #tpu.memory_space<vmem>>, vector<1x128x1024xf32>
    %30 = vector.shape_cast %29 : vector<1x128x1024xf32> to vector<128x1024xf32>
    %cst_29 = arith.constant dense<0.000000e+00> : vector<2x1024xf32>
    %31 = tpu.matmul %28, %30, %cst_29 {dimension_numbers = #tpu.dot_dimension_numbers<[1], [0], [0], [1], [0, 0, 1, 1], [], []>} : vector<2x128xf32>, vector<128x1024xf32>, vector<2x1024xf32> -> vector<2x1024xf32>
    %32 = arith.addf %16, %31 : vector<2x1024xf32>
    %c2 = arith.constant 2 : index
    %c0_30 = arith.constant 0 : index
    %c0_31 = arith.constant 0 : index
    %33 = vector.load %arg0[%c2, %c0_30, %c0_31] : memref<9x2x576xf32, #tpu.memory_space<vmem>>, vector<1x2x576xf32>
    %34 = vector.shape_cast %33 : vector<1x2x576xf32> to vector<2x576xf32>
    %c0_32 = arith.constant 0 : index
    %c0_33 = arith.constant 0 : index
    %35 = vector.load %arg1[%c0_32, %c0_33] : memref<576x128xf32, #tpu.memory_space<vmem>>, vector<576x128xf32>
    %cst_34 = arith.constant dense<0.000000e+00> : vector<2x128xf32>
    %36 = tpu.matmul %34, %35, %cst_34 {dimension_numbers = #tpu.dot_dimension_numbers<[1], [0], [0], [1], [0, 0, 1, 1], [], []>} : vector<2x576xf32>, vector<576x128xf32>, vector<2x128xf32> -> vector<2x128xf32>
    %c0_35 = arith.constant 0 : index
    %c0_36 = arith.constant 0 : index
    %37 = vector.load %arg2[%c0_35, %c0_36] : memref<1x128xf32, #tpu.memory_space<vmem>>, vector<1x128xf32>
    %38 = vector.broadcast %37 : vector<1x128xf32> to vector<2x128xf32>
    %39 = arith.addf %36, %38 : vector<2x128xf32>
    %cst_37 = arith.constant 0.000000e+00 : f32
    %40 = vector.broadcast %cst_37 : f32 to vector<2x128xf32>
    %41 = arith.maximumf %39, %40 : vector<2x128xf32>
    %c2_38 = arith.constant 2 : index
    %c0_39 = arith.constant 0 : index
    %c0_40 = arith.constant 0 : index
    %42 = vector.load %arg3[%c2_38, %c0_39, %c0_40] : memref<9x2x128xf32, #tpu.memory_space<vmem>>, vector<1x2x128xf32>
    %43 = vector.shape_cast %42 : vector<1x2x128xf32> to vector<2x128xf32>
    %44 = arith.mulf %41, %43 : vector<2x128xf32>
    %c2_41 = arith.constant 2 : index
    %c0_42 = arith.constant 0 : index
    %c0_43 = arith.constant 0 : index
    %45 = vector.load %arg4[%c2_41, %c0_42, %c0_43] : memref<9x128x1024xf32, #tpu.memory_space<vmem>>, vector<1x128x1024xf32>
    %46 = vector.shape_cast %45 : vector<1x128x1024xf32> to vector<128x1024xf32>
    %cst_44 = arith.constant dense<0.000000e+00> : vector<2x1024xf32>
    %47 = tpu.matmul %44, %46, %cst_44 {dimension_numbers = #tpu.dot_dimension_numbers<[1], [0], [0], [1], [0, 0, 1, 1], [], []>} : vector<2x128xf32>, vector<128x1024xf32>, vector<2x1024xf32> -> vector<2x1024xf32>
    %48 = arith.addf %32, %47 : vector<2x1024xf32>
    %c3 = arith.constant 3 : index
    %c0_45 = arith.constant 0 : index
    %c0_46 = arith.constant 0 : index
    %49 = vector.load %arg0[%c3, %c0_45, %c0_46] : memref<9x2x576xf32, #tpu.memory_space<vmem>>, vector<1x2x576xf32>
    %50 = vector.shape_cast %49 : vector<1x2x576xf32> to vector<2x576xf32>
    %c0_47 = arith.constant 0 : index
    %c0_48 = arith.constant 0 : index
    %51 = vector.load %arg1[%c0_47, %c0_48] : memref<576x128xf32, #tpu.memory_space<vmem>>, vector<576x128xf32>
    %cst_49 = arith.constant dense<0.000000e+00> : vector<2x128xf32>
    %52 = tpu.matmul %50, %51, %cst_49 {dimension_numbers = #tpu.dot_dimension_numbers<[1], [0], [0], [1], [0, 0, 1, 1], [], []>} : vector<2x576xf32>, vector<576x128xf32>, vector<2x128xf32> -> vector<2x128xf32>
    %c0_50 = arith.constant 0 : index
    %c0_51 = arith.constant 0 : index
    %53 = vector.load %arg2[%c0_50, %c0_51] : memref<1x128xf32, #tpu.memory_space<vmem>>, vector<1x128xf32>
    %54 = vector.broadcast %53 : vector<1x128xf32> to vector<2x128xf32>
    %55 = arith.addf %52, %54 : vector<2x128xf32>
    %cst_52 = arith.constant 0.000000e+00 : f32
    %56 = vector.broadcast %cst_52 : f32 to vector<2x128xf32>
    %57 = arith.maximumf %55, %56 : vector<2x128xf32>
    %c3_53 = arith.constant 3 : index
    %c0_54 = arith.constant 0 : index
    %c0_55 = arith.constant 0 : index
    %58 = vector.load %arg3[%c3_53, %c0_54, %c0_55] : memref<9x2x128xf32, #tpu.memory_space<vmem>>, vector<1x2x128xf32>
    %59 = vector.shape_cast %58 : vector<1x2x128xf32> to vector<2x128xf32>
    %60 = arith.mulf %57, %59 : vector<2x128xf32>
    %c3_56 = arith.constant 3 : index
    %c0_57 = arith.constant 0 : index
    %c0_58 = arith.constant 0 : index
    %61 = vector.load %arg4[%c3_56, %c0_57, %c0_58] : memref<9x128x1024xf32, #tpu.memory_space<vmem>>, vector<1x128x1024xf32>
    %62 = vector.shape_cast %61 : vector<1x128x1024xf32> to vector<128x1024xf32>
    %cst_59 = arith.constant dense<0.000000e+00> : vector<2x1024xf32>
    %63 = tpu.matmul %60, %62, %cst_59 {dimension_numbers = #tpu.dot_dimension_numbers<[1], [0], [0], [1], [0, 0, 1, 1], [], []>} : vector<2x128xf32>, vector<128x1024xf32>, vector<2x1024xf32> -> vector<2x1024xf32>
    %64 = arith.addf %48, %63 : vector<2x1024xf32>
    %c4 = arith.constant 4 : index
    %c0_60 = arith.constant 0 : index
    %c0_61 = arith.constant 0 : index
    %65 = vector.load %arg0[%c4, %c0_60, %c0_61] : memref<9x2x576xf32, #tpu.memory_space<vmem>>, vector<1x2x576xf32>
    %66 = vector.shape_cast %65 : vector<1x2x576xf32> to vector<2x576xf32>
    %c0_62 = arith.constant 0 : index
    %c0_63 = arith.constant 0 : index
    %67 = vector.load %arg1[%c0_62, %c0_63] : memref<576x128xf32, #tpu.memory_space<vmem>>, vector<576x128xf32>
    %cst_64 = arith.constant dense<0.000000e+00> : vector<2x128xf32>
    %68 = tpu.matmul %66, %67, %cst_64 {dimension_numbers = #tpu.dot_dimension_numbers<[1], [0], [0], [1], [0, 0, 1, 1], [], []>} : vector<2x576xf32>, vector<576x128xf32>, vector<2x128xf32> -> vector<2x128xf32>
    %c0_65 = arith.constant 0 : index
    %c0_66 = arith.constant 0 : index
    %69 = vector.load %arg2[%c0_65, %c0_66] : memref<1x128xf32, #tpu.memory_space<vmem>>, vector<1x128xf32>
    %70 = vector.broadcast %69 : vector<1x128xf32> to vector<2x128xf32>
    %71 = arith.addf %68, %70 : vector<2x128xf32>
    %cst_67 = arith.constant 0.000000e+00 : f32
    %72 = vector.broadcast %cst_67 : f32 to vector<2x128xf32>
    %73 = arith.maximumf %71, %72 : vector<2x128xf32>
    %c4_68 = arith.constant 4 : index
    %c0_69 = arith.constant 0 : index
    %c0_70 = arith.constant 0 : index
    %74 = vector.load %arg3[%c4_68, %c0_69, %c0_70] : memref<9x2x128xf32, #tpu.memory_space<vmem>>, vector<1x2x128xf32>
    %75 = vector.shape_cast %74 : vector<1x2x128xf32> to vector<2x128xf32>
    %76 = arith.mulf %73, %75 : vector<2x128xf32>
    %c4_71 = arith.constant 4 : index
    %c0_72 = arith.constant 0 : index
    %c0_73 = arith.constant 0 : index
    %77 = vector.load %arg4[%c4_71, %c0_72, %c0_73] : memref<9x128x1024xf32, #tpu.memory_space<vmem>>, vector<1x128x1024xf32>
    %78 = vector.shape_cast %77 : vector<1x128x1024xf32> to vector<128x1024xf32>
    %cst_74 = arith.constant dense<0.000000e+00> : vector<2x1024xf32>
    %79 = tpu.matmul %76, %78, %cst_74 {dimension_numbers = #tpu.dot_dimension_numbers<[1], [0], [0], [1], [0, 0, 1, 1], [], []>} : vector<2x128xf32>, vector<128x1024xf32>, vector<2x1024xf32> -> vector<2x1024xf32>
    %80 = arith.addf %64, %79 : vector<2x1024xf32>
    %c5 = arith.constant 5 : index
    %c0_75 = arith.constant 0 : index
    %c0_76 = arith.constant 0 : index
    %81 = vector.load %arg0[%c5, %c0_75, %c0_76] : memref<9x2x576xf32, #tpu.memory_space<vmem>>, vector<1x2x576xf32>
    %82 = vector.shape_cast %81 : vector<1x2x576xf32> to vector<2x576xf32>
    %c0_77 = arith.constant 0 : index
    %c0_78 = arith.constant 0 : index
    %83 = vector.load %arg1[%c0_77, %c0_78] : memref<576x128xf32, #tpu.memory_space<vmem>>, vector<576x128xf32>
    %cst_79 = arith.constant dense<0.000000e+00> : vector<2x128xf32>
    %84 = tpu.matmul %82, %83, %cst_79 {dimension_numbers = #tpu.dot_dimension_numbers<[1], [0], [0], [1], [0, 0, 1, 1], [], []>} : vector<2x576xf32>, vector<576x128xf32>, vector<2x128xf32> -> vector<2x128xf32>
    %c0_80 = arith.constant 0 : index
    %c0_81 = arith.constant 0 : index
    %85 = vector.load %arg2[%c0_80, %c0_81] : memref<1x128xf32, #tpu.memory_space<vmem>>, vector<1x128xf32>
    %86 = vector.broadcast %85 : vector<1x128xf32> to vector<2x128xf32>
    %87 = arith.addf %84, %86 : vector<2x128xf32>
    %cst_82 = arith.constant 0.000000e+00 : f32
    %88 = vector.broadcast %cst_82 : f32 to vector<2x128xf32>
    %89 = arith.maximumf %87, %88 : vector<2x128xf32>
    %c5_83 = arith.constant 5 : index
    %c0_84 = arith.constant 0 : index
    %c0_85 = arith.constant 0 : index
    %90 = vector.load %arg3[%c5_83, %c0_84, %c0_85] : memref<9x2x128xf32, #tpu.memory_space<vmem>>, vector<1x2x128xf32>
    %91 = vector.shape_cast %90 : vector<1x2x128xf32> to vector<2x128xf32>
    %92 = arith.mulf %89, %91 : vector<2x128xf32>
    %c5_86 = arith.constant 5 : index
    %c0_87 = arith.constant 0 : index
    %c0_88 = arith.constant 0 : index
    %93 = vector.load %arg4[%c5_86, %c0_87, %c0_88] : memref<9x128x1024xf32, #tpu.memory_space<vmem>>, vector<1x128x1024xf32>
    %94 = vector.shape_cast %93 : vector<1x128x1024xf32> to vector<128x1024xf32>
    %cst_89 = arith.constant dense<0.000000e+00> : vector<2x1024xf32>
    %95 = tpu.matmul %92, %94, %cst_89 {dimension_numbers = #tpu.dot_dimension_numbers<[1], [0], [0], [1], [0, 0, 1, 1], [], []>} : vector<2x128xf32>, vector<128x1024xf32>, vector<2x1024xf32> -> vector<2x1024xf32>
    %96 = arith.addf %80, %95 : vector<2x1024xf32>
    %c6 = arith.constant 6 : index
    %c0_90 = arith.constant 0 : index
    %c0_91 = arith.constant 0 : index
    %97 = vector.load %arg0[%c6, %c0_90, %c0_91] : memref<9x2x576xf32, #tpu.memory_space<vmem>>, vector<1x2x576xf32>
    %98 = vector.shape_cast %97 : vector<1x2x576xf32> to vector<2x576xf32>
    %c0_92 = arith.constant 0 : index
    %c0_93 = arith.constant 0 : index
    %99 = vector.load %arg1[%c0_92, %c0_93] : memref<576x128xf32, #tpu.memory_space<vmem>>, vector<576x128xf32>
    %cst_94 = arith.constant dense<0.000000e+00> : vector<2x128xf32>
    %100 = tpu.matmul %98, %99, %cst_94 {dimension_numbers = #tpu.dot_dimension_numbers<[1], [0], [0], [1], [0, 0, 1, 1], [], []>} : vector<2x576xf32>, vector<576x128xf32>, vector<2x128xf32> -> vector<2x128xf32>
    %c0_95 = arith.constant 0 : index
    %c0_96 = arith.constant 0 : index
    %101 = vector.load %arg2[%c0_95, %c0_96] : memref<1x128xf32, #tpu.memory_space<vmem>>, vector<1x128xf32>
    %102 = vector.broadcast %101 : vector<1x128xf32> to vector<2x128xf32>
    %103 = arith.addf %100, %102 : vector<2x128xf32>
    %cst_97 = arith.constant 0.000000e+00 : f32
    %104 = vector.broadcast %cst_97 : f32 to vector<2x128xf32>
    %105 = arith.maximumf %103, %104 : vector<2x128xf32>
    %c6_98 = arith.constant 6 : index
    %c0_99 = arith.constant 0 : index
    %c0_100 = arith.constant 0 : index
    %106 = vector.load %arg3[%c6_98, %c0_99, %c0_100] : memref<9x2x128xf32, #tpu.memory_space<vmem>>, vector<1x2x128xf32>
    %107 = vector.shape_cast %106 : vector<1x2x128xf32> to vector<2x128xf32>
    %108 = arith.mulf %105, %107 : vector<2x128xf32>
    %c6_101 = arith.constant 6 : index
    %c0_102 = arith.constant 0 : index
    %c0_103 = arith.constant 0 : index
    %109 = vector.load %arg4[%c6_101, %c0_102, %c0_103] : memref<9x128x1024xf32, #tpu.memory_space<vmem>>, vector<1x128x1024xf32>
    %110 = vector.shape_cast %109 : vector<1x128x1024xf32> to vector<128x1024xf32>
    %cst_104 = arith.constant dense<0.000000e+00> : vector<2x1024xf32>
    %111 = tpu.matmul %108, %110, %cst_104 {dimension_numbers = #tpu.dot_dimension_numbers<[1], [0], [0], [1], [0, 0, 1, 1], [], []>} : vector<2x128xf32>, vector<128x1024xf32>, vector<2x1024xf32> -> vector<2x1024xf32>
    %112 = arith.addf %96, %111 : vector<2x1024xf32>
    %c7 = arith.constant 7 : index
    %c0_105 = arith.constant 0 : index
    %c0_106 = arith.constant 0 : index
    %113 = vector.load %arg0[%c7, %c0_105, %c0_106] : memref<9x2x576xf32, #tpu.memory_space<vmem>>, vector<1x2x576xf32>
    %114 = vector.shape_cast %113 : vector<1x2x576xf32> to vector<2x576xf32>
    %c0_107 = arith.constant 0 : index
    %c0_108 = arith.constant 0 : index
    %115 = vector.load %arg1[%c0_107, %c0_108] : memref<576x128xf32, #tpu.memory_space<vmem>>, vector<576x128xf32>
    %cst_109 = arith.constant dense<0.000000e+00> : vector<2x128xf32>
    %116 = tpu.matmul %114, %115, %cst_109 {dimension_numbers = #tpu.dot_dimension_numbers<[1], [0], [0], [1], [0, 0, 1, 1], [], []>} : vector<2x576xf32>, vector<576x128xf32>, vector<2x128xf32> -> vector<2x128xf32>
    %c0_110 = arith.constant 0 : index
    %c0_111 = arith.constant 0 : index
    %117 = vector.load %arg2[%c0_110, %c0_111] : memref<1x128xf32, #tpu.memory_space<vmem>>, vector<1x128xf32>
    %118 = vector.broadcast %117 : vector<1x128xf32> to vector<2x128xf32>
    %119 = arith.addf %116, %118 : vector<2x128xf32>
    %cst_112 = arith.constant 0.000000e+00 : f32
    %120 = vector.broadcast %cst_112 : f32 to vector<2x128xf32>
    %121 = arith.maximumf %119, %120 : vector<2x128xf32>
    %c7_113 = arith.constant 7 : index
    %c0_114 = arith.constant 0 : index
    %c0_115 = arith.constant 0 : index
    %122 = vector.load %arg3[%c7_113, %c0_114, %c0_115] : memref<9x2x128xf32, #tpu.memory_space<vmem>>, vector<1x2x128xf32>
    %123 = vector.shape_cast %122 : vector<1x2x128xf32> to vector<2x128xf32>
    %124 = arith.mulf %121, %123 : vector<2x128xf32>
    %c7_116 = arith.constant 7 : index
    %c0_117 = arith.constant 0 : index
    %c0_118 = arith.constant 0 : index
    %125 = vector.load %arg4[%c7_116, %c0_117, %c0_118] : memref<9x128x1024xf32, #tpu.memory_space<vmem>>, vector<1x128x1024xf32>
    %126 = vector.shape_cast %125 : vector<1x128x1024xf32> to vector<128x1024xf32>
    %cst_119 = arith.constant dense<0.000000e+00> : vector<2x1024xf32>
    %127 = tpu.matmul %124, %126, %cst_119 {dimension_numbers = #tpu.dot_dimension_numbers<[1], [0], [0], [1], [0, 0, 1, 1], [], []>} : vector<2x128xf32>, vector<128x1024xf32>, vector<2x1024xf32> -> vector<2x1024xf32>
    %128 = arith.addf %112, %127 : vector<2x1024xf32>
    %c8 = arith.constant 8 : index
    %c0_120 = arith.constant 0 : index
    %c0_121 = arith.constant 0 : index
    %129 = vector.load %arg0[%c8, %c0_120, %c0_121] : memref<9x2x576xf32, #tpu.memory_space<vmem>>, vector<1x2x576xf32>
    %130 = vector.shape_cast %129 : vector<1x2x576xf32> to vector<2x576xf32>
    %c0_122 = arith.constant 0 : index
    %c0_123 = arith.constant 0 : index
    %131 = vector.load %arg1[%c0_122, %c0_123] : memref<576x128xf32, #tpu.memory_space<vmem>>, vector<576x128xf32>
    %cst_124 = arith.constant dense<0.000000e+00> : vector<2x128xf32>
    %132 = tpu.matmul %130, %131, %cst_124 {dimension_numbers = #tpu.dot_dimension_numbers<[1], [0], [0], [1], [0, 0, 1, 1], [], []>} : vector<2x576xf32>, vector<576x128xf32>, vector<2x128xf32> -> vector<2x128xf32>
    %c0_125 = arith.constant 0 : index
    %c0_126 = arith.constant 0 : index
    %133 = vector.load %arg2[%c0_125, %c0_126] : memref<1x128xf32, #tpu.memory_space<vmem>>, vector<1x128xf32>
    %134 = vector.broadcast %133 : vector<1x128xf32> to vector<2x128xf32>
    %135 = arith.addf %132, %134 : vector<2x128xf32>
    %cst_127 = arith.constant 0.000000e+00 : f32
    %136 = vector.broadcast %cst_127 : f32 to vector<2x128xf32>
    %137 = arith.maximumf %135, %136 : vector<2x128xf32>
    %c8_128 = arith.constant 8 : index
    %c0_129 = arith.constant 0 : index
    %c0_130 = arith.constant 0 : index
    %138 = vector.load %arg3[%c8_128, %c0_129, %c0_130] : memref<9x2x128xf32, #tpu.memory_space<vmem>>, vector<1x2x128xf32>
    %139 = vector.shape_cast %138 : vector<1x2x128xf32> to vector<2x128xf32>
    %140 = arith.mulf %137, %139 : vector<2x128xf32>
    %c8_131 = arith.constant 8 : index
    %c0_132 = arith.constant 0 : index
    %c0_133 = arith.constant 0 : index
    %141 = vector.load %arg4[%c8_131, %c0_132, %c0_133] : memref<9x128x1024xf32, #tpu.memory_space<vmem>>, vector<1x128x1024xf32>
    %142 = vector.shape_cast %141 : vector<1x128x1024xf32> to vector<128x1024xf32>
    %cst_134 = arith.constant dense<0.000000e+00> : vector<2x1024xf32>
    %143 = tpu.matmul %140, %142, %cst_134 {dimension_numbers = #tpu.dot_dimension_numbers<[1], [0], [0], [1], [0, 0, 1, 1], [], []>} : vector<2x128xf32>, vector<128x1024xf32>, vector<2x1024xf32> -> vector<2x1024xf32>
    %144 = arith.addf %128, %143 : vector<2x1024xf32>
    %c0_135 = arith.constant 0 : index
    %c0_136 = arith.constant 0 : index
    %145 = vector.load %arg5[%c0_135, %c0_136] : memref<1x1024xf32, #tpu.memory_space<vmem>>, vector<1x1024xf32>
    %146 = vector.broadcast %145 : vector<1x1024xf32> to vector<2x1024xf32>
    %147 = arith.addf %144, %146 : vector<2x1024xf32>
    %cst_137 = arith.constant 0.000000e+00 : f32
    %148 = vector.broadcast %cst_137 : f32 to vector<2x1024xf32>
    %149 = arith.maximumf %147, %148 : vector<2x1024xf32>
    %c0_138 = arith.constant 0 : index
    %c0_139 = arith.constant 0 : index
    %150 = vector.load %arg6[%c0_138, %c0_139] : memref<2x1024xf32, #tpu.memory_space<vmem>>, vector<2x1024xf32>
    %151 = arith.mulf %149, %150 : vector<2x1024xf32>
    %c0_140 = arith.constant 0 : index
    %c0_141 = arith.constant 0 : index
    %152 = vector.load %arg7[%c0_140, %c0_141] : memref<1024x10xf32, #tpu.memory_space<vmem>>, vector<1024x10xf32>
    %cst_142 = arith.constant dense<0.000000e+00> : vector<2x10xf32>
    %153 = tpu.matmul %151, %152, %cst_142 {dimension_numbers = #tpu.dot_dimension_numbers<[1], [0], [0], [1], [0, 0, 1, 1], [], []>} : vector<2x1024xf32>, vector<1024x10xf32>, vector<2x10xf32> -> vector<2x10xf32>
    %c0_143 = arith.constant 0 : index
    %c0_144 = arith.constant 0 : index
    %154 = vector.load %arg8[%c0_143, %c0_144] : memref<1x10xf32, #tpu.memory_space<vmem>>, vector<1x10xf32>
    %155 = vector.broadcast %154 : vector<1x10xf32> to vector<2x10xf32>
    %156 = arith.addf %153, %155 : vector<2x10xf32>
    %c0_145 = arith.constant 0 : index
    %c0_146 = arith.constant 0 : index
    %157 = vector.load %arg9[%c0_145, %c0_146] : memref<2x10xf32, #tpu.memory_space<vmem>>, vector<2x10xf32>
    tpu.vector_store %arg9[%c0_145, %c0_146], %156 {strides = array<i32>} : memref<2x10xf32, #tpu.memory_space<vmem>>, vector<2x10xf32>,
    return
  }
}

</mosaic_0001>

<bundles_post_ra>
// kernel: cnn_forward.5
= control target key start
LH: loop header
LB: loop body
LE: loop exit
PB: predicated region body
PF: predicated region fallthrough
CT: control target
= control target key end

     0   :  { %8 = vsyncpa [#allocation3], 0  ;;  %s1802_s0 = inlined_call_operand.vmem [shape: f32[450,27], index: 0, kind: input, shape index: {}]   ;;  %s1803_s1 = inlined_call_operand.hbm [shape: f32[27,32], index: 1, kind: input, shape index: {}]   ;;  %s1804_s2 = inlined_call_operand.hbm [shape: f32[1,32], index: 2, kind: input, shape index: {}]   ;;  %s1805_s3 = inlined_call_operand.vmem [shape: f32[450,32], index: 3, kind: output, shape index: {}]  }
   0x1   :  { %9 = vsyncpa [#allocation5], 0  ;;  %s1122_s12 = smov [#allocation2]   ;;  %s1074_s16 = scalar_lea.hbm %s1803_s1, 512 }
   0x2   :  { %s17_s13 = sshll.u32 %s1122_s12, 4  ;;  %p1075_p0 = scmp.ne.s32.totalorder %s1803_s1, %s1074_s16  ;;  %s18_s13 = int_to_ptr.vmem [resolvable:$true] %s17_s13 }
   0x3   :  { %p1078_p1 = scmp.lt.u32.totalorder %s1074_s16, %s1803_s1 }
   0x5   :  { %p1080_p2 = pnand %p1078_p1, %p1075_p0 }
   0x7   :  { %1083 = shalt.err (!%p1080_p2)
}
   0x8   :  { %s1084_s21 = scalar_lea.vmem %s18_s13, 512  ;;  %p1089_p4 = scmp.lt.s32.totalorder %s18_s13, %s18_s13 }
   0x9   :  { %p1085_p3 = scmp.ne.s32.totalorder %s18_s13, %s1084_s21  ;;  %p1090_p5 = scmp.lt.s32.totalorder %s1084_s21, %s1084_s21 }
   0xb   :  { %p1091_p6 = por %p1090_p5, %p1089_p4 }
   0xd   :  { %p1092_p7 = pnand %p1091_p6, %p1085_p3 }
   0xf   :  { %1095 = shalt.err (!%p1092_p7)
}
  0x10   :  { %s1123_s22 = smov 128   ;;  %s1124_s23 = smov 8  }
  0x11   :  { %23 = dma.hbm_to_vmem [thread:$0]  %s1803_s1, 512, %s18_s13, [#allocation3], %s1123_s22, %s1123_s22, %s1124_s23  }
  0x12   :  { %s1125_s26 = smov [#allocation4]   ;;  %s1096_s30 = scalar_lea.hbm %s1804_s2, 16 }
  0x13   :  { %s30_s27 = sshll.u32 %s1125_s26, 4  ;;  %p1097_p8 = scmp.ne.s32.totalorder %s1804_s2, %s1096_s30  ;;  %s31_s27 = int_to_ptr.vmem [resolvable:$true] %s30_s27 }
  0x14   :  { %p1100_p9 = scmp.lt.u32.totalorder %s1096_s30, %s1804_s2 }
  0x16   :  { %p1102_p10 = pnand %p1100_p9, %p1097_p8 }
  0x18   :  { %1105 = shalt.err (!%p1102_p10)
}
  0x19   :  { %s1106_s8 = scalar_lea.vmem %s31_s27, 16  ;;  %s1110_s1 = scalar_lea.vmem %s31_s27, 32 }
  0x1a   :  { %p1107_p11 = scmp.ne.s32.totalorder %s31_s27, %s1106_s8  ;;  %p1111_p12 = scmp.lt.s32.totalorder %s31_s27, %s31_s27 }
  0x1b   :  { %p1112_p13 = scmp.lt.s32.totalorder %s1110_s1, %s1106_s8 }
  0x1d   :  { %p1113_p0 = por %p1112_p13, %p1111_p12 }
  0x1f   :  { %p1114_p1 = pnand %p1113_p0, %p1107_p11 }
  0x21   :  { %1117 = shalt.err (!%p1114_p1)
}
  0x22   :  { %33 = dma.hbm_to_vmem [thread:$0]  %s1804_s2, 16, %s31_s27, [#allocation5]  }
  0x23   :  { %1118 = dma.done.wait [#allocation3], 512  }
  0x24   :  { %1119 = vsyncadd [#allocation3], 4294966784 }
  0x25   :  { %1120 = dma.done.wait [#allocation5], 16  }
  0x26   :  { %1121 = vsyncadd [#allocation5], 4294967280  ;;  %v1126_v0 = vmov 0.0|0.0   ;;  %vm1127_vm0 = vmmov 0   ;;  %v1128_v1 = vmov 0.0   ;;  %v97_v2 = vld [vmem:[#allocation2] sm:$0xff] }
  0x27   :  { %1055 = vmatprep.subr.bf16.mxu0 %v1126_v0  ;;  %1062 = vmatprep.subr.bf16.mxu1 %v1126_v0  ;;  %v98_v3 = vld [vmem:[#allocation2 + $0x8] sm:$0xff]  ;;  %v99_v4 = vld [vmem:[#allocation2 + $0x10] sm:$0xff]  ;;  %v100_v6 = vld [vmem:[#allocation2 + $0x18] sm:$0x7]  ;;  %vm280_vm1 = vcmask 1042432   ;;  %vm1129_vm2 = vmmov 1  }
  0x28   :  { %884 = vmatprep.mubr.msk.f32.mxu0 %vm1127_vm0, %v1128_v1  ;;  %971 = vmatprep.mubr.msk.f32.mxu1 %vm1127_vm0, %v1128_v1  ;;  %v1056_v5 = vpack.c.bf16 %v98_v3, %v97_v2  ;;  %v1059_v7 = vpack.c.bf16 %v100_v6, %v99_v4  ;;  %vm1060_vm3 = vmpackc.low %vm280_vm1, %vm1129_vm2  ;;  %v40_v8 = vld [vmem:[%s1802_s0] sm:$0xff]  ;;  %vm108_vm4 = vcmask 220160   ;;  %v69_v9 = vld [vmem:[%s1802_s0 + $0xe8] sm:$0xff]  ;;  %vm691_vm5 = vcmask 261120  }
  0x29   :  { %v41_v10 = vld [vmem:[%s1802_s0 + $0x8] sm:$0xff]  ;;  %v70_v11 = vld [vmem:[%s1802_s0 + $0xf0] sm:$0xff]  ;;  %v71_v13 = vld [vmem:[%s1802_s0 + $0xf8] sm:$0xff]  ;;  %vm748_vm6 = vcmask 254976  }
  0x2a   :  { %1057 = vmatpush3.bf16.msra.mxu0 %v1056_v5  ;;  %1064 = vmatpush3.bf16.msra.mxu1 %v1056_v5  ;;  %v42_v12 = vld [vmem:[%s1802_s0 + $0x10] sm:$0xff]  ;;  %v43_v14 = vld [vmem:[%s1802_s0 + $0x18] sm:$0xff]  ;;  %v72_v15 = vld [vmem:[%s1802_s0 + $0x100] sm:$0xff] }
  0x2b   :  { %1058 = vmatprep.subr.bf16.mxu0 %v1126_v0  ;;  %1063 = vmatprep.subr.bf16.mxu1 %v1126_v0  ;;  %v44_v16 = vld [vmem:[%s1802_s0 + $0x20] sm:$0xff]  ;;  %v73_v17 = vld [vmem:[%s1802_s0 + $0x108] sm:$0xff]  ;;  %v74_v19 = vld [vmem:[%s1802_s0 + $0x110] sm:$0xff] }
  0x2c   :  { %v45_v18 = vld [vmem:[%s1802_s0 + $0x28] sm:$0xff]  ;;  %v46_v20 = vld [vmem:[%s1802_s0 + $0x30] sm:$0xff]  ;;  %v75_v21 = vld [vmem:[%s1802_s0 + $0x118] sm:$0xff] }
  0x2d   :  { %v47_v22 = vld [vmem:[%s1802_s0 + $0x38] sm:$0xff]  ;;  %v76_v23 = vld [vmem:[%s1802_s0 + $0x120] sm:$0xff]  ;;  %v77_v25 = vld [vmem:[%s1802_s0 + $0x128] sm:$0xff] }
  0x2e   :  { %1061 = vmatpush3.bf16.msk.msra.mxu0 %vm1060_vm3, %v1059_v7  ;;  %1065 = vmatpush3.bf16.msk.msra.mxu1 %vm1060_vm3, %v1059_v7  ;;  %v48_v24 = vld [vmem:[%s1802_s0 + $0x40] sm:$0xff]  ;;  %v49_v26 = vld [vmem:[%s1802_s0 + $0x48] sm:$0xff]  ;;  %v78_v27 = vld [vmem:[%s1802_s0 + $0x130] sm:$0xff] }
  0x2f   :  { %v50_v28 = vld [vmem:[%s1802_s0 + $0x50] sm:$0xff]  ;;  %v79_v29 = vld [vmem:[%s1802_s0 + $0x138] sm:$0xff]  ;;  %v80_v31 = vld [vmem:[%s1802_s0 + $0x140] sm:$0xff] }
  0x30   :  { %v51_v30 = vld [vmem:[%s1802_s0 + $0x58] sm:$0xff]  ;;  %v52_v32 = vld [vmem:[%s1802_s0 + $0x60] sm:$0xff]  ;;  %v81_v33 = vld [vmem:[%s1802_s0 + $0x148] sm:$0xff] }
  0x31   :  { %885 = vmatmul.mubr.msk.f32.vlgmr.msra.gmra.mrb[0].mxu0 %vm108_vm4, %v40_v8  ;;  %972 = vmatmul.mubr.msk.f32.vlgmr.msra.gmra.mrb[0].mxu1 %vm108_vm4, %v69_v9  ;;  %v53_v34 = vld [vmem:[%s1802_s0 + $0x68] sm:$0xff]  ;;  %v82_v35 = vld [vmem:[%s1802_s0 + $0x150] sm:$0xff]  ;;  %v83_v37 = vld [vmem:[%s1802_s0 + $0x158] sm:$0xff] }
  0x32   :  { %887 = vmatprep.mubr.msk.f32.mxu0 %vm1127_vm0, %v1128_v1  ;;  %974 = vmatprep.mubr.msk.f32.mxu1 %vm1127_vm0, %v1128_v1  ;;  %v54_v36 = vld [vmem:[%s1802_s0 + $0x70] sm:$0xff]  ;;  %v55_v38 = vld [vmem:[%s1802_s0 + $0x78] sm:$0xff]  ;;  %v84_v39 = vld [vmem:[%s1802_s0 + $0x160] sm:$0xff] }
  0x33   :  { %v56_v40 = vld [vmem:[%s1802_s0 + $0x80] sm:$0xff]  ;;  %v85_v41 = vld [vmem:[%s1802_s0 + $0x168] sm:$0xff]  ;;  %v86_v43 = vld [vmem:[%s1802_s0 + $0x170] sm:$0xff] }
  0x34   :  { %v57_v42 = vld [vmem:[%s1802_s0 + $0x88] sm:$0xff]  ;;  %v58_v44 = vld [vmem:[%s1802_s0 + $0x90] sm:$0xff]  ;;  %v87_v45 = vld [vmem:[%s1802_s0 + $0x178] sm:$0xff] }
  0x35   :  { %888 = vmatmul.mubr.msk.f32.gmra.mrb[2].mxu0 %vm108_vm4, %v41_v10  ;;  %975 = vmatmul.mubr.msk.f32.gmra.mrb[2].mxu1 %vm108_vm4, %v70_v11  ;;  %v59_v46 = vld [vmem:[%s1802_s0 + $0x98] sm:$0xff]  ;;  %v88_v47 = vld [vmem:[%s1802_s0 + $0x180] sm:$0xff]  ;;  %v89_v49 = vld [vmem:[%s1802_s0 + $0x188] sm:$0xff] }
  0x36   :  { %890 = vmatprep.mubr.msk.f32.mxu0 %vm1127_vm0, %v1128_v1  ;;  %977 = vmatprep.mubr.msk.f32.mxu1 %vm1127_vm0, %v1128_v1  ;;  %v60_v48 = vld [vmem:[%s1802_s0 + $0xa0] sm:$0xff]  ;;  %v61_v50 = vld [vmem:[%s1802_s0 + $0xa8] sm:$0xff]  ;;  %v90_v51 = vld [vmem:[%s1802_s0 + $0x190] sm:$0xff] }
  0x37   :  { %v62_v52 = vld [vmem:[%s1802_s0 + $0xb0] sm:$0xff]  ;;  %v91_v53 = vld [vmem:[%s1802_s0 + $0x198] sm:$0xff]  ;;  %v92_v55 = vld [vmem:[%s1802_s0 + $0x1a0] sm:$0xff] }
  0x38   :  { %v63_v54 = vld [vmem:[%s1802_s0 + $0xb8] sm:$0xff]  ;;  %v64_v56 = vld [vmem:[%s1802_s0 + $0xc0] sm:$0xff]  ;;  %v93_v57 = vld [vmem:[%s1802_s0 + $0x1a8] sm:$0xff] }
  0x39   :  { %891 = vmatmul.mubr.msk.f32.gmra.mrb[4].mxu0 %vm108_vm4, %v42_v12  ;;  %978 = vmatmul.mubr.msk.f32.gmra.mrb[4].mxu1 %vm108_vm4, %v71_v13  ;;  %v65_v58 = vld [vmem:[%s1802_s0 + $0xc8] sm:$0xff]  ;;  %v94_v59 = vld [vmem:[%s1802_s0 + $0x1b0] sm:$0xff]  ;;  %v95_v61 = vld [vmem:[%s1802_s0 + $0x1b8] sm:$0xff] }
  0x3a   :  { %893 = vmatprep.mubr.msk.f32.mxu0 %vm1127_vm0, %v1128_v1  ;;  %980 = vmatprep.mubr.msk.f32.mxu1 %vm1127_vm0, %v1128_v1  ;;  %v66_v60 = vld [vmem:[%s1802_s0 + $0xd0] sm:$0xff]  ;;  %v67_v62 = vld [vmem:[%s1802_s0 + $0xd8] sm:$0xff]  ;;  %v96_v63 = vld [vmem:[%s1802_s0 + $0x1c0] sm:$0x3] }
  0x3b   :  { %v68_v0 = vld [vmem:[%s1802_s0 + $0xe0] sm:$0xff] }
  0x3c   :  { %v1516_v2 = vld [vmem:[#allocation4] ss:$0 sm:$0xff] }
  0x3d   :  { %894 = vmatmul.mubr.msk.f32.gmra.mrb[6].mxu0 %vm108_vm4, %v43_v14  ;;  %981 = vmatmul.mubr.msk.f32.gmra.mrb[6].mxu1 %vm108_vm4, %v72_v15 }
  0x3e   :  { %896 = vmatprep.mubr.msk.f32.mxu0 %vm1127_vm0, %v1128_v1  ;;  %983 = vmatprep.mubr.msk.f32.mxu1 %vm1127_vm0, %v1128_v1 }
  0x41   :  { %897 = vmatmul.mubr.msk.f32.gmra.mrb[8].mxu0 %vm108_vm4, %v44_v16  ;;  %984 = vmatmul.mubr.msk.f32.gmra.mrb[8].mxu1 %vm108_vm4, %v73_v17 }
  0x42   :  { %899 = vmatprep.mubr.msk.f32.mxu0 %vm1127_vm0, %v1128_v1  ;;  %986 = vmatprep.mubr.msk.f32.mxu1 %vm1127_vm0, %v1128_v1 }
  0x45   :  { %900 = vmatmul.mubr.msk.f32.gmra.mrb[10].mxu0 %vm108_vm4, %v45_v18  ;;  %987 = vmatmul.mubr.msk.f32.gmra.mrb[10].mxu1 %vm108_vm4, %v74_v19 }
  0x46   :  { %902 = vmatprep.mubr.msk.f32.mxu0 %vm1127_vm0, %v1128_v1  ;;  %989 = vmatprep.mubr.msk.f32.mxu1 %vm1127_vm0, %v1128_v1 }
  0x49   :  { %903 = vmatmul.mubr.msk.f32.gmra.mrb[12].mxu0 %vm108_vm4, %v46_v20  ;;  %990 = vmatmul.mubr.msk.f32.gmra.mrb[12].mxu1 %vm108_vm4, %v75_v21 }
  0x4a   :  { %905 = vmatprep.mubr.msk.f32.mxu0 %vm1127_vm0, %v1128_v1  ;;  %992 = vmatprep.mubr.msk.f32.mxu1 %vm1127_vm0, %v1128_v1 }
  0x4d   :  { %906 = vmatmul.mubr.msk.f32.gmra.mrb[14].mxu0 %vm108_vm4, %v47_v22  ;;  %993 = vmatmul.mubr.msk.f32.gmra.mrb[14].mxu1 %vm108_vm4, %v76_v23 }
  0x4e   :  { %908 = vmatprep.mubr.msk.f32.mxu0 %vm1127_vm0, %v1128_v1  ;;  %995 = vmatprep.mubr.msk.f32.mxu1 %vm1127_vm0, %v1128_v1 }
  0x51   :  { %909 = vmatmul.mubr.msk.f32.gmra.mrb[16].mxu0 %vm108_vm4, %v48_v24  ;;  %996 = vmatmul.mubr.msk.f32.gmra.mrb[16].mxu1 %vm108_vm4, %v77_v25 }
  0x52   :  { %911 = vmatprep.mubr.msk.f32.mxu0 %vm1127_vm0, %v1128_v1  ;;  %998 = vmatprep.mubr.msk.f32.mxu1 %vm1127_vm0, %v1128_v1 }
  0x55   :  { %912 = vmatmul.mubr.msk.f32.gmra.mrb[18].mxu0 %vm108_vm4, %v49_v26  ;;  %999 = vmatmul.mubr.msk.f32.gmra.mrb[18].mxu1 %vm108_vm4, %v78_v27 }
  0x56   :  { %914 = vmatprep.mubr.msk.f32.mxu0 %vm1127_vm0, %v1128_v1  ;;  %1001 = vmatprep.mubr.msk.f32.mxu1 %vm1127_vm0, %v1128_v1 }
  0x59   :  { %915 = vmatmul.mubr.msk.f32.gmra.mrb[20].mxu0 %vm108_vm4, %v50_v28  ;;  %1002 = vmatmul.mubr.msk.f32.gmra.mrb[20].mxu1 %vm108_vm4, %v79_v29 }
  0x5a   :  { %917 = vmatprep.mubr.msk.f32.mxu0 %vm1127_vm0, %v1128_v1  ;;  %1004 = vmatprep.mubr.msk.f32.mxu1 %vm1127_vm0, %v1128_v1 }
  0x5d   :  { %918 = vmatmul.mubr.msk.f32.gmra.mrb[22].mxu0 %vm108_vm4, %v51_v30  ;;  %1005 = vmatmul.mubr.msk.f32.gmra.mrb[22].mxu1 %vm108_vm4, %v80_v31 }
  0x5e   :  { %920 = vmatprep.mubr.msk.f32.mxu0 %vm1127_vm0, %v1128_v1  ;;  %1007 = vmatprep.mubr.msk.f32.mxu1 %vm1127_vm0, %v1128_v1 }
  0x61   :  { %921 = vmatmul.mubr.msk.f32.gmra.mrb[24].mxu0 %vm108_vm4, %v52_v32  ;;  %1008 = vmatmul.mubr.msk.f32.gmra.mrb[24].mxu1 %vm108_vm4, %v81_v33 }
  0x62   :  { %923 = vmatprep.mubr.msk.f32.mxu0 %vm1127_vm0, %v1128_v1  ;;  %1010 = vmatprep.mubr.msk.f32.mxu1 %vm1127_vm0, %v1128_v1 }
  0x65   :  { %924 = vmatmul.mubr.msk.f32.gmra.mrb[26].mxu0 %vm108_vm4, %v53_v34  ;;  %1011 = vmatmul.mubr.msk.f32.gmra.mrb[26].mxu1 %vm108_vm4, %v82_v35 }
  0x66   :  { %926 = vmatprep.mubr.msk.f32.mxu0 %vm1127_vm0, %v1128_v1  ;;  %1013 = vmatprep.mubr.msk.f32.mxu1 %vm1127_vm0, %v1128_v1 }
  0x69   :  { %927 = vmatmul.mubr.msk.f32.gmra.mrb[28].mxu0 %vm108_vm4, %v54_v36  ;;  %1014 = vmatmul.mubr.msk.f32.gmra.mrb[28].mxu1 %vm108_vm4, %v83_v37 }
  0x6a   :  { %929 = vmatprep.mubr.msk.f32.mxu0 %vm1127_vm0, %v1128_v1  ;;  %1016 = vmatprep.mubr.msk.f32.mxu1 %vm1127_vm0, %v1128_v1 }
  0x6d   :  { %930 = vmatmul.mubr.msk.f32.gmra.mrb[30].mxu0 %vm108_vm4, %v55_v38  ;;  %1017 = vmatmul.mubr.msk.f32.gmra.mrb[30].mxu1 %vm108_vm4, %v84_v39 }
  0x6e   :  { %932 = vmatprep.mubr.msk.f32.mxu0 %vm1127_vm0, %v1128_v1  ;;  %1019 = vmatprep.mubr.msk.f32.mxu1 %vm1127_vm0, %v1128_v1 }
  0x71   :  { %933 = vmatmul.mubr.msk.f32.gmra.mrb[32].mxu0 %vm108_vm4, %v56_v40  ;;  %1020 = vmatmul.mubr.msk.f32.gmra.mrb[32].mxu1 %vm108_vm4, %v85_v41 }
  0x72   :  { %935 = vmatprep.mubr.msk.f32.mxu0 %vm1127_vm0, %v1128_v1  ;;  %1022 = vmatprep.mubr.msk.f32.mxu1 %vm1127_vm0, %v1128_v1 }
  0x75   :  { %936 = vmatmul.mubr.msk.f32.gmra.mrb[34].mxu0 %vm108_vm4, %v57_v42  ;;  %1023 = vmatmul.mubr.msk.f32.gmra.mrb[34].mxu1 %vm108_vm4, %v86_v43 }
  0x76   :  { %938 = vmatprep.mubr.msk.f32.mxu0 %vm1127_vm0, %v1128_v1  ;;  %1025 = vmatprep.mubr.msk.f32.mxu1 %vm1127_vm0, %v1128_v1 }
  0x79   :  { %939 = vmatmul.mubr.msk.f32.gmra.mrb[36].mxu0 %vm108_vm4, %v58_v44  ;;  %1026 = vmatmul.mubr.msk.f32.gmra.mrb[36].mxu1 %vm108_vm4, %v87_v45 }
  0x7a   :  { %941 = vmatprep.mubr.msk.f32.mxu0 %vm1127_vm0, %v1128_v1  ;;  %1028 = vmatprep.mubr.msk.f32.mxu1 %vm1127_vm0, %v1128_v1 }
  0x7d   :  { %942 = vmatmul.mubr.msk.f32.gmra.mrb[38].mxu0 %vm108_vm4, %v59_v46  ;;  %1029 = vmatmul.mubr.msk.f32.gmra.mrb[38].mxu1 %vm108_vm4, %v88_v47 }
  0x7e   :  { %944 = vmatprep.mubr.msk.f32.mxu0 %vm1127_vm0, %v1128_v1  ;;  %1031 = vmatprep.mubr.msk.f32.mxu1 %vm1127_vm0, %v1128_v1 }
  0x81   :  { %945 = vmatmul.mubr.msk.f32.gmra.mrb[40].mxu0 %vm108_vm4, %v60_v48  ;;  %1032 = vmatmul.mubr.msk.f32.gmra.mrb[40].mxu1 %vm108_vm4, %v89_v49 }
  0x82   :  { %947 = vmatprep.mubr.msk.f32.mxu0 %vm1127_vm0, %v1128_v1  ;;  %1034 = vmatprep.mubr.msk.f32.mxu1 %vm1127_vm0, %v1128_v1 }
  0x85   :  { %948 = vmatmul.mubr.msk.f32.gmra.mrb[42].mxu0 %vm108_vm4, %v61_v50  ;;  %1035 = vmatmul.mubr.msk.f32.gmra.mrb[42].mxu1 %vm108_vm4, %v90_v51 }
  0x86   :  { %950 = vmatprep.mubr.msk.f32.mxu0 %vm1127_vm0, %v1128_v1  ;;  %1037 = vmatprep.mubr.msk.f32.mxu1 %vm1127_vm0, %v1128_v1 }
  0x89   :  { %951 = vmatmul.mubr.msk.f32.gmra.mrb[44].mxu0 %vm108_vm4, %v62_v52  ;;  %1038 = vmatmul.mubr.msk.f32.gmra.mrb[44].mxu1 %vm108_vm4, %v91_v53 }
  0x8a   :  { %953 = vmatprep.mubr.msk.f32.mxu0 %vm1127_vm0, %v1128_v1  ;;  %1040 = vmatprep.mubr.msk.f32.mxu1 %vm1127_vm0, %v1128_v1 }
  0x8d   :  { %954 = vmatmul.mubr.msk.f32.gmra.mrb[46].mxu0 %vm108_vm4, %v63_v54  ;;  %1041 = vmatmul.mubr.msk.f32.gmra.mrb[46].mxu1 %vm108_vm4, %v92_v55 }
  0x8e   :  { %956 = vmatprep.mubr.msk.f32.mxu0 %vm1127_vm0, %v1128_v1  ;;  %1043 = vmatprep.mubr.msk.f32.mxu1 %vm1127_vm0, %v1128_v1 }
  0x91   :  { %957 = vmatmul.mubr.msk.f32.gmra.mrb[48].mxu0 %vm108_vm4, %v64_v56  ;;  %1044 = vmatmul.mubr.msk.f32.gmra.mrb[48].mxu1 %vm108_vm4, %v93_v57 }
  0x92   :  { %959 = vmatprep.mubr.msk.f32.mxu0 %vm1127_vm0, %v1128_v1  ;;  %1046 = vmatprep.mubr.msk.f32.mxu1 %vm1127_vm0, %v1128_v1 }
  0x95   :  { %960 = vmatmul.mubr.msk.f32.gmra.mrb[50].mxu0 %vm108_vm4, %v65_v58  ;;  %1047 = vmatmul.mubr.msk.f32.gmra.mrb[50].mxu1 %vm108_vm4, %v94_v59 }
  0x96   :  { %962 = vmatprep.mubr.msk.f32.mxu0 %vm1127_vm0, %v1128_v1  ;;  %1049 = vmatprep.mubr.msk.f32.mxu1 %vm1127_vm0, %v1128_v1 }
  0x99   :  { %963 = vmatmul.mubr.msk.f32.gmra.mrb[52].mxu0 %vm108_vm4, %v66_v60  ;;  %1050 = vmatmul.mubr.msk.f32.gmra.mrb[52].mxu1 %vm108_vm4, %v95_v61 }
  0x9a   :  { %965 = vmatprep.mubr.msk.f32.mxu0 %vm1127_vm0, %v1128_v1  ;;  %1052 = vmatprep.mubr.msk.f32.mxu1 %vm1127_vm0, %v1128_v1 }
  0x9d   :  { %966 = vmatmul.mubr.msk.f32.gmra.mrb[54].mxu0 %vm108_vm4, %v67_v62  ;;  %1053 = vmatmul.mubr.msk.f32.gmra.mrb[54].mxu1 %vm108_vm4, %v96_v63 }
  0x9e   :  { %968 = vmatprep.mubr.msk.f32.mxu0 %vm1127_vm0, %v1128_v1 }
  0xa1   :  { %969 = vmatmul.mubr.msk.f32.gmra.mrb[56].mxu0 %vm108_vm4, %v68_v0 }
 0x104   :  { %v350_v3 = vpop.f32.mrb[0].mxu0  ;;  %v495_v4 = vpop.f32.mrb[0].mxu1 }
 0x105   :  { %v351_v5 = vadd.f32 %v1516_v2, %v350_v3  ;;  %v886_v6 = vpop.f32.mrb[1].mxu0  ;;  %v496_v7 = vadd.f32 %v1516_v2, %v495_v4  ;;  %v973_v8 = vpop.f32.mrb[1].mxu1 }
 0x107   :  { %v634_v9 = vmax.f32 %v351_v5, 0.0  ;;  %v663_v10 = vmax.f32 %v496_v7, 0.0 }
 0x108   :  { %v355_v1 = vpop.f32.mrb[2].mxu0  ;;  %v500_v11 = vpop.f32.mrb[2].mxu1 }
 0x109   :  { %692 = vst.msk [vmem:[%s1805_s3] sm:$0xff] %vm691_vm5, %v634_v9  ;;  %721 = vst.msk [vmem:[%s1805_s3 + $0xe8] sm:$0xff] %vm691_vm5, %v663_v10  ;;  %v356_v12 = vadd.f32 %v1516_v2, %v355_v1  ;;  %v889_v13 = vpop.f32.mrb[3].mxu0  ;;  %v501_v14 = vadd.f32 %v1516_v2, %v500_v11  ;;  %v976_v15 = vpop.f32.mrb[3].mxu1 }
 0x10b   :  { %v635_v16 = vmax.f32 %v356_v12, 0.0  ;;  %v664_v17 = vmax.f32 %v501_v14, 0.0 }
 0x10c   :  { %v360_v18 = vpop.f32.mrb[4].mxu0  ;;  %v505_v19 = vpop.f32.mrb[4].mxu1 }
 0x10d   :  { %693 = vst.msk [vmem:[%s1805_s3 + $0x8] sm:$0xff] %vm691_vm5, %v635_v16  ;;  %722 = vst.msk [vmem:[%s1805_s3 + $0xf0] sm:$0xff] %vm691_vm5, %v664_v17  ;;  %v361_v20 = vadd.f32 %v1516_v2, %v360_v18  ;;  %v892_v21 = vpop.f32.mrb[5].mxu0  ;;  %v506_v22 = vadd.f32 %v1516_v2, %v505_v19  ;;  %v979_v23 = vpop.f32.mrb[5].mxu1 }
 0x10f   :  { %v636_v24 = vmax.f32 %v361_v20, 0.0  ;;  %v665_v25 = vmax.f32 %v506_v22, 0.0 }
 0x110   :  { %v365_v26 = vpop.f32.mrb[6].mxu0  ;;  %v510_v27 = vpop.f32.mrb[6].mxu1 }
 0x111   :  { %694 = vst.msk [vmem:[%s1805_s3 + $0x10] sm:$0xff] %vm691_vm5, %v636_v24  ;;  %723 = vst.msk [vmem:[%s1805_s3 + $0xf8] sm:$0xff] %vm691_vm5, %v665_v25  ;;  %v366_v28 = vadd.f32 %v1516_v2, %v365_v26  ;;  %v895_v29 = vpop.f32.mrb[7].mxu0  ;;  %v511_v30 = vadd.f32 %v1516_v2, %v510_v27  ;;  %v982_v31 = vpop.f32.mrb[7].mxu1 }
 0x113   :  { %v637_v32 = vmax.f32 %v366_v28, 0.0  ;;  %v666_v33 = vmax.f32 %v511_v30, 0.0 }
 0x114   :  { %v370_v34 = vpop.f32.mrb[8].mxu0  ;;  %v515_v35 = vpop.f32.mrb[8].mxu1 }
 0x115   :  { %695 = vst.msk [vmem:[%s1805_s3 + $0x18] sm:$0xff] %vm691_vm5, %v637_v32  ;;  %724 = vst.msk [vmem:[%s1805_s3 + $0x100] sm:$0xff] %vm691_vm5, %v666_v33  ;;  %v371_v36 = vadd.f32 %v1516_v2, %v370_v34  ;;  %v898_v37 = vpop.f32.mrb[9].mxu0  ;;  %v516_v38 = vadd.f32 %v1516_v2, %v515_v35  ;;  %v985_v39 = vpop.f32.mrb[9].mxu1 }
 0x117   :  { %v638_v40 = vmax.f32 %v371_v36, 0.0  ;;  %v667_v41 = vmax.f32 %v516_v38, 0.0 }
 0x118   :  { %v375_v42 = vpop.f32.mrb[10].mxu0  ;;  %v520_v43 = vpop.f32.mrb[10].mxu1 }
 0x119   :  { %696 = vst.msk [vmem:[%s1805_s3 + $0x20] sm:$0xff] %vm691_vm5, %v638_v40  ;;  %725 = vst.msk [vmem:[%s1805_s3 + $0x108] sm:$0xff] %vm691_vm5, %v667_v41  ;;  %v376_v44 = vadd.f32 %v1516_v2, %v375_v42  ;;  %v901_v45 = vpop.f32.mrb[11].mxu0  ;;  %v521_v46 = vadd.f32 %v1516_v2, %v520_v43  ;;  %v988_v47 = vpop.f32.mrb[11].mxu1 }
 0x11b   :  { %v639_v48 = vmax.f32 %v376_v44, 0.0  ;;  %v668_v49 = vmax.f32 %v521_v46, 0.0 }
 0x11c   :  { %v380_v50 = vpop.f32.mrb[12].mxu0  ;;  %v525_v51 = vpop.f32.mrb[12].mxu1 }
 0x11d   :  { %697 = vst.msk [vmem:[%s1805_s3 + $0x28] sm:$0xff] %vm691_vm5, %v639_v48  ;;  %726 = vst.msk [vmem:[%s1805_s3 + $0x110] sm:$0xff] %vm691_vm5, %v668_v49  ;;  %v381_v52 = vadd.f32 %v1516_v2, %v380_v50  ;;  %v904_v53 = vpop.f32.mrb[13].mxu0  ;;  %v526_v54 = vadd.f32 %v1516_v2, %v525_v51  ;;  %v991_v55 = vpop.f32.mrb[13].mxu1 }
 0x11f   :  { %v640_v56 = vmax.f32 %v381_v52, 0.0  ;;  %v669_v57 = vmax.f32 %v526_v54, 0.0 }
 0x120   :  { %v385_v58 = vpop.f32.mrb[14].mxu0  ;;  %v530_v59 = vpop.f32.mrb[14].mxu1 }
 0x121   :  { %698 = vst.msk [vmem:[%s1805_s3 + $0x30] sm:$0xff] %vm691_vm5, %v640_v56  ;;  %727 = vst.msk [vmem:[%s1805_s3 + $0x118] sm:$0xff] %vm691_vm5, %v669_v57  ;;  %v386_v60 = vadd.f32 %v1516_v2, %v385_v58  ;;  %v907_v61 = vpop.f32.mrb[15].mxu0  ;;  %v531_v62 = vadd.f32 %v1516_v2, %v530_v59  ;;  %v994_v63 = vpop.f32.mrb[15].mxu1 }
 0x123   :  { %v641_v0 = vmax.f32 %v386_v60, 0.0  ;;  %v670_v3 = vmax.f32 %v531_v62, 0.0 }
 0x124   :  { %v390_v4 = vpop.f32.mrb[16].mxu0  ;;  %v535_v5 = vpop.f32.mrb[16].mxu1 }
 0x125   :  { %699 = vst.msk [vmem:[%s1805_s3 + $0x38] sm:$0xff] %vm691_vm5, %v641_v0  ;;  %728 = vst.msk [vmem:[%s1805_s3 + $0x120] sm:$0xff] %vm691_vm5, %v670_v3  ;;  %v391_v6 = vadd.f32 %v1516_v2, %v390_v4  ;;  %v910_v7 = vpop.f32.mrb[17].mxu0  ;;  %v536_v8 = vadd.f32 %v1516_v2, %v535_v5  ;;  %v997_v9 = vpop.f32.mrb[17].mxu1 }
 0x127   :  { %v642_v10 = vmax.f32 %v391_v6, 0.0  ;;  %v671_v1 = vmax.f32 %v536_v8, 0.0 }
 0x128   :  { %v395_v11 = vpop.f32.mrb[18].mxu0  ;;  %v540_v12 = vpop.f32.mrb[18].mxu1 }
 0x129   :  { %700 = vst.msk [vmem:[%s1805_s3 + $0x40] sm:$0xff] %vm691_vm5, %v642_v10  ;;  %729 = vst.msk [vmem:[%s1805_s3 + $0x128] sm:$0xff] %vm691_vm5, %v671_v1  ;;  %v396_v13 = vadd.f32 %v1516_v2, %v395_v11  ;;  %v913_v14 = vpop.f32.mrb[19].mxu0  ;;  %v541_v15 = vadd.f32 %v1516_v2, %v540_v12  ;;  %v1000_v16 = vpop.f32.mrb[19].mxu1 }
 0x12b   :  { %v643_v17 = vmax.f32 %v396_v13, 0.0  ;;  %v672_v18 = vmax.f32 %v541_v15, 0.0 }
 0x12c   :  { %v400_v19 = vpop.f32.mrb[20].mxu0  ;;  %v545_v20 = vpop.f32.mrb[20].mxu1 }
 0x12d   :  { %701 = vst.msk [vmem:[%s1805_s3 + $0x48] sm:$0xff] %vm691_vm5, %v643_v17  ;;  %730 = vst.msk [vmem:[%s1805_s3 + $0x130] sm:$0xff] %vm691_vm5, %v672_v18  ;;  %v401_v21 = vadd.f32 %v1516_v2, %v400_v19  ;;  %v916_v22 = vpop.f32.mrb[21].mxu0  ;;  %v546_v23 = vadd.f32 %v1516_v2, %v545_v20  ;;  %v1003_v24 = vpop.f32.mrb[21].mxu1 }
 0x12f   :  { %v644_v25 = vmax.f32 %v401_v21, 0.0  ;;  %v673_v26 = vmax.f32 %v546_v23, 0.0 }
 0x130   :  { %v405_v27 = vpop.f32.mrb[22].mxu0  ;;  %v550_v28 = vpop.f32.mrb[22].mxu1 }
 0x131   :  { %702 = vst.msk [vmem:[%s1805_s3 + $0x50] sm:$0xff] %vm691_vm5, %v644_v25  ;;  %731 = vst.msk [vmem:[%s1805_s3 + $0x138] sm:$0xff] %vm691_vm5, %v673_v26  ;;  %v406_v29 = vadd.f32 %v1516_v2, %v405_v27  ;;  %v919_v30 = vpop.f32.mrb[23].mxu0  ;;  %v551_v31 = vadd.f32 %v1516_v2, %v550_v28  ;;  %v1006_v32 = vpop.f32.mrb[23].mxu1 }
 0x133   :  { %v645_v33 = vmax.f32 %v406_v29, 0.0  ;;  %v674_v34 = vmax.f32 %v551_v31, 0.0 }
 0x134   :  { %v410_v35 = vpop.f32.mrb[24].mxu0  ;;  %v555_v36 = vpop.f32.mrb[24].mxu1 }
 0x135   :  { %703 = vst.msk [vmem:[%s1805_s3 + $0x58] sm:$0xff] %vm691_vm5, %v645_v33  ;;  %732 = vst.msk [vmem:[%s1805_s3 + $0x140] sm:$0xff] %vm691_vm5, %v674_v34  ;;  %v411_v37 = vadd.f32 %v1516_v2, %v410_v35  ;;  %v922_v38 = vpop.f32.mrb[25].mxu0  ;;  %v556_v39 = vadd.f32 %v1516_v2, %v555_v36  ;;  %v1009_v40 = vpop.f32.mrb[25].mxu1 }
 0x137   :  { %v646_v41 = vmax.f32 %v411_v37, 0.0  ;;  %v675_v42 = vmax.f32 %v556_v39, 0.0 }
 0x138   :  { %v415_v43 = vpop.f32.mrb[26].mxu0  ;;  %v560_v44 = vpop.f32.mrb[26].mxu1 }
 0x139   :  { %704 = vst.msk [vmem:[%s1805_s3 + $0x60] sm:$0xff] %vm691_vm5, %v646_v41  ;;  %733 = vst.msk [vmem:[%s1805_s3 + $0x148] sm:$0xff] %vm691_vm5, %v675_v42  ;;  %v416_v45 = vadd.f32 %v1516_v2, %v415_v43  ;;  %v925_v46 = vpop.f32.mrb[27].mxu0  ;;  %v561_v47 = vadd.f32 %v1516_v2, %v560_v44  ;;  %v1012_v48 = vpop.f32.mrb[27].mxu1 }
 0x13b   :  { %v647_v49 = vmax.f32 %v416_v45, 0.0  ;;  %v676_v50 = vmax.f32 %v561_v47, 0.0 }
 0x13c   :  { %v420_v51 = vpop.f32.mrb[28].mxu0  ;;  %v565_v52 = vpop.f32.mrb[28].mxu1 }
 0x13d   :  { %705 = vst.msk [vmem:[%s1805_s3 + $0x68] sm:$0xff] %vm691_vm5, %v647_v49  ;;  %734 = vst.msk [vmem:[%s1805_s3 + $0x150] sm:$0xff] %vm691_vm5, %v676_v50  ;;  %v421_v53 = vadd.f32 %v1516_v2, %v420_v51  ;;  %v928_v54 = vpop.f32.mrb[29].mxu0  ;;  %v566_v55 = vadd.f32 %v1516_v2, %v565_v52  ;;  %v1015_v56 = vpop.f32.mrb[29].mxu1 }
 0x13f   :  { %v648_v57 = vmax.f32 %v421_v53, 0.0  ;;  %v677_v58 = vmax.f32 %v566_v55, 0.0 }
 0x140   :  { %v425_v59 = vpop.f32.mrb[30].mxu0  ;;  %v570_v60 = vpop.f32.mrb[30].mxu1 }
 0x141   :  { %706 = vst.msk [vmem:[%s1805_s3 + $0x70] sm:$0xff] %vm691_vm5, %v648_v57  ;;  %735 = vst.msk [vmem:[%s1805_s3 + $0x158] sm:$0xff] %vm691_vm5, %v677_v58  ;;  %v426_v61 = vadd.f32 %v1516_v2, %v425_v59  ;;  %v931_v62 = vpop.f32.mrb[31].mxu0  ;;  %v571_v63 = vadd.f32 %v1516_v2, %v570_v60  ;;  %v1018_v0 = vpop.f32.mrb[31].mxu1 }
 0x143   :  { %v649_v3 = vmax.f32 %v426_v61, 0.0  ;;  %v678_v4 = vmax.f32 %v571_v63, 0.0 }
 0x144   :  { %v430_v5 = vpop.f32.mrb[32].mxu0  ;;  %v575_v6 = vpop.f32.mrb[32].mxu1 }
 0x145   :  { %707 = vst.msk [vmem:[%s1805_s3 + $0x78] sm:$0xff] %vm691_vm5, %v649_v3  ;;  %736 = vst.msk [vmem:[%s1805_s3 + $0x160] sm:$0xff] %vm691_vm5, %v678_v4  ;;  %v431_v7 = vadd.f32 %v1516_v2, %v430_v5  ;;  %v934_v8 = vpop.f32.mrb[33].mxu0  ;;  %v576_v9 = vadd.f32 %v1516_v2, %v575_v6  ;;  %v1021_v10 = vpop.f32.mrb[33].mxu1 }
 0x147   :  { %v650_v1 = vmax.f32 %v431_v7, 0.0  ;;  %v679_v11 = vmax.f32 %v576_v9, 0.0 }
 0x148   :  { %v435_v12 = vpop.f32.mrb[34].mxu0  ;;  %v580_v13 = vpop.f32.mrb[34].mxu1 }
 0x149   :  { %708 = vst.msk [vmem:[%s1805_s3 + $0x80] sm:$0xff] %vm691_vm5, %v650_v1  ;;  %737 = vst.msk [vmem:[%s1805_s3 + $0x168] sm:$0xff] %vm691_vm5, %v679_v11  ;;  %v436_v14 = vadd.f32 %v1516_v2, %v435_v12  ;;  %v937_v15 = vpop.f32.mrb[35].mxu0  ;;  %v581_v16 = vadd.f32 %v1516_v2, %v580_v13  ;;  %v1024_v17 = vpop.f32.mrb[35].mxu1 }
 0x14b   :  { %v651_v18 = vmax.f32 %v436_v14, 0.0  ;;  %v680_v19 = vmax.f32 %v581_v16, 0.0 }
 0x14c   :  { %v440_v20 = vpop.f32.mrb[36].mxu0  ;;  %v585_v21 = vpop.f32.mrb[36].mxu1 }
 0x14d   :  { %709 = vst.msk [vmem:[%s1805_s3 + $0x88] sm:$0xff] %vm691_vm5, %v651_v18  ;;  %738 = vst.msk [vmem:[%s1805_s3 + $0x170] sm:$0xff] %vm691_vm5, %v680_v19  ;;  %v441_v22 = vadd.f32 %v1516_v2, %v440_v20  ;;  %v940_v23 = vpop.f32.mrb[37].mxu0  ;;  %v586_v24 = vadd.f32 %v1516_v2, %v585_v21  ;;  %v1027_v25 = vpop.f32.mrb[37].mxu1 }
 0x14f   :  { %v652_v26 = vmax.f32 %v441_v22, 0.0  ;;  %v681_v27 = vmax.f32 %v586_v24, 0.0 }
 0x150   :  { %v445_v28 = vpop.f32.mrb[38].mxu0  ;;  %v590_v29 = vpop.f32.mrb[38].mxu1 }
 0x151   :  { %710 = vst.msk [vmem:[%s1805_s3 + $0x90] sm:$0xff] %vm691_vm5, %v652_v26  ;;  %739 = vst.msk [vmem:[%s1805_s3 + $0x178] sm:$0xff] %vm691_vm5, %v681_v27  ;;  %v446_v30 = vadd.f32 %v1516_v2, %v445_v28  ;;  %v943_v31 = vpop.f32.mrb[39].mxu0  ;;  %v591_v32 = vadd.f32 %v1516_v2, %v590_v29  ;;  %v1030_v33 = vpop.f32.mrb[39].mxu1 }
 0x153   :  { %v653_v34 = vmax.f32 %v446_v30, 0.0  ;;  %v682_v35 = vmax.f32 %v591_v32, 0.0 }
 0x154   :  { %v450_v36 = vpop.f32.mrb[40].mxu0  ;;  %v595_v37 = vpop.f32.mrb[40].mxu1 }
 0x155   :  { %711 = vst.msk [vmem:[%s1805_s3 + $0x98] sm:$0xff] %vm691_vm5, %v653_v34  ;;  %740 = vst.msk [vmem:[%s1805_s3 + $0x180] sm:$0xff] %vm691_vm5, %v682_v35  ;;  %v451_v38 = vadd.f32 %v1516_v2, %v450_v36  ;;  %v946_v39 = vpop.f32.mrb[41].mxu0  ;;  %v596_v40 = vadd.f32 %v1516_v2, %v595_v37  ;;  %v1033_v41 = vpop.f32.mrb[41].mxu1 }
 0x157   :  { %v654_v42 = vmax.f32 %v451_v38, 0.0  ;;  %v683_v43 = vmax.f32 %v596_v40, 0.0 }
 0x158   :  { %v455_v44 = vpop.f32.mrb[42].mxu0  ;;  %v600_v45 = vpop.f32.mrb[42].mxu1 }
 0x159   :  { %712 = vst.msk [vmem:[%s1805_s3 + $0xa0] sm:$0xff] %vm691_vm5, %v654_v42  ;;  %741 = vst.msk [vmem:[%s1805_s3 + $0x188] sm:$0xff] %vm691_vm5, %v683_v43  ;;  %v456_v46 = vadd.f32 %v1516_v2, %v455_v44  ;;  %v949_v47 = vpop.f32.mrb[43].mxu0  ;;  %v601_v48 = vadd.f32 %v1516_v2, %v600_v45  ;;  %v1036_v49 = vpop.f32.mrb[43].mxu1 }
 0x15b   :  { %v655_v50 = vmax.f32 %v456_v46, 0.0  ;;  %v684_v51 = vmax.f32 %v601_v48, 0.0 }
 0x15c   :  { %v460_v52 = vpop.f32.mrb[44].mxu0  ;;  %v605_v53 = vpop.f32.mrb[44].mxu1 }
 0x15d   :  { %713 = vst.msk [vmem:[%s1805_s3 + $0xa8] sm:$0xff] %vm691_vm5, %v655_v50  ;;  %742 = vst.msk [vmem:[%s1805_s3 + $0x190] sm:$0xff] %vm691_vm5, %v684_v51  ;;  %v461_v54 = vadd.f32 %v1516_v2, %v460_v52  ;;  %v952_v55 = vpop.f32.mrb[45].mxu0  ;;  %v606_v56 = vadd.f32 %v1516_v2, %v605_v53  ;;  %v1039_v57 = vpop.f32.mrb[45].mxu1 }
 0x15f   :  { %v656_v58 = vmax.f32 %v461_v54, 0.0  ;;  %v685_v59 = vmax.f32 %v606_v56, 0.0 }
 0x160   :  { %v465_v60 = vpop.f32.mrb[46].mxu0  ;;  %v610_v61 = vpop.f32.mrb[46].mxu1 }
 0x161   :  { %714 = vst.msk [vmem:[%s1805_s3 + $0xb0] sm:$0xff] %vm691_vm5, %v656_v58  ;;  %743 = vst.msk [vmem:[%s1805_s3 + $0x198] sm:$0xff] %vm691_vm5, %v685_v59  ;;  %v466_v62 = vadd.f32 %v1516_v2, %v465_v60  ;;  %v955_v63 = vpop.f32.mrb[47].mxu0  ;;  %v611_v0 = vadd.f32 %v1516_v2, %v610_v61  ;;  %v1042_v3 = vpop.f32.mrb[47].mxu1 }
 0x163   :  { %v657_v4 = vmax.f32 %v466_v62, 0.0  ;;  %v686_v5 = vmax.f32 %v611_v0, 0.0 }
 0x164   :  { %v470_v6 = vpop.f32.mrb[48].mxu0  ;;  %v615_v7 = vpop.f32.mrb[48].mxu1 }
 0x165   :  { %715 = vst.msk [vmem:[%s1805_s3 + $0xb8] sm:$0xff] %vm691_vm5, %v657_v4  ;;  %744 = vst.msk [vmem:[%s1805_s3 + $0x1a0] sm:$0xff] %vm691_vm5, %v686_v5  ;;  %v471_v8 = vadd.f32 %v1516_v2, %v470_v6  ;;  %v958_v9 = vpop.f32.mrb[49].mxu0  ;;  %v616_v10 = vadd.f32 %v1516_v2, %v615_v7  ;;  %v1045_v1 = vpop.f32.mrb[49].mxu1 }
 0x167   :  { %v658_v11 = vmax.f32 %v471_v8, 0.0  ;;  %v687_v12 = vmax.f32 %v616_v10, 0.0 }
 0x168   :  { %v475_v13 = vpop.f32.mrb[50].mxu0  ;;  %v620_v14 = vpop.f32.mrb[50].mxu1 }
 0x169   :  { %716 = vst.msk [vmem:[%s1805_s3 + $0xc0] sm:$0xff] %vm691_vm5, %v658_v11  ;;  %745 = vst.msk [vmem:[%s1805_s3 + $0x1a8] sm:$0xff] %vm691_vm5, %v687_v12  ;;  %v476_v15 = vadd.f32 %v1516_v2, %v475_v13  ;;  %v961_v16 = vpop.f32.mrb[51].mxu0  ;;  %v621_v17 = vadd.f32 %v1516_v2, %v620_v14  ;;  %v1048_v18 = vpop.f32.mrb[51].mxu1 }
 0x16b   :  { %v659_v19 = vmax.f32 %v476_v15, 0.0  ;;  %v688_v20 = vmax.f32 %v621_v17, 0.0 }
 0x16c   :  { %v480_v21 = vpop.f32.mrb[52].mxu0  ;;  %v625_v22 = vpop.f32.mrb[52].mxu1 }
 0x16d   :  { %717 = vst.msk [vmem:[%s1805_s3 + $0xc8] sm:$0xff] %vm691_vm5, %v659_v19  ;;  %746 = vst.msk [vmem:[%s1805_s3 + $0x1b0] sm:$0xff] %vm691_vm5, %v688_v20  ;;  %v481_v23 = vadd.f32 %v1516_v2, %v480_v21  ;;  %v964_v24 = vpop.f32.mrb[53].mxu0  ;;  %v626_v25 = vadd.f32 %v1516_v2, %v625_v22  ;;  %v1051_v26 = vpop.f32.mrb[53].mxu1 }
 0x16f   :  { %v660_v27 = vmax.f32 %v481_v23, 0.0  ;;  %v689_v28 = vmax.f32 %v626_v25, 0.0 }
 0x170   :  { %v485_v29 = vpop.f32.mrb[54].mxu0  ;;  %v630_v30 = vpop.f32.mrb[54].mxu1 }
 0x171   :  { %718 = vst.msk [vmem:[%s1805_s3 + $0xd0] sm:$0xff] %vm691_vm5, %v660_v27  ;;  %747 = vst.msk [vmem:[%s1805_s3 + $0x1b8] sm:$0xff] %vm691_vm5, %v689_v28  ;;  %v486_v31 = vadd.f32 %v1516_v2, %v485_v29  ;;  %v967_v32 = vpop.f32.mrb[55].mxu0  ;;  %v631_v33 = vadd.f32 %v1516_v2, %v630_v30  ;;  %v1054_v34 = vpop.f32.mrb[55].mxu1 }
 0x173   :  { %v661_v35 = vmax.f32 %v486_v31, 0.0  ;;  %v690_v36 = vmax.f32 %v631_v33, 0.0 }
 0x174   :  { %v490_v37 = vpop.f32.mrb[56].mxu0 }
 0x175   :  { %719 = vst.msk [vmem:[%s1805_s3 + $0xd8] sm:$0xff] %vm691_vm5, %v661_v35  ;;  %v491_v38 = vadd.f32 %v1516_v2, %v490_v37  ;;  %v970_v39 = vpop.f32.mrb[57].mxu0 }
 0x176   :  { %749 = vst.msk [vmem:[%s1805_s3 + $0x1c0] sm:$0x3] %vm748_vm6, %v690_v36 }
 0x177   :  { %v662_v40 = vmax.f32 %v491_v38, 0.0 }
 0x179   :  { %720 = vst.msk [vmem:[%s1805_s3 + $0xe0] sm:$0xff] %vm691_vm5, %v662_v40 }
 0x17a   :  { %754 = vsyncpa [#allocation3], 1 }
 0x17b   :  { %755 = vsyncpa [#allocation5], 1 }

// kernel: cnn_forward.6
= control target key start
LH: loop header
LB: loop body
LE: loop exit
PB: predicated region body
PF: predicated region fallthrough
CT: control target
= control target key end

     0   :  { %v618_v3 = vmov 0.0|0.0   ;;  %vm619_vm0 = vmmov 0   ;;  %v620_v4 = vmov 0.0   ;;  %vm96_vm1 = vcmask 261120   ;;  %s974_s1 = inlined_call_operand.vmem [shape: f32[288,64], index: 1, kind: input, shape index: {}]   ;;  %s975_s0 = inlined_call_operand.vmem [shape: f32[98,288], index: 0, kind: input, shape index: {}]   ;;  %s976_s2 = inlined_call_operand.vmem [shape: f32[1,64], index: 2, kind: input, shape index: {}]   ;;  %s977_s3 = inlined_call_operand.vmem [shape: f32[98,64], index: 3, kind: output, shape index: {}]  }
   0x1   :  { %v69_v0 = vld [vmem:[%s974_s1 + $0x80] sm:$0xff]  ;;  %v70_v1 = vld [vmem:[%s974_s1 + $0x88] sm:$0xff]  ;;  %609 = vmatprep.subr.bf16.mxu1 %v618_v3  ;;  %538 = vmatprep.mubr.msk.f32.mxu1 %vm619_vm0, %v620_v4  ;;  %v71_v7 = vld [vmem:[%s974_s1 + $0x90] sm:$0xff]  ;;  %vm409_vm2 = vcmask 523264   ;;  %vm422_vm3 = vcmask 517120  }
   0x2   :  { %v53_v2 = vld [vmem:[%s974_s1] sm:$0xff]  ;;  %v577_v5 = vpack.c.bf16 %v70_v1, %v69_v0  ;;  %v54_v6 = vld [vmem:[%s974_s1 + $0x8] sm:$0xff]  ;;  %v72_v8 = vld [vmem:[%s974_s1 + $0x98] sm:$0xff] }
   0x3   :  { %v579_v9 = vpack.c.bf16 %v54_v6, %v53_v2  ;;  %v581_v10 = vpack.c.bf16 %v72_v8, %v71_v7  ;;  %v55_v11 = vld [vmem:[%s974_s1 + $0x10] sm:$0xff]  ;;  %v56_v12 = vld [vmem:[%s974_s1 + $0x18] sm:$0xff]  ;;  %v73_v13 = vld [vmem:[%s974_s1 + $0xa0] sm:$0xff] }
   0x4   :  { %578 = vmatprep.subr.bf16.mxu0 %v577_v5  ;;  %v74_v14 = vld [vmem:[%s974_s1 + $0xa8] sm:$0xff]  ;;  %v583_v15 = vpack.c.bf16 %v56_v12, %v55_v11  ;;  %v57_v17 = vld [vmem:[%s974_s1 + $0x20] sm:$0xff]  ;;  %v75_v19 = vld [vmem:[%s974_s1 + $0xb0] sm:$0xff] }
   0x5   :  { %580 = vmatpush3.bf16.msra.mxu0 %v579_v9  ;;  %v585_v16 = vpack.c.bf16 %v74_v14, %v73_v13  ;;  %v58_v18 = vld [vmem:[%s974_s1 + $0x28] sm:$0xff]  ;;  %v76_v20 = vld [vmem:[%s974_s1 + $0xb8] sm:$0xff]  ;;  %v59_v23 = vld [vmem:[%s974_s1 + $0x30] sm:$0xff] }
   0x6   :  { %582 = vmatprep.subr.bf16.mxu0 %v581_v10  ;;  %v587_v21 = vpack.c.bf16 %v58_v18, %v57_v17  ;;  %v589_v22 = vpack.c.bf16 %v76_v20, %v75_v19  ;;  %v60_v24 = vld [vmem:[%s974_s1 + $0x38] sm:$0xff]  ;;  %v77_v25 = vld [vmem:[%s974_s1 + $0xc0] sm:$0xff]  ;;  %v78_v26 = vld [vmem:[%s974_s1 + $0xc8] sm:$0xff] }
   0x7   :  { %v85_v27 = vld [vmem:[%s974_s1 + $0x100] sm:$0xff]  ;;  %v86_v28 = vld [vmem:[%s974_s1 + $0x108] sm:$0xff]  ;;  %v591_v30 = vpack.c.bf16 %v60_v24, %v59_v23  ;;  %v87_v32 = vld [vmem:[%s974_s1 + $0x110] sm:$0xff]  ;;  %v593_v34 = vpack.c.bf16 %v78_v26, %v77_v25 }
   0x8   :  { %v15_v29 = vld [vmem:[%s975_s0 + $0x8] sm:$0xff]  ;;  %v610_v31 = vpack.c.bf16 %v86_v28, %v85_v27  ;;  %v88_v33 = vld [vmem:[%s974_s1 + $0x118] sm:$0xff]  ;;  %v61_v35 = vld [vmem:[%s974_s1 + $0x40] sm:$0xff] }
   0x9   :  { %584 = vmatpush3.bf16.msra.mxu0 %v583_v15  ;;  %200 = vmatprep.mubr.f32.mxu0 %v15_v29  ;;  %v62_v36 = vld [vmem:[%s974_s1 + $0x48] sm:$0xff]  ;;  %v79_v37 = vld [vmem:[%s974_s1 + $0xd0] sm:$0xff]  ;;  %v80_v38 = vld [vmem:[%s974_s1 + $0xd8] sm:$0xff]  ;;  %v613_v39 = vpack.c.bf16 %v88_v33, %v87_v32 }
   0xa   :  { %586 = vmatprep.subr.bf16.mxu0 %v585_v16  ;;  %611 = vmatpush3.bf16.msra.mxu1 %v610_v31  ;;  %v595_v40 = vpack.c.bf16 %v62_v36, %v61_v35  ;;  %v597_v41 = vpack.c.bf16 %v80_v38, %v79_v37  ;;  %v63_v42 = vld [vmem:[%s974_s1 + $0x50] sm:$0xff]  ;;  %v64_v43 = vld [vmem:[%s974_s1 + $0x58] sm:$0xff]  ;;  %v81_v44 = vld [vmem:[%s974_s1 + $0xe0] sm:$0xff] }
   0xb   :  { %612 = vmatprep.subr.bf16.mxu1 %v618_v3  ;;  %v82_v45 = vld [vmem:[%s974_s1 + $0xe8] sm:$0xff]  ;;  %v16_v46 = vld [vmem:[%s975_s0 + $0x10] sm:$0xff]  ;;  %v599_v47 = vpack.c.bf16 %v64_v43, %v63_v42  ;;  %v65_v49 = vld [vmem:[%s974_s1 + $0x60] sm:$0xff] }
   0xc   :  { %v601_v48 = vpack.c.bf16 %v82_v45, %v81_v44  ;;  %v66_v50 = vld [vmem:[%s974_s1 + $0x68] sm:$0xff]  ;;  %v83_v51 = vld [vmem:[%s974_s1 + $0xf0] sm:$0xff]  ;;  %v84_v52 = vld [vmem:[%s974_s1 + $0xf8] sm:$0xff] }
   0xd   :  { %588 = vmatpush3.bf16.msra.mxu0 %v587_v21  ;;  %v19_v53 = vld [vmem:[%s975_s0 + $0x28] sm:$0xff]  ;;  %v603_v54 = vpack.c.bf16 %v66_v50, %v65_v49  ;;  %v605_v55 = vpack.c.bf16 %v84_v52, %v83_v51  ;;  %v67_v56 = vld [vmem:[%s974_s1 + $0x70] sm:$0xff]  ;;  %v68_v57 = vld [vmem:[%s974_s1 + $0x78] sm:$0xff] }
   0xe   :  { %590 = vmatprep.subr.bf16.mxu0 %v589_v22  ;;  %614 = vmatpush3.bf16.msra.mxu1 %v613_v39  ;;  %v22_v58 = vld [vmem:[%s975_s0 + $0x40] sm:$0xff]  ;;  %v607_v59 = vpack.c.bf16 %v68_v57, %v67_v56  ;;  %v25_v60 = vld [vmem:[%s975_s0 + $0x58] sm:$0xff]  ;;  %v28_v63 = vld [vmem:[%s975_s0 + $0x70] sm:$0xff] }
   0xf   :  { %v14_v61 = vld [vmem:[%s975_s0] sm:$0xff]  ;;  %v17_v0 = vld [vmem:[%s975_s0 + $0x18] sm:$0xff]  ;;  %v31_v2 = vld [vmem:[%s975_s0 + $0x88] sm:$0xff] }
  0x10   :  { %v18_v62 = vld [vmem:[%s975_s0 + $0x20] sm:$0xff]  ;;  %v21_v1 = vld [vmem:[%s975_s0 + $0x38] sm:$0xff]  ;;  %v20_v3 = vld [vmem:[%s975_s0 + $0x30] sm:$0xff] }
  0x11   :  { %592 = vmatpush3.bf16.msra.mxu0 %v591_v30  ;;  %539 = vmatmul.mubr.msk.f32.vlgmr.msra.gmra.mrb[0].mxu1 %vm96_vm1, %v16_v46  ;;  %v24_v5 = vld [vmem:[%s975_s0 + $0x50] sm:$0xff]  ;;  %v34_v6 = vld [vmem:[%s975_s0 + $0xa0] sm:$0xff]  ;;  %v23_v7 = vld [vmem:[%s975_s0 + $0x48] sm:$0xff] }
  0x12   :  { %594 = vmatprep.subr.bf16.mxu0 %v593_v34  ;;  %541 = vmatprep.mubr.msk.f32.mxu1 %vm619_vm0, %v620_v4  ;;  %v27_v8 = vld [vmem:[%s975_s0 + $0x68] sm:$0xff]  ;;  %v37_v9 = vld [vmem:[%s975_s0 + $0xb8] sm:$0xff]  ;;  %v26_v10 = vld [vmem:[%s975_s0 + $0x60] sm:$0xff] }
  0x13   :  { %v30_v11 = vld [vmem:[%s975_s0 + $0x80] sm:$0xff]  ;;  %v40_v12 = vld [vmem:[%s975_s0 + $0xd0] sm:$0xff]  ;;  %v29_v13 = vld [vmem:[%s975_s0 + $0x78] sm:$0xff] }
  0x14   :  { %v33_v14 = vld [vmem:[%s975_s0 + $0x98] sm:$0xff]  ;;  %v43_v15 = vld [vmem:[%s975_s0 + $0xe8] sm:$0xff]  ;;  %v32_v16 = vld [vmem:[%s975_s0 + $0x90] sm:$0xff] }
  0x15   :  { %596 = vmatpush3.bf16.msra.mxu0 %v595_v40  ;;  %542 = vmatmul.mubr.msk.f32.gmra.mrb[2].mxu1 %vm96_vm1, %v19_v53  ;;  %v36_v17 = vld [vmem:[%s975_s0 + $0xb0] sm:$0xff]  ;;  %v46_v18 = vld [vmem:[%s975_s0 + $0x100] sm:$0xff]  ;;  %v35_v19 = vld [vmem:[%s975_s0 + $0xa8] sm:$0xff] }
  0x16   :  { %598 = vmatprep.subr.bf16.mxu0 %v597_v41  ;;  %544 = vmatprep.mubr.msk.f32.mxu1 %vm619_vm0, %v620_v4  ;;  %v39_v20 = vld [vmem:[%s975_s0 + $0xc8] sm:$0xff]  ;;  %v49_v21 = vld [vmem:[%s975_s0 + $0x118] sm:$0xff]  ;;  %v38_v22 = vld [vmem:[%s975_s0 + $0xc0] sm:$0xff] }
  0x17   :  { %v42_v23 = vld [vmem:[%s975_s0 + $0xe0] sm:$0xff]  ;;  %v52_v24 = vld [vmem:[%s975_s0 + $0x130] sm:$0x3]  ;;  %v41_v25 = vld [vmem:[%s975_s0 + $0xd8] sm:$0xff] }
  0x18   :  { %v45_v26 = vld [vmem:[%s975_s0 + $0xf8] sm:$0xff]  ;;  %v48_v27 = vld [vmem:[%s975_s0 + $0x110] sm:$0xff]  ;;  %v47_v28 = vld [vmem:[%s975_s0 + $0x108] sm:$0xff] }
  0x19   :  { %600 = vmatpush3.bf16.msra.mxu0 %v599_v47  ;;  %545 = vmatmul.mubr.msk.f32.gmra.mrb[4].mxu1 %vm96_vm1, %v22_v58  ;;  %v51_v29 = vld [vmem:[%s975_s0 + $0x128] sm:$0x3]  ;;  %v50_v30 = vld [vmem:[%s975_s0 + $0x120] sm:$0x3] }
  0x1a   :  { %602 = vmatprep.subr.bf16.mxu0 %v601_v48  ;;  %547 = vmatprep.mubr.msk.f32.mxu1 %vm619_vm0, %v620_v4  ;;  %v908_v41 = vld [vmem:[%s976_s2] ss:$0 sm:$0xff] }
  0x1d   :  { %604 = vmatpush3.bf16.msra.mxu0 %v603_v54  ;;  %548 = vmatmul.mubr.msk.f32.gmra.mrb[6].mxu1 %vm96_vm1, %v25_v60 }
  0x1e   :  { %606 = vmatprep.subr.bf16.mxu0 %v605_v55  ;;  %550 = vmatprep.mubr.msk.f32.mxu1 %vm619_vm0, %v620_v4 }
  0x21   :  { %608 = vmatpush3.bf16.msra.mxu0 %v607_v59  ;;  %551 = vmatmul.mubr.msk.f32.gmra.mrb[8].mxu1 %vm96_vm1, %v28_v63 }
  0x22   :  { %553 = vmatprep.mubr.msk.f32.mxu1 %vm619_vm0, %v620_v4 }
  0x24   :  { %201 = vmatmul.mubr.f32.vlgmr.msra.gmra.mrb[0].mxu0 %v14_v61 }
  0x25   :  { %205 = vmatprep.mubr.f32.mxu0 %v18_v62  ;;  %554 = vmatmul.mubr.msk.f32.gmra.mrb[10].mxu1 %vm96_vm1, %v31_v2 }
  0x26   :  { %556 = vmatprep.mubr.msk.f32.mxu1 %vm619_vm0, %v620_v4 }
  0x28   :  { %206 = vmatmul.mubr.f32.gmra.mrb[2].mxu0 %v17_v0 }
  0x29   :  { %210 = vmatprep.mubr.f32.mxu0 %v21_v1  ;;  %557 = vmatmul.mubr.msk.f32.gmra.mrb[12].mxu1 %vm96_vm1, %v34_v6 }
  0x2a   :  { %559 = vmatprep.mubr.msk.f32.mxu1 %vm619_vm0, %v620_v4 }
  0x2c   :  { %211 = vmatmul.mubr.f32.gmra.mrb[4].mxu0 %v20_v3 }
  0x2d   :  { %215 = vmatprep.mubr.f32.mxu0 %v24_v5  ;;  %560 = vmatmul.mubr.msk.f32.gmra.mrb[14].mxu1 %vm96_vm1, %v37_v9 }
  0x2e   :  { %562 = vmatprep.mubr.msk.f32.mxu1 %vm619_vm0, %v620_v4 }
  0x30   :  { %216 = vmatmul.mubr.f32.gmra.mrb[6].mxu0 %v23_v7 }
  0x31   :  { %220 = vmatprep.mubr.f32.mxu0 %v27_v8  ;;  %563 = vmatmul.mubr.msk.f32.gmra.mrb[16].mxu1 %vm96_vm1, %v40_v12 }
  0x32   :  { %565 = vmatprep.mubr.msk.f32.mxu1 %vm619_vm0, %v620_v4 }
  0x34   :  { %221 = vmatmul.mubr.f32.gmra.mrb[8].mxu0 %v26_v10 }
  0x35   :  { %225 = vmatprep.mubr.f32.mxu0 %v30_v11  ;;  %566 = vmatmul.mubr.msk.f32.gmra.mrb[18].mxu1 %vm96_vm1, %v43_v15 }
  0x36   :  { %568 = vmatprep.mubr.msk.f32.mxu1 %vm619_vm0, %v620_v4 }
  0x38   :  { %226 = vmatmul.mubr.f32.gmra.mrb[10].mxu0 %v29_v13 }
  0x39   :  { %230 = vmatprep.mubr.f32.mxu0 %v33_v14  ;;  %569 = vmatmul.mubr.msk.f32.gmra.mrb[20].mxu1 %vm96_vm1, %v46_v18 }
  0x3a   :  { %571 = vmatprep.mubr.msk.f32.mxu1 %vm619_vm0, %v620_v4 }
  0x3c   :  { %231 = vmatmul.mubr.f32.gmra.mrb[12].mxu0 %v32_v16 }
  0x3d   :  { %235 = vmatprep.mubr.f32.mxu0 %v36_v17  ;;  %572 = vmatmul.mubr.msk.f32.gmra.mrb[22].mxu1 %vm96_vm1, %v49_v21 }
  0x3e   :  { %574 = vmatprep.mubr.msk.f32.mxu1 %vm619_vm0, %v620_v4  ;;  %v44_v4 = vld [vmem:[%s975_s0 + $0xf0] sm:$0xff] }
  0x40   :  { %236 = vmatmul.mubr.f32.gmra.mrb[14].mxu0 %v35_v19 }
  0x41   :  { %240 = vmatprep.mubr.f32.mxu0 %v39_v20  ;;  %575 = vmatmul.mubr.msk.f32.gmra.mrb[24].mxu1 %vm96_vm1, %v52_v24 }
  0x44   :  { %241 = vmatmul.mubr.f32.gmra.mrb[16].mxu0 %v38_v22 }
  0x45   :  { %245 = vmatprep.mubr.f32.mxu0 %v42_v23 }
  0x48   :  { %246 = vmatmul.mubr.f32.gmra.mrb[18].mxu0 %v41_v25 }
  0x49   :  { %250 = vmatprep.mubr.f32.mxu0 %v45_v26 }
  0x4c   :  { %251 = vmatmul.mubr.f32.gmra.mrb[20].mxu0 %v44_v4 }
  0x4d   :  { %255 = vmatprep.mubr.f32.mxu0 %v48_v27 }
  0x50   :  { %256 = vmatmul.mubr.f32.gmra.mrb[22].mxu0 %v47_v28 }
  0x51   :  { %260 = vmatprep.mubr.f32.mxu0 %v51_v29 }
  0x54   :  { %261 = vmatmul.mubr.f32.gmra.mrb[24].mxu0 %v50_v30 }
  0xe4   :  { %v332_v31 = vpop.f32.mrb[0].mxu1 }
  0xe5   :  { %v540_v32 = vpop.f32.mrb[1].mxu1 }
  0xe8   :  { %v337_v33 = vpop.f32.mrb[2].mxu1 }
  0xe9   :  { %v543_v34 = vpop.f32.mrb[3].mxu1 }
  0xec   :  { %v342_v35 = vpop.f32.mrb[4].mxu1 }
  0xed   :  { %v546_v36 = vpop.f32.mrb[5].mxu1 }
  0xf0   :  { %v347_v37 = vpop.f32.mrb[6].mxu1 }
  0xf1   :  { %v549_v38 = vpop.f32.mrb[7].mxu1 }
  0xf4   :  { %v352_v43 = vpop.f32.mrb[8].mxu1 }
  0xf5   :  { %v552_v44 = vpop.f32.mrb[9].mxu1 }
  0xf7   :  { %v474_v39 = vpop.f32.mrb[0].mxu0 }
  0xf8   :  { %v475_v40 = vpop.f32.mrb[1].mxu0  ;;  %v357_v50 = vpop.f32.mrb[10].mxu1 }
  0xf9   :  { %v476_v42 = vadd.f32 %v475_v40, %v474_v39  ;;  %v555_v51 = vpop.f32.mrb[11].mxu1 }
  0xfb   :  { %v477_v45 = vpop.f32.mrb[2].mxu0  ;;  %v203_v46 = vadd.f32 %v476_v42, %v908_v41 }
  0xfc   :  { %v478_v47 = vpop.f32.mrb[3].mxu0  ;;  %v362_v58 = vpop.f32.mrb[12].mxu1 }
  0xfd   :  { %v333_v48 = vadd.f32 %v332_v31, %v203_v46  ;;  %v479_v49 = vadd.f32 %v478_v47, %v477_v45  ;;  %v558_v59 = vpop.f32.mrb[13].mxu1 }
  0xff   :  { %v396_v52 = vmax.f32 %v333_v48, 0.0  ;;  %v480_v53 = vpop.f32.mrb[4].mxu0  ;;  %v208_v54 = vadd.f32 %v479_v49, %v908_v41 }
 0x100   :  { %v481_v55 = vpop.f32.mrb[5].mxu0  ;;  %v367_v2 = vpop.f32.mrb[14].mxu1 }
 0x101   :  { %410 = vst.msk [vmem:[%s977_s3] sm:$0xff] %vm409_vm2, %v396_v52  ;;  %v338_v56 = vadd.f32 %v337_v33, %v208_v54  ;;  %v482_v57 = vadd.f32 %v481_v55, %v480_v53  ;;  %v561_v3 = vpop.f32.mrb[15].mxu1 }
 0x103   :  { %v397_v60 = vmax.f32 %v338_v56, 0.0  ;;  %v483_v61 = vpop.f32.mrb[6].mxu0  ;;  %v213_v62 = vadd.f32 %v482_v57, %v908_v41 }
 0x104   :  { %v484_v63 = vpop.f32.mrb[7].mxu0  ;;  %v372_v11 = vpop.f32.mrb[16].mxu1 }
 0x105   :  { %411 = vst.msk [vmem:[%s977_s3 + $0x8] sm:$0xff] %vm409_vm2, %v397_v60  ;;  %v343_v0 = vadd.f32 %v342_v35, %v213_v62  ;;  %v485_v1 = vadd.f32 %v484_v63, %v483_v61  ;;  %v564_v12 = vpop.f32.mrb[17].mxu1 }
 0x107   :  { %v398_v5 = vmax.f32 %v343_v0, 0.0  ;;  %v486_v6 = vpop.f32.mrb[8].mxu0  ;;  %v218_v7 = vadd.f32 %v485_v1, %v908_v41 }
 0x108   :  { %v487_v8 = vpop.f32.mrb[9].mxu0  ;;  %v377_v19 = vpop.f32.mrb[18].mxu1 }
 0x109   :  { %412 = vst.msk [vmem:[%s977_s3 + $0x10] sm:$0xff] %vm409_vm2, %v398_v5  ;;  %v348_v9 = vadd.f32 %v347_v37, %v218_v7  ;;  %v488_v10 = vadd.f32 %v487_v8, %v486_v6  ;;  %v567_v20 = vpop.f32.mrb[19].mxu1 }
 0x10b   :  { %v399_v13 = vmax.f32 %v348_v9, 0.0  ;;  %v489_v14 = vpop.f32.mrb[10].mxu0  ;;  %v223_v15 = vadd.f32 %v488_v10, %v908_v41 }
 0x10c   :  { %v490_v16 = vpop.f32.mrb[11].mxu0  ;;  %v382_v4 = vpop.f32.mrb[20].mxu1 }
 0x10d   :  { %413 = vst.msk [vmem:[%s977_s3 + $0x18] sm:$0xff] %vm409_vm2, %v399_v13  ;;  %v353_v17 = vadd.f32 %v352_v43, %v223_v15  ;;  %v491_v18 = vadd.f32 %v490_v16, %v489_v14  ;;  %v570_v27 = vpop.f32.mrb[21].mxu1 }
 0x10f   :  { %v400_v21 = vmax.f32 %v353_v17, 0.0  ;;  %v492_v22 = vpop.f32.mrb[12].mxu0  ;;  %v228_v23 = vadd.f32 %v491_v18, %v908_v41 }
 0x110   :  { %v493_v24 = vpop.f32.mrb[13].mxu0  ;;  %v387_v34 = vpop.f32.mrb[22].mxu1 }
 0x111   :  { %414 = vst.msk [vmem:[%s977_s3 + $0x20] sm:$0xff] %vm409_vm2, %v400_v21  ;;  %v358_v25 = vadd.f32 %v357_v50, %v228_v23  ;;  %v494_v26 = vadd.f32 %v493_v24, %v492_v22  ;;  %v573_v35 = vpop.f32.mrb[23].mxu1 }
 0x113   :  { %v401_v28 = vmax.f32 %v358_v25, 0.0  ;;  %v495_v29 = vpop.f32.mrb[14].mxu0  ;;  %v233_v30 = vadd.f32 %v494_v26, %v908_v41 }
 0x114   :  { %v496_v31 = vpop.f32.mrb[15].mxu0  ;;  %v392_v43 = vpop.f32.mrb[24].mxu1 }
 0x115   :  { %415 = vst.msk [vmem:[%s977_s3 + $0x28] sm:$0xff] %vm409_vm2, %v401_v28  ;;  %v363_v32 = vadd.f32 %v362_v58, %v233_v30  ;;  %v497_v33 = vadd.f32 %v496_v31, %v495_v29  ;;  %v576_v44 = vpop.f32.mrb[25].mxu1 }
 0x117   :  { %v402_v36 = vmax.f32 %v363_v32, 0.0  ;;  %v498_v37 = vpop.f32.mrb[16].mxu0  ;;  %v238_v38 = vadd.f32 %v497_v33, %v908_v41 }
 0x118   :  { %v499_v39 = vpop.f32.mrb[17].mxu0 }
 0x119   :  { %416 = vst.msk [vmem:[%s977_s3 + $0x30] sm:$0xff] %vm409_vm2, %v402_v36  ;;  %v368_v40 = vadd.f32 %v367_v2, %v238_v38  ;;  %v500_v42 = vadd.f32 %v499_v39, %v498_v37 }
 0x11b   :  { %v403_v45 = vmax.f32 %v368_v40, 0.0  ;;  %v501_v46 = vpop.f32.mrb[18].mxu0  ;;  %v243_v47 = vadd.f32 %v500_v42, %v908_v41 }
 0x11c   :  { %v502_v48 = vpop.f32.mrb[19].mxu0 }
 0x11d   :  { %417 = vst.msk [vmem:[%s977_s3 + $0x38] sm:$0xff] %vm409_vm2, %v403_v45  ;;  %v373_v49 = vadd.f32 %v372_v11, %v243_v47  ;;  %v503_v50 = vadd.f32 %v502_v48, %v501_v46 }
 0x11f   :  { %v404_v51 = vmax.f32 %v373_v49, 0.0  ;;  %v504_v52 = vpop.f32.mrb[20].mxu0  ;;  %v248_v53 = vadd.f32 %v503_v50, %v908_v41 }
 0x120   :  { %v505_v54 = vpop.f32.mrb[21].mxu0 }
 0x121   :  { %418 = vst.msk [vmem:[%s977_s3 + $0x40] sm:$0xff] %vm409_vm2, %v404_v51  ;;  %v378_v55 = vadd.f32 %v377_v19, %v248_v53  ;;  %v506_v56 = vadd.f32 %v505_v54, %v504_v52 }
 0x123   :  { %v405_v57 = vmax.f32 %v378_v55, 0.0  ;;  %v507_v58 = vpop.f32.mrb[22].mxu0  ;;  %v253_v59 = vadd.f32 %v506_v56, %v908_v41 }
 0x124   :  { %v508_v60 = vpop.f32.mrb[23].mxu0 }
 0x125   :  { %419 = vst.msk [vmem:[%s977_s3 + $0x48] sm:$0xff] %vm409_vm2, %v405_v57  ;;  %v383_v61 = vadd.f32 %v382_v4, %v253_v59  ;;  %v509_v62 = vadd.f32 %v508_v60, %v507_v58 }
 0x127   :  { %v406_v63 = vmax.f32 %v383_v61, 0.0  ;;  %v510_v0 = vpop.f32.mrb[24].mxu0  ;;  %v258_v1 = vadd.f32 %v509_v62, %v908_v41 }
 0x128   :  { %v511_v2 = vpop.f32.mrb[25].mxu0 }
 0x129   :  { %420 = vst.msk [vmem:[%s977_s3 + $0x50] sm:$0xff] %vm409_vm2, %v406_v63  ;;  %v388_v3 = vadd.f32 %v387_v34, %v258_v1  ;;  %v512_v5 = vadd.f32 %v511_v2, %v510_v0 }
 0x12b   :  { %v407_v6 = vmax.f32 %v388_v3, 0.0  ;;  %v263_v7 = vadd.f32 %v512_v5, %v908_v41 }
 0x12d   :  { %421 = vst.msk [vmem:[%s977_s3 + $0x58] sm:$0xff] %vm409_vm2, %v407_v6  ;;  %v393_v8 = vadd.f32 %v392_v43, %v263_v7 }
 0x12f   :  { %v408_v9 = vmax.f32 %v393_v8, 0.0 }
 0x131   :  { %423 = vst.msk [vmem:[%s977_s3 + $0x60] sm:$0x3] %vm422_vm3, %v408_v9 }

// kernel: cnn_forward.7
= control target key start
LH: loop header
LB: loop body
LE: loop exit
PB: predicated region body
PF: predicated region fallthrough
CT: control target
= control target key end

     0   :  { %v10829_v43 = vmov 1983009808   ;;  %v120_v45 = vlaneseq  ;;  %s15669_s0 = inlined_call_operand.vmem [shape: f32[9,2,576], index: 0, kind: input, shape index: {}]   ;;  %s15670_s1 = inlined_call_operand.vmem [shape: f32[576,128], index: 1, kind: input, shape index: {}]   ;;  %s15671_s2 = inlined_call_operand.vmem [shape: f32[1,128], index: 2, kind: input, shape index: {}]   ;;  %s15672_s3 = inlined_call_operand.vmem [shape: f32[9,2,128], index: 3, kind: input, shape index: {}]   ;;  %s15673_s4 = inlined_call_operand.vmem [shape: f32[9,128,1024], index: 4, kind: input, shape index: {}]   ;;  %s15674_s5 = inlined_call_operand.vmem [shape: f32[1,1024], index: 5, kind: input, shape index: {}]   ;;  %s15675_s6 = inlined_call_operand.vmem [shape: f32[2,1024], index: 6, kind: input, shape index: {}]   ;;  %s15676_s7 = inlined_call_operand.vmem [shape: f32[1024,10], index: 7, kind: input, shape index: {}]   ;;  %s15677_s8 = inlined_call_operand.vmem [shape: f32[1,10], index: 8, kind: input, shape index: {}]   ;;  %s15678_s9 = inlined_call_operand.hbm [shape: f32[2,10], index: 9, kind: output, shape index: {}]  }
   0x1   :  { %v51_v0 = vld [vmem:[%s15670_s1 + $0x80] sm:$0xff]  ;;  %v52_v1 = vld [vmem:[%s15670_s1 + $0x88] sm:$0xff]  ;;  %v53_v11 = vld [vmem:[%s15670_s1 + $0x90] sm:$0xff]  ;;  %v118_v44 = vunpack.c.l.s4 %v10829_v43 }
   0x2   :  { %v35_v2 = vld [vmem:[%s15670_s1] sm:$0xff]  ;;  %v10893_v3 = vpack.c.bf16 %v52_v1, %v51_v0  ;;  %v36_v4 = vld [vmem:[%s15670_s1 + $0x8] sm:$0xff]  ;;  %v54_v13 = vld [vmem:[%s15670_s1 + $0x98] sm:$0xff]  ;;  %v11048_v60 = vshrl.u32 %v120_v45, 7 }
   0x3   :  { %v83_v5 = vld [vmem:[%s15670_s1 + $0x180] sm:$0xff]  ;;  %v84_v6 = vld [vmem:[%s15670_s1 + $0x188] sm:$0xff]  ;;  %v10904_v7 = vpack.c.bf16 %v36_v4, %v35_v2  ;;  %v37_v14 = vld [vmem:[%s15670_s1 + $0x10] sm:$0xff]  ;;  %v10931_v16 = vpack.c.bf16 %v54_v13, %v53_v11  ;;  %v119_v59 = vunpack.c.0.s8 %v118_v44 }
   0x4   :  { %v10906_v8 = vpack.c.bf16 %v84_v6, %v83_v5  ;;  %v67_v9 = vld [vmem:[%s15670_s1 + $0x100] sm:$0xff]  ;;  %v68_v10 = vld [vmem:[%s15670_s1 + $0x108] sm:$0xff]  ;;  %8758 = vmatprep.subr.bf16.mxu0 %v10893_v3  ;;  %v38_v15 = vld [vmem:[%s15670_s1 + $0x18] sm:$0xff] }
   0x5   :  { %v10918_v12 = vpack.c.bf16 %v68_v10, %v67_v9  ;;  %8760 = vmatpush3.bf16.msra.mxu0 %v10904_v7  ;;  %v10933_v17 = vpack.c.bf16 %v38_v15, %v37_v14  ;;  %v85_v18 = vld [vmem:[%s15670_s1 + $0x190] sm:$0xff]  ;;  %v86_v19 = vld [vmem:[%s15670_s1 + $0x198] sm:$0xff]  ;;  %v55_v23 = vld [vmem:[%s15670_s1 + $0xa0] sm:$0xff]  ;;  %v11090_v14 = vsub.s32 %v119_v59, %v11048_v60 }
   0x6   :  { %8790 = vmatprep.subr.bf16.mxu1 %v10906_v8  ;;  %v69_v20 = vld [vmem:[%s15670_s1 + $0x110] sm:$0xff]  ;;  %v10945_v21 = vpack.c.bf16 %v86_v19, %v85_v18  ;;  %v70_v22 = vld [vmem:[%s15670_s1 + $0x118] sm:$0xff]  ;;  %v56_v24 = vld [vmem:[%s15670_s1 + $0xa8] sm:$0xff]  ;;  %8762 = vmatprep.subr.bf16.mxu0 %v10931_v16 }
   0x7   :  { %8792 = vmatpush3.bf16.msra.mxu1 %v10918_v12  ;;  %v10957_v25 = vpack.c.bf16 %v70_v22, %v69_v20  ;;  %v10959_v26 = vpack.c.bf16 %v56_v24, %v55_v23  ;;  %v39_v27 = vld [vmem:[%s15670_s1 + $0x20] sm:$0xff]  ;;  %v40_v28 = vld [vmem:[%s15670_s1 + $0x28] sm:$0xff]  ;;  %v57_v35 = vld [vmem:[%s15670_s1 + $0xb0] sm:$0xff] }
   0x8   :  { %v87_v29 = vld [vmem:[%s15670_s1 + $0x1a0] sm:$0xff]  ;;  %8794 = vmatprep.subr.bf16.mxu1 %v10945_v21  ;;  %v88_v30 = vld [vmem:[%s15670_s1 + $0x1a8] sm:$0xff]  ;;  %v10981_v33 = vpack.c.bf16 %v40_v28, %v39_v27  ;;  %v58_v36 = vld [vmem:[%s15670_s1 + $0xb8] sm:$0xff] }
   0x9   :  { %v71_v31 = vld [vmem:[%s15670_s1 + $0x120] sm:$0xff]  ;;  %v72_v32 = vld [vmem:[%s15670_s1 + $0x128] sm:$0xff]  ;;  %8764 = vmatpush3.bf16.msra.mxu0 %v10933_v17  ;;  %v10983_v34 = vpack.c.bf16 %v88_v30, %v87_v29  ;;  %v41_v37 = vld [vmem:[%s15670_s1 + $0x30] sm:$0xff]  ;;  %v10998_v39 = vpack.c.bf16 %v58_v36, %v57_v35 }
   0xa   :  { %8766 = vmatprep.subr.bf16.mxu0 %v10959_v26  ;;  %v10996_v38 = vpack.c.bf16 %v72_v32, %v71_v31  ;;  %v42_v40 = vld [vmem:[%s15670_s1 + $0x38] sm:$0xff]  ;;  %v89_v41 = vld [vmem:[%s15670_s1 + $0x1b0] sm:$0xff]  ;;  %v59_v49 = vld [vmem:[%s15670_s1 + $0xc0] sm:$0xff] }
   0xb   :  { %8796 = vmatpush3.bf16.msra.mxu1 %v10957_v25  ;;  %v90_v42 = vld [vmem:[%s15670_s1 + $0x1b8] sm:$0xff]  ;;  %v73_v47 = vld [vmem:[%s15670_s1 + $0x130] sm:$0xff]  ;;  %v60_v50 = vld [vmem:[%s15670_s1 + $0xc8] sm:$0xff]  ;;  %v11025_v51 = vpack.c.bf16 %v42_v40, %v41_v37 }
   0xc   :  { %8798 = vmatprep.subr.bf16.mxu1 %v10983_v34  ;;  %v11010_v46 = vpack.c.bf16 %v90_v42, %v89_v41  ;;  %v74_v48 = vld [vmem:[%s15670_s1 + $0x138] sm:$0xff]  ;;  %v91_v52 = vld [vmem:[%s15670_s1 + $0x1c0] sm:$0xff]  ;;  %v92_v53 = vld [vmem:[%s15670_s1 + $0x1c8] sm:$0xff]  ;;  %v11037_v55 = vpack.c.bf16 %v60_v50, %v59_v49 }
   0xd   :  { %8768 = vmatpush3.bf16.msra.mxu0 %v10981_v33  ;;  %v11035_v54 = vpack.c.bf16 %v74_v48, %v73_v47  ;;  %v43_v56 = vld [vmem:[%s15670_s1 + $0x40] sm:$0xff]  ;;  %v44_v57 = vld [vmem:[%s15670_s1 + $0x48] sm:$0xff]  ;;  %v11051_v61 = vpack.c.bf16 %v92_v53, %v91_v52  ;;  %v61_v63 = vld [vmem:[%s15670_s1 + $0xd0] sm:$0xff] }
   0xe   :  { %8770 = vmatprep.subr.bf16.mxu0 %v10998_v39  ;;  %v75_v58 = vld [vmem:[%s15670_s1 + $0x140] sm:$0xff]  ;;  %v76_v62 = vld [vmem:[%s15670_s1 + $0x148] sm:$0xff]  ;;  %v62_v0 = vld [vmem:[%s15670_s1 + $0xd8] sm:$0xff]  ;;  %v11069_v4 = vpack.c.bf16 %v44_v57, %v43_v56 }
   0xf   :  { %8800 = vmatpush3.bf16.msra.mxu1 %v10996_v38  ;;  %v93_v1 = vld [vmem:[%s15670_s1 + $0x1d0] sm:$0xff]  ;;  %v94_v2 = vld [vmem:[%s15670_s1 + $0x1d8] sm:$0xff]  ;;  %v11076_v6 = vpack.c.bf16 %v76_v62, %v75_v58  ;;  %v11078_v9 = vpack.c.bf16 %v62_v0, %v61_v63  ;;  %v63_v18 = vld [vmem:[%s15670_s1 + $0xe0] sm:$0xff] }
  0x10   :  { %8802 = vmatprep.subr.bf16.mxu1 %v11010_v46  ;;  %v45_v5 = vld [vmem:[%s15670_s1 + $0x50] sm:$0xff]  ;;  %v46_v10 = vld [vmem:[%s15670_s1 + $0x58] sm:$0xff]  ;;  %v11093_v15 = vpack.c.bf16 %v94_v2, %v93_v1  ;;  %v64_v19 = vld [vmem:[%s15670_s1 + $0xe8] sm:$0xff] }
  0x11   :  { %8772 = vmatpush3.bf16.msra.mxu0 %v11025_v51  ;;  %v77_v11 = vld [vmem:[%s15670_s1 + $0x150] sm:$0xff]  ;;  %v78_v13 = vld [vmem:[%s15670_s1 + $0x158] sm:$0xff]  ;;  %v95_v20 = vld [vmem:[%s15670_s1 + $0x1e0] sm:$0xff]  ;;  %v11108_v23 = vpack.c.bf16 %v46_v10, %v45_v5  ;;  %v11117_v28 = vpack.c.bf16 %v64_v19, %v63_v18 }
  0x12   :  { %8774 = vmatprep.subr.bf16.mxu0 %v11037_v55  ;;  %v96_v22 = vld [vmem:[%s15670_s1 + $0x1e8] sm:$0xff]  ;;  %v11110_v24 = vpack.c.bf16 %v78_v13, %v77_v11  ;;  %v33_v27 = vld [vmem:[%s15669_s0] sm:$0xff]  ;;  %v65_v40 = vld [vmem:[%s15670_s1 + $0xf0] sm:$0xff] }
  0x13   :  { %8804 = vmatpush3.bf16.msra.mxu1 %v11035_v54  ;;  %v47_v29 = vld [vmem:[%s15670_s1 + $0x60] sm:$0xff]  ;;  %v48_v30 = vld [vmem:[%s15670_s1 + $0x68] sm:$0xff]  ;;  %v123_v32 = vrot.slane %v33_v27, %v11090_v14  ;;  %v116_v35 = vcombine.high %v33_v27, %v33_v27  ;;  %v11130_v36 = vpack.c.bf16 %v96_v22, %v95_v20  ;;  %v66_v41 = vld [vmem:[%s15670_s1 + $0xf8] sm:$0xff] }
  0x14   :  { %8806 = vmatprep.subr.bf16.mxu1 %v11051_v61  ;;  %v79_v31 = vld [vmem:[%s15670_s1 + $0x160] sm:$0xff]  ;;  %v80_v37 = vld [vmem:[%s15670_s1 + $0x168] sm:$0xff]  ;;  %v97_v42 = vld [vmem:[%s15670_s1 + $0x1f0] sm:$0xff]  ;;  %v11149_v47 = vpack.c.bf16 %v48_v30, %v47_v29  ;;  %v11155_v49 = vpack.c.bf16 %v66_v41, %v65_v40 }
  0x15   :  { %8776 = vmatpush3.bf16.msra.mxu0 %v11069_v4  ;;  %v98_v43 = vld [vmem:[%s15670_s1 + $0x1f8] sm:$0xff]  ;;  %v131_v44 = vcombine.high %v123_v32, %v123_v32  ;;  %v130_v45 = vrot.slane %v116_v35, %v11090_v14  ;;  %v11153_v48 = vpack.c.bf16 %v80_v37, %v79_v31  ;;  %v49_v50 = vld [vmem:[%s15670_s1 + $0x70] sm:$0xff] }
  0x16   :  { %8778 = vmatprep.subr.bf16.mxu0 %v11078_v9  ;;  %v50_v52 = vld [vmem:[%s15670_s1 + $0x78] sm:$0xff] }
  0x17   :  { %8808 = vmatpush3.bf16.msra.mxu1 %v11076_v6  ;;  %v132_v53 = vcombine.high %v130_v45, %v130_v45 }
  0x18   :  { %8810 = vmatprep.subr.bf16.mxu1 %v11093_v15 }
  0x19   :  { %8780 = vmatpush3.bf16.msra.mxu0 %v11108_v23 }
  0x1a   :  { %8782 = vmatprep.subr.bf16.mxu0 %v11117_v28 }
  0x1b   :  { %8812 = vmatpush3.bf16.msra.mxu1 %v11110_v24 }
  0x1c   :  { %14 = vsyncpa [#allocation3], 0  ;;  %8814 = vmatprep.subr.bf16.mxu1 %v11130_v36  ;;  %v11164_v56 = vpack.c.bf16 %v98_v43, %v97_v42  ;;  %211 = vmatprep.mubr.f32.mxu0 %v131_v44  ;;  %v81_v57 = vld [vmem:[%s15670_s1 + $0x170] sm:$0xff]  ;;  %v82_v58 = vld [vmem:[%s15670_s1 + $0x178] sm:$0xff]  ;;  %v11173_v59 = vpack.c.bf16 %v50_v52, %v49_v50  ;;  %v10830_v10 = vmov 0.0|0.0   ;;  %vm10831_vm0 = vmmov 0  }
  0x1d   :  { %281 = vmatprep.mubr.f32.mxu1 %v132_v53  ;;  %8784 = vmatpush3.bf16.msra.mxu0 %v11149_v47  ;;  %v6670_v62 = vld [vmem:[%s15669_s0 + $0xa] sm:$0xff]  ;;  %v11180_v63 = vpack.c.bf16 %v82_v58, %v81_v57  ;;  %v99_v0 = vld [vmem:[%s15670_s1 + $0x200] sm:$0xff]  ;;  %v102_v13 = vld [vmem:[%s15670_s1 + $0x218] sm:$0xff]  ;;  %v10832_v27 = vmov 0.0   ;;  %vm144_vm1 = vcmask 523264   ;;  %s10833_s18 = smov [#allocation2]  }
  0x1e   :  { %8786 = vmatprep.subr.bf16.mxu0 %v11155_v49  ;;  %v100_v1 = vld [vmem:[%s15670_s1 + $0x208] sm:$0xff]  ;;  %v500_v2 = vrot.slane %v6670_v62, %v11090_v14  ;;  %v101_v11 = vld [vmem:[%s15670_s1 + $0x210] sm:$0xff]  ;;  %v103_v20 = vld [vmem:[%s15670_s1 + $0x220] sm:$0xff]  ;;  %v493_v30 = vcombine.high %v6670_v62, %v6670_v62  ;;  %s6659_s19 = sshll.u32 %s10833_s18, 4  ;;  %vm6651_vm2 = vcmask 74752   ;;  %s6660_s19 = int_to_ptr.vmem [resolvable:$true] %s6659_s19 }
  0x1f   :  { %8816 = vmatpush3.bf16.msra.mxu1 %v11153_v48  ;;  %v11191_v5 = vpack.c.bf16 %v100_v1, %v99_v0  ;;  %v11203_v19 = vpack.c.bf16 %v102_v13, %v101_v11  ;;  %v104_v22 = vld [vmem:[%s15670_s1 + $0x228] sm:$0xff]  ;;  %v105_v31 = vld [vmem:[%s15670_s1 + $0x230] sm:$0xff]  ;;  %v6686_v52 = vld [vmem:[%s15673_s4 + $0x458] sm:$0xff]  ;;  %p10810_p1 = scmp.lt.s32.totalorder %s6660_s19, %s6660_s19 }
  0x20   :  { %8818 = vmatprep.subr.bf16.mxu1 %v11164_v56  ;;  %v508_v18 = vcombine.high %v500_v2, %v500_v2  ;;  %v11217_v29 = vpack.c.bf16 %v104_v22, %v103_v20  ;;  %v507_v37 = vrot.slane %v493_v30, %v11090_v14  ;;  %v6668_v40 = vld.sshfl [vmem:[%s15669_s0 + $0x8] sm:$0x3 pattern:$0x76325410]  ;;  %v6675_v53 = vld [vmem:[%s15673_s4 + $0x400] sm:$0xff]  ;;  %v6677_v0 = vld [vmem:[%s15673_s4 + $0x410] sm:$0xff] }
  0x21   :  { %8788 = vmatpush3.bf16.msra.mxu0 %v11173_v59  ;;  %v6672_v42 = vld.sshfl [vmem:[%s15669_s0 + $0x12] sm:$0x3 pattern:$0x76325410]  ;;  %v6676_v43 = vld [vmem:[%s15673_s4 + $0x408] sm:$0xff]  ;;  %v6683_v57 = vld [vmem:[%s15673_s4 + $0x440] sm:$0xff] }
  0x22   :  { %8821 = vmatprep.subr.bf16.mxu0 %v10830_v10  ;;  %v509_v41 = vcombine.high %v507_v37, %v507_v37  ;;  %v6684_v44 = vld [vmem:[%s15673_s4 + $0x448] sm:$0xff]  ;;  %v8911_v62 = vpack.c.bf16 %v6683_v57, %v6675_v53  ;;  %v6685_v1 = vld [vmem:[%s15673_s4 + $0x450] sm:$0xff]  ;;  %v6702_v20 = vld [vmem:[%s15673_s4 + $0x4d8] sm:$0xff] }
  0x23   :  { %8820 = vmatpush3.bf16.msra.mxu1 %v11180_v63  ;;  %v8909_v50 = vpack.c.bf16 %v6684_v44, %v6676_v43  ;;  %v8943_v11 = vpack.c.bf16 %v6685_v1, %v6677_v0  ;;  %v6700_v13 = vld [vmem:[%s15673_s4 + $0x4c8] sm:$0xff]  ;;  %v6707_v53 = vld [vmem:[%s15673_s4 + $0x500] sm:$0xff]  ;;  %v6717_v0 = vld [vmem:[%s15673_s4 + $0x550] sm:$0xff] }
  0x24   :  { %8834 = vmatprep.subr.bf16.mxu1 %v10893_v3  ;;  %212 = vmatmul.mubr.f32.vlgmr.msra.gmra.mrb[0].mxu0 %v123_v32  ;;  %v106_v32 = vld [vmem:[%s15670_s1 + $0x238] sm:$0xff]  ;;  %v6716_v43 = vld [vmem:[%s15673_s4 + $0x548] sm:$0xff] }
  0x25   :  { %8823 = vmatpush3.bf16.msra.mxu0 %v11191_v5  ;;  %8602 = vmatprep.mubr.msk.f32.mxu0 %vm10831_vm0, %v10832_v27  ;;  %v11229_v35 = vpack.c.bf16 %v106_v32, %v105_v31  ;;  %v6691_v31 = vld [vmem:[%s15673_s4 + $0x480] sm:$0xff] }
  0x26   :  { %282 = vmatmul.mubr.f32.vlgmr.msra.gmra.mrb[0].mxu1 %v130_v45  ;;  %8824 = vmatprep.subr.bf16.mxu0 %v10830_v10  ;;  %v6678_v45 = vld [vmem:[%s15673_s4 + $0x418] sm:$0xff]  ;;  %v6699_v32 = vld [vmem:[%s15673_s4 + $0x4c0] sm:$0xff] }
  0x27   :  { %8836 = vmatpush3.bf16.msra.mxu1 %v10904_v7  ;;  %587 = vmatprep.mubr.f32.mxu1 %v508_v18  ;;  %v8941_v58 = vpack.c.bf16 %v6686_v52, %v6678_v45  ;;  %v6694_v18 = vld [vmem:[%s15673_s4 + $0x498] sm:$0xff] }
  0x28   :  { %8838 = vmatprep.subr.bf16.mxu1 %v10931_v16  ;;  %v8945_v30 = vpack.c.bf16 %v6702_v20, %v6694_v18  ;;  %v6718_v52 = vld [vmem:[%s15673_s4 + $0x558] sm:$0xff] }
  0x29   :  { %8826 = vmatpush3.bf16.msra.mxu0 %v11203_v19  ;;  %v6726_v18 = vld [vmem:[%s15673_s4 + $0x598] sm:$0xff] }
  0x2a   :  { %8827 = vmatprep.subr.bf16.mxu0 %v10830_v10 }
  0x2b   :  { %8840 = vmatpush3.bf16.msra.mxu1 %v10933_v17 }
  0x2c   :  { %8842 = vmatprep.subr.bf16.mxu1 %v10959_v26 }
  0x2d   :  { %8829 = vmatpush3.bf16.msra.mxu0 %v11217_v29 }
  0x2e   :  { %8830 = vmatprep.subr.bf16.mxu0 %v10830_v10 }
  0x2f   :  { %8844 = vmatpush3.bf16.msra.mxu1 %v10981_v33 }
  0x30   :  { %8846 = vmatprep.subr.bf16.mxu1 %v10998_v39 }
  0x31   :  { %8832 = vmatpush3.bf16.msra.mxu0 %v11229_v35 }
  0x32   :  { %8866 = vmatprep.subr.bf16.mxu0 %v10906_v8 }
  0x33   :  { %8848 = vmatpush3.bf16.msra.mxu1 %v11025_v51 }
  0x34   :  { %8850 = vmatprep.subr.bf16.mxu1 %v11037_v55  ;;  %8603 = vmatmul.mubr.msk.f32.vlgmr.msra.gmra.mrb[2].mxu0 %vm144_vm1, %v6668_v40  ;;  %v8915_v40 = vpack.c.bf16 %v6699_v32, %v6691_v31  ;;  %v6731_v31 = vld [vmem:[%s15673_s4 + $0x5c0] sm:$0xff] }
  0x35   :  { %8868 = vmatpush3.bf16.msra.mxu0 %v10918_v12  ;;  %657 = vmatprep.mubr.f32.mxu0 %v509_v41  ;;  %v6701_v41 = vld [vmem:[%s15673_s4 + $0x4d0] sm:$0xff] }
  0x36   :  { %8870 = vmatprep.subr.bf16.mxu0 %v10945_v21 }
  0x37   :  { %8852 = vmatpush3.bf16.msra.mxu1 %v11069_v4 }
  0x38   :  { %8854 = vmatprep.subr.bf16.mxu1 %v11078_v9 }
  0x39   :  { %8872 = vmatpush3.bf16.msra.mxu0 %v10957_v25 }
  0x3a   :  { %8874 = vmatprep.subr.bf16.mxu0 %v10983_v34 }
  0x3b   :  { %8856 = vmatpush3.bf16.msra.mxu1 %v11108_v23 }
  0x3c   :  { %8858 = vmatprep.subr.bf16.mxu1 %v11117_v28 }
  0x3d   :  { %8876 = vmatpush3.bf16.msra.mxu0 %v10996_v38 }
  0x3e   :  { %8878 = vmatprep.subr.bf16.mxu0 %v11010_v46 }
  0x3f   :  { %8860 = vmatpush3.bf16.msra.mxu1 %v11149_v47 }
  0x40   :  { %8862 = vmatprep.subr.bf16.mxu1 %v11155_v49 }
  0x41   :  { %8880 = vmatpush3.bf16.msra.mxu0 %v11035_v54 }
  0x42   :  { %8882 = vmatprep.subr.bf16.mxu0 %v11051_v61 }
  0x43   :  { %8864 = vmatpush3.bf16.msra.mxu1 %v11173_v59 }
  0x44   :  { %8897 = vmatprep.subr.bf16.mxu1 %v10830_v10 }
  0x45   :  { %8884 = vmatpush3.bf16.msra.mxu0 %v11076_v6 }
  0x46   :  { %588 = vmatmul.mubr.f32.vlgmr.msra.gmra.mrb[2].mxu1 %v500_v2  ;;  %8886 = vmatprep.subr.bf16.mxu0 %v11093_v15  ;;  %v6692_v2 = vld [vmem:[%s15673_s4 + $0x488] sm:$0xff] }
  0x47   :  { %8899 = vmatpush3.bf16.msra.mxu1 %v11191_v5  ;;  %8621 = vmatprep.mubr.msk.f32.mxu1 %vm10831_vm0, %v10832_v27  ;;  %v8913_v22 = vpack.c.bf16 %v6700_v13, %v6692_v2  ;;  %v6732_v13 = vld [vmem:[%s15673_s4 + $0x5c8] sm:$0xff] }
  0x48   :  { %8900 = vmatprep.subr.bf16.mxu1 %v10830_v10 }
  0x49   :  { %8888 = vmatpush3.bf16.msra.mxu0 %v11110_v24 }
  0x4a   :  { %8890 = vmatprep.subr.bf16.mxu0 %v11130_v36 }
  0x4b   :  { %8902 = vmatpush3.bf16.msra.mxu1 %v11203_v19 }
  0x4c   :  { %8903 = vmatprep.subr.bf16.mxu1 %v10830_v10 }
  0x4d   :  { %8892 = vmatpush3.bf16.msra.mxu0 %v11153_v48 }
  0x4e   :  { %8894 = vmatprep.subr.bf16.mxu0 %v11164_v56 }
  0x4f   :  { %8905 = vmatpush3.bf16.msra.mxu1 %v11217_v29 }
  0x50   :  { %8906 = vmatprep.subr.bf16.mxu1 %v10830_v10 }
  0x51   :  { %8896 = vmatpush3.bf16.msra.mxu0 %v11180_v63 }
  0x52   :  { %8910 = vmatprep.subr.bf16.mxu0 %v8909_v50  ;;  %v6710_v50 = vld [vmem:[%s15673_s4 + $0x518] sm:$0xff] }
  0x53   :  { %8908 = vmatpush3.bf16.msra.mxu1 %v11229_v35  ;;  %v8949_v57 = vpack.c.bf16 %v6718_v52, %v6710_v50  ;;  %v6750_v50 = vld [vmem:[%s15673_s4 + $0x658] sm:$0xff] }
  0x54   :  { %658 = vmatmul.mubr.f32.vlgmr.msra.gmra.mrb[4].mxu0 %v507_v37  ;;  %8942 = vmatprep.subr.bf16.mxu1 %v8941_v58  ;;  %v6693_v37 = vld [vmem:[%s15673_s4 + $0x490] sm:$0xff]  ;;  %v6715_v58 = vld [vmem:[%s15673_s4 + $0x540] sm:$0xff] }
  0x55   :  { %930 = vmatprep.mubr.f32.mxu0 %v10832_v27  ;;  %8912 = vmatpush1.bf16.msra.mxu0 %v8911_v62  ;;  %v8947_v44 = vpack.c.bf16 %v6701_v41, %v6693_v37  ;;  %v6709_v62 = vld [vmem:[%s15673_s4 + $0x510] sm:$0xff]  ;;  %v8919_v1 = vpack.c.bf16 %v6715_v58, %v6707_v53  ;;  %v6747_v58 = vld [vmem:[%s15673_s4 + $0x640] sm:$0xff] }
  0x56   :  { %8622 = vmatmul.mubr.msk.f32.vlgmr.msra.gmra.mrb[4].mxu1 %vm144_vm1, %v6672_v42  ;;  %v6708_v42 = vld [vmem:[%s15673_s4 + $0x508] sm:$0xff]  ;;  %8914 = vmatprep.subr.bf16.mxu0 %v8913_v22  ;;  %v8951_v2 = vpack.c.bf16 %v6717_v0, %v6709_v62  ;;  %v6734_v22 = vld [vmem:[%s15673_s4 + $0x5d8] sm:$0xff]  ;;  %v6733_v41 = vld [vmem:[%s15673_s4 + $0x5d0] sm:$0xff] }
  0x57   :  { %1001 = vmatprep.mubr.f32.mxu1 %v10832_v27  ;;  %8944 = vmatpush1.bf16.msra.mxu1 %v8943_v11  ;;  %v8917_v45 = vpack.c.bf16 %v6716_v43, %v6708_v42  ;;  %v6724_v11 = vld [vmem:[%s15673_s4 + $0x588] sm:$0xff]  ;;  %v8953_v32 = vpack.c.bf16 %v6734_v22, %v6726_v18  ;;  %v6741_v62 = vld [vmem:[%s15673_s4 + $0x610] sm:$0xff]  ;;  %v6766_v22 = vld [vmem:[%s15673_s4 + $0x6d8] sm:$0xff] }
  0x58   :  { %8946 = vmatprep.subr.bf16.mxu1 %v8945_v30  ;;  %v8921_v20 = vpack.c.bf16 %v6732_v13, %v6724_v11  ;;  %v6723_v30 = vld [vmem:[%s15673_s4 + $0x580] sm:$0xff]  ;;  %v6740_v42 = vld [vmem:[%s15673_s4 + $0x608] sm:$0xff] }
  0x59   :  { %8916 = vmatpush1.bf16.msra.mxu0 %v8915_v40  ;;  %v8923_v37 = vpack.c.bf16 %v6731_v31, %v6723_v30  ;;  %v6725_v40 = vld [vmem:[%s15673_s4 + $0x590] sm:$0xff]  ;;  %v6764_v11 = vld [vmem:[%s15673_s4 + $0x6c8] sm:$0xff]  ;;  %v6755_v31 = vld [vmem:[%s15673_s4 + $0x680] sm:$0xff] }
  0x5a   :  { %8918 = vmatprep.subr.bf16.mxu0 %v8917_v45  ;;  %v8955_v43 = vpack.c.bf16 %v6733_v41, %v6725_v40  ;;  %v6742_v45 = vld [vmem:[%s15673_s4 + $0x618] sm:$0xff]  ;;  %v6765_v41 = vld [vmem:[%s15673_s4 + $0x6d0] sm:$0xff] }
  0x5b   :  { %8948 = vmatpush1.bf16.msra.mxu1 %v8947_v44  ;;  %v6748_v44 = vld [vmem:[%s15673_s4 + $0x648] sm:$0xff]  ;;  %v8957_v53 = vpack.c.bf16 %v6750_v50, %v6742_v45  ;;  %v6774_v45 = vld [vmem:[%s15673_s4 + $0x718] sm:$0xff] }
  0x5c   :  { %8950 = vmatprep.subr.bf16.mxu1 %v8949_v57  ;;  %v8925_v52 = vpack.c.bf16 %v6748_v44, %v6740_v42  ;;  %v6739_v57 = vld [vmem:[%s15673_s4 + $0x600] sm:$0xff]  ;;  %v6780_v44 = vld [vmem:[%s15673_s4 + $0x748] sm:$0xff] }
  0x5d   :  { %8920 = vmatpush1.bf16.msra.mxu0 %v8919_v1  ;;  %v8927_v0 = vpack.c.bf16 %v6747_v58, %v6739_v57  ;;  %v6749_v1 = vld [vmem:[%s15673_s4 + $0x650] sm:$0xff]  ;;  %v6779_v57 = vld [vmem:[%s15673_s4 + $0x740] sm:$0xff] }
  0x5e   :  { %8922 = vmatprep.subr.bf16.mxu0 %v8921_v20  ;;  %v8959_v13 = vpack.c.bf16 %v6749_v1, %v6741_v62  ;;  %v6758_v20 = vld [vmem:[%s15673_s4 + $0x698] sm:$0xff]  ;;  %v6781_v1 = vld [vmem:[%s15673_s4 + $0x750] sm:$0xff] }
  0x5f   :  { %8952 = vmatpush1.bf16.msra.mxu1 %v8951_v2  ;;  %v6756_v2 = vld [vmem:[%s15673_s4 + $0x688] sm:$0xff]  ;;  %v8961_v30 = vpack.c.bf16 %v6766_v22, %v6758_v20  ;;  %v6798_v22 = vld [vmem:[%s15673_s4 + $0x7d8] sm:$0xff] }
  0x60   :  { %8954 = vmatprep.subr.bf16.mxu1 %v8953_v32  ;;  %v8929_v18 = vpack.c.bf16 %v6764_v11, %v6756_v2  ;;  %v6763_v32 = vld [vmem:[%s15673_s4 + $0x6c0] sm:$0xff]  ;;  %v6788_v11 = vld [vmem:[%s15673_s4 + $0x788] sm:$0xff] }
  0x61   :  { %8924 = vmatpush1.bf16.msra.mxu0 %v8923_v37  ;;  %v6757_v37 = vld [vmem:[%s15673_s4 + $0x690] sm:$0xff]  ;;  %v8931_v40 = vpack.c.bf16 %v6763_v32, %v6755_v31  ;;  %v6795_v31 = vld [vmem:[%s15673_s4 + $0x7c0] sm:$0xff] }
  0x62   :  { %8926 = vmatprep.subr.bf16.mxu0 %v8925_v52  ;;  %v8963_v42 = vpack.c.bf16 %v6765_v41, %v6757_v37  ;;  %v6782_v52 = vld [vmem:[%s15673_s4 + $0x758] sm:$0xff]  ;;  %v6797_v41 = vld [vmem:[%s15673_s4 + $0x7d0] sm:$0xff] }
  0x63   :  { %8956 = vmatpush1.bf16.msra.mxu1 %v8955_v43  ;;  %v6772_v43 = vld [vmem:[%s15673_s4 + $0x708] sm:$0xff]  ;;  %v8965_v58 = vpack.c.bf16 %v6782_v52, %v6774_v45  ;;  %v6690_v52 = vld [vmem:[%s15673_s4 + $0x478] sm:$0xff] }
  0x64   :  { %8958 = vmatprep.subr.bf16.mxu1 %v8957_v53  ;;  %v8933_v50 = vpack.c.bf16 %v6780_v44, %v6772_v43  ;;  %v6771_v53 = vld [vmem:[%s15673_s4 + $0x700] sm:$0xff]  ;;  %v6680_v43 = vld [vmem:[%s15673_s4 + $0x428] sm:$0xff] }
  0x65   :  { %8928 = vmatpush1.bf16.msra.mxu0 %v8927_v0  ;;  %v8935_v62 = vpack.c.bf16 %v6779_v57, %v6771_v53  ;;  %v6773_v0 = vld [vmem:[%s15673_s4 + $0x710] sm:$0xff]  ;;  %v6688_v44 = vld [vmem:[%s15673_s4 + $0x468] sm:$0xff] }
  0x66   :  { %8930 = vmatprep.subr.bf16.mxu0 %v8929_v18  ;;  %v8967_v2 = vpack.c.bf16 %v6781_v1, %v6773_v0  ;;  %v6790_v18 = vld [vmem:[%s15673_s4 + $0x798] sm:$0xff]  ;;  %v8973_v45 = vpack.c.bf16 %v6688_v44, %v6680_v43 }
  0x67   :  { %8960 = vmatpush1.bf16.msra.mxu1 %v8959_v13  ;;  %v6796_v13 = vld [vmem:[%s15673_s4 + $0x7c8] sm:$0xff]  ;;  %v8969_v32 = vpack.c.bf16 %v6798_v22, %v6790_v18 }
  0x68   :  { %8962 = vmatprep.subr.bf16.mxu1 %v8961_v30  ;;  %v8937_v20 = vpack.c.bf16 %v6796_v13, %v6788_v11  ;;  %v6787_v30 = vld [vmem:[%s15673_s4 + $0x780] sm:$0xff] }
  0x69   :  { %8932 = vmatpush1.bf16.msra.mxu0 %v8931_v40  ;;  %v8939_v37 = vpack.c.bf16 %v6795_v31, %v6787_v30  ;;  %v6789_v40 = vld [vmem:[%s15673_s4 + $0x790] sm:$0xff] }
  0x6a   :  { %8934 = vmatprep.subr.bf16.mxu0 %v8933_v50  ;;  %v6682_v50 = vld [vmem:[%s15673_s4 + $0x438] sm:$0xff] }
  0x6b   :  { %8964 = vmatpush1.bf16.msra.mxu1 %v8963_v42  ;;  %v8971_v42 = vpack.c.bf16 %v6797_v41, %v6789_v40  ;;  %v9005_v53 = vpack.c.bf16 %v6690_v52, %v6682_v50  ;;  %v6674_v52 = vld [vmem:[%s15672_s3 + $0x2] sm:$0x3] }
  0x6c   :  { %8966 = vmatprep.subr.bf16.mxu1 %v8965_v58  ;;  %v6667_v58 = vld [vmem:[%s15671_s2] ss:$0 sm:$0xff] }
  0x6d   :  { %8936 = vmatpush1.bf16.msra.mxu0 %v8935_v62 }
  0x6e   :  { %8938 = vmatprep.subr.bf16.mxu0 %v8937_v20 }
  0x6f   :  { %8968 = vmatpush1.bf16.msra.mxu1 %v8967_v2 }
  0x70   :  { %8970 = vmatprep.subr.bf16.mxu1 %v8969_v32 }
  0x71   :  { %8940 = vmatpush1.bf16.msra.mxu0 %v8939_v37 }
  0x72   :  { %8974 = vmatprep.subr.bf16.mxu0 %v8973_v45 }
  0x73   :  { %8972 = vmatpush1.bf16.msra.mxu1 %v8971_v42 }
  0x74   :  { %9006 = vmatprep.subr.bf16.mxu1 %v9005_v53  ;;  %v6679_v53 = vld [vmem:[%s15673_s4 + $0x420] sm:$0xff] }
  0xf7   :  { %v7767_v57 = vpop.f32.mrb[0].mxu0 }
  0xf8   :  { %v7768_v62 = vpop.f32.mrb[1].mxu0 }
  0xf9   :  { %v7802_v0 = vpop.f32.mrb[0].mxu1  ;;  %v7769_v1 = vadd.f32 %v7768_v62, %v7767_v57  ;;  %v6687_v57 = vld [vmem:[%s15673_s4 + $0x460] sm:$0xff] }
  0xfa   :  { %v7803_v2 = vpop.f32.mrb[1].mxu1 }
  0xfb   :  { %v7804_v11 = vadd.f32 %v7803_v2, %v7802_v0  ;;  %v214_v13 = vadd.f32 %v7769_v1, %v6667_v58  ;;  %v6689_v0 = vld [vmem:[%s15673_s4 + $0x470] sm:$0xff]  ;;  %v6696_v1 = vld [vmem:[%s15673_s4 + $0x4a8] sm:$0xff] }
  0xfc   :  { %v6704_v2 = vld [vmem:[%s15673_s4 + $0x4e8] sm:$0xff] }
  0xfd   :  { %v284_v18 = vadd.f32 %v7804_v11, %v214_v13  ;;  %v6698_v11 = vld [vmem:[%s15673_s4 + $0x4b8] sm:$0xff] }
  0xfe   :  { %v6706_v13 = vld [vmem:[%s15673_s4 + $0x4f8] sm:$0xff] }
 0x107   :  { %v353_v20 = vpop.f32.mrb[2].mxu0 }
 0x108   :  { %v11488_v22 = vadd.f32 %v353_v20, %v284_v18  ;;  %v8604_v30 = vpop.f32.mrb[3].mxu0  ;;  %v8975_v20 = vpack.c.bf16 %v6687_v57, %v6679_v53 }
 0x119   :  { %v7846_v31 = vpop.f32.mrb[2].mxu1 }
 0x11a   :  { %v7847_v32 = vpop.f32.mrb[3].mxu1 }
 0x11b   :  { %v7848_v37 = vadd.f32 %v7847_v32, %v7846_v31  ;;  %v6695_v31 = vld [vmem:[%s15673_s4 + $0x4a0] sm:$0xff] }
 0x11c   :  { %v6703_v32 = vld [vmem:[%s15673_s4 + $0x4e0] sm:$0xff] }
 0x11d   :  { %v590_v43 = vadd.f32 %v7848_v37, %v6667_v58  ;;  %v6681_v58 = vld [vmem:[%s15673_s4 + $0x430] sm:$0xff]  ;;  %v8979_v53 = vpack.c.bf16 %v6703_v32, %v6695_v31 }
 0x11e   :  { %v9007_v30 = vpack.c.bf16 %v6689_v0, %v6681_v58  ;;  %v6719_v58 = vld [vmem:[%s15673_s4 + $0x560] sm:$0xff] }
 0x127   :  { %v7881_v40 = vpop.f32.mrb[4].mxu0 }
 0x128   :  { %v7882_v41 = vpop.f32.mrb[5].mxu0 }
 0x129   :  { %v729_v42 = vpop.f32.mrb[4].mxu1  ;;  %v7883_v44 = vadd.f32 %v7882_v41, %v7881_v40  ;;  %v8977_v40 = vpack.c.bf16 %v6704_v2, %v6696_v1  ;;  %v9009_v41 = vpack.c.bf16 %v6706_v13, %v6698_v11  ;;  %v6713_v2 = vld [vmem:[%s15673_s4 + $0x530] sm:$0xff]  ;;  %v6728_v13 = vld [vmem:[%s15673_s4 + $0x5a8] sm:$0xff] }
 0x12a   :  { %v8623_v45 = vpop.f32.mrb[5].mxu1  ;;  %v6721_v11 = vld [vmem:[%s15673_s4 + $0x570] sm:$0xff] }
 0x12b   :  { %v660_v50 = vadd.f32 %v7883_v44, %v590_v43  ;;  %v6705_v43 = vld [vmem:[%s15673_s4 + $0x4f0] sm:$0xff]  ;;  %v6712_v44 = vld [vmem:[%s15673_s4 + $0x528] sm:$0xff]  ;;  %v9015_v32 = vpack.c.bf16 %v6721_v11, %v6713_v2 }
 0x12c   :  { %v6720_v45 = vld [vmem:[%s15673_s4 + $0x568] sm:$0xff] }
 0x12d   :  { %v730_v62 = vadd.f32 %v729_v42, %v660_v50  ;;  %v6697_v42 = vld [vmem:[%s15673_s4 + $0x4b0] sm:$0xff]  ;;  %v6714_v50 = vld [vmem:[%s15673_s4 + $0x538] sm:$0xff]  ;;  %v8981_v0 = vpack.c.bf16 %v6720_v45, %v6712_v44 }
 0x12e   :  { %v9011_v57 = vpack.c.bf16 %v6705_v43, %v6697_v42  ;;  %v6729_v44 = vld [vmem:[%s15673_s4 + $0x5b0] sm:$0xff] }
 0x12f   :  { %v733_v18 = vmax.f32 %v730_v62, 0.0  ;;  %v6711_v62 = vld [vmem:[%s15673_s4 + $0x520] sm:$0xff]  ;;  %v6737_v45 = vld [vmem:[%s15673_s4 + $0x5f0] sm:$0xff] }
 0x130   :  { %v8983_v31 = vpack.c.bf16 %v6719_v58, %v6711_v62  ;;  %v9019_v58 = vpack.c.bf16 %v6737_v45, %v6729_v44 }
 0x131   :  { %v11523_v37 = vmul.f32 %v6674_v52, %v733_v18  ;;  %v6722_v52 = vld [vmem:[%s15673_s4 + $0x578] sm:$0xff]  ;;  %v6736_v18 = vld [vmem:[%s15673_s4 + $0x5e8] sm:$0xff] }
 0x132   :  { %v9013_v1 = vpack.c.bf16 %v6722_v52, %v6714_v50  ;;  %v8985_v42 = vpack.c.bf16 %v6736_v18, %v6728_v13  ;;  %v6744_v50 = vld [vmem:[%s15673_s4 + $0x628] sm:$0xff]  ;;  %v6745_v13 = vld [vmem:[%s15673_s4 + $0x630] sm:$0xff] }
 0x133   :  { %931 = vmatmul.mubr.f32.vlgmr.msra.gmra.mrb[6].mxu0 %v11523_v37  ;;  %1002 = vmatmul.mubr.f32.vlgmr.msra.gmra.mrb[6].mxu1 %v11523_v37  ;;  %v6752_v52 = vld [vmem:[%s15673_s4 + $0x668] sm:$0xff]  ;;  %v6753_v18 = vld [vmem:[%s15673_s4 + $0x670] sm:$0xff] }
 0x134   :  { %8976 = vmatpush1.bf16.msra.mxu0 %v8975_v20  ;;  %9008 = vmatpush1.bf16.msra.mxu1 %v9007_v30  ;;  %v6730_v20 = vld [vmem:[%s15673_s4 + $0x5b8] sm:$0xff]  ;;  %v8989_v2 = vpack.c.bf16 %v6752_v52, %v6744_v50  ;;  %v6761_v50 = vld [vmem:[%s15673_s4 + $0x6b0] sm:$0xff] }
 0x135   :  { %8978 = vmatprep.subr.bf16.mxu0 %v8977_v40  ;;  %9010 = vmatprep.subr.bf16.mxu1 %v9009_v41  ;;  %v6738_v30 = vld [vmem:[%s15673_s4 + $0x5f8] sm:$0xff]  ;;  %v6727_v40 = vld [vmem:[%s15673_s4 + $0x5a0] sm:$0xff]  ;;  %v6769_v52 = vld [vmem:[%s15673_s4 + $0x6f0] sm:$0xff] }
 0x136   :  { %1072 = vmatprep.mubr.f32.mxu0 %v10832_v27  ;;  %1143 = vmatprep.mubr.f32.mxu1 %v10832_v27  ;;  %v6735_v41 = vld [vmem:[%s15673_s4 + $0x5e0] sm:$0xff]  ;;  %v9017_v43 = vpack.c.bf16 %v6738_v30, %v6730_v20  ;;  %v6760_v20 = vld [vmem:[%s15673_s4 + $0x6a8] sm:$0xff] }
 0x137   :  { %v8987_v62 = vpack.c.bf16 %v6735_v41, %v6727_v40  ;;  %v6768_v30 = vld [vmem:[%s15673_s4 + $0x6e8] sm:$0xff]  ;;  %v9023_v41 = vpack.c.bf16 %v6753_v18, %v6745_v13 }
 0x138   :  { %8980 = vmatpush1.bf16.msra.mxu0 %v8979_v53  ;;  %9012 = vmatpush1.bf16.msra.mxu1 %v9011_v57  ;;  %v6746_v53 = vld [vmem:[%s15673_s4 + $0x638] sm:$0xff]  ;;  %v8993_v44 = vpack.c.bf16 %v6768_v30, %v6760_v20  ;;  %v6777_v20 = vld [vmem:[%s15673_s4 + $0x730] sm:$0xff] }
 0x139   :  { %8982 = vmatprep.subr.bf16.mxu0 %v8981_v0  ;;  %9014 = vmatprep.subr.bf16.mxu1 %v9013_v1  ;;  %v6754_v57 = vld [vmem:[%s15673_s4 + $0x678] sm:$0xff]  ;;  %v6743_v0 = vld [vmem:[%s15673_s4 + $0x620] sm:$0xff]  ;;  %v6785_v30 = vld [vmem:[%s15673_s4 + $0x770] sm:$0xff] }
 0x13a   :  { %v6751_v1 = vld [vmem:[%s15673_s4 + $0x660] sm:$0xff]  ;;  %v9021_v11 = vpack.c.bf16 %v6754_v57, %v6746_v53  ;;  %v6776_v53 = vld [vmem:[%s15673_s4 + $0x728] sm:$0xff] }
 0x13b   :  { %v8991_v40 = vpack.c.bf16 %v6751_v1, %v6743_v0  ;;  %v6784_v57 = vld [vmem:[%s15673_s4 + $0x768] sm:$0xff]  ;;  %v9027_v1 = vpack.c.bf16 %v6769_v52, %v6761_v50 }
 0x13c   :  { %8984 = vmatpush1.bf16.msra.mxu0 %v8983_v31  ;;  %9016 = vmatpush1.bf16.msra.mxu1 %v9015_v32  ;;  %v6762_v31 = vld [vmem:[%s15673_s4 + $0x6b8] sm:$0xff]  ;;  %v8997_v13 = vpack.c.bf16 %v6784_v57, %v6776_v53  ;;  %v6793_v53 = vld [vmem:[%s15673_s4 + $0x7b0] sm:$0xff] }
 0x13d   :  { %8986 = vmatprep.subr.bf16.mxu0 %v8985_v42  ;;  %9018 = vmatprep.subr.bf16.mxu1 %v9017_v43  ;;  %v6770_v32 = vld [vmem:[%s15673_s4 + $0x6f8] sm:$0xff]  ;;  %v6759_v42 = vld [vmem:[%s15673_s4 + $0x6a0] sm:$0xff]  ;;  %v6801_v57 = vld [vmem:[%s15673_s4 + $0x7f0] sm:$0xff] }
 0x13e   :  { %v6767_v43 = vld [vmem:[%s15673_s4 + $0x6e0] sm:$0xff]  ;;  %v9025_v45 = vpack.c.bf16 %v6770_v32, %v6762_v31  ;;  %v6792_v31 = vld [vmem:[%s15673_s4 + $0x7a8] sm:$0xff] }
 0x13f   :  { %v8995_v0 = vpack.c.bf16 %v6767_v43, %v6759_v42  ;;  %v6800_v32 = vld [vmem:[%s15673_s4 + $0x7e8] sm:$0xff]  ;;  %v9031_v43 = vpack.c.bf16 %v6785_v30, %v6777_v20 }
 0x140   :  { %8988 = vmatpush1.bf16.msra.mxu0 %v8987_v62  ;;  %9020 = vmatpush1.bf16.msra.mxu1 %v9019_v58  ;;  %v6778_v62 = vld [vmem:[%s15673_s4 + $0x738] sm:$0xff]  ;;  %v9001_v50 = vpack.c.bf16 %v6800_v32, %v6792_v31  ;;  %v362_v31 = vld [vmem:[%s15673_s4 + $0x10] sm:$0xff] }
 0x141   :  { %8990 = vmatprep.subr.bf16.mxu0 %v8989_v2  ;;  %9022 = vmatprep.subr.bf16.mxu1 %v9021_v11  ;;  %v6786_v58 = vld [vmem:[%s15673_s4 + $0x778] sm:$0xff]  ;;  %v6775_v2 = vld [vmem:[%s15673_s4 + $0x720] sm:$0xff]  ;;  %v370_v32 = vld [vmem:[%s15673_s4 + $0x50] sm:$0xff] }
 0x142   :  { %v6783_v11 = vld [vmem:[%s15673_s4 + $0x760] sm:$0xff]  ;;  %v9029_v18 = vpack.c.bf16 %v6786_v58, %v6778_v62  ;;  %v361_v62 = vld [vmem:[%s15673_s4 + $0x8] sm:$0xff] }
 0x143   :  { %v8999_v42 = vpack.c.bf16 %v6783_v11, %v6775_v2  ;;  %v369_v58 = vld [vmem:[%s15673_s4 + $0x48] sm:$0xff]  ;;  %v9035_v11 = vpack.c.bf16 %v6801_v57, %v6793_v53 }
 0x144   :  { %8992 = vmatpush1.bf16.msra.mxu0 %v8991_v40  ;;  %9024 = vmatpush1.bf16.msra.mxu1 %v9023_v41  ;;  %v6794_v40 = vld [vmem:[%s15673_s4 + $0x7b8] sm:$0xff]  ;;  %v9037_v20 = vpack.c.bf16 %v369_v58, %v361_v62  ;;  %v378_v62 = vld [vmem:[%s15673_s4 + $0x90] sm:$0xff] }
 0x145   :  { %8994 = vmatprep.subr.bf16.mxu0 %v8993_v44  ;;  %9026 = vmatprep.subr.bf16.mxu1 %v9025_v45  ;;  %v6802_v41 = vld [vmem:[%s15673_s4 + $0x7f8] sm:$0xff]  ;;  %v6791_v44 = vld [vmem:[%s15673_s4 + $0x7a0] sm:$0xff]  ;;  %v386_v58 = vld [vmem:[%s15673_s4 + $0xd0] sm:$0xff] }
 0x146   :  { %v6799_v45 = vld [vmem:[%s15673_s4 + $0x7e0] sm:$0xff]  ;;  %v9033_v52 = vpack.c.bf16 %v6802_v41, %v6794_v40  ;;  %v377_v40 = vld [vmem:[%s15673_s4 + $0x88] sm:$0xff] }
 0x147   :  { %v9003_v2 = vpack.c.bf16 %v6799_v45, %v6791_v44  ;;  %v385_v41 = vld [vmem:[%s15673_s4 + $0xc8] sm:$0xff]  ;;  %v9071_v45 = vpack.c.bf16 %v370_v32, %v362_v31 }
 0x148   :  { %8996 = vmatpush1.bf16.msra.mxu0 %v8995_v0  ;;  %9028 = vmatpush1.bf16.msra.mxu1 %v9027_v1  ;;  %v363_v0 = vld [vmem:[%s15673_s4 + $0x18] sm:$0xff]  ;;  %v9041_v53 = vpack.c.bf16 %v385_v41, %v377_v40  ;;  %v402_v40 = vld [vmem:[%s15673_s4 + $0x150] sm:$0xff]  ;;  %v409_v41 = vld [vmem:[%s15673_s4 + $0x188] sm:$0xff] }
 0x149   :  { %8998 = vmatprep.subr.bf16.mxu0 %v8997_v13  ;;  %9030 = vmatprep.subr.bf16.mxu1 %v9029_v18  ;;  %v371_v1 = vld [vmem:[%s15673_s4 + $0x58] sm:$0xff]  ;;  %v360_v13 = vld [vmem:[%s15673_s4] sm:$0xff] }
 0x14a   :  { %v368_v18 = vld [vmem:[%s15673_s4 + $0x40] sm:$0xff]  ;;  %v9069_v30 = vpack.c.bf16 %v371_v1, %v363_v0  ;;  %v393_v0 = vld [vmem:[%s15673_s4 + $0x108] sm:$0xff] }
 0x14b   :  { %v9039_v44 = vpack.c.bf16 %v368_v18, %v360_v13  ;;  %v401_v1 = vld [vmem:[%s15673_s4 + $0x148] sm:$0xff]  ;;  %v9075_v18 = vpack.c.bf16 %v386_v58, %v378_v62  ;;  %v410_v58 = vld [vmem:[%s15673_s4 + $0x190] sm:$0xff] }
 0x14c   :  { %9000 = vmatpush1.bf16.msra.mxu0 %v8999_v42  ;;  %9032 = vmatpush1.bf16.msra.mxu1 %v9031_v43  ;;  %v379_v42 = vld [vmem:[%s15673_s4 + $0x98] sm:$0xff]  ;;  %v9045_v31 = vpack.c.bf16 %v401_v1, %v393_v0  ;;  %v418_v0 = vld [vmem:[%s15673_s4 + $0x1d0] sm:$0xff]  ;;  %v425_v1 = vld [vmem:[%s15673_s4 + $0x208] sm:$0xff] }
 0x14d   :  { %9002 = vmatprep.subr.bf16.mxu0 %v9001_v50  ;;  %9034 = vmatprep.subr.bf16.mxu1 %v9033_v52  ;;  %v387_v43 = vld [vmem:[%s15673_s4 + $0xd8] sm:$0xff]  ;;  %v376_v50 = vld [vmem:[%s15673_s4 + $0x80] sm:$0xff] }
 0x14e   :  { %v384_v52 = vld [vmem:[%s15673_s4 + $0xc0] sm:$0xff]  ;;  %v9073_v57 = vpack.c.bf16 %v387_v43, %v379_v42  ;;  %v417_v42 = vld [vmem:[%s15673_s4 + $0x1c8] sm:$0xff]  ;;  %v411_v43 = vld [vmem:[%s15673_s4 + $0x198] sm:$0xff] }
 0x14f   :  { %v9043_v13 = vpack.c.bf16 %v384_v52, %v376_v50  ;;  %v408_v52 = vld [vmem:[%s15673_s4 + $0x180] sm:$0xff] }
 0x150   :  { %9004 = vmatpush1.bf16.msra.mxu0 %v9003_v2  ;;  %9036 = vmatpush1.bf16.msra.mxu1 %v9035_v11  ;;  %v395_v2 = vld [vmem:[%s15673_s4 + $0x118] sm:$0xff] }
 0x151   :  { %9038 = vmatprep.subr.bf16.mxu0 %v9037_v20  ;;  %9070 = vmatprep.subr.bf16.mxu1 %v9069_v30  ;;  %v403_v11 = vld [vmem:[%s15673_s4 + $0x158] sm:$0xff]  ;;  %v392_v20 = vld [vmem:[%s15673_s4 + $0x100] sm:$0xff] }
 0x152   :  { %v400_v30 = vld [vmem:[%s15673_s4 + $0x140] sm:$0xff]  ;;  %v9077_v32 = vpack.c.bf16 %v403_v11, %v395_v2  ;;  %v433_v2 = vld [vmem:[%s15673_s4 + $0x248] sm:$0xff]  ;;  %v427_v11 = vld [vmem:[%s15673_s4 + $0x218] sm:$0xff] }
 0x153   :  { %1073 = vmatmul.mubr.f32.vlgmr.msra.gmra.mrb[8].mxu0 %v11523_v37  ;;  %1144 = vmatmul.mubr.f32.vlgmr.msra.gmra.mrb[8].mxu1 %v11523_v37  ;;  %v394_v37 = vld [vmem:[%s15673_s4 + $0x110] sm:$0xff] }
 0x154   :  { %9040 = vmatpush1.bf16.msra.mxu0 %v9039_v44  ;;  %9072 = vmatpush1.bf16.msra.mxu1 %v9071_v45  ;;  %v419_v44 = vld [vmem:[%s15673_s4 + $0x1d8] sm:$0xff]  ;;  %v9047_v45 = vpack.c.bf16 %v400_v30, %v392_v20  ;;  %v9079_v50 = vpack.c.bf16 %v402_v40, %v394_v37  ;;  %v9083_v20 = vpack.c.bf16 %v418_v0, %v410_v58  ;;  %v424_v30 = vld [vmem:[%s15673_s4 + $0x200] sm:$0xff]  ;;  %v426_v40 = vld [vmem:[%s15673_s4 + $0x210] sm:$0xff] }
 0x155   :  { %9042 = vmatprep.subr.bf16.mxu0 %v9041_v53  ;;  %9074 = vmatprep.subr.bf16.mxu1 %v9073_v57  ;;  %v416_v53 = vld [vmem:[%s15673_s4 + $0x1c0] sm:$0xff]  ;;  %v9049_v57 = vpack.c.bf16 %v417_v42, %v409_v41  ;;  %v9081_v62 = vpack.c.bf16 %v419_v44, %v411_v43  ;;  %v434_v41 = vld [vmem:[%s15673_s4 + $0x250] sm:$0xff]  ;;  %v441_v42 = vld [vmem:[%s15673_s4 + $0x288] sm:$0xff] }
 0x156   :  { %1214 = vmatprep.mubr.f32.mxu0 %v10832_v27  ;;  %1285 = vmatprep.mubr.f32.mxu1 %v10832_v27  ;;  %v449_v43 = vld [vmem:[%s15673_s4 + $0x2c8] sm:$0xff]  ;;  %v443_v44 = vld [vmem:[%s15673_s4 + $0x298] sm:$0xff]  ;;  %v442_v0 = vld [vmem:[%s15673_s4 + $0x290] sm:$0xff] }
 0x158   :  { %9044 = vmatpush1.bf16.msra.mxu0 %v9043_v13  ;;  %9076 = vmatpush1.bf16.msra.mxu1 %v9075_v18  ;;  %v435_v13 = vld [vmem:[%s15673_s4 + $0x258] sm:$0xff]  ;;  %v9051_v18 = vpack.c.bf16 %v416_v53, %v408_v52  ;;  %v9087_v52 = vpack.c.bf16 %v434_v41, %v426_v40  ;;  %v440_v53 = vld [vmem:[%s15673_s4 + $0x280] sm:$0xff]  ;;  %v458_v41 = vld [vmem:[%s15673_s4 + $0x310] sm:$0xff] }
 0x159   :  { %9046 = vmatprep.subr.bf16.mxu0 %v9045_v31  ;;  %9078 = vmatprep.subr.bf16.mxu1 %v9077_v32  ;;  %v432_v31 = vld [vmem:[%s15673_s4 + $0x240] sm:$0xff]  ;;  %v9053_v32 = vpack.c.bf16 %v433_v2, %v425_v1  ;;  %v9085_v37 = vpack.c.bf16 %v435_v13, %v427_v11  ;;  %v450_v1 = vld [vmem:[%s15673_s4 + $0x2d0] sm:$0xff]  ;;  %v457_v2 = vld [vmem:[%s15673_s4 + $0x308] sm:$0xff] }
 0x15a   :  { %v465_v11 = vld [vmem:[%s15673_s4 + $0x348] sm:$0xff]  ;;  %v459_v13 = vld [vmem:[%s15673_s4 + $0x318] sm:$0xff] }
 0x15c   :  { %9048 = vmatpush1.bf16.msra.mxu0 %v9047_v45  ;;  %9080 = vmatpush1.bf16.msra.mxu1 %v9079_v50  ;;  %v451_v45 = vld [vmem:[%s15673_s4 + $0x2d8] sm:$0xff]  ;;  %v9055_v50 = vpack.c.bf16 %v432_v31, %v424_v30  ;;  %v9091_v30 = vpack.c.bf16 %v450_v1, %v442_v0  ;;  %v456_v31 = vld [vmem:[%s15673_s4 + $0x300] sm:$0xff]  ;;  %v474_v1 = vld [vmem:[%s15673_s4 + $0x390] sm:$0xff] }
 0x15d   :  { %9050 = vmatprep.subr.bf16.mxu0 %v9049_v57  ;;  %9082 = vmatprep.subr.bf16.mxu1 %v9081_v62  ;;  %v448_v57 = vld [vmem:[%s15673_s4 + $0x2c0] sm:$0xff]  ;;  %v9057_v62 = vpack.c.bf16 %v449_v43, %v441_v42  ;;  %v9089_v58 = vpack.c.bf16 %v451_v45, %v443_v44  ;;  %v466_v42 = vld [vmem:[%s15673_s4 + $0x350] sm:$0xff]  ;;  %v473_v43 = vld [vmem:[%s15673_s4 + $0x388] sm:$0xff] }
 0x15e   :  { %v481_v44 = vld [vmem:[%s15673_s4 + $0x3c8] sm:$0xff]  ;;  %v475_v45 = vld [vmem:[%s15673_s4 + $0x398] sm:$0xff] }
 0x160   :  { %9052 = vmatpush1.bf16.msra.mxu0 %v9051_v18  ;;  %9084 = vmatpush1.bf16.msra.mxu1 %v9083_v20  ;;  %v467_v18 = vld [vmem:[%s15673_s4 + $0x358] sm:$0xff]  ;;  %v9059_v20 = vpack.c.bf16 %v448_v57, %v440_v53  ;;  %v9095_v53 = vpack.c.bf16 %v466_v42, %v458_v41  ;;  %v472_v57 = vld [vmem:[%s15673_s4 + $0x380] sm:$0xff]  ;;  %v357_v41 = vmax.f32 %v11488_v22, 0.0  ;;  %v389_v22 = vld [vmem:[%s15673_s4 + $0xe8] sm:$0xff] }
 0x161   :  { %9054 = vmatprep.subr.bf16.mxu0 %v9053_v32  ;;  %9086 = vmatprep.subr.bf16.mxu1 %v9085_v37  ;;  %v464_v32 = vld [vmem:[%s15673_s4 + $0x340] sm:$0xff]  ;;  %v9061_v37 = vpack.c.bf16 %v465_v11, %v457_v2  ;;  %v9093_v40 = vpack.c.bf16 %v467_v18, %v459_v13  ;;  %v482_v2 = vld [vmem:[%s15673_s4 + $0x3d0] sm:$0xff]  ;;  %v365_v11 = vld [vmem:[%s15673_s4 + $0x28] sm:$0xff] }
 0x162   :  { %v373_v13 = vld [vmem:[%s15673_s4 + $0x68] sm:$0xff]  ;;  %v367_v18 = vld [vmem:[%s15673_s4 + $0x38] sm:$0xff] }
 0x163   :  { %v9101_v42 = vpack.c.bf16 %v373_v13, %v365_v11  ;;  %v382_v13 = vld [vmem:[%s15673_s4 + $0xb0] sm:$0xff] }
 0x164   :  { %9056 = vmatpush1.bf16.msra.mxu0 %v9055_v50  ;;  %9088 = vmatpush1.bf16.msra.mxu1 %v9087_v52  ;;  %v483_v50 = vld [vmem:[%s15673_s4 + $0x3d8] sm:$0xff]  ;;  %v9063_v52 = vpack.c.bf16 %v464_v32, %v456_v31  ;;  %v9099_v32 = vpack.c.bf16 %v482_v2, %v474_v1 }
 0x165   :  { %9058 = vmatprep.subr.bf16.mxu0 %v9057_v62  ;;  %9090 = vmatprep.subr.bf16.mxu1 %v9089_v58  ;;  %v480_v62 = vld [vmem:[%s15673_s4 + $0x3c0] sm:$0xff]  ;;  %v9065_v58 = vpack.c.bf16 %v481_v44, %v473_v43  ;;  %v9097_v0 = vpack.c.bf16 %v483_v50, %v475_v45  ;;  %v366_v44 = vld [vmem:[%s15673_s4 + $0x30] sm:$0xff]  ;;  %v381_v50 = vld [vmem:[%s15673_s4 + $0xa8] sm:$0xff] }
 0x166   :  { %v9067_v31 = vpack.c.bf16 %v480_v62, %v472_v57  ;;  %v374_v45 = vld [vmem:[%s15673_s4 + $0x70] sm:$0xff]  ;;  %v9105_v2 = vpack.c.bf16 %v389_v22, %v381_v50  ;;  %v413_v22 = vld [vmem:[%s15673_s4 + $0x1a8] sm:$0xff] }
 0x167   :  { %v9135_v62 = vpack.c.bf16 %v374_v45, %v366_v44  ;;  %v398_v45 = vld [vmem:[%s15673_s4 + $0x130] sm:$0xff] }
 0x168   :  { %9060 = vmatpush1.bf16.msra.mxu0 %v9059_v20  ;;  %9092 = vmatpush1.bf16.msra.mxu1 %v9091_v30  ;;  %v375_v20 = vld [vmem:[%s15673_s4 + $0x78] sm:$0xff]  ;;  %v358_v30 = vld [vmem:[%s15672_s3] sm:$0x3]  ;;  %v406_v50 = vld [vmem:[%s15673_s4 + $0x170] sm:$0xff] }
 0x169   :  { %9062 = vmatprep.subr.bf16.mxu0 %v9061_v37  ;;  %9094 = vmatprep.subr.bf16.mxu1 %v9093_v40  ;;  %v364_v37 = vld [vmem:[%s15673_s4 + $0x20] sm:$0xff]  ;;  %v9133_v43 = vpack.c.bf16 %v375_v20, %v367_v18  ;;  %v11921_v1 = vmul.f32 %v358_v30, %v357_v41  ;;  %v390_v18 = vld [vmem:[%s15673_s4 + $0xf0] sm:$0xff]  ;;  %v397_v20 = vld [vmem:[%s15673_s4 + $0x128] sm:$0xff] }
 0x16a   :  { %v372_v40 = vld [vmem:[%s15673_s4 + $0x60] sm:$0xff]  ;;  %v405_v30 = vld [vmem:[%s15673_s4 + $0x168] sm:$0xff] }
 0x16b   :  { %v9103_v57 = vpack.c.bf16 %v372_v40, %v364_v37  ;;  %v9139_v40 = vpack.c.bf16 %v390_v18, %v382_v13  ;;  %v396_v41 = vld [vmem:[%s15673_s4 + $0x120] sm:$0xff]  ;;  %v414_v18 = vld [vmem:[%s15673_s4 + $0x1b0] sm:$0xff] }
 0x16c   :  { %9064 = vmatpush1.bf16.msra.mxu0 %v9063_v52  ;;  %9096 = vmatpush1.bf16.msra.mxu1 %v9095_v53  ;;  %v383_v52 = vld [vmem:[%s15673_s4 + $0xb8] sm:$0xff] }
 0x16d   :  { %9066 = vmatprep.subr.bf16.mxu0 %v9065_v58  ;;  %9098 = vmatprep.subr.bf16.mxu1 %v9097_v0  ;;  %v391_v53 = vld [vmem:[%s15673_s4 + $0xf8] sm:$0xff]  ;;  %v380_v58 = vld [vmem:[%s15673_s4 + $0xa0] sm:$0xff] }
 0x16e   :  { %v388_v0 = vld [vmem:[%s15673_s4 + $0xe0] sm:$0xff]  ;;  %v9137_v11 = vpack.c.bf16 %v391_v53, %v383_v52  ;;  %v421_v52 = vld [vmem:[%s15673_s4 + $0x1e8] sm:$0xff]  ;;  %v415_v53 = vld [vmem:[%s15673_s4 + $0x1b8] sm:$0xff] }
 0x16f   :  { %v9107_v37 = vpack.c.bf16 %v388_v0, %v380_v58  ;;  %v9143_v58 = vpack.c.bf16 %v406_v50, %v398_v45  ;;  %v412_v0 = vld [vmem:[%s15673_s4 + $0x1a0] sm:$0xff]  ;;  %v430_v50 = vld [vmem:[%s15673_s4 + $0x230] sm:$0xff] }
 0x170   :  { %9068 = vmatpush1.bf16.msra.mxu0 %v9067_v31  ;;  %9100 = vmatpush1.bf16.msra.mxu1 %v9099_v32  ;;  %v399_v31 = vld [vmem:[%s15673_s4 + $0x138] sm:$0xff] }
 0x171   :  { %9102 = vmatprep.subr.bf16.mxu0 %v9101_v42  ;;  %9134 = vmatprep.subr.bf16.mxu1 %v9133_v43  ;;  %v407_v32 = vld [vmem:[%s15673_s4 + $0x178] sm:$0xff]  ;;  %v404_v42 = vld [vmem:[%s15673_s4 + $0x160] sm:$0xff]  ;;  %v9109_v43 = vpack.c.bf16 %v405_v30, %v397_v20  ;;  %v422_v20 = vld [vmem:[%s15673_s4 + $0x1f0] sm:$0xff] }
 0x172   :  { %v9141_v44 = vpack.c.bf16 %v407_v32, %v399_v31  ;;  %v429_v30 = vld [vmem:[%s15673_s4 + $0x228] sm:$0xff]  ;;  %v431_v32 = vld [vmem:[%s15673_s4 + $0x238] sm:$0xff] }
 0x173   :  { %1215 = vmatmul.mubr.f32.vlgmr.msra.gmra.mrb[6].mxu0 %v11921_v1  ;;  %1286 = vmatmul.mubr.f32.vlgmr.msra.gmra.mrb[6].mxu1 %v11921_v1  ;;  %v437_v31 = vld [vmem:[%s15673_s4 + $0x268] sm:$0xff] }
 0x174   :  { %9104 = vmatpush1.bf16.msra.mxu0 %v9103_v57  ;;  %9136 = vmatpush1.bf16.msra.mxu1 %v9135_v62  ;;  %v423_v57 = vld [vmem:[%s15673_s4 + $0x1f8] sm:$0xff]  ;;  %v9111_v62 = vpack.c.bf16 %v404_v42, %v396_v41  ;;  %v9147_v41 = vpack.c.bf16 %v422_v20, %v414_v18  ;;  %v428_v42 = vld [vmem:[%s15673_s4 + $0x220] sm:$0xff]  ;;  %v446_v20 = vld [vmem:[%s15673_s4 + $0x2b0] sm:$0xff] }
 0x175   :  { %9106 = vmatprep.subr.bf16.mxu0 %v9105_v2  ;;  %9138 = vmatprep.subr.bf16.mxu1 %v9137_v11  ;;  %v420_v2 = vld [vmem:[%s15673_s4 + $0x1e0] sm:$0xff]  ;;  %v9113_v11 = vpack.c.bf16 %v421_v52, %v413_v22  ;;  %v9145_v13 = vpack.c.bf16 %v423_v57, %v415_v53  ;;  %v438_v22 = vld [vmem:[%s15673_s4 + $0x270] sm:$0xff]  ;;  %v445_v52 = vld [vmem:[%s15673_s4 + $0x2a8] sm:$0xff] }
 0x176   :  { %1356 = vmatprep.mubr.f32.mxu0 %v10832_v27  ;;  %1427 = vmatprep.mubr.f32.mxu1 %v10832_v27  ;;  %v453_v53 = vld [vmem:[%s15673_s4 + $0x2e8] sm:$0xff]  ;;  %v447_v57 = vld [vmem:[%s15673_s4 + $0x2b8] sm:$0xff] }
 0x178   :  { %9108 = vmatpush1.bf16.msra.mxu0 %v9107_v37  ;;  %9140 = vmatpush1.bf16.msra.mxu1 %v9139_v40  ;;  %v439_v37 = vld [vmem:[%s15673_s4 + $0x278] sm:$0xff]  ;;  %v9115_v40 = vpack.c.bf16 %v420_v2, %v412_v0  ;;  %v9151_v0 = vpack.c.bf16 %v438_v22, %v430_v50  ;;  %v444_v2 = vld [vmem:[%s15673_s4 + $0x2a0] sm:$0xff]  ;;  %v462_v22 = vld [vmem:[%s15673_s4 + $0x330] sm:$0xff] }
 0x179   :  { %9110 = vmatprep.subr.bf16.mxu0 %v9109_v43  ;;  %9142 = vmatprep.subr.bf16.mxu1 %v9141_v44  ;;  %v436_v43 = vld [vmem:[%s15673_s4 + $0x260] sm:$0xff]  ;;  %v9117_v44 = vpack.c.bf16 %v437_v31, %v429_v30  ;;  %v9149_v45 = vpack.c.bf16 %v439_v37, %v431_v32  ;;  %v454_v30 = vld [vmem:[%s15673_s4 + $0x2f0] sm:$0xff]  ;;  %v461_v31 = vld [vmem:[%s15673_s4 + $0x328] sm:$0xff] }
 0x17a   :  { %v469_v32 = vld [vmem:[%s15673_s4 + $0x368] sm:$0xff]  ;;  %v463_v37 = vld [vmem:[%s15673_s4 + $0x338] sm:$0xff] }
 0x17c   :  { %9112 = vmatpush1.bf16.msra.mxu0 %v9111_v62  ;;  %9144 = vmatpush1.bf16.msra.mxu1 %v9143_v58  ;;  %v455_v62 = vld [vmem:[%s15673_s4 + $0x2f8] sm:$0xff]  ;;  %v9119_v58 = vpack.c.bf16 %v436_v43, %v428_v42  ;;  %v9155_v42 = vpack.c.bf16 %v454_v30, %v446_v20  ;;  %v460_v43 = vld [vmem:[%s15673_s4 + $0x320] sm:$0xff] }
 0x17d   :  { %9114 = vmatprep.subr.bf16.mxu0 %v9113_v11  ;;  %9146 = vmatprep.subr.bf16.mxu1 %v9145_v13  ;;  %v452_v11 = vld [vmem:[%s15673_s4 + $0x2e0] sm:$0xff]  ;;  %v9121_v13 = vpack.c.bf16 %v453_v53, %v445_v52  ;;  %v9153_v18 = vpack.c.bf16 %v455_v62, %v447_v57  ;;  %v470_v52 = vld [vmem:[%s15673_s4 + $0x370] sm:$0xff]  ;;  %v477_v53 = vld [vmem:[%s15673_s4 + $0x3a8] sm:$0xff] }
 0x17e   :  { %v485_v57 = vld [vmem:[%s15673_s4 + $0x3e8] sm:$0xff]  ;;  %v479_v62 = vld [vmem:[%s15673_s4 + $0x3b8] sm:$0xff]  ;;  %v484_v30 = vld [vmem:[%s15673_s4 + $0x3e0] sm:$0xff] }
 0x180   :  { %9116 = vmatpush1.bf16.msra.mxu0 %v9115_v40  ;;  %9148 = vmatpush1.bf16.msra.mxu1 %v9147_v41  ;;  %v471_v40 = vld [vmem:[%s15673_s4 + $0x378] sm:$0xff]  ;;  %v9123_v41 = vpack.c.bf16 %v452_v11, %v444_v2  ;;  %v9159_v11 = vpack.c.bf16 %v470_v52, %v462_v22  ;;  %v6810_v52 = vld [vmem:[%s15673_s4 + $0x810] sm:$0xff] }
 0x181   :  { %9118 = vmatprep.subr.bf16.mxu0 %v9117_v44  ;;  %9150 = vmatprep.subr.bf16.mxu1 %v9149_v45  ;;  %v468_v44 = vld [vmem:[%s15673_s4 + $0x360] sm:$0xff]  ;;  %v9125_v45 = vpack.c.bf16 %v469_v32, %v461_v31  ;;  %v9157_v50 = vpack.c.bf16 %v471_v40, %v463_v37  ;;  %v478_v31 = vld [vmem:[%s15673_s4 + $0x3b0] sm:$0xff] }
 0x182   :  { %v9127_v2 = vpack.c.bf16 %v468_v44, %v460_v43  ;;  %v486_v32 = vld [vmem:[%s15673_s4 + $0x3f0] sm:$0xff] }
 0x184   :  { %9120 = vmatpush1.bf16.msra.mxu0 %v9119_v58  ;;  %9152 = vmatpush1.bf16.msra.mxu1 %v9151_v0  ;;  %v487_v58 = vld [vmem:[%s15673_s4 + $0x3f8] sm:$0xff] }
 0x185   :  { %9122 = vmatprep.subr.bf16.mxu0 %v9121_v13  ;;  %9154 = vmatprep.subr.bf16.mxu1 %v9153_v18  ;;  %v6803_v0 = vld [vmem:[%s15669_s0 + $0x14] sm:$0xff]  ;;  %v476_v13 = vld [vmem:[%s15673_s4 + $0x3a0] sm:$0xff]  ;;  %v9129_v18 = vpack.c.bf16 %v485_v57, %v477_v53  ;;  %v9161_v20 = vpack.c.bf16 %v487_v58, %v479_v62 }
 0x186   :  { %v1439_v37 = vcombine.high %v6803_v0, %v6803_v0  ;;  %v9131_v40 = vpack.c.bf16 %v484_v30, %v476_v13  ;;  %v6818_v53 = vld [vmem:[%s15673_s4 + $0x850] sm:$0xff]  ;;  %v6827_v57 = vld [vmem:[%s15673_s4 + $0x898] sm:$0xff] }
 0x187   :  { %v6835_v62 = vld [vmem:[%s15673_s4 + $0x8d8] sm:$0xff]  ;;  %v9275_v58 = vpack.c.bf16 %v6818_v53, %v6810_v52  ;;  %v6824_v53 = vld [vmem:[%s15673_s4 + $0x880] sm:$0xff] }
 0x188   :  { %9124 = vmatpush1.bf16.msra.mxu0 %v9123_v41  ;;  %9156 = vmatpush1.bf16.msra.mxu1 %v9155_v42  ;;  %v9163_v41 = vpack.c.bf16 %v486_v32, %v478_v31  ;;  %v1446_v42 = vrot.slane %v6803_v0, %v11090_v14  ;;  %v1453_v43 = vrot.slane %v1439_v37, %v11090_v14  ;;  %v6843_v13 = vld [vmem:[%s15673_s4 + $0x918] sm:$0xff]  ;;  %v6842_v31 = vld [vmem:[%s15673_s4 + $0x910] sm:$0xff] }
 0x189   :  { %9126 = vmatprep.subr.bf16.mxu0 %v9125_v45  ;;  %9158 = vmatprep.subr.bf16.mxu1 %v9157_v50  ;;  %v6819_v50 = vld [vmem:[%s15673_s4 + $0x858] sm:$0xff]  ;;  %v9277_v0 = vpack.c.bf16 %v6835_v62, %v6827_v57  ;;  %v6850_v32 = vld [vmem:[%s15673_s4 + $0x950] sm:$0xff]  ;;  %v6832_v57 = vld [vmem:[%s15673_s4 + $0x8c0] sm:$0xff] }
 0x18a   :  { %v1454_v44 = vcombine.high %v1446_v42, %v1446_v42  ;;  %v1455_v45 = vcombine.high %v1453_v43, %v1453_v43  ;;  %v9283_v37 = vpack.c.bf16 %v6850_v32, %v6842_v31  ;;  %v6841_v62 = vld [vmem:[%s15673_s4 + $0x908] sm:$0xff]  ;;  %v6859_v31 = vld [vmem:[%s15673_s4 + $0x998] sm:$0xff] }
 0x18c   :  { %9128 = vmatpush1.bf16.msra.mxu0 %v9127_v2  ;;  %9160 = vmatpush1.bf16.msra.mxu1 %v9159_v11  ;;  %v6826_v2 = vld [vmem:[%s15673_s4 + $0x890] sm:$0xff] }
 0x18d   :  { %9130 = vmatprep.subr.bf16.mxu0 %v9129_v18  ;;  %9162 = vmatprep.subr.bf16.mxu1 %v9161_v20  ;;  %v6834_v11 = vld [vmem:[%s15673_s4 + $0x8d0] sm:$0xff]  ;;  %v6851_v18 = vld [vmem:[%s15673_s4 + $0x958] sm:$0xff] }
 0x18e   :  { %v9279_v20 = vpack.c.bf16 %v6834_v11, %v6826_v2  ;;  %v9281_v30 = vpack.c.bf16 %v6851_v18, %v6843_v13  ;;  %v6840_v11 = vld [vmem:[%s15673_s4 + $0x900] sm:$0xff] }
 0x18f   :  { %v6848_v13 = vld [vmem:[%s15673_s4 + $0x940] sm:$0xff] }
 0x190   :  { %9132 = vmatpush1.bf16.msra.mxu0 %v9131_v40  ;;  %9164 = vmatpush1.bf16.msra.mxu1 %v9163_v41  ;;  %v6809_v40 = vld [vmem:[%s15673_s4 + $0x808] sm:$0xff]  ;;  %v9251_v18 = vpack.c.bf16 %v6848_v13, %v6840_v11  ;;  %v6874_v11 = vld [vmem:[%s15673_s4 + $0xa10] sm:$0xff] }
 0x191   :  { %9166 = vmatprep.subr.bf16.mxu0 %v10893_v3  ;;  %9198 = vmatprep.subr.bf16.mxu1 %v10906_v8  ;;  %v6817_v41 = vld [vmem:[%s15673_s4 + $0x848] sm:$0xff]  ;;  %v6882_v13 = vld [vmem:[%s15673_s4 + $0xa50] sm:$0xff] }
 0x193   :  { %1357 = vmatmul.mubr.f32.vlgmr.msra.gmra.mrb[8].mxu0 %v11921_v1  ;;  %1428 = vmatmul.mubr.f32.vlgmr.msra.gmra.mrb[8].mxu1 %v11921_v1  ;;  %v6811_v1 = vld [vmem:[%s15673_s4 + $0x818] sm:$0xff] }
 0x194   :  { %9168 = vmatpush3.bf16.msra.mxu0 %v10904_v7  ;;  %9200 = vmatpush3.bf16.msra.mxu1 %v10918_v12  ;;  %v9273_v22 = vpack.c.bf16 %v6819_v50, %v6811_v1  ;;  %v6833_v1 = vld [vmem:[%s15673_s4 + $0x8c8] sm:$0xff]  ;;  %v6805_v50 = vld.sshfl [vmem:[%s15669_s0 + $0x1c] sm:$0x3 pattern:$0x76325410] }
 0x195   :  { %9170 = vmatprep.subr.bf16.mxu0 %v10931_v16  ;;  %9202 = vmatprep.subr.bf16.mxu1 %v10945_v21 }
 0x196   :  { %1533 = vmatprep.mubr.f32.mxu0 %v1454_v44  ;;  %1603 = vmatprep.mubr.f32.mxu1 %v1455_v45  ;;  %v6816_v44 = vld [vmem:[%s15673_s4 + $0x840] sm:$0xff]  ;;  %v6825_v45 = vld [vmem:[%s15673_s4 + $0x888] sm:$0xff] }
 0x197   :  { %v9245_v52 = vpack.c.bf16 %v6833_v1, %v6825_v45  ;;  %v6866_v45 = vld [vmem:[%s15673_s4 + $0x9d0] sm:$0xff] }
 0x198   :  { %9172 = vmatpush3.bf16.msra.mxu0 %v10933_v17  ;;  %9204 = vmatpush3.bf16.msra.mxu1 %v10957_v25 }
 0x199   :  { %9174 = vmatprep.subr.bf16.mxu0 %v10959_v26  ;;  %9206 = vmatprep.subr.bf16.mxu1 %v10983_v34 }
 0x19c   :  { %9176 = vmatpush3.bf16.msra.mxu0 %v10981_v33  ;;  %9208 = vmatpush3.bf16.msra.mxu1 %v10996_v38 }
 0x19d   :  { %9178 = vmatprep.subr.bf16.mxu0 %v10998_v39  ;;  %9210 = vmatprep.subr.bf16.mxu1 %v11010_v46 }
 0x1a0   :  { %9180 = vmatpush3.bf16.msra.mxu0 %v11025_v51  ;;  %9212 = vmatpush3.bf16.msra.mxu1 %v11035_v54 }
 0x1a1   :  { %9182 = vmatprep.subr.bf16.mxu0 %v11037_v55  ;;  %9214 = vmatprep.subr.bf16.mxu1 %v11051_v61 }
 0x1a4   :  { %9184 = vmatpush3.bf16.msra.mxu0 %v11069_v4  ;;  %9216 = vmatpush3.bf16.msra.mxu1 %v11076_v6 }
 0x1a5   :  { %9186 = vmatprep.subr.bf16.mxu0 %v11078_v9  ;;  %9218 = vmatprep.subr.bf16.mxu1 %v11093_v15 }
 0x1a8   :  { %9188 = vmatpush3.bf16.msra.mxu0 %v11108_v23  ;;  %9220 = vmatpush3.bf16.msra.mxu1 %v11110_v24 }
 0x1a9   :  { %9190 = vmatprep.subr.bf16.mxu0 %v11117_v28  ;;  %9222 = vmatprep.subr.bf16.mxu1 %v11130_v36 }
 0x1ac   :  { %9192 = vmatpush3.bf16.msra.mxu0 %v11149_v47  ;;  %9224 = vmatpush3.bf16.msra.mxu1 %v11153_v48 }
 0x1ad   :  { %9194 = vmatprep.subr.bf16.mxu0 %v11155_v49  ;;  %9226 = vmatprep.subr.bf16.mxu1 %v11164_v56 }
 0x1b0   :  { %9196 = vmatpush3.bf16.msra.mxu0 %v11173_v59  ;;  %9228 = vmatpush3.bf16.msra.mxu1 %v11180_v63 }
 0x1b1   :  { %9229 = vmatprep.subr.bf16.mxu0 %v10830_v10  ;;  %9274 = vmatprep.subr.bf16.mxu1 %v9273_v22 }
 0x1b3   :  { %1534 = vmatmul.mubr.f32.vlgmr.msra.gmra.mrb[10].mxu0 %v1446_v42  ;;  %1604 = vmatmul.mubr.f32.vlgmr.msra.gmra.mrb[10].mxu1 %v1453_v43  ;;  %v9241_v42 = vpack.c.bf16 %v6817_v41, %v6809_v40  ;;  %v6808_v43 = vld [vmem:[%s15673_s4 + $0x800] sm:$0xff] }
 0x1b4   :  { %9231 = vmatpush3.bf16.msra.mxu0 %v11191_v5  ;;  %8640 = vmatprep.mubr.msk.f32.mxu0 %vm10831_vm0, %v10832_v27  ;;  %v9243_v22 = vpack.c.bf16 %v6816_v44, %v6808_v43  ;;  %v6856_v40 = vld [vmem:[%s15673_s4 + $0x980] sm:$0xff]  ;;  %v6858_v44 = vld [vmem:[%s15673_s4 + $0x990] sm:$0xff] }
 0x1b5   :  { %9232 = vmatprep.subr.bf16.mxu0 %v10830_v10  ;;  %9276 = vmatpush1.bf16.msra.mxu1 %v9275_v58  ;;  %v6849_v58 = vld [vmem:[%s15673_s4 + $0x948] sm:$0xff]  ;;  %v6864_v41 = vld [vmem:[%s15673_s4 + $0x9c0] sm:$0xff]  ;;  %v9287_v1 = vpack.c.bf16 %v6866_v45, %v6858_v44  ;;  %v6898_v45 = vld [vmem:[%s15673_s4 + $0xad0] sm:$0xff] }
 0x1b6   :  { %9278 = vmatprep.subr.bf16.mxu1 %v9277_v0  ;;  %1947 = vmatprep.mubr.f32.mxu1 %v10832_v27  ;;  %v9247_v0 = vpack.c.bf16 %v6832_v57, %v6824_v53  ;;  %v9249_v2 = vpack.c.bf16 %v6849_v58, %v6841_v62  ;;  %v9255_v43 = vpack.c.bf16 %v6864_v41, %v6856_v40  ;;  %v6883_v57 = vld [vmem:[%s15673_s4 + $0xa58] sm:$0xff]  ;;  %v6872_v62 = vld [vmem:[%s15673_s4 + $0xa00] sm:$0xff] }
 0x1b7   :  { %v6880_v58 = vld [vmem:[%s15673_s4 + $0xa40] sm:$0xff] }
 0x1b8   :  { %9234 = vmatpush3.bf16.msra.mxu0 %v11203_v19  ;;  %v6888_v41 = vld [vmem:[%s15673_s4 + $0xa80] sm:$0xff] }
 0x1b9   :  { %9235 = vmatprep.subr.bf16.mxu0 %v10830_v10  ;;  %9280 = vmatpush1.bf16.msra.mxu1 %v9279_v20  ;;  %v6857_v20 = vld [vmem:[%s15673_s4 + $0x988] sm:$0xff] }
 0x1ba   :  { %9282 = vmatprep.subr.bf16.mxu1 %v9281_v30  ;;  %v6865_v30 = vld [vmem:[%s15673_s4 + $0x9c8] sm:$0xff] }
 0x1bb   :  { %v9253_v32 = vpack.c.bf16 %v6865_v30, %v6857_v20  ;;  %v9291_v20 = vpack.c.bf16 %v6882_v13, %v6874_v11  ;;  %v6897_v30 = vld [vmem:[%s15673_s4 + $0xac8] sm:$0xff]  ;;  %v6914_v11 = vld [vmem:[%s15673_s4 + $0xb50] sm:$0xff] }
 0x1bc   :  { %9237 = vmatpush3.bf16.msra.mxu0 %v11217_v29 }
 0x1bd   :  { %9238 = vmatprep.subr.bf16.mxu0 %v10830_v10  ;;  %9284 = vmatpush1.bf16.msra.mxu1 %v9283_v37  ;;  %v6867_v37 = vld [vmem:[%s15673_s4 + $0x9d8] sm:$0xff] }
 0x1c0   :  { %9240 = vmatpush3.bf16.msra.mxu0 %v11229_v35 }
 0x1c1   :  { %9242 = vmatprep.subr.bf16.mxu0 %v9241_v42  ;;  %v9285_v42 = vpack.c.bf16 %v6867_v37, %v6859_v31  ;;  %v6891_v31 = vld [vmem:[%s15673_s4 + $0xa98] sm:$0xff] }
 0x1c3   :  { %8641 = vmatmul.mubr.msk.f32.vlgmr.msra.gmra.mrb[12].mxu0 %vm144_vm1, %v6805_v50  ;;  %9286 = vmatprep.subr.bf16.mxu1 %v9285_v42  ;;  %v6873_v50 = vld [vmem:[%s15673_s4 + $0xa08] sm:$0xff]  ;;  %v6896_v42 = vld [vmem:[%s15673_s4 + $0xac0] sm:$0xff] }
 0x1c4   :  { %9244 = vmatpush1.bf16.msra.mxu0 %v9243_v22  ;;  %1876 = vmatprep.mubr.f32.mxu0 %v10832_v27  ;;  %v6881_v22 = vld [vmem:[%s15673_s4 + $0xa48] sm:$0xff]  ;;  %v9263_v44 = vpack.c.bf16 %v6896_v42, %v6888_v41  ;;  %v6928_v41 = vld [vmem:[%s15673_s4 + $0xbc0] sm:$0xff] }
 0x1c5   :  { %9246 = vmatprep.subr.bf16.mxu0 %v9245_v52  ;;  %v6875_v52 = vld [vmem:[%s15673_s4 + $0xa18] sm:$0xff]  ;;  %9288 = vmatpush1.bf16.msra.mxu1 %v9287_v1  ;;  %v9257_v53 = vpack.c.bf16 %v6881_v22, %v6873_v50  ;;  %v6905_v1 = vld [vmem:[%s15673_s4 + $0xb08] sm:$0xff] }
 0x1c6   :  { %v6913_v50 = vld [vmem:[%s15673_s4 + $0xb48] sm:$0xff] }
 0x1c8   :  { %9248 = vmatpush1.bf16.msra.mxu0 %v9247_v0  ;;  %v9289_v0 = vpack.c.bf16 %v6883_v57, %v6875_v52  ;;  %v9265_v52 = vpack.c.bf16 %v6913_v50, %v6905_v1  ;;  %v6915_v57 = vld [vmem:[%s15673_s4 + $0xb58] sm:$0xff]  ;;  %v6813_v50 = vld [vmem:[%s15673_s4 + $0x828] sm:$0xff] }
 0x1c9   :  { %9250 = vmatprep.subr.bf16.mxu0 %v9249_v2  ;;  %v9259_v2 = vpack.c.bf16 %v6880_v58, %v6872_v62  ;;  %v6904_v62 = vld [vmem:[%s15673_s4 + $0xb00] sm:$0xff] }
 0x1ca   :  { %9290 = vmatprep.subr.bf16.mxu1 %v9289_v0  ;;  %v6912_v0 = vld [vmem:[%s15673_s4 + $0xb40] sm:$0xff] }
 0x1cb   :  { %9292 = vmatpush1.bf16.msra.mxu1 %v9291_v20  ;;  %v9267_v13 = vpack.c.bf16 %v6912_v0, %v6904_v62  ;;  %v6921_v20 = vld [vmem:[%s15673_s4 + $0xb88] sm:$0xff] }
 0x1cc   :  { %9252 = vmatpush1.bf16.msra.mxu0 %v9251_v18  ;;  %v6889_v18 = vld [vmem:[%s15673_s4 + $0xa88] sm:$0xff] }
 0x1cd   :  { %9254 = vmatprep.subr.bf16.mxu0 %v9253_v32  ;;  %v6899_v32 = vld [vmem:[%s15673_s4 + $0xad8] sm:$0xff]  ;;  %v9261_v37 = vpack.c.bf16 %v6897_v30, %v6889_v18  ;;  %v6929_v30 = vld [vmem:[%s15673_s4 + $0xbc8] sm:$0xff] }
 0x1ce   :  { %v9293_v40 = vpack.c.bf16 %v6899_v32, %v6891_v31  ;;  %v6923_v31 = vld [vmem:[%s15673_s4 + $0xb98] sm:$0xff]  ;;  %v9269_v32 = vpack.c.bf16 %v6929_v30, %v6921_v20  ;;  %v12339_v20 = vld [vmem:[%s15671_s2] ss:$0 sm:$0xff] }
 0x1d0   :  { %9256 = vmatpush1.bf16.msra.mxu0 %v9255_v43  ;;  %v6890_v43 = vld [vmem:[%s15673_s4 + $0xa90] sm:$0xff]  ;;  %9294 = vmatprep.subr.bf16.mxu1 %v9293_v40  ;;  %v6920_v40 = vld [vmem:[%s15673_s4 + $0xb80] sm:$0xff] }
 0x1d1   :  { %9258 = vmatprep.subr.bf16.mxu0 %v9257_v53  ;;  %v9295_v22 = vpack.c.bf16 %v6898_v45, %v6890_v43  ;;  %v6907_v53 = vld [vmem:[%s15673_s4 + $0xb18] sm:$0xff]  ;;  %v9271_v43 = vpack.c.bf16 %v6928_v41, %v6920_v40  ;;  %v6930_v45 = vld [vmem:[%s15673_s4 + $0xbd0] sm:$0xff]  ;;  %v6812_v40 = vld [vmem:[%s15673_s4 + $0x820] sm:$0xff] }
 0x1d2   :  { %v9297_v58 = vpack.c.bf16 %v6915_v57, %v6907_v53  ;;  %v6815_v53 = vld [vmem:[%s15673_s4 + $0x838] sm:$0xff]  ;;  %v6820_v41 = vld [vmem:[%s15673_s4 + $0x860] sm:$0xff] }
 0x1d3   :  { %9296 = vmatpush1.bf16.msra.mxu1 %v9295_v22  ;;  %v6821_v22 = vld [vmem:[%s15673_s4 + $0x868] sm:$0xff]  ;;  %v6823_v57 = vld [vmem:[%s15673_s4 + $0x878] sm:$0xff] }
 0x1d4   :  { %9260 = vmatpush1.bf16.msra.mxu0 %v9259_v2  ;;  %v6906_v2 = vld [vmem:[%s15673_s4 + $0xb10] sm:$0xff]  ;;  %9298 = vmatprep.subr.bf16.mxu1 %v9297_v58  ;;  %v9337_v62 = vpack.c.bf16 %v6823_v57, %v6815_v53  ;;  %v9307_v57 = vpack.c.bf16 %v6820_v41, %v6812_v40  ;;  %v6855_v40 = vld [vmem:[%s15673_s4 + $0x978] sm:$0xff] }
 0x1d5   :  { %9262 = vmatprep.subr.bf16.mxu0 %v9261_v37  ;;  %v9299_v18 = vpack.c.bf16 %v6914_v11, %v6906_v2  ;;  %v6931_v37 = vld [vmem:[%s15673_s4 + $0xbd8] sm:$0xff] }
 0x1d6   :  { %v9301_v42 = vpack.c.bf16 %v6931_v37, %v6923_v31  ;;  %v6807_v37 = vld [vmem:[%s15672_s3 + $0x4] sm:$0x3] }
 0x1d7   :  { %9300 = vmatpush1.bf16.msra.mxu1 %v9299_v18 }
 0x1d8   :  { %9264 = vmatpush1.bf16.msra.mxu0 %v9263_v44  ;;  %v6922_v44 = vld [vmem:[%s15673_s4 + $0xb90] sm:$0xff]  ;;  %9302 = vmatprep.subr.bf16.mxu1 %v9301_v42 }
 0x1d9   :  { %9266 = vmatprep.subr.bf16.mxu0 %v9265_v52  ;;  %v9303_v1 = vpack.c.bf16 %v6930_v45, %v6922_v44  ;;  %v9305_v52 = vpack.c.bf16 %v6821_v22, %v6813_v50  ;;  %v6814_v44 = vld [vmem:[%s15673_s4 + $0x830] sm:$0xff]  ;;  %v6837_v50 = vld [vmem:[%s15673_s4 + $0x8e8] sm:$0xff]  ;;  %v6831_v22 = vld [vmem:[%s15673_s4 + $0x8b8] sm:$0xff] }
 0x1da   :  { %v6822_v45 = vld [vmem:[%s15673_s4 + $0x870] sm:$0xff] }
 0x1db   :  { %9304 = vmatpush1.bf16.msra.mxu1 %v9303_v1  ;;  %v6829_v1 = vld [vmem:[%s15673_s4 + $0x8a8] sm:$0xff] }
 0x1dc   :  { %9268 = vmatpush1.bf16.msra.mxu0 %v9267_v13  ;;  %9338 = vmatprep.subr.bf16.mxu1 %v9337_v62  ;;  %v9339_v62 = vpack.c.bf16 %v6822_v45, %v6814_v44  ;;  %v6852_v44 = vld [vmem:[%s15673_s4 + $0x960] sm:$0xff] }
 0x1dd   :  { %9270 = vmatprep.subr.bf16.mxu0 %v9269_v32 }
 0x1e0   :  { %9272 = vmatpush1.bf16.msra.mxu0 %v9271_v43 }
 0x1e1   :  { %9306 = vmatprep.subr.bf16.mxu0 %v9305_v52  ;;  %v6839_v52 = vld [vmem:[%s15673_s4 + $0x8f8] sm:$0xff] }
 0x286   :  { %v7925_v58 = vpop.f32.mrb[10].mxu0  ;;  %v7960_v0 = vpop.f32.mrb[10].mxu1 }
 0x287   :  { %v7926_v2 = vpop.f32.mrb[11].mxu0  ;;  %v7961_v11 = vpop.f32.mrb[11].mxu1 }
 0x288   :  { %v7927_v13 = vadd.f32 %v7926_v2, %v7925_v58  ;;  %v7962_v18 = vadd.f32 %v7961_v11, %v7960_v0  ;;  %v6828_v58 = vld [vmem:[%s15673_s4 + $0x8a0] sm:$0xff]  ;;  %v9309_v11 = vpack.c.bf16 %v6837_v50, %v6829_v1  ;;  %v6846_v50 = vld [vmem:[%s15673_s4 + $0x930] sm:$0xff] }
 0x289   :  { %v6836_v0 = vld [vmem:[%s15673_s4 + $0x8e0] sm:$0xff] }
 0x28a   :  { %v1536_v30 = vadd.f32 %v12339_v20, %v7927_v13  ;;  %v9341_v13 = vpack.c.bf16 %v6839_v52, %v6831_v22  ;;  %v9311_v41 = vpack.c.bf16 %v6836_v0, %v6828_v58  ;;  %v6854_v22 = vld [vmem:[%s15673_s4 + $0x970] sm:$0xff]  ;;  %v6861_v52 = vld [vmem:[%s15673_s4 + $0x9a8] sm:$0xff] }
 0x28b   :  { %v9347_v0 = vpack.c.bf16 %v6854_v22, %v6846_v50 }
 0x28c   :  { %v1606_v31 = vadd.f32 %v7962_v18, %v1536_v30  ;;  %v6830_v18 = vld [vmem:[%s15673_s4 + $0x8b0] sm:$0xff] }
 0x28d   :  { %v6838_v30 = vld [vmem:[%s15673_s4 + $0x8f0] sm:$0xff] }
 0x296   :  { %v1675_v32 = vpop.f32.mrb[12].mxu0 }
 0x297   :  { %v1676_v42 = vadd.f32 %v1675_v32, %v1606_v31  ;;  %v8642_v43 = vpop.f32.mrb[13].mxu0  ;;  %v6845_v31 = vld [vmem:[%s15673_s4 + $0x928] sm:$0xff] }
 0x298   :  { %v6853_v32 = vld [vmem:[%s15673_s4 + $0x968] sm:$0xff]  ;;  %v6844_v43 = vld [vmem:[%s15673_s4 + $0x920] sm:$0xff] }
 0x299   :  { %v1679_v53 = vmax.f32 %v1676_v42, 0.0  ;;  %v9343_v42 = vpack.c.bf16 %v6838_v30, %v6830_v18  ;;  %v9313_v45 = vpack.c.bf16 %v6853_v32, %v6845_v31  ;;  %v9315_v58 = vpack.c.bf16 %v6852_v44, %v6844_v43  ;;  %v6862_v31 = vld [vmem:[%s15673_s4 + $0x9b0] sm:$0xff] }
 0x29a   :  { %v6870_v32 = vld [vmem:[%s15673_s4 + $0x9f0] sm:$0xff] }
 0x29b   :  { %v12375_v2 = vmul.f32 %v6807_v37, %v1679_v53  ;;  %v6847_v37 = vld [vmem:[%s15673_s4 + $0x938] sm:$0xff]  ;;  %v6869_v53 = vld [vmem:[%s15673_s4 + $0x9e8] sm:$0xff]  ;;  %v9351_v44 = vpack.c.bf16 %v6870_v32, %v6862_v31 }
 0x29c   :  { %v9345_v1 = vpack.c.bf16 %v6855_v40, %v6847_v37  ;;  %v9317_v18 = vpack.c.bf16 %v6869_v53, %v6861_v52  ;;  %v6877_v37 = vld [vmem:[%s15673_s4 + $0xa28] sm:$0xff]  ;;  %v6878_v52 = vld [vmem:[%s15673_s4 + $0xa30] sm:$0xff] }
 0x29d   :  { %1877 = vmatmul.mubr.f32.vlgmr.msra.gmra.mrb[6].mxu0 %v12375_v2  ;;  %1948 = vmatmul.mubr.f32.vlgmr.msra.gmra.mrb[6].mxu1 %v12375_v2  ;;  %v6885_v40 = vld [vmem:[%s15673_s4 + $0xa68] sm:$0xff]  ;;  %v6886_v53 = vld [vmem:[%s15673_s4 + $0xa70] sm:$0xff] }
 0x29e   :  { %9308 = vmatpush1.bf16.msra.mxu0 %v9307_v57  ;;  %9340 = vmatpush1.bf16.msra.mxu1 %v9339_v62  ;;  %v6863_v57 = vld [vmem:[%s15673_s4 + $0x9b8] sm:$0xff]  ;;  %v9321_v50 = vpack.c.bf16 %v6885_v40, %v6877_v37  ;;  %v6894_v37 = vld [vmem:[%s15673_s4 + $0xab0] sm:$0xff] }
 0x29f   :  { %9310 = vmatprep.subr.bf16.mxu0 %v9309_v11  ;;  %9342 = vmatprep.subr.bf16.mxu1 %v9341_v13  ;;  %v6871_v62 = vld [vmem:[%s15673_s4 + $0x9f8] sm:$0xff]  ;;  %v6860_v11 = vld [vmem:[%s15673_s4 + $0x9a0] sm:$0xff]  ;;  %v6902_v40 = vld [vmem:[%s15673_s4 + $0xaf0] sm:$0xff] }
 0x2a0   :  { %2018 = vmatprep.mubr.f32.mxu0 %v10832_v27  ;;  %2089 = vmatprep.mubr.f32.mxu1 %v10832_v27  ;;  %v6868_v13 = vld [vmem:[%s15673_s4 + $0x9e0] sm:$0xff]  ;;  %v9349_v30 = vpack.c.bf16 %v6871_v62, %v6863_v57  ;;  %v6893_v57 = vld [vmem:[%s15673_s4 + $0xaa8] sm:$0xff] }
 0x2a1   :  { %v9319_v43 = vpack.c.bf16 %v6868_v13, %v6860_v11  ;;  %v6901_v62 = vld [vmem:[%s15673_s4 + $0xae8] sm:$0xff]  ;;  %v9355_v13 = vpack.c.bf16 %v6886_v53, %v6878_v52 }
 0x2a2   :  { %9312 = vmatpush1.bf16.msra.mxu0 %v9311_v41  ;;  %9344 = vmatpush1.bf16.msra.mxu1 %v9343_v42  ;;  %v6879_v41 = vld [vmem:[%s15673_s4 + $0xa38] sm:$0xff]  ;;  %v9325_v31 = vpack.c.bf16 %v6901_v62, %v6893_v57  ;;  %v6910_v57 = vld [vmem:[%s15673_s4 + $0xb30] sm:$0xff] }
 0x2a3   :  { %9314 = vmatprep.subr.bf16.mxu0 %v9313_v45  ;;  %9346 = vmatprep.subr.bf16.mxu1 %v9345_v1  ;;  %v6887_v42 = vld [vmem:[%s15673_s4 + $0xa78] sm:$0xff]  ;;  %v6876_v45 = vld [vmem:[%s15673_s4 + $0xa20] sm:$0xff]  ;;  %v6918_v62 = vld [vmem:[%s15673_s4 + $0xb70] sm:$0xff] }
 0x2a4   :  { %v6884_v1 = vld [vmem:[%s15673_s4 + $0xa60] sm:$0xff]  ;;  %v9353_v22 = vpack.c.bf16 %v6887_v42, %v6879_v41  ;;  %v6909_v41 = vld [vmem:[%s15673_s4 + $0xb28] sm:$0xff] }
 0x2a5   :  { %v9323_v11 = vpack.c.bf16 %v6884_v1, %v6876_v45  ;;  %v6917_v42 = vld [vmem:[%s15673_s4 + $0xb68] sm:$0xff]  ;;  %v9359_v1 = vpack.c.bf16 %v6902_v40, %v6894_v37 }
 0x2a6   :  { %9316 = vmatpush1.bf16.msra.mxu0 %v9315_v58  ;;  %9348 = vmatpush1.bf16.msra.mxu1 %v9347_v0  ;;  %v6895_v58 = vld [vmem:[%s15673_s4 + $0xab8] sm:$0xff]  ;;  %v9329_v52 = vpack.c.bf16 %v6917_v42, %v6909_v41  ;;  %v6932_v41 = vld [vmem:[%s15673_s4 + $0xbe0] sm:$0xff]  ;;  %v6926_v42 = vld [vmem:[%s15673_s4 + $0xbb0] sm:$0xff] }
 0x2a7   :  { %9318 = vmatprep.subr.bf16.mxu0 %v9317_v18  ;;  %9350 = vmatprep.subr.bf16.mxu1 %v9349_v30  ;;  %v6903_v0 = vld [vmem:[%s15673_s4 + $0xaf8] sm:$0xff]  ;;  %v6892_v18 = vld [vmem:[%s15673_s4 + $0xaa0] sm:$0xff] }
 0x2a8   :  { %v6900_v30 = vld [vmem:[%s15673_s4 + $0xae0] sm:$0xff]  ;;  %v9357_v32 = vpack.c.bf16 %v6903_v0, %v6895_v58  ;;  %v6925_v58 = vld [vmem:[%s15673_s4 + $0xba8] sm:$0xff] }
 0x2a9   :  { %v9327_v45 = vpack.c.bf16 %v6900_v30, %v6892_v18  ;;  %v6933_v0 = vld [vmem:[%s15673_s4 + $0xbe8] sm:$0xff]  ;;  %v6936_v18 = vld [vmem:[%s15669_s0 + $0x1e] sm:$0xff] }
 0x2aa   :  { %9320 = vmatpush1.bf16.msra.mxu0 %v9319_v43  ;;  %9352 = vmatpush1.bf16.msra.mxu1 %v9351_v44  ;;  %v6911_v43 = vld [vmem:[%s15673_s4 + $0xb38] sm:$0xff]  ;;  %v9333_v37 = vpack.c.bf16 %v6933_v0, %v6925_v58  ;;  %v6941_v58 = vld [vmem:[%s15673_s4 + $0xc00] sm:$0xff] }
 0x2ab   :  { %9322 = vmatprep.subr.bf16.mxu0 %v9321_v50  ;;  %9354 = vmatprep.subr.bf16.mxu1 %v9353_v22  ;;  %v6919_v44 = vld [vmem:[%s15673_s4 + $0xb78] sm:$0xff]  ;;  %v6908_v50 = vld [vmem:[%s15673_s4 + $0xb20] sm:$0xff] }
 0x2ac   :  { %v6916_v22 = vld [vmem:[%s15673_s4 + $0xb60] sm:$0xff]  ;;  %v9361_v53 = vpack.c.bf16 %v6919_v44, %v6911_v43  ;;  %v6934_v43 = vld [vmem:[%s15673_s4 + $0xbf0] sm:$0xff]  ;;  %v2109_v44 = vcombine.high %v6936_v18, %v6936_v18 }
 0x2ad   :  { %v9331_v30 = vpack.c.bf16 %v6916_v22, %v6908_v50  ;;  %v2116_v50 = vrot.slane %v6936_v18, %v11090_v14  ;;  %v6949_v0 = vld [vmem:[%s15673_s4 + $0xc40] sm:$0xff] }
 0x2ae   :  { %9324 = vmatpush1.bf16.msra.mxu0 %v9323_v11  ;;  %9356 = vmatpush1.bf16.msra.mxu1 %v9355_v13  ;;  %v6927_v11 = vld [vmem:[%s15673_s4 + $0xbb8] sm:$0xff]  ;;  %v2123_v22 = vrot.slane %v2109_v44, %v11090_v14  ;;  %v9447_v18 = vpack.c.bf16 %v6949_v0, %v6941_v58  ;;  %v6981_v44 = vld [vmem:[%s15673_s4 + $0xd40] sm:$0xff] }
 0x2af   :  { %9326 = vmatprep.subr.bf16.mxu0 %v9325_v31  ;;  %9358 = vmatprep.subr.bf16.mxu1 %v9357_v32  ;;  %v6935_v13 = vld [vmem:[%s15673_s4 + $0xbf8] sm:$0xff]  ;;  %v9363_v31 = vpack.c.bf16 %v6918_v62, %v6910_v57  ;;  %v6924_v32 = vld [vmem:[%s15673_s4 + $0xba0] sm:$0xff]  ;;  %v6950_v57 = vld [vmem:[%s15673_s4 + $0xc48] sm:$0xff] }
 0x2b0   :  { %v9365_v40 = vpack.c.bf16 %v6935_v13, %v6927_v11  ;;  %v6958_v11 = vld [vmem:[%s15673_s4 + $0xc88] sm:$0xff] }
 0x2b1   :  { %v6966_v13 = vld [vmem:[%s15673_s4 + $0xcc8] sm:$0xff] }
 0x2b2   :  { %9328 = vmatpush1.bf16.msra.mxu0 %v9327_v45  ;;  %9360 = vmatpush1.bf16.msra.mxu1 %v9359_v1  ;;  %v9335_v45 = vpack.c.bf16 %v6932_v41, %v6924_v32  ;;  %v9367_v1 = vpack.c.bf16 %v6934_v43, %v6926_v42  ;;  %v6965_v32 = vld [vmem:[%s15673_s4 + $0xcc0] sm:$0xff] }
 0x2b3   :  { %9330 = vmatprep.subr.bf16.mxu0 %v9329_v52  ;;  %9362 = vmatprep.subr.bf16.mxu1 %v9361_v53  ;;  %v2124_v52 = vcombine.high %v2116_v50, %v2116_v50  ;;  %v2125_v53 = vcombine.high %v2123_v22, %v2123_v22  ;;  %v6973_v43 = vld [vmem:[%s15673_s4 + $0xd00] sm:$0xff] }
 0x2b6   :  { %9332 = vmatpush1.bf16.msra.mxu0 %v9331_v30  ;;  %9364 = vmatpush1.bf16.msra.mxu1 %v9363_v31  ;;  %v9449_v30 = vpack.c.bf16 %v6966_v13, %v6958_v11  ;;  %v6957_v31 = vld [vmem:[%s15673_s4 + $0xc80] sm:$0xff]  ;;  %v6959_v11 = vld [vmem:[%s15673_s4 + $0xc90] sm:$0xff] }
 0x2b7   :  { %9334 = vmatprep.subr.bf16.mxu0 %v9333_v37  ;;  %9366 = vmatprep.subr.bf16.mxu1 %v9365_v40  ;;  %v6974_v37 = vld [vmem:[%s15673_s4 + $0xd08] sm:$0xff]  ;;  %v9451_v41 = vpack.c.bf16 %v6965_v32, %v6957_v31  ;;  %v6967_v13 = vld [vmem:[%s15673_s4 + $0xcd0] sm:$0xff] }
 0x2b8   :  { %v6982_v40 = vld [vmem:[%s15673_s4 + $0xd48] sm:$0xff]  ;;  %v9483_v31 = vpack.c.bf16 %v6967_v13, %v6959_v11  ;;  %v7008_v11 = vld [vmem:[%s15673_s4 + $0xe18] sm:$0xff] }
 0x2b9   :  { %v9453_v42 = vpack.c.bf16 %v6982_v40, %v6974_v37  ;;  %v6975_v37 = vld [vmem:[%s15673_s4 + $0xd10] sm:$0xff] }
 0x2ba   :  { %9336 = vmatpush1.bf16.msra.mxu0 %v9335_v45  ;;  %9368 = vmatpush1.bf16.msra.mxu1 %v9367_v1  ;;  %v9455_v45 = vpack.c.bf16 %v6981_v44, %v6973_v43  ;;  %v6944_v1 = vld [vmem:[%s15673_s4 + $0xc18] sm:$0xff]  ;;  %v6983_v40 = vld [vmem:[%s15673_s4 + $0xd50] sm:$0xff]  ;;  %v6998_v43 = vld [vmem:[%s15673_s4 + $0xdc8] sm:$0xff] }
 0x2bb   :  { %9370 = vmatprep.subr.bf16.mxu1 %v10893_v3  ;;  %9402 = vmatprep.subr.bf16.mxu0 %v10906_v8  ;;  %v6992_v44 = vld [vmem:[%s15673_s4 + $0xd98] sm:$0xff] }
 0x2bd   :  { %2019 = vmatmul.mubr.f32.vlgmr.msra.gmra.mrb[8].mxu0 %v12375_v2  ;;  %2090 = vmatmul.mubr.f32.vlgmr.msra.gmra.mrb[8].mxu1 %v12375_v2  ;;  %v6942_v2 = vld [vmem:[%s15673_s4 + $0xc08] sm:$0xff] }
 0x2be   :  { %9372 = vmatpush3.bf16.msra.mxu1 %v10904_v7  ;;  %9404 = vmatpush3.bf16.msra.mxu0 %v10918_v12  ;;  %v9445_v62 = vpack.c.bf16 %v6950_v57, %v6942_v2  ;;  %v6960_v2 = vld [vmem:[%s15673_s4 + $0xc98] sm:$0xff] }
 0x2bf   :  { %9374 = vmatprep.subr.bf16.mxu1 %v10931_v16  ;;  %9406 = vmatprep.subr.bf16.mxu0 %v10945_v21  ;;  %v6968_v57 = vld [vmem:[%s15673_s4 + $0xcd8] sm:$0xff] }
 0x2c0   :  { %2203 = vmatprep.mubr.f32.mxu1 %v2124_v52  ;;  %2273 = vmatprep.mubr.f32.mxu0 %v2125_v53  ;;  %v6943_v52 = vld [vmem:[%s15673_s4 + $0xc10] sm:$0xff]  ;;  %v9481_v0 = vpack.c.bf16 %v6968_v57, %v6960_v2 }
 0x2c1   :  { %v6951_v53 = vld [vmem:[%s15673_s4 + $0xc50] sm:$0xff] }
 0x2c2   :  { %9376 = vmatpush3.bf16.msra.mxu1 %v10933_v17  ;;  %9408 = vmatpush3.bf16.msra.mxu0 %v10957_v25  ;;  %v9479_v58 = vpack.c.bf16 %v6951_v53, %v6943_v52  ;;  %v6991_v2 = vld [vmem:[%s15673_s4 + $0xd90] sm:$0xff] }
 0x2c3   :  { %9378 = vmatprep.subr.bf16.mxu1 %v10959_v26  ;;  %9410 = vmatprep.subr.bf16.mxu0 %v10983_v34  ;;  %v6999_v57 = vld [vmem:[%s15673_s4 + $0xdd0] sm:$0xff] }
 0x2c6   :  { %9380 = vmatpush3.bf16.msra.mxu1 %v10981_v33  ;;  %9412 = vmatpush3.bf16.msra.mxu0 %v10996_v38 }
 0x2c7   :  { %9382 = vmatprep.subr.bf16.mxu1 %v10998_v39  ;;  %9414 = vmatprep.subr.bf16.mxu0 %v11010_v46 }
 0x2ca   :  { %9384 = vmatpush3.bf16.msra.mxu1 %v11025_v51  ;;  %9416 = vmatpush3.bf16.msra.mxu0 %v11035_v54 }
 0x2cb   :  { %9386 = vmatprep.subr.bf16.mxu1 %v11037_v55  ;;  %9418 = vmatprep.subr.bf16.mxu0 %v11051_v61 }
 0x2ce   :  { %9388 = vmatpush3.bf16.msra.mxu1 %v11069_v4  ;;  %9420 = vmatpush3.bf16.msra.mxu0 %v11076_v6 }
 0x2cf   :  { %9390 = vmatprep.subr.bf16.mxu1 %v11078_v9  ;;  %9422 = vmatprep.subr.bf16.mxu0 %v11093_v15 }
 0x2d2   :  { %9392 = vmatpush3.bf16.msra.mxu1 %v11108_v23  ;;  %9424 = vmatpush3.bf16.msra.mxu0 %v11110_v24 }
 0x2d3   :  { %9394 = vmatprep.subr.bf16.mxu1 %v11117_v28  ;;  %9426 = vmatprep.subr.bf16.mxu0 %v11130_v36 }
 0x2d6   :  { %9396 = vmatpush3.bf16.msra.mxu1 %v11149_v47  ;;  %9428 = vmatpush3.bf16.msra.mxu0 %v11153_v48 }
 0x2d7   :  { %9398 = vmatprep.subr.bf16.mxu1 %v11155_v49  ;;  %9430 = vmatprep.subr.bf16.mxu0 %v11164_v56 }
 0x2da   :  { %9400 = vmatpush3.bf16.msra.mxu1 %v11173_v59  ;;  %9432 = vmatpush3.bf16.msra.mxu0 %v11180_v63 }
 0x2db   :  { %9433 = vmatprep.subr.bf16.mxu1 %v10830_v10  ;;  %9446 = vmatprep.subr.bf16.mxu0 %v9445_v62  ;;  %v6938_v62 = vld.sshfl [vmem:[%s15669_s0 + $0x26] sm:$0x3 pattern:$0x76325410] }
 0x2dd   :  { %2204 = vmatmul.mubr.f32.vlgmr.msra.gmra.mrb[12].mxu1 %v2116_v50  ;;  %2274 = vmatmul.mubr.f32.vlgmr.msra.gmra.mrb[14].mxu0 %v2123_v22  ;;  %v6952_v50 = vld [vmem:[%s15673_s4 + $0xc58] sm:$0xff] }
 0x2de   :  { %9435 = vmatpush3.bf16.msra.mxu1 %v11191_v5  ;;  %8659 = vmatprep.mubr.msk.f32.mxu1 %vm10831_vm0, %v10832_v27  ;;  %v9477_v22 = vpack.c.bf16 %v6952_v50, %v6944_v1  ;;  %v7000_v1 = vld [vmem:[%s15673_s4 + $0xdd8] sm:$0xff]  ;;  %v6989_v50 = vld [vmem:[%s15673_s4 + $0xd80] sm:$0xff] }
 0x2df   :  { %9436 = vmatprep.subr.bf16.mxu1 %v10830_v10  ;;  %9448 = vmatpush1.bf16.msra.mxu0 %v9447_v18  ;;  %v6976_v18 = vld [vmem:[%s15673_s4 + $0xd18] sm:$0xff]  ;;  %v9489_v52 = vpack.c.bf16 %v7000_v1, %v6992_v44  ;;  %v7030_v44 = vld [vmem:[%s15673_s4 + $0xec8] sm:$0xff] }
 0x2e0   :  { %9450 = vmatprep.subr.bf16.mxu0 %v9449_v30  ;;  %2546 = vmatprep.mubr.f32.mxu0 %v10832_v27  ;;  %v6984_v30 = vld [vmem:[%s15673_s4 + $0xd58] sm:$0xff] }
 0x2e1   :  { %v9485_v32 = vpack.c.bf16 %v6984_v30, %v6976_v18  ;;  %v7016_v18 = vld [vmem:[%s15673_s4 + $0xe58] sm:$0xff]  ;;  %v7005_v30 = vld [vmem:[%s15673_s4 + $0xe00] sm:$0xff] }
 0x2e2   :  { %9438 = vmatpush3.bf16.msra.mxu1 %v11203_v19  ;;  %v7032_v1 = vld [vmem:[%s15673_s4 + $0xed8] sm:$0xff] }
 0x2e3   :  { %9439 = vmatprep.subr.bf16.mxu1 %v10830_v10  ;;  %9452 = vmatpush1.bf16.msra.mxu0 %v9451_v41  ;;  %v9487_v41 = vpack.c.bf16 %v6983_v40, %v6975_v37  ;;  %v7007_v40 = vld [vmem:[%s15673_s4 + $0xe10] sm:$0xff] }
 0x2e4   :  { %9454 = vmatprep.subr.bf16.mxu0 %v9453_v42  ;;  %v6990_v42 = vld [vmem:[%s15673_s4 + $0xd88] sm:$0xff] }
 0x2e6   :  { %9441 = vmatpush3.bf16.msra.mxu1 %v11217_v29 }
 0x2e7   :  { %9442 = vmatprep.subr.bf16.mxu1 %v10830_v10  ;;  %9456 = vmatpush1.bf16.msra.mxu0 %v9455_v45  ;;  %v9457_v45 = vpack.c.bf16 %v6998_v43, %v6990_v42  ;;  %v7022_v42 = vld [vmem:[%s15673_s4 + $0xe88] sm:$0xff] }
 0x2e9   :  { %9458 = vmatprep.subr.bf16.mxu0 %v9457_v45  ;;  %v7024_v45 = vld [vmem:[%s15673_s4 + $0xe98] sm:$0xff] }
 0x2ea   :  { %9444 = vmatpush3.bf16.msra.mxu1 %v11229_v35 }
 0x2eb   :  { %9478 = vmatprep.subr.bf16.mxu1 %v9477_v22  ;;  %v6997_v22 = vld [vmem:[%s15673_s4 + $0xdc0] sm:$0xff] }
 0x2ec   :  { %v9459_v53 = vpack.c.bf16 %v6997_v22, %v6989_v50  ;;  %v9465_v50 = vpack.c.bf16 %v7030_v44, %v7022_v42  ;;  %v9497_v22 = vpack.c.bf16 %v7032_v1, %v7024_v45  ;;  %v7054_v44 = vld [vmem:[%s15673_s4 + $0xf88] sm:$0xff]  ;;  %v7056_v1 = vld [vmem:[%s15673_s4 + $0xf98] sm:$0xff] }
 0x2ed   :  { %8660 = vmatmul.mubr.msk.f32.vlgmr.msra.gmra.mrb[14].mxu1 %vm144_vm1, %v6938_v62  ;;  %v9491_v62 = vpack.c.bf16 %v6999_v57, %v6991_v2  ;;  %v7023_v2 = vld [vmem:[%s15673_s4 + $0xe90] sm:$0xff]  ;;  %v7062_v45 = vld [vmem:[%s15673_s4 + $0xfc8] sm:$0xff] }
 0x2ee   :  { %9480 = vmatpush1.bf16.msra.mxu1 %v9479_v58  ;;  %2617 = vmatprep.mubr.f32.mxu1 %v10832_v27  ;;  %v7006_v58 = vld [vmem:[%s15673_s4 + $0xe08] sm:$0xff] }
 0x2ef   :  { %9482 = vmatprep.subr.bf16.mxu1 %v9481_v0  ;;  %9460 = vmatpush1.bf16.msra.mxu0 %v9459_v53  ;;  %v7014_v0 = vld [vmem:[%s15673_s4 + $0xe48] sm:$0xff]  ;;  %v7029_v53 = vld [vmem:[%s15673_s4 + $0xec0] sm:$0xff] }
 0x2f0   :  { %v9461_v13 = vpack.c.bf16 %v7014_v0, %v7006_v58  ;;  %v7038_v58 = vld [vmem:[%s15673_s4 + $0xf08] sm:$0xff] }
 0x2f1   :  { %v7046_v0 = vld [vmem:[%s15673_s4 + $0xf48] sm:$0xff] }
 0x2f2   :  { %9484 = vmatpush1.bf16.msra.mxu1 %v9483_v31  ;;  %v7013_v31 = vld [vmem:[%s15673_s4 + $0xe40] sm:$0xff]  ;;  %9462 = vmatprep.subr.bf16.mxu0 %v9461_v13  ;;  %v9469_v13 = vpack.c.bf16 %v7046_v0, %v7038_v58  ;;  %v7063_v58 = vld [vmem:[%s15673_s4 + $0xfd0] sm:$0xff] }
 0x2f3   :  { %9486 = vmatprep.subr.bf16.mxu1 %v9485_v32  ;;  %v9493_v32 = vpack.c.bf16 %v7016_v18, %v7008_v11  ;;  %v9463_v37 = vpack.c.bf16 %v7013_v31, %v7005_v30  ;;  %v7040_v18 = vld [vmem:[%s15673_s4 + $0xf18] sm:$0xff]  ;;  %v7037_v31 = vld [vmem:[%s15673_s4 + $0xf00] sm:$0xff] }
 0x2f4   :  { %v7048_v30 = vld [vmem:[%s15673_s4 + $0xf58] sm:$0xff] }
 0x2f5   :  { %9464 = vmatpush1.bf16.msra.mxu0 %v9463_v37  ;;  %v7045_v37 = vld [vmem:[%s15673_s4 + $0xf40] sm:$0xff] }
 0x2f6   :  { %9488 = vmatpush1.bf16.msra.mxu1 %v9487_v41  ;;  %v7015_v41 = vld [vmem:[%s15673_s4 + $0xe50] sm:$0xff]  ;;  %9466 = vmatprep.subr.bf16.mxu0 %v9465_v50  ;;  %v9471_v42 = vpack.c.bf16 %v7045_v37, %v7037_v31  ;;  %v9473_v50 = vpack.c.bf16 %v7062_v45, %v7054_v44  ;;  %v6956_v31 = vld [vmem:[%s15673_s4 + $0xc78] sm:$0xff] }
 0x2f7   :  { %9490 = vmatprep.subr.bf16.mxu1 %v9489_v52  ;;  %v9495_v43 = vpack.c.bf16 %v7015_v41, %v7007_v40  ;;  %v7021_v52 = vld [vmem:[%s15673_s4 + $0xe80] sm:$0xff]  ;;  %v7039_v40 = vld [vmem:[%s15673_s4 + $0xf10] sm:$0xff] }
 0x2f8   :  { %v9467_v57 = vpack.c.bf16 %v7029_v53, %v7021_v52  ;;  %v7047_v41 = vld [vmem:[%s15673_s4 + $0xf50] sm:$0xff]  ;;  %v7053_v52 = vld [vmem:[%s15673_s4 + $0xf80] sm:$0xff] }
 0x2f9   :  { %v7061_v53 = vld [vmem:[%s15673_s4 + $0xfc0] sm:$0xff] }
 0x2fa   :  { %9492 = vmatpush1.bf16.msra.mxu1 %v9491_v62  ;;  %v7031_v62 = vld [vmem:[%s15673_s4 + $0xed0] sm:$0xff]  ;;  %9468 = vmatpush1.bf16.msra.mxu0 %v9467_v57  ;;  %v9475_v57 = vpack.c.bf16 %v7061_v53, %v7053_v52  ;;  %v6945_v52 = vld [vmem:[%s15673_s4 + $0xc20] sm:$0xff] }
 0x2fb   :  { %9494 = vmatprep.subr.bf16.mxu1 %v9493_v32  ;;  %v9499_v11 = vpack.c.bf16 %v7031_v62, %v7023_v2  ;;  %v9501_v32 = vpack.c.bf16 %v7048_v30, %v7040_v18  ;;  %9470 = vmatprep.subr.bf16.mxu0 %v9469_v13  ;;  %v7055_v62 = vld [vmem:[%s15673_s4 + $0xf90] sm:$0xff]  ;;  %v6954_v13 = vld [vmem:[%s15673_s4 + $0xc68] sm:$0xff]  ;;  %v6948_v30 = vld [vmem:[%s15673_s4 + $0xc38] sm:$0xff] }
 0x2fc   :  { %v9507_v0 = vpack.c.bf16 %v7063_v58, %v7055_v62  ;;  %v6953_v53 = vld [vmem:[%s15673_s4 + $0xc60] sm:$0xff]  ;;  %v6955_v62 = vld [vmem:[%s15673_s4 + $0xc70] sm:$0xff]  ;;  %v6962_v58 = vld [vmem:[%s15673_s4 + $0xca8] sm:$0xff] }
 0x2fe   :  { %9496 = vmatpush1.bf16.msra.mxu1 %v9495_v43  ;;  %v9503_v43 = vpack.c.bf16 %v7047_v41, %v7039_v40  ;;  %9472 = vmatpush1.bf16.msra.mxu0 %v9471_v42 }
 0x2ff   :  { %9498 = vmatprep.subr.bf16.mxu1 %v9497_v22  ;;  %v7064_v22 = vld [vmem:[%s15673_s4 + $0xfd8] sm:$0xff]  ;;  %9474 = vmatprep.subr.bf16.mxu0 %v9473_v50 }
 0x300   :  { %v9505_v2 = vpack.c.bf16 %v7064_v22, %v7056_v1  ;;  %v6940_v22 = vld [vmem:[%s15672_s3 + $0x6] sm:$0x3] }
 0x302   :  { %9500 = vmatpush1.bf16.msra.mxu1 %v9499_v11  ;;  %9476 = vmatpush1.bf16.msra.mxu0 %v9475_v57  ;;  %v6946_v11 = vld [vmem:[%s15673_s4 + $0xc28] sm:$0xff] }
 0x303   :  { %9502 = vmatprep.subr.bf16.mxu1 %v9501_v32  ;;  %v9509_v18 = vpack.c.bf16 %v6954_v13, %v6946_v11  ;;  %v9541_v32 = vpack.c.bf16 %v6956_v31, %v6948_v30  ;;  %v6964_v11 = vld [vmem:[%s15673_s4 + $0xcb8] sm:$0xff]  ;;  %v9511_v30 = vpack.c.bf16 %v6953_v53, %v6945_v52 }
 0x304   :  { %v6972_v13 = vld [vmem:[%s15673_s4 + $0xcf8] sm:$0xff] }
 0x305   :  { %9510 = vmatprep.subr.bf16.mxu0 %v9509_v18 }
 0x306   :  { %9504 = vmatpush1.bf16.msra.mxu1 %v9503_v43 }
 0x307   :  { %9506 = vmatprep.subr.bf16.mxu1 %v9505_v2 }
 0x30a   :  { %9508 = vmatpush1.bf16.msra.mxu1 %v9507_v0  ;;  %v6970_v0 = vld [vmem:[%s15673_s4 + $0xce8] sm:$0xff] }
 0x30b   :  { %9542 = vmatprep.subr.bf16.mxu1 %v9541_v32  ;;  %v6961_v32 = vld [vmem:[%s15673_s4 + $0xca0] sm:$0xff] }
 0x3b0   :  { %v8004_v37 = vpop.f32.mrb[12].mxu1  ;;  %v8039_v40 = vpop.f32.mrb[14].mxu0 }
 0x3b1   :  { %v8005_v41 = vpop.f32.mrb[13].mxu1  ;;  %v8040_v42 = vpop.f32.mrb[15].mxu0 }
 0x3b2   :  { %v8006_v43 = vadd.f32 %v8005_v41, %v8004_v37  ;;  %v8041_v44 = vadd.f32 %v8040_v42, %v8039_v40  ;;  %v6969_v37 = vld [vmem:[%s15673_s4 + $0xce0] sm:$0xff]  ;;  %v9513_v41 = vpack.c.bf16 %v6970_v0, %v6962_v58  ;;  %v9545_v42 = vpack.c.bf16 %v6972_v13, %v6964_v11  ;;  %v6979_v58 = vld [vmem:[%s15673_s4 + $0xd30] sm:$0xff]  ;;  %v6994_v11 = vld [vmem:[%s15673_s4 + $0xda8] sm:$0xff] }
 0x3b3   :  { %v9515_v52 = vpack.c.bf16 %v6969_v37, %v6961_v32  ;;  %v6987_v0 = vld [vmem:[%s15673_s4 + $0xd70] sm:$0xff]  ;;  %v7002_v13 = vld [vmem:[%s15673_s4 + $0xde8] sm:$0xff]  ;;  %v6993_v37 = vld [vmem:[%s15673_s4 + $0xda0] sm:$0xff] }
 0x3b4   :  { %v2206_v45 = vadd.f32 %v12339_v20, %v8006_v43  ;;  %v6947_v20 = vld [vmem:[%s15673_s4 + $0xc30] sm:$0xff]  ;;  %v9551_v32 = vpack.c.bf16 %v6987_v0, %v6979_v58 }
 0x3b5   :  { %v9543_v31 = vpack.c.bf16 %v6955_v62, %v6947_v20  ;;  %v6963_v43 = vld [vmem:[%s15673_s4 + $0xcb0] sm:$0xff] }
 0x3b6   :  { %v2276_v1 = vadd.f32 %v8041_v44, %v2206_v45  ;;  %v6971_v44 = vld [vmem:[%s15673_s4 + $0xcf0] sm:$0xff]  ;;  %v6978_v45 = vld [vmem:[%s15673_s4 + $0xd28] sm:$0xff] }
 0x3b7   :  { %v9547_v53 = vpack.c.bf16 %v6971_v44, %v6963_v43  ;;  %v6995_v44 = vld [vmem:[%s15673_s4 + $0xdb0] sm:$0xff] }
 0x3b8   :  { %v7011_v0 = vld [vmem:[%s15673_s4 + $0xe30] sm:$0xff] }
 0x3c0   :  { %v2345_v50 = vpop.f32.mrb[14].mxu1 }
 0x3c1   :  { %v2346_v2 = vadd.f32 %v2345_v50, %v2276_v1  ;;  %v8661_v57 = vpop.f32.mrb[15].mxu1  ;;  %v6986_v1 = vld [vmem:[%s15673_s4 + $0xd68] sm:$0xff]  ;;  %v6980_v50 = vld [vmem:[%s15673_s4 + $0xd38] sm:$0xff] }
 0x3c2   :  { %v6985_v57 = vld [vmem:[%s15673_s4 + $0xd60] sm:$0xff]  ;;  %v9517_v20 = vpack.c.bf16 %v6986_v1, %v6978_v45  ;;  %v7003_v45 = vld [vmem:[%s15673_s4 + $0xdf0] sm:$0xff]  ;;  %v7010_v1 = vld [vmem:[%s15673_s4 + $0xe28] sm:$0xff] }
 0x3c3   :  { %v2349_v18 = vmax.f32 %v2346_v2, 0.0  ;;  %v6977_v2 = vld [vmem:[%s15673_s4 + $0xd20] sm:$0xff] }
 0x3c5   :  { %v12824_v40 = vmul.f32 %v6940_v22, %v2349_v18  ;;  %v6988_v22 = vld [vmem:[%s15673_s4 + $0xd78] sm:$0xff] }
 0x3c6   :  { %v9549_v62 = vpack.c.bf16 %v6988_v22, %v6980_v50  ;;  %v6996_v18 = vld [vmem:[%s15673_s4 + $0xdb8] sm:$0xff]  ;;  %v7018_v50 = vld [vmem:[%s15673_s4 + $0xe68] sm:$0xff] }
 0x3c7   :  { %2547 = vmatmul.mubr.f32.vlgmr.msra.gmra.mrb[6].mxu0 %v12824_v40  ;;  %2618 = vmatmul.mubr.f32.vlgmr.msra.gmra.mrb[6].mxu1 %v12824_v40  ;;  %v7012_v22 = vld [vmem:[%s15673_s4 + $0xe38] sm:$0xff] }
 0x3c8   :  { %9512 = vmatpush1.bf16.msra.mxu0 %v9511_v30  ;;  %9544 = vmatpush1.bf16.msra.mxu1 %v9543_v31  ;;  %v7004_v30 = vld [vmem:[%s15673_s4 + $0xdf8] sm:$0xff]  ;;  %v9519_v31 = vpack.c.bf16 %v6985_v57, %v6977_v2  ;;  %v9555_v2 = vpack.c.bf16 %v7003_v45, %v6995_v44  ;;  %v7009_v57 = vld [vmem:[%s15673_s4 + $0xe20] sm:$0xff]  ;;  %v7027_v45 = vld [vmem:[%s15673_s4 + $0xeb0] sm:$0xff] }
 0x3c9   :  { %9514 = vmatprep.subr.bf16.mxu0 %v9513_v41  ;;  %9546 = vmatprep.subr.bf16.mxu1 %v9545_v42  ;;  %v7001_v41 = vld [vmem:[%s15673_s4 + $0xde0] sm:$0xff]  ;;  %v9521_v42 = vpack.c.bf16 %v7002_v13, %v6994_v11  ;;  %v9553_v43 = vpack.c.bf16 %v7004_v30, %v6996_v18  ;;  %v7019_v11 = vld [vmem:[%s15673_s4 + $0xe70] sm:$0xff]  ;;  %v7026_v13 = vld [vmem:[%s15673_s4 + $0xea8] sm:$0xff] }
 0x3ca   :  { %2688 = vmatprep.mubr.f32.mxu0 %v10832_v27  ;;  %2759 = vmatprep.mubr.f32.mxu1 %v10832_v27  ;;  %v7034_v18 = vld [vmem:[%s15673_s4 + $0xee8] sm:$0xff]  ;;  %v7028_v30 = vld [vmem:[%s15673_s4 + $0xeb8] sm:$0xff] }
 0x3cc   :  { %9516 = vmatpush1.bf16.msra.mxu0 %v9515_v52  ;;  %9548 = vmatpush1.bf16.msra.mxu1 %v9547_v53  ;;  %v7020_v52 = vld [vmem:[%s15673_s4 + $0xe78] sm:$0xff]  ;;  %v9523_v53 = vpack.c.bf16 %v7001_v41, %v6993_v37  ;;  %v9559_v37 = vpack.c.bf16 %v7019_v11, %v7011_v0  ;;  %v7025_v41 = vld [vmem:[%s15673_s4 + $0xea0] sm:$0xff]  ;;  %v7043_v11 = vld [vmem:[%s15673_s4 + $0xf30] sm:$0xff] }
 0x3cd   :  { %9518 = vmatprep.subr.bf16.mxu0 %v9517_v20  ;;  %9550 = vmatprep.subr.bf16.mxu1 %v9549_v62  ;;  %v7017_v20 = vld [vmem:[%s15673_s4 + $0xe60] sm:$0xff]  ;;  %v9525_v62 = vpack.c.bf16 %v7018_v50, %v7010_v1  ;;  %v9557_v58 = vpack.c.bf16 %v7020_v52, %v7012_v22  ;;  %v7035_v1 = vld [vmem:[%s15673_s4 + $0xef0] sm:$0xff]  ;;  %v7042_v50 = vld [vmem:[%s15673_s4 + $0xf28] sm:$0xff] }
 0x3ce   :  { %v7050_v22 = vld [vmem:[%s15673_s4 + $0xf68] sm:$0xff]  ;;  %v7044_v52 = vld [vmem:[%s15673_s4 + $0xf38] sm:$0xff] }
 0x3d0   :  { %9520 = vmatpush1.bf16.msra.mxu0 %v9519_v31  ;;  %9552 = vmatpush1.bf16.msra.mxu1 %v9551_v32  ;;  %v7036_v31 = vld [vmem:[%s15673_s4 + $0xef8] sm:$0xff]  ;;  %v9527_v32 = vpack.c.bf16 %v7017_v20, %v7009_v57  ;;  %v9563_v57 = vpack.c.bf16 %v7035_v1, %v7027_v45  ;;  %v7041_v20 = vld [vmem:[%s15673_s4 + $0xf20] sm:$0xff] }
 0x3d1   :  { %9522 = vmatprep.subr.bf16.mxu0 %v9521_v42  ;;  %9554 = vmatprep.subr.bf16.mxu1 %v9553_v43  ;;  %v7033_v42 = vld [vmem:[%s15673_s4 + $0xee0] sm:$0xff]  ;;  %v9529_v43 = vpack.c.bf16 %v7034_v18, %v7026_v13  ;;  %v9561_v44 = vpack.c.bf16 %v7036_v31, %v7028_v30  ;;  %v7051_v13 = vld [vmem:[%s15673_s4 + $0xf70] sm:$0xff]  ;;  %v7058_v18 = vld [vmem:[%s15673_s4 + $0xfa8] sm:$0xff] }
 0x3d2   :  { %v7066_v30 = vld [vmem:[%s15673_s4 + $0xfe8] sm:$0xff]  ;;  %v7060_v31 = vld [vmem:[%s15673_s4 + $0xfb8] sm:$0xff]  ;;  %v7065_v1 = vld [vmem:[%s15673_s4 + $0xfe0] sm:$0xff] }
 0x3d4   :  { %9524 = vmatpush1.bf16.msra.mxu0 %v9523_v53  ;;  %9556 = vmatpush1.bf16.msra.mxu1 %v9555_v2  ;;  %v7052_v53 = vld [vmem:[%s15673_s4 + $0xf78] sm:$0xff]  ;;  %v9531_v2 = vpack.c.bf16 %v7033_v42, %v7025_v41  ;;  %v9567_v42 = vpack.c.bf16 %v7051_v13, %v7043_v11  ;;  %v7076_v13 = vld [vmem:[%s15673_s4 + $0x1010] sm:$0xff] }
 0x3d5   :  { %9526 = vmatprep.subr.bf16.mxu0 %v9525_v62  ;;  %9558 = vmatprep.subr.bf16.mxu1 %v9557_v58  ;;  %v7049_v62 = vld [vmem:[%s15673_s4 + $0xf60] sm:$0xff]  ;;  %v9533_v58 = vpack.c.bf16 %v7050_v22, %v7042_v50  ;;  %v9565_v0 = vpack.c.bf16 %v7052_v53, %v7044_v52  ;;  %v7059_v50 = vld [vmem:[%s15673_s4 + $0xfb0] sm:$0xff] }
 0x3d6   :  { %v9535_v41 = vpack.c.bf16 %v7049_v62, %v7041_v20  ;;  %v7067_v22 = vld [vmem:[%s15673_s4 + $0xff0] sm:$0xff] }
 0x3d8   :  { %9528 = vmatpush1.bf16.msra.mxu0 %v9527_v32  ;;  %9560 = vmatpush1.bf16.msra.mxu1 %v9559_v37  ;;  %v7068_v32 = vld [vmem:[%s15673_s4 + $0xff8] sm:$0xff]  ;;  %v7069_v37 = vld [vmem:[%s15669_s0 + $0x28] sm:$0xff] }
 0x3d9   :  { %9530 = vmatprep.subr.bf16.mxu0 %v9529_v43  ;;  %9562 = vmatprep.subr.bf16.mxu1 %v9561_v44  ;;  %v7057_v43 = vld [vmem:[%s15673_s4 + $0xfa0] sm:$0xff]  ;;  %v9537_v44 = vpack.c.bf16 %v7066_v30, %v7058_v18  ;;  %v9569_v45 = vpack.c.bf16 %v7068_v32, %v7060_v31  ;;  %v2779_v52 = vcombine.high %v7069_v37, %v7069_v37  ;;  %v7084_v18 = vld [vmem:[%s15673_s4 + $0x1050] sm:$0xff]  ;;  %v7093_v30 = vld [vmem:[%s15673_s4 + $0x1098] sm:$0xff] }
 0x3da   :  { %v9539_v53 = vpack.c.bf16 %v7065_v1, %v7057_v43  ;;  %v7101_v31 = vld [vmem:[%s15673_s4 + $0x10d8] sm:$0xff]  ;;  %v9683_v32 = vpack.c.bf16 %v7084_v18, %v7076_v13  ;;  %v7090_v18 = vld [vmem:[%s15673_s4 + $0x1080] sm:$0xff] }
 0x3db   :  { %v2793_v20 = vrot.slane %v2779_v52, %v11090_v14  ;;  %v7109_v43 = vld [vmem:[%s15673_s4 + $0x1118] sm:$0xff] }
 0x3dc   :  { %9532 = vmatpush1.bf16.msra.mxu0 %v9531_v2  ;;  %9564 = vmatpush1.bf16.msra.mxu1 %v9563_v57  ;;  %v9571_v2 = vpack.c.bf16 %v7067_v22, %v7059_v50  ;;  %v2786_v57 = vrot.slane %v7069_v37, %v11090_v14  ;;  %v9685_v37 = vpack.c.bf16 %v7101_v31, %v7093_v30  ;;  %v7108_v50 = vld [vmem:[%s15673_s4 + $0x1110] sm:$0xff]  ;;  %v7098_v30 = vld [vmem:[%s15673_s4 + $0x10c0] sm:$0xff]  ;;  %v7107_v31 = vld [vmem:[%s15673_s4 + $0x1108] sm:$0xff] }
 0x3dd   :  { %9534 = vmatprep.subr.bf16.mxu0 %v9533_v58  ;;  %9566 = vmatprep.subr.bf16.mxu1 %v9565_v0  ;;  %v2795_v58 = vcombine.high %v2793_v20, %v2793_v20  ;;  %v7085_v0 = vld [vmem:[%s15673_s4 + $0x1058] sm:$0xff]  ;;  %v7116_v22 = vld [vmem:[%s15673_s4 + $0x1150] sm:$0xff] }
 0x3de   :  { %v2794_v62 = vcombine.high %v2786_v57, %v2786_v57  ;;  %v9691_v52 = vpack.c.bf16 %v7116_v22, %v7108_v50  ;;  %v7125_v50 = vld [vmem:[%s15673_s4 + $0x1198] sm:$0xff] }
 0x3e0   :  { %9536 = vmatpush1.bf16.msra.mxu0 %v9535_v41  ;;  %9568 = vmatpush1.bf16.msra.mxu1 %v9567_v42  ;;  %v7092_v41 = vld [vmem:[%s15673_s4 + $0x1090] sm:$0xff] }
 0x3e1   :  { %9538 = vmatprep.subr.bf16.mxu0 %v9537_v44  ;;  %9570 = vmatprep.subr.bf16.mxu1 %v9569_v45  ;;  %v7100_v42 = vld [vmem:[%s15673_s4 + $0x10d0] sm:$0xff]  ;;  %v7117_v44 = vld [vmem:[%s15673_s4 + $0x1158] sm:$0xff] }
 0x3e2   :  { %v9687_v45 = vpack.c.bf16 %v7100_v42, %v7092_v41  ;;  %v9689_v1 = vpack.c.bf16 %v7117_v44, %v7109_v43  ;;  %v7106_v42 = vld [vmem:[%s15673_s4 + $0x1100] sm:$0xff] }
 0x3e3   :  { %v7114_v43 = vld [vmem:[%s15673_s4 + $0x1140] sm:$0xff] }
 0x3e4   :  { %9540 = vmatpush1.bf16.msra.mxu0 %v9539_v53  ;;  %9572 = vmatpush1.bf16.msra.mxu1 %v9571_v2  ;;  %v7075_v53 = vld [vmem:[%s15673_s4 + $0x1008] sm:$0xff]  ;;  %v9659_v44 = vpack.c.bf16 %v7114_v43, %v7106_v42  ;;  %v7140_v42 = vld [vmem:[%s15673_s4 + $0x1210] sm:$0xff] }
 0x3e5   :  { %9574 = vmatprep.subr.bf16.mxu0 %v10893_v3  ;;  %9606 = vmatprep.subr.bf16.mxu1 %v10906_v8  ;;  %v7083_v2 = vld [vmem:[%s15673_s4 + $0x1048] sm:$0xff]  ;;  %v7148_v43 = vld [vmem:[%s15673_s4 + $0x1250] sm:$0xff] }
 0x3e7   :  { %2689 = vmatmul.mubr.f32.vlgmr.msra.gmra.mrb[8].mxu0 %v12824_v40  ;;  %2760 = vmatmul.mubr.f32.vlgmr.msra.gmra.mrb[8].mxu1 %v12824_v40  ;;  %v7077_v40 = vld [vmem:[%s15673_s4 + $0x1018] sm:$0xff] }
 0x3e8   :  { %9576 = vmatpush3.bf16.msra.mxu0 %v10904_v7  ;;  %9608 = vmatpush3.bf16.msra.mxu1 %v10918_v12  ;;  %v9681_v11 = vpack.c.bf16 %v7085_v0, %v7077_v40  ;;  %v7099_v40 = vld [vmem:[%s15673_s4 + $0x10c8] sm:$0xff]  ;;  %v7071_v0 = vld.sshfl [vmem:[%s15669_s0 + $0x30] sm:$0x3 pattern:$0x76325410] }
 0x3e9   :  { %9578 = vmatprep.subr.bf16.mxu0 %v10931_v16  ;;  %9610 = vmatprep.subr.bf16.mxu1 %v10945_v21 }
 0x3ea   :  { %2873 = vmatprep.mubr.f32.mxu0 %v2794_v62  ;;  %2943 = vmatprep.mubr.f32.mxu1 %v2795_v58  ;;  %v7082_v62 = vld [vmem:[%s15673_s4 + $0x1040] sm:$0xff]  ;;  %v7091_v58 = vld [vmem:[%s15673_s4 + $0x1088] sm:$0xff] }
 0x3eb   :  { %v9653_v13 = vpack.c.bf16 %v7099_v40, %v7091_v58  ;;  %v7132_v58 = vld [vmem:[%s15673_s4 + $0x11d0] sm:$0xff] }
 0x3ec   :  { %9580 = vmatpush3.bf16.msra.mxu0 %v10933_v17  ;;  %9612 = vmatpush3.bf16.msra.mxu1 %v10957_v25 }
 0x3ed   :  { %9582 = vmatprep.subr.bf16.mxu0 %v10959_v26  ;;  %9614 = vmatprep.subr.bf16.mxu1 %v10983_v34 }
 0x3f0   :  { %9584 = vmatpush3.bf16.msra.mxu0 %v10981_v33  ;;  %9616 = vmatpush3.bf16.msra.mxu1 %v10996_v38 }
 0x3f1   :  { %9586 = vmatprep.subr.bf16.mxu0 %v10998_v39  ;;  %9618 = vmatprep.subr.bf16.mxu1 %v11010_v46 }
 0x3f4   :  { %9588 = vmatpush3.bf16.msra.mxu0 %v11025_v51  ;;  %9620 = vmatpush3.bf16.msra.mxu1 %v11035_v54 }
 0x3f5   :  { %9590 = vmatprep.subr.bf16.mxu0 %v11037_v55  ;;  %9622 = vmatprep.subr.bf16.mxu1 %v11051_v61 }
 0x3f8   :  { %9592 = vmatpush3.bf16.msra.mxu0 %v11069_v4  ;;  %9624 = vmatpush3.bf16.msra.mxu1 %v11076_v6 }
 0x3f9   :  { %9594 = vmatprep.subr.bf16.mxu0 %v11078_v9  ;;  %9626 = vmatprep.subr.bf16.mxu1 %v11093_v15 }
 0x3fc   :  { %9596 = vmatpush3.bf16.msra.mxu0 %v11108_v23  ;;  %9628 = vmatpush3.bf16.msra.mxu1 %v11110_v24 }
 0x3fd   :  { %9598 = vmatprep.subr.bf16.mxu0 %v11117_v28  ;;  %9630 = vmatprep.subr.bf16.mxu1 %v11130_v36 }
 0x400   :  { %9600 = vmatpush3.bf16.msra.mxu0 %v11149_v47  ;;  %9632 = vmatpush3.bf16.msra.mxu1 %v11153_v48 }
 0x401   :  { %9602 = vmatprep.subr.bf16.mxu0 %v11155_v49  ;;  %9634 = vmatprep.subr.bf16.mxu1 %v11164_v56 }
 0x404   :  { %9604 = vmatpush3.bf16.msra.mxu0 %v11173_v59  ;;  %9636 = vmatpush3.bf16.msra.mxu1 %v11180_v63 }
 0x405   :  { %9637 = vmatprep.subr.bf16.mxu0 %v10830_v10  ;;  %9682 = vmatprep.subr.bf16.mxu1 %v9681_v11 }
 0x407   :  { %2874 = vmatmul.mubr.f32.vlgmr.msra.gmra.mrb[16].mxu0 %v2786_v57  ;;  %2944 = vmatmul.mubr.f32.vlgmr.msra.gmra.mrb[16].mxu1 %v2793_v20  ;;  %v9649_v57 = vpack.c.bf16 %v7083_v2, %v7075_v53  ;;  %v7074_v20 = vld [vmem:[%s15673_s4 + $0x1000] sm:$0xff] }
 0x408   :  { %9639 = vmatpush3.bf16.msra.mxu0 %v11191_v5  ;;  %8678 = vmatprep.mubr.msk.f32.mxu0 %vm10831_vm0, %v10832_v27  ;;  %v9651_v11 = vpack.c.bf16 %v7082_v62, %v7074_v20  ;;  %v7122_v53 = vld [vmem:[%s15673_s4 + $0x1180] sm:$0xff]  ;;  %v7124_v62 = vld [vmem:[%s15673_s4 + $0x1190] sm:$0xff] }
 0x409   :  { %9640 = vmatprep.subr.bf16.mxu0 %v10830_v10  ;;  %9684 = vmatpush1.bf16.msra.mxu1 %v9683_v32  ;;  %v7115_v32 = vld [vmem:[%s15673_s4 + $0x1148] sm:$0xff]  ;;  %v7130_v2 = vld [vmem:[%s15673_s4 + $0x11c0] sm:$0xff]  ;;  %v9695_v40 = vpack.c.bf16 %v7132_v58, %v7124_v62  ;;  %v7164_v58 = vld [vmem:[%s15673_s4 + $0x12d0] sm:$0xff] }
 0x40a   :  { %9686 = vmatprep.subr.bf16.mxu1 %v9685_v37  ;;  %3287 = vmatprep.mubr.f32.mxu1 %v10832_v27  ;;  %v9655_v37 = vpack.c.bf16 %v7098_v30, %v7090_v18  ;;  %v9657_v41 = vpack.c.bf16 %v7115_v32, %v7107_v31  ;;  %v9663_v20 = vpack.c.bf16 %v7130_v2, %v7122_v53  ;;  %v7149_v30 = vld [vmem:[%s15673_s4 + $0x1258] sm:$0xff]  ;;  %v7138_v31 = vld [vmem:[%s15673_s4 + $0x1200] sm:$0xff] }
 0x40b   :  { %v7146_v32 = vld [vmem:[%s15673_s4 + $0x1240] sm:$0xff] }
 0x40c   :  { %9642 = vmatpush3.bf16.msra.mxu0 %v11203_v19  ;;  %v7154_v2 = vld [vmem:[%s15673_s4 + $0x1280] sm:$0xff] }
 0x40d   :  { %9643 = vmatprep.subr.bf16.mxu0 %v10830_v10  ;;  %9688 = vmatpush1.bf16.msra.mxu1 %v9687_v45  ;;  %v7123_v45 = vld [vmem:[%s15673_s4 + $0x1188] sm:$0xff] }
 0x40e   :  { %9690 = vmatprep.subr.bf16.mxu1 %v9689_v1  ;;  %v7131_v1 = vld [vmem:[%s15673_s4 + $0x11c8] sm:$0xff] }
 0x40f   :  { %v9661_v22 = vpack.c.bf16 %v7131_v1, %v7123_v45  ;;  %v9699_v45 = vpack.c.bf16 %v7148_v43, %v7140_v42  ;;  %v7163_v1 = vld [vmem:[%s15673_s4 + $0x12c8] sm:$0xff]  ;;  %v7180_v42 = vld [vmem:[%s15673_s4 + $0x1350] sm:$0xff] }
 0x410   :  { %9645 = vmatpush3.bf16.msra.mxu0 %v11217_v29 }
 0x411   :  { %9646 = vmatprep.subr.bf16.mxu0 %v10830_v10  ;;  %9692 = vmatpush1.bf16.msra.mxu1 %v9691_v52  ;;  %v7133_v52 = vld [vmem:[%s15673_s4 + $0x11d8] sm:$0xff] }
 0x414   :  { %9648 = vmatpush3.bf16.msra.mxu0 %v11229_v35 }
 0x415   :  { %9650 = vmatprep.subr.bf16.mxu0 %v9649_v57  ;;  %v9693_v57 = vpack.c.bf16 %v7133_v52, %v7125_v50  ;;  %v7157_v50 = vld [vmem:[%s15673_s4 + $0x1298] sm:$0xff] }
 0x417   :  { %8679 = vmatmul.mubr.msk.f32.vlgmr.msra.gmra.mrb[18].mxu0 %vm144_vm1, %v7071_v0  ;;  %9694 = vmatprep.subr.bf16.mxu1 %v9693_v57  ;;  %v7139_v0 = vld [vmem:[%s15673_s4 + $0x1208] sm:$0xff]  ;;  %v7162_v57 = vld [vmem:[%s15673_s4 + $0x12c0] sm:$0xff] }
 0x418   :  { %9652 = vmatpush1.bf16.msra.mxu0 %v9651_v11  ;;  %3216 = vmatprep.mubr.f32.mxu0 %v10832_v27  ;;  %v7147_v11 = vld [vmem:[%s15673_s4 + $0x1248] sm:$0xff]  ;;  %v9671_v62 = vpack.c.bf16 %v7162_v57, %v7154_v2  ;;  %v7194_v2 = vld [vmem:[%s15673_s4 + $0x13c0] sm:$0xff] }
 0x419   :  { %9654 = vmatprep.subr.bf16.mxu0 %v9653_v13  ;;  %v7141_v13 = vld [vmem:[%s15673_s4 + $0x1218] sm:$0xff]  ;;  %9696 = vmatpush1.bf16.msra.mxu1 %v9695_v40  ;;  %v9665_v18 = vpack.c.bf16 %v7147_v11, %v7139_v0  ;;  %v7171_v40 = vld [vmem:[%s15673_s4 + $0x1308] sm:$0xff] }
 0x41a   :  { %v7179_v0 = vld [vmem:[%s15673_s4 + $0x1348] sm:$0xff] }
 0x41c   :  { %9656 = vmatpush1.bf16.msra.mxu0 %v9655_v37  ;;  %v9697_v37 = vpack.c.bf16 %v7149_v30, %v7141_v13  ;;  %v9673_v13 = vpack.c.bf16 %v7179_v0, %v7171_v40  ;;  %v7181_v30 = vld [vmem:[%s15673_s4 + $0x1358] sm:$0xff]  ;;  %v7079_v0 = vld [vmem:[%s15673_s4 + $0x1028] sm:$0xff] }
 0x41d   :  { %9658 = vmatprep.subr.bf16.mxu0 %v9657_v41  ;;  %v9667_v41 = vpack.c.bf16 %v7146_v32, %v7138_v31  ;;  %v7170_v31 = vld [vmem:[%s15673_s4 + $0x1300] sm:$0xff] }
 0x41e   :  { %9698 = vmatprep.subr.bf16.mxu1 %v9697_v37  ;;  %v7178_v37 = vld [vmem:[%s15673_s4 + $0x1340] sm:$0xff] }
 0x41f   :  { %9700 = vmatpush1.bf16.msra.mxu1 %v9699_v45  ;;  %v9675_v43 = vpack.c.bf16 %v7178_v37, %v7170_v31  ;;  %v7187_v45 = vld [vmem:[%s15673_s4 + $0x1388] sm:$0xff] }
 0x420   :  { %9660 = vmatpush1.bf16.msra.mxu0 %v9659_v44  ;;  %v7155_v44 = vld [vmem:[%s15673_s4 + $0x1288] sm:$0xff] }
 0x421   :  { %9662 = vmatprep.subr.bf16.mxu0 %v9661_v22  ;;  %v7165_v22 = vld [vmem:[%s15673_s4 + $0x12d8] sm:$0xff]  ;;  %v9669_v52 = vpack.c.bf16 %v7163_v1, %v7155_v44  ;;  %v7195_v1 = vld [vmem:[%s15673_s4 + $0x13c8] sm:$0xff] }
 0x422   :  { %v9701_v53 = vpack.c.bf16 %v7165_v22, %v7157_v50  ;;  %v7189_v50 = vld [vmem:[%s15673_s4 + $0x1398] sm:$0xff]  ;;  %v9677_v22 = vpack.c.bf16 %v7195_v1, %v7187_v45  ;;  %v13242_v45 = vld [vmem:[%s15671_s2] ss:$0 sm:$0xff] }
 0x424   :  { %9664 = vmatpush1.bf16.msra.mxu0 %v9663_v20  ;;  %v7156_v20 = vld [vmem:[%s15673_s4 + $0x1290] sm:$0xff]  ;;  %9702 = vmatprep.subr.bf16.mxu1 %v9701_v53  ;;  %v7186_v53 = vld [vmem:[%s15673_s4 + $0x1380] sm:$0xff] }
 0x425   :  { %9666 = vmatprep.subr.bf16.mxu0 %v9665_v18  ;;  %v9703_v11 = vpack.c.bf16 %v7164_v58, %v7156_v20  ;;  %v7173_v18 = vld [vmem:[%s15673_s4 + $0x1318] sm:$0xff]  ;;  %v9679_v20 = vpack.c.bf16 %v7194_v2, %v7186_v53  ;;  %v7196_v58 = vld [vmem:[%s15673_s4 + $0x13d0] sm:$0xff]  ;;  %v7078_v53 = vld [vmem:[%s15673_s4 + $0x1020] sm:$0xff] }
 0x426   :  { %v9705_v32 = vpack.c.bf16 %v7181_v30, %v7173_v18  ;;  %v7081_v18 = vld [vmem:[%s15673_s4 + $0x1038] sm:$0xff]  ;;  %v7086_v2 = vld [vmem:[%s15673_s4 + $0x1060] sm:$0xff] }
 0x427   :  { %9704 = vmatpush1.bf16.msra.mxu1 %v9703_v11  ;;  %v7087_v11 = vld [vmem:[%s15673_s4 + $0x1068] sm:$0xff]  ;;  %v7089_v30 = vld [vmem:[%s15673_s4 + $0x1078] sm:$0xff] }
 0x428   :  { %9668 = vmatpush1.bf16.msra.mxu0 %v9667_v41  ;;  %v7172_v41 = vld [vmem:[%s15673_s4 + $0x1310] sm:$0xff]  ;;  %9706 = vmatprep.subr.bf16.mxu1 %v9705_v32  ;;  %v9745_v31 = vpack.c.bf16 %v7089_v30, %v7081_v18  ;;  %v9715_v30 = vpack.c.bf16 %v7086_v2, %v7078_v53  ;;  %v7121_v53 = vld [vmem:[%s15673_s4 + $0x1178] sm:$0xff] }
 0x429   :  { %9670 = vmatprep.subr.bf16.mxu0 %v9669_v52  ;;  %v9707_v44 = vpack.c.bf16 %v7180_v42, %v7172_v41  ;;  %v7197_v52 = vld [vmem:[%s15673_s4 + $0x13d8] sm:$0xff] }
 0x42a   :  { %v9709_v57 = vpack.c.bf16 %v7197_v52, %v7189_v50  ;;  %v7073_v52 = vld [vmem:[%s15672_s3 + $0x8] sm:$0x3] }
 0x42b   :  { %9708 = vmatpush1.bf16.msra.mxu1 %v9707_v44 }
 0x42c   :  { %9672 = vmatpush1.bf16.msra.mxu0 %v9671_v62  ;;  %v7188_v62 = vld [vmem:[%s15673_s4 + $0x1390] sm:$0xff]  ;;  %9710 = vmatprep.subr.bf16.mxu1 %v9709_v57 }
 0x42d   :  { %9674 = vmatprep.subr.bf16.mxu0 %v9673_v13  ;;  %v9711_v40 = vpack.c.bf16 %v7196_v58, %v7188_v62  ;;  %v9713_v13 = vpack.c.bf16 %v7087_v11, %v7079_v0  ;;  %v7080_v62 = vld [vmem:[%s15673_s4 + $0x1030] sm:$0xff]  ;;  %v7103_v0 = vld [vmem:[%s15673_s4 + $0x10e8] sm:$0xff]  ;;  %v7097_v11 = vld [vmem:[%s15673_s4 + $0x10b8] sm:$0xff] }
 0x42e   :  { %v7088_v58 = vld [vmem:[%s15673_s4 + $0x1070] sm:$0xff] }
 0x42f   :  { %9712 = vmatpush1.bf16.msra.mxu1 %v9711_v40  ;;  %v7095_v40 = vld [vmem:[%s15673_s4 + $0x10a8] sm:$0xff] }
 0x430   :  { %9676 = vmatpush1.bf16.msra.mxu0 %v9675_v43  ;;  %9746 = vmatprep.subr.bf16.mxu1 %v9745_v31  ;;  %v9747_v31 = vpack.c.bf16 %v7088_v58, %v7080_v62  ;;  %v7118_v62 = vld [vmem:[%s15673_s4 + $0x1160] sm:$0xff] }
 0x431   :  { %9678 = vmatprep.subr.bf16.mxu0 %v9677_v22 }
 0x434   :  { %9680 = vmatpush1.bf16.msra.mxu0 %v9679_v20 }
 0x435   :  { %9714 = vmatprep.subr.bf16.mxu0 %v9713_v13  ;;  %v7105_v13 = vld [vmem:[%s15673_s4 + $0x10f8] sm:$0xff] }
 0x4da   :  { %v8083_v32 = vpop.f32.mrb[16].mxu0  ;;  %v8118_v37 = vpop.f32.mrb[16].mxu1 }
 0x4db   :  { %v8084_v41 = vpop.f32.mrb[17].mxu0  ;;  %v8119_v42 = vpop.f32.mrb[17].mxu1 }
 0x4dc   :  { %v8085_v43 = vadd.f32 %v8084_v41, %v8083_v32  ;;  %v8120_v44 = vadd.f32 %v8119_v42, %v8118_v37  ;;  %v7094_v32 = vld [vmem:[%s15673_s4 + $0x10a0] sm:$0xff]  ;;  %v9717_v42 = vpack.c.bf16 %v7103_v0, %v7095_v40  ;;  %v7112_v0 = vld [vmem:[%s15673_s4 + $0x1130] sm:$0xff] }
 0x4dd   :  { %v7102_v37 = vld [vmem:[%s15673_s4 + $0x10e0] sm:$0xff] }
 0x4de   :  { %v2876_v1 = vadd.f32 %v13242_v45, %v8085_v43  ;;  %v9749_v43 = vpack.c.bf16 %v7105_v13, %v7097_v11  ;;  %v9719_v2 = vpack.c.bf16 %v7102_v37, %v7094_v32  ;;  %v7120_v11 = vld [vmem:[%s15673_s4 + $0x1170] sm:$0xff]  ;;  %v7127_v13 = vld [vmem:[%s15673_s4 + $0x11a8] sm:$0xff] }
 0x4df   :  { %v9755_v37 = vpack.c.bf16 %v7120_v11, %v7112_v0 }
 0x4e0   :  { %v2946_v50 = vadd.f32 %v8120_v44, %v2876_v1  ;;  %v7096_v44 = vld [vmem:[%s15673_s4 + $0x10b0] sm:$0xff] }
 0x4e1   :  { %v7104_v1 = vld [vmem:[%s15673_s4 + $0x10f0] sm:$0xff] }
 0x4ea   :  { %v3015_v22 = vpop.f32.mrb[18].mxu0 }
 0x4eb   :  { %v3016_v57 = vadd.f32 %v3015_v22, %v2946_v50  ;;  %v8680_v20 = vpop.f32.mrb[19].mxu0  ;;  %v7111_v50 = vld [vmem:[%s15673_s4 + $0x1128] sm:$0xff] }
 0x4ec   :  { %v7119_v22 = vld [vmem:[%s15673_s4 + $0x1168] sm:$0xff]  ;;  %v7110_v20 = vld [vmem:[%s15673_s4 + $0x1120] sm:$0xff] }
 0x4ed   :  { %v3019_v18 = vmax.f32 %v3016_v57, 0.0  ;;  %v9751_v57 = vpack.c.bf16 %v7104_v1, %v7096_v44  ;;  %v9721_v58 = vpack.c.bf16 %v7119_v22, %v7111_v50  ;;  %v9723_v32 = vpack.c.bf16 %v7118_v62, %v7110_v20  ;;  %v7128_v50 = vld [vmem:[%s15673_s4 + $0x11b0] sm:$0xff] }
 0x4ee   :  { %v7136_v22 = vld [vmem:[%s15673_s4 + $0x11f0] sm:$0xff] }
 0x4ef   :  { %v13278_v41 = vmul.f32 %v7073_v52, %v3019_v18  ;;  %v7113_v52 = vld [vmem:[%s15673_s4 + $0x1138] sm:$0xff]  ;;  %v7135_v18 = vld [vmem:[%s15673_s4 + $0x11e8] sm:$0xff]  ;;  %v9759_v62 = vpack.c.bf16 %v7136_v22, %v7128_v50 }
 0x4f0   :  { %v9753_v40 = vpack.c.bf16 %v7121_v53, %v7113_v52  ;;  %v9725_v44 = vpack.c.bf16 %v7135_v18, %v7127_v13  ;;  %v7143_v52 = vld [vmem:[%s15673_s4 + $0x1228] sm:$0xff]  ;;  %v7144_v13 = vld [vmem:[%s15673_s4 + $0x1230] sm:$0xff] }
 0x4f1   :  { %3217 = vmatmul.mubr.f32.vlgmr.msra.gmra.mrb[6].mxu0 %v13278_v41  ;;  %3288 = vmatmul.mubr.f32.vlgmr.msra.gmra.mrb[6].mxu1 %v13278_v41  ;;  %v7151_v53 = vld [vmem:[%s15673_s4 + $0x1268] sm:$0xff]  ;;  %v7152_v18 = vld [vmem:[%s15673_s4 + $0x1270] sm:$0xff] }
 0x4f2   :  { %9716 = vmatpush1.bf16.msra.mxu0 %v9715_v30  ;;  %9748 = vmatpush1.bf16.msra.mxu1 %v9747_v31  ;;  %v7129_v30 = vld [vmem:[%s15673_s4 + $0x11b8] sm:$0xff]  ;;  %v9729_v0 = vpack.c.bf16 %v7151_v53, %v7143_v52  ;;  %v7160_v52 = vld [vmem:[%s15673_s4 + $0x12b0] sm:$0xff] }
 0x4f3   :  { %9718 = vmatprep.subr.bf16.mxu0 %v9717_v42  ;;  %9750 = vmatprep.subr.bf16.mxu1 %v9749_v43  ;;  %v7137_v31 = vld [vmem:[%s15673_s4 + $0x11f8] sm:$0xff]  ;;  %v7126_v42 = vld [vmem:[%s15673_s4 + $0x11a0] sm:$0xff]  ;;  %v7168_v53 = vld [vmem:[%s15673_s4 + $0x12f0] sm:$0xff] }
 0x4f4   :  { %3358 = vmatprep.mubr.f32.mxu0 %v10832_v27  ;;  %3429 = vmatprep.mubr.f32.mxu1 %v10832_v27  ;;  %v7134_v43 = vld [vmem:[%s15673_s4 + $0x11e0] sm:$0xff]  ;;  %v9757_v1 = vpack.c.bf16 %v7137_v31, %v7129_v30  ;;  %v7159_v30 = vld [vmem:[%s15673_s4 + $0x12a8] sm:$0xff] }
 0x4f5   :  { %v9727_v20 = vpack.c.bf16 %v7134_v43, %v7126_v42  ;;  %v7167_v31 = vld [vmem:[%s15673_s4 + $0x12e8] sm:$0xff]  ;;  %v9763_v43 = vpack.c.bf16 %v7152_v18, %v7144_v13 }
 0x4f6   :  { %9720 = vmatpush1.bf16.msra.mxu0 %v9719_v2  ;;  %9752 = vmatpush1.bf16.msra.mxu1 %v9751_v57  ;;  %v7145_v2 = vld [vmem:[%s15673_s4 + $0x1238] sm:$0xff]  ;;  %v9733_v50 = vpack.c.bf16 %v7167_v31, %v7159_v30  ;;  %v7176_v30 = vld [vmem:[%s15673_s4 + $0x1330] sm:$0xff] }
 0x4f7   :  { %9722 = vmatprep.subr.bf16.mxu0 %v9721_v58  ;;  %9754 = vmatprep.subr.bf16.mxu1 %v9753_v40  ;;  %v7153_v57 = vld [vmem:[%s15673_s4 + $0x1278] sm:$0xff]  ;;  %v7142_v58 = vld [vmem:[%s15673_s4 + $0x1220] sm:$0xff]  ;;  %v7184_v31 = vld [vmem:[%s15673_s4 + $0x1370] sm:$0xff] }
 0x4f8   :  { %v7150_v40 = vld [vmem:[%s15673_s4 + $0x1260] sm:$0xff]  ;;  %v9761_v11 = vpack.c.bf16 %v7153_v57, %v7145_v2  ;;  %v7175_v2 = vld [vmem:[%s15673_s4 + $0x1328] sm:$0xff] }
 0x4f9   :  { %v9731_v42 = vpack.c.bf16 %v7150_v40, %v7142_v58  ;;  %v7183_v57 = vld [vmem:[%s15673_s4 + $0x1368] sm:$0xff]  ;;  %v9767_v40 = vpack.c.bf16 %v7168_v53, %v7160_v52 }
 0x4fa   :  { %9724 = vmatpush1.bf16.msra.mxu0 %v9723_v32  ;;  %9756 = vmatpush1.bf16.msra.mxu1 %v9755_v37  ;;  %v7161_v32 = vld [vmem:[%s15673_s4 + $0x12b8] sm:$0xff]  ;;  %v9737_v13 = vpack.c.bf16 %v7183_v57, %v7175_v2  ;;  %v7198_v2 = vld [vmem:[%s15673_s4 + $0x13e0] sm:$0xff]  ;;  %v7192_v57 = vld [vmem:[%s15673_s4 + $0x13b0] sm:$0xff] }
 0x4fb   :  { %9726 = vmatprep.subr.bf16.mxu0 %v9725_v44  ;;  %9758 = vmatprep.subr.bf16.mxu1 %v9757_v1  ;;  %v7169_v37 = vld [vmem:[%s15673_s4 + $0x12f8] sm:$0xff]  ;;  %v7158_v44 = vld [vmem:[%s15673_s4 + $0x12a0] sm:$0xff] }
 0x4fc   :  { %v7166_v1 = vld [vmem:[%s15673_s4 + $0x12e0] sm:$0xff]  ;;  %v9765_v22 = vpack.c.bf16 %v7169_v37, %v7161_v32  ;;  %v7191_v32 = vld [vmem:[%s15673_s4 + $0x13a8] sm:$0xff] }
 0x4fd   :  { %v9735_v58 = vpack.c.bf16 %v7166_v1, %v7158_v44  ;;  %v7199_v37 = vld [vmem:[%s15673_s4 + $0x13e8] sm:$0xff]  ;;  %v7202_v44 = vld [vmem:[%s15669_s0 + $0x32] sm:$0xff] }
 0x4fe   :  { %9728 = vmatpush1.bf16.msra.mxu0 %v9727_v20  ;;  %9760 = vmatpush1.bf16.msra.mxu1 %v9759_v62  ;;  %v7177_v20 = vld [vmem:[%s15673_s4 + $0x1338] sm:$0xff]  ;;  %v9741_v52 = vpack.c.bf16 %v7199_v37, %v7191_v32  ;;  %v7207_v32 = vld [vmem:[%s15673_s4 + $0x1400] sm:$0xff] }
 0x4ff   :  { %9730 = vmatprep.subr.bf16.mxu0 %v9729_v0  ;;  %9762 = vmatprep.subr.bf16.mxu1 %v9761_v11  ;;  %v7185_v62 = vld [vmem:[%s15673_s4 + $0x1378] sm:$0xff]  ;;  %v7174_v0 = vld [vmem:[%s15673_s4 + $0x1320] sm:$0xff] }
 0x500   :  { %v7182_v11 = vld [vmem:[%s15673_s4 + $0x1360] sm:$0xff]  ;;  %v9769_v18 = vpack.c.bf16 %v7185_v62, %v7177_v20  ;;  %v7200_v20 = vld [vmem:[%s15673_s4 + $0x13f0] sm:$0xff]  ;;  %v3449_v62 = vcombine.high %v7202_v44, %v7202_v44 }
 0x501   :  { %v9739_v1 = vpack.c.bf16 %v7182_v11, %v7174_v0  ;;  %v3456_v0 = vrot.slane %v7202_v44, %v11090_v14  ;;  %v7215_v37 = vld [vmem:[%s15673_s4 + $0x1440] sm:$0xff] }
 0x502   :  { %9732 = vmatpush1.bf16.msra.mxu0 %v9731_v42  ;;  %9764 = vmatpush1.bf16.msra.mxu1 %v9763_v43  ;;  %v7193_v42 = vld [vmem:[%s15673_s4 + $0x13b8] sm:$0xff]  ;;  %v3463_v11 = vrot.slane %v3449_v62, %v11090_v14  ;;  %v9855_v44 = vpack.c.bf16 %v7215_v37, %v7207_v32  ;;  %v7247_v62 = vld [vmem:[%s15673_s4 + $0x1540] sm:$0xff] }
 0x503   :  { %9734 = vmatprep.subr.bf16.mxu0 %v9733_v50  ;;  %9766 = vmatprep.subr.bf16.mxu1 %v9765_v22  ;;  %v7201_v43 = vld [vmem:[%s15673_s4 + $0x13f8] sm:$0xff]  ;;  %v9771_v50 = vpack.c.bf16 %v7184_v31, %v7176_v30  ;;  %v7190_v22 = vld [vmem:[%s15673_s4 + $0x13a0] sm:$0xff]  ;;  %v7216_v30 = vld [vmem:[%s15673_s4 + $0x1448] sm:$0xff] }
 0x504   :  { %v9773_v53 = vpack.c.bf16 %v7201_v43, %v7193_v42  ;;  %v7224_v42 = vld [vmem:[%s15673_s4 + $0x1488] sm:$0xff] }
 0x505   :  { %v7232_v43 = vld [vmem:[%s15673_s4 + $0x14c8] sm:$0xff] }
 0x506   :  { %9736 = vmatpush1.bf16.msra.mxu0 %v9735_v58  ;;  %9768 = vmatpush1.bf16.msra.mxu1 %v9767_v40  ;;  %v9743_v58 = vpack.c.bf16 %v7198_v2, %v7190_v22  ;;  %v9775_v40 = vpack.c.bf16 %v7200_v20, %v7192_v57  ;;  %v7231_v22 = vld [vmem:[%s15673_s4 + $0x14c0] sm:$0xff] }
 0x507   :  { %9738 = vmatprep.subr.bf16.mxu0 %v9737_v13  ;;  %9770 = vmatprep.subr.bf16.mxu1 %v9769_v18  ;;  %v3464_v13 = vcombine.high %v3456_v0, %v3456_v0  ;;  %v3465_v18 = vcombine.high %v3463_v11, %v3463_v11  ;;  %v7239_v20 = vld [vmem:[%s15673_s4 + $0x1500] sm:$0xff] }
 0x50a   :  { %9740 = vmatpush1.bf16.msra.mxu0 %v9739_v1  ;;  %9772 = vmatpush1.bf16.msra.mxu1 %v9771_v50  ;;  %v9857_v1 = vpack.c.bf16 %v7232_v43, %v7224_v42  ;;  %v7223_v50 = vld [vmem:[%s15673_s4 + $0x1480] sm:$0xff]  ;;  %v7225_v42 = vld [vmem:[%s15673_s4 + $0x1490] sm:$0xff] }
 0x50b   :  { %9742 = vmatprep.subr.bf16.mxu0 %v9741_v52  ;;  %9774 = vmatprep.subr.bf16.mxu1 %v9773_v53  ;;  %v7240_v52 = vld [vmem:[%s15673_s4 + $0x1508] sm:$0xff]  ;;  %v9859_v2 = vpack.c.bf16 %v7231_v22, %v7223_v50  ;;  %v7233_v43 = vld [vmem:[%s15673_s4 + $0x14d0] sm:$0xff] }
 0x50c   :  { %v7248_v53 = vld [vmem:[%s15673_s4 + $0x1548] sm:$0xff]  ;;  %v9891_v50 = vpack.c.bf16 %v7233_v43, %v7225_v42  ;;  %v7274_v42 = vld [vmem:[%s15673_s4 + $0x1618] sm:$0xff] }
 0x50d   :  { %v9861_v57 = vpack.c.bf16 %v7248_v53, %v7240_v52  ;;  %v7241_v52 = vld [vmem:[%s15673_s4 + $0x1510] sm:$0xff] }
 0x50e   :  { %9744 = vmatpush1.bf16.msra.mxu0 %v9743_v58  ;;  %9776 = vmatpush1.bf16.msra.mxu1 %v9775_v40  ;;  %v9863_v58 = vpack.c.bf16 %v7247_v62, %v7239_v20  ;;  %v7210_v40 = vld [vmem:[%s15673_s4 + $0x1418] sm:$0xff]  ;;  %v7249_v53 = vld [vmem:[%s15673_s4 + $0x1550] sm:$0xff]  ;;  %v7264_v20 = vld [vmem:[%s15673_s4 + $0x15c8] sm:$0xff] }
 0x50f   :  { %9778 = vmatprep.subr.bf16.mxu1 %v10893_v3  ;;  %9810 = vmatprep.subr.bf16.mxu0 %v10906_v8  ;;  %v7258_v62 = vld [vmem:[%s15673_s4 + $0x1598] sm:$0xff] }
 0x511   :  { %3359 = vmatmul.mubr.f32.vlgmr.msra.gmra.mrb[8].mxu0 %v13278_v41  ;;  %3430 = vmatmul.mubr.f32.vlgmr.msra.gmra.mrb[8].mxu1 %v13278_v41  ;;  %v7208_v41 = vld [vmem:[%s15673_s4 + $0x1408] sm:$0xff] }
 0x512   :  { %9780 = vmatpush3.bf16.msra.mxu1 %v10904_v7  ;;  %9812 = vmatpush3.bf16.msra.mxu0 %v10918_v12  ;;  %v9853_v31 = vpack.c.bf16 %v7216_v30, %v7208_v41  ;;  %v7226_v41 = vld [vmem:[%s15673_s4 + $0x1498] sm:$0xff] }
 0x513   :  { %9782 = vmatprep.subr.bf16.mxu1 %v10931_v16  ;;  %9814 = vmatprep.subr.bf16.mxu0 %v10945_v21  ;;  %v7234_v30 = vld [vmem:[%s15673_s4 + $0x14d8] sm:$0xff] }
 0x514   :  { %3543 = vmatprep.mubr.f32.mxu1 %v3464_v13  ;;  %3613 = vmatprep.mubr.f32.mxu0 %v3465_v18  ;;  %v7209_v13 = vld [vmem:[%s15673_s4 + $0x1410] sm:$0xff]  ;;  %v9889_v37 = vpack.c.bf16 %v7234_v30, %v7226_v41 }
 0x515   :  { %v7217_v18 = vld [vmem:[%s15673_s4 + $0x1450] sm:$0xff] }
 0x516   :  { %9784 = vmatpush3.bf16.msra.mxu1 %v10933_v17  ;;  %9816 = vmatpush3.bf16.msra.mxu0 %v10957_v25  ;;  %v9887_v32 = vpack.c.bf16 %v7217_v18, %v7209_v13  ;;  %v7257_v41 = vld [vmem:[%s15673_s4 + $0x1590] sm:$0xff] }
 0x517   :  { %9786 = vmatprep.subr.bf16.mxu1 %v10959_v26  ;;  %9818 = vmatprep.subr.bf16.mxu0 %v10983_v34  ;;  %v7265_v30 = vld [vmem:[%s15673_s4 + $0x15d0] sm:$0xff] }
 0x51a   :  { %9788 = vmatpush3.bf16.msra.mxu1 %v10981_v33  ;;  %9820 = vmatpush3.bf16.msra.mxu0 %v10996_v38 }
 0x51b   :  { %9790 = vmatprep.subr.bf16.mxu1 %v10998_v39  ;;  %9822 = vmatprep.subr.bf16.mxu0 %v11010_v46 }
 0x51e   :  { %9792 = vmatpush3.bf16.msra.mxu1 %v11025_v51  ;;  %9824 = vmatpush3.bf16.msra.mxu0 %v11035_v54 }
 0x51f   :  { %9794 = vmatprep.subr.bf16.mxu1 %v11037_v55  ;;  %9826 = vmatprep.subr.bf16.mxu0 %v11051_v61 }
 0x522   :  { %9796 = vmatpush3.bf16.msra.mxu1 %v11069_v4  ;;  %9828 = vmatpush3.bf16.msra.mxu0 %v11076_v6 }
 0x523   :  { %9798 = vmatprep.subr.bf16.mxu1 %v11078_v9  ;;  %9830 = vmatprep.subr.bf16.mxu0 %v11093_v15 }
 0x526   :  { %9800 = vmatpush3.bf16.msra.mxu1 %v11108_v23  ;;  %9832 = vmatpush3.bf16.msra.mxu0 %v11110_v24 }
 0x527   :  { %9802 = vmatprep.subr.bf16.mxu1 %v11117_v28  ;;  %9834 = vmatprep.subr.bf16.mxu0 %v11130_v36 }
 0x52a   :  { %9804 = vmatpush3.bf16.msra.mxu1 %v11149_v47  ;;  %9836 = vmatpush3.bf16.msra.mxu0 %v11153_v48 }
 0x52b   :  { %9806 = vmatprep.subr.bf16.mxu1 %v11155_v49  ;;  %9838 = vmatprep.subr.bf16.mxu0 %v11164_v56 }
 0x52e   :  { %9808 = vmatpush3.bf16.msra.mxu1 %v11173_v59  ;;  %9840 = vmatpush3.bf16.msra.mxu0 %v11180_v63 }
 0x52f   :  { %9841 = vmatprep.subr.bf16.mxu1 %v10830_v10  ;;  %9854 = vmatprep.subr.bf16.mxu0 %v9853_v31  ;;  %v7204_v31 = vld.sshfl [vmem:[%s15669_s0 + $0x3a] sm:$0x3 pattern:$0x76325410] }
 0x531   :  { %3544 = vmatmul.mubr.f32.vlgmr.msra.gmra.mrb[18].mxu1 %v3456_v0  ;;  %3614 = vmatmul.mubr.f32.vlgmr.msra.gmra.mrb[20].mxu0 %v3463_v11  ;;  %v7218_v0 = vld [vmem:[%s15673_s4 + $0x1458] sm:$0xff] }
 0x532   :  { %9843 = vmatpush3.bf16.msra.mxu1 %v11191_v5  ;;  %8697 = vmatprep.mubr.msk.f32.mxu1 %vm10831_vm0, %v10832_v27  ;;  %v9885_v11 = vpack.c.bf16 %v7218_v0, %v7210_v40  ;;  %v7266_v40 = vld [vmem:[%s15673_s4 + $0x15d8] sm:$0xff]  ;;  %v7255_v0 = vld [vmem:[%s15673_s4 + $0x1580] sm:$0xff] }
 0x533   :  { %9844 = vmatprep.subr.bf16.mxu1 %v10830_v10  ;;  %9856 = vmatpush1.bf16.msra.mxu0 %v9855_v44  ;;  %v7242_v44 = vld [vmem:[%s15673_s4 + $0x1518] sm:$0xff]  ;;  %v9897_v13 = vpack.c.bf16 %v7266_v40, %v7258_v62  ;;  %v7296_v62 = vld [vmem:[%s15673_s4 + $0x16c8] sm:$0xff] }
 0x534   :  { %9858 = vmatprep.subr.bf16.mxu0 %v9857_v1  ;;  %3886 = vmatprep.mubr.f32.mxu0 %v10832_v27  ;;  %v7250_v1 = vld [vmem:[%s15673_s4 + $0x1558] sm:$0xff] }
 0x535   :  { %v9893_v22 = vpack.c.bf16 %v7250_v1, %v7242_v44  ;;  %v7282_v44 = vld [vmem:[%s15673_s4 + $0x1658] sm:$0xff]  ;;  %v7271_v1 = vld [vmem:[%s15673_s4 + $0x1600] sm:$0xff] }
 0x536   :  { %9846 = vmatpush3.bf16.msra.mxu1 %v11203_v19  ;;  %v7298_v40 = vld [vmem:[%s15673_s4 + $0x16d8] sm:$0xff] }
 0x537   :  { %9847 = vmatprep.subr.bf16.mxu1 %v10830_v10  ;;  %9860 = vmatpush1.bf16.msra.mxu0 %v9859_v2  ;;  %v9895_v2 = vpack.c.bf16 %v7249_v53, %v7241_v52  ;;  %v7273_v53 = vld [vmem:[%s15673_s4 + $0x1610] sm:$0xff] }
 0x538   :  { %9862 = vmatprep.subr.bf16.mxu0 %v9861_v57  ;;  %v7256_v57 = vld [vmem:[%s15673_s4 + $0x1588] sm:$0xff] }
 0x53a   :  { %9849 = vmatpush3.bf16.msra.mxu1 %v11217_v29 }
 0x53b   :  { %9850 = vmatprep.subr.bf16.mxu1 %v10830_v10  ;;  %9864 = vmatpush1.bf16.msra.mxu0 %v9863_v58  ;;  %v9865_v58 = vpack.c.bf16 %v7264_v20, %v7256_v57  ;;  %v7288_v57 = vld [vmem:[%s15673_s4 + $0x1688] sm:$0xff] }
 0x53d   :  { %9866 = vmatprep.subr.bf16.mxu0 %v9865_v58  ;;  %v7290_v58 = vld [vmem:[%s15673_s4 + $0x1698] sm:$0xff] }
 0x53e   :  { %9852 = vmatpush3.bf16.msra.mxu1 %v11229_v35 }
 0x53f   :  { %9886 = vmatprep.subr.bf16.mxu1 %v9885_v11  ;;  %v7263_v11 = vld [vmem:[%s15673_s4 + $0x15c0] sm:$0xff] }
 0x540   :  { %v9867_v18 = vpack.c.bf16 %v7263_v11, %v7255_v0  ;;  %v9873_v0 = vpack.c.bf16 %v7296_v62, %v7288_v57  ;;  %v9905_v11 = vpack.c.bf16 %v7298_v40, %v7290_v58  ;;  %v7320_v62 = vld [vmem:[%s15673_s4 + $0x1788] sm:$0xff]  ;;  %v7322_v40 = vld [vmem:[%s15673_s4 + $0x1798] sm:$0xff] }
 0x541   :  { %8698 = vmatmul.mubr.msk.f32.vlgmr.msra.gmra.mrb[20].mxu1 %vm144_vm1, %v7204_v31  ;;  %v9899_v31 = vpack.c.bf16 %v7265_v30, %v7257_v41  ;;  %v7289_v41 = vld [vmem:[%s15673_s4 + $0x1690] sm:$0xff]  ;;  %v7328_v58 = vld [vmem:[%s15673_s4 + $0x17c8] sm:$0xff] }
 0x542   :  { %9888 = vmatpush1.bf16.msra.mxu1 %v9887_v32  ;;  %3957 = vmatprep.mubr.f32.mxu1 %v10832_v27  ;;  %v7272_v32 = vld [vmem:[%s15673_s4 + $0x1608] sm:$0xff] }
 0x543   :  { %9890 = vmatprep.subr.bf16.mxu1 %v9889_v37  ;;  %9868 = vmatpush1.bf16.msra.mxu0 %v9867_v18  ;;  %v7280_v37 = vld [vmem:[%s15673_s4 + $0x1648] sm:$0xff]  ;;  %v7295_v18 = vld [vmem:[%s15673_s4 + $0x16c0] sm:$0xff] }
 0x544   :  { %v9869_v43 = vpack.c.bf16 %v7280_v37, %v7272_v32  ;;  %v7304_v32 = vld [vmem:[%s15673_s4 + $0x1708] sm:$0xff] }
 0x545   :  { %v7312_v37 = vld [vmem:[%s15673_s4 + $0x1748] sm:$0xff] }
 0x546   :  { %9892 = vmatpush1.bf16.msra.mxu1 %v9891_v50  ;;  %v7279_v50 = vld [vmem:[%s15673_s4 + $0x1640] sm:$0xff]  ;;  %9870 = vmatprep.subr.bf16.mxu0 %v9869_v43  ;;  %v9877_v43 = vpack.c.bf16 %v7312_v37, %v7304_v32  ;;  %v7329_v32 = vld [vmem:[%s15673_s4 + $0x17d0] sm:$0xff] }
 0x547   :  { %9894 = vmatprep.subr.bf16.mxu1 %v9893_v22  ;;  %v9901_v22 = vpack.c.bf16 %v7282_v44, %v7274_v42  ;;  %v9871_v52 = vpack.c.bf16 %v7279_v50, %v7271_v1  ;;  %v7306_v44 = vld [vmem:[%s15673_s4 + $0x1718] sm:$0xff]  ;;  %v7303_v50 = vld [vmem:[%s15673_s4 + $0x1700] sm:$0xff] }
 0x548   :  { %v7314_v1 = vld [vmem:[%s15673_s4 + $0x1758] sm:$0xff] }
 0x549   :  { %9872 = vmatpush1.bf16.msra.mxu0 %v9871_v52  ;;  %v7311_v52 = vld [vmem:[%s15673_s4 + $0x1740] sm:$0xff] }
 0x54a   :  { %9896 = vmatpush1.bf16.msra.mxu1 %v9895_v2  ;;  %v7281_v2 = vld [vmem:[%s15673_s4 + $0x1650] sm:$0xff]  ;;  %9874 = vmatprep.subr.bf16.mxu0 %v9873_v0  ;;  %v9879_v57 = vpack.c.bf16 %v7311_v52, %v7303_v50  ;;  %v9881_v0 = vpack.c.bf16 %v7328_v58, %v7320_v62  ;;  %v7222_v50 = vld [vmem:[%s15673_s4 + $0x1478] sm:$0xff] }
 0x54b   :  { %9898 = vmatprep.subr.bf16.mxu1 %v9897_v13  ;;  %v9903_v20 = vpack.c.bf16 %v7281_v2, %v7273_v53  ;;  %v7287_v13 = vld [vmem:[%s15673_s4 + $0x1680] sm:$0xff]  ;;  %v7305_v53 = vld [vmem:[%s15673_s4 + $0x1710] sm:$0xff] }
 0x54c   :  { %v9875_v30 = vpack.c.bf16 %v7295_v18, %v7287_v13  ;;  %v7313_v2 = vld [vmem:[%s15673_s4 + $0x1750] sm:$0xff]  ;;  %v7319_v13 = vld [vmem:[%s15673_s4 + $0x1780] sm:$0xff] }
 0x54d   :  { %v7327_v18 = vld [vmem:[%s15673_s4 + $0x17c0] sm:$0xff] }
 0x54e   :  { %9900 = vmatpush1.bf16.msra.mxu1 %v9899_v31  ;;  %v7297_v31 = vld [vmem:[%s15673_s4 + $0x16d0] sm:$0xff]  ;;  %9876 = vmatpush1.bf16.msra.mxu0 %v9875_v30  ;;  %v9883_v30 = vpack.c.bf16 %v7327_v18, %v7319_v13  ;;  %v7211_v13 = vld [vmem:[%s15673_s4 + $0x1420] sm:$0xff] }
 0x54f   :  { %9902 = vmatprep.subr.bf16.mxu1 %v9901_v22  ;;  %v9907_v42 = vpack.c.bf16 %v7297_v31, %v7289_v41  ;;  %v9909_v22 = vpack.c.bf16 %v7314_v1, %v7306_v44  ;;  %9878 = vmatprep.subr.bf16.mxu0 %v9877_v43  ;;  %v7321_v31 = vld [vmem:[%s15673_s4 + $0x1790] sm:$0xff]  ;;  %v7220_v43 = vld [vmem:[%s15673_s4 + $0x1468] sm:$0xff]  ;;  %v7214_v1 = vld [vmem:[%s15673_s4 + $0x1438] sm:$0xff] }
 0x550   :  { %v9915_v37 = vpack.c.bf16 %v7329_v32, %v7321_v31  ;;  %v7219_v18 = vld [vmem:[%s15673_s4 + $0x1460] sm:$0xff]  ;;  %v7221_v31 = vld [vmem:[%s15673_s4 + $0x1470] sm:$0xff]  ;;  %v7228_v32 = vld [vmem:[%s15673_s4 + $0x14a8] sm:$0xff] }
 0x552   :  { %9904 = vmatpush1.bf16.msra.mxu1 %v9903_v20  ;;  %v9911_v20 = vpack.c.bf16 %v7313_v2, %v7305_v53  ;;  %9880 = vmatpush1.bf16.msra.mxu0 %v9879_v57 }
 0x553   :  { %9906 = vmatprep.subr.bf16.mxu1 %v9905_v11  ;;  %v7330_v11 = vld [vmem:[%s15673_s4 + $0x17d8] sm:$0xff]  ;;  %9882 = vmatprep.subr.bf16.mxu0 %v9881_v0 }
 0x554   :  { %v9913_v41 = vpack.c.bf16 %v7330_v11, %v7322_v40  ;;  %v7206_v11 = vld [vmem:[%s15672_s3 + $0xa] sm:$0x3] }
 0x556   :  { %9908 = vmatpush1.bf16.msra.mxu1 %v9907_v42  ;;  %9884 = vmatpush1.bf16.msra.mxu0 %v9883_v30  ;;  %v7212_v42 = vld [vmem:[%s15673_s4 + $0x1428] sm:$0xff] }
 0x557   :  { %9910 = vmatprep.subr.bf16.mxu1 %v9909_v22  ;;  %v9917_v44 = vpack.c.bf16 %v7220_v43, %v7212_v42  ;;  %v9949_v22 = vpack.c.bf16 %v7222_v50, %v7214_v1  ;;  %v7230_v42 = vld [vmem:[%s15673_s4 + $0x14b8] sm:$0xff]  ;;  %v9919_v1 = vpack.c.bf16 %v7219_v18, %v7211_v13 }
 0x558   :  { %v7238_v43 = vld [vmem:[%s15673_s4 + $0x14f8] sm:$0xff] }
 0x559   :  { %9918 = vmatprep.subr.bf16.mxu0 %v9917_v44 }
 0x55a   :  { %9912 = vmatpush1.bf16.msra.mxu1 %v9911_v20 }
 0x55b   :  { %9914 = vmatprep.subr.bf16.mxu1 %v9913_v41 }
 0x55e   :  { %9916 = vmatpush1.bf16.msra.mxu1 %v9915_v37  ;;  %v7236_v37 = vld [vmem:[%s15673_s4 + $0x14e8] sm:$0xff] }
 0x55f   :  { %9950 = vmatprep.subr.bf16.mxu1 %v9949_v22  ;;  %v7227_v22 = vld [vmem:[%s15673_s4 + $0x14a0] sm:$0xff] }
 0x604   :  { %v8162_v52 = vpop.f32.mrb[18].mxu1  ;;  %v8197_v53 = vpop.f32.mrb[20].mxu0 }
 0x605   :  { %v8163_v2 = vpop.f32.mrb[19].mxu1  ;;  %v8198_v57 = vpop.f32.mrb[21].mxu0 }
 0x606   :  { %v8164_v20 = vadd.f32 %v8163_v2, %v8162_v52  ;;  %v8199_v62 = vadd.f32 %v8198_v57, %v8197_v53  ;;  %v7235_v52 = vld [vmem:[%s15673_s4 + $0x14e0] sm:$0xff]  ;;  %v9921_v2 = vpack.c.bf16 %v7236_v37, %v7228_v32  ;;  %v9953_v57 = vpack.c.bf16 %v7238_v43, %v7230_v42  ;;  %v7245_v32 = vld [vmem:[%s15673_s4 + $0x1530] sm:$0xff]  ;;  %v7260_v42 = vld [vmem:[%s15673_s4 + $0x15a8] sm:$0xff] }
 0x607   :  { %v9923_v13 = vpack.c.bf16 %v7235_v52, %v7227_v22  ;;  %v7253_v37 = vld [vmem:[%s15673_s4 + $0x1570] sm:$0xff]  ;;  %v7268_v43 = vld [vmem:[%s15673_s4 + $0x15e8] sm:$0xff]  ;;  %v7259_v52 = vld [vmem:[%s15673_s4 + $0x15a0] sm:$0xff] }
 0x608   :  { %v3546_v58 = vadd.f32 %v13242_v45, %v8164_v20  ;;  %v7213_v45 = vld [vmem:[%s15673_s4 + $0x1430] sm:$0xff]  ;;  %v9959_v22 = vpack.c.bf16 %v7253_v37, %v7245_v32 }
 0x609   :  { %v9951_v50 = vpack.c.bf16 %v7221_v31, %v7213_v45  ;;  %v7229_v20 = vld [vmem:[%s15673_s4 + $0x14b0] sm:$0xff] }
 0x60a   :  { %v3616_v40 = vadd.f32 %v8199_v62, %v3546_v58  ;;  %v7237_v62 = vld [vmem:[%s15673_s4 + $0x14f0] sm:$0xff]  ;;  %v7244_v58 = vld [vmem:[%s15673_s4 + $0x1528] sm:$0xff] }
 0x60b   :  { %v9955_v18 = vpack.c.bf16 %v7237_v62, %v7229_v20  ;;  %v7261_v62 = vld [vmem:[%s15673_s4 + $0x15b0] sm:$0xff] }
 0x60c   :  { %v7277_v37 = vld [vmem:[%s15673_s4 + $0x1630] sm:$0xff] }
 0x614   :  { %v3685_v0 = vpop.f32.mrb[20].mxu1 }
 0x615   :  { %v3686_v41 = vadd.f32 %v3685_v0, %v3616_v40  ;;  %v8699_v30 = vpop.f32.mrb[21].mxu1  ;;  %v7252_v40 = vld [vmem:[%s15673_s4 + $0x1568] sm:$0xff]  ;;  %v7246_v0 = vld [vmem:[%s15673_s4 + $0x1538] sm:$0xff] }
 0x616   :  { %v7251_v30 = vld [vmem:[%s15673_s4 + $0x1560] sm:$0xff]  ;;  %v9925_v45 = vpack.c.bf16 %v7252_v40, %v7244_v58  ;;  %v7269_v58 = vld [vmem:[%s15673_s4 + $0x15f0] sm:$0xff]  ;;  %v7276_v40 = vld [vmem:[%s15673_s4 + $0x1628] sm:$0xff] }
 0x617   :  { %v3689_v44 = vmax.f32 %v3686_v41, 0.0  ;;  %v7243_v41 = vld [vmem:[%s15673_s4 + $0x1520] sm:$0xff] }
 0x619   :  { %v13727_v53 = vmul.f32 %v7206_v11, %v3689_v44  ;;  %v7254_v11 = vld [vmem:[%s15673_s4 + $0x1578] sm:$0xff] }
 0x61a   :  { %v9957_v31 = vpack.c.bf16 %v7254_v11, %v7246_v0  ;;  %v7262_v44 = vld [vmem:[%s15673_s4 + $0x15b8] sm:$0xff]  ;;  %v7284_v0 = vld [vmem:[%s15673_s4 + $0x1668] sm:$0xff] }
 0x61b   :  { %3887 = vmatmul.mubr.f32.vlgmr.msra.gmra.mrb[6].mxu0 %v13727_v53  ;;  %3958 = vmatmul.mubr.f32.vlgmr.msra.gmra.mrb[6].mxu1 %v13727_v53  ;;  %v7278_v11 = vld [vmem:[%s15673_s4 + $0x1638] sm:$0xff] }
 0x61c   :  { %9920 = vmatpush1.bf16.msra.mxu0 %v9919_v1  ;;  %9952 = vmatpush1.bf16.msra.mxu1 %v9951_v50  ;;  %v7270_v1 = vld [vmem:[%s15673_s4 + $0x15f8] sm:$0xff]  ;;  %v9927_v50 = vpack.c.bf16 %v7251_v30, %v7243_v41  ;;  %v9963_v41 = vpack.c.bf16 %v7269_v58, %v7261_v62  ;;  %v7275_v30 = vld [vmem:[%s15673_s4 + $0x1620] sm:$0xff]  ;;  %v7293_v58 = vld [vmem:[%s15673_s4 + $0x16b0] sm:$0xff] }
 0x61d   :  { %9922 = vmatprep.subr.bf16.mxu0 %v9921_v2  ;;  %9954 = vmatprep.subr.bf16.mxu1 %v9953_v57  ;;  %v7267_v2 = vld [vmem:[%s15673_s4 + $0x15e0] sm:$0xff]  ;;  %v9929_v57 = vpack.c.bf16 %v7268_v43, %v7260_v42  ;;  %v9961_v20 = vpack.c.bf16 %v7270_v1, %v7262_v44  ;;  %v7285_v42 = vld [vmem:[%s15673_s4 + $0x1670] sm:$0xff]  ;;  %v7292_v43 = vld [vmem:[%s15673_s4 + $0x16a8] sm:$0xff] }
 0x61e   :  { %4028 = vmatprep.mubr.f32.mxu0 %v10832_v27  ;;  %4099 = vmatprep.mubr.f32.mxu1 %v10832_v27  ;;  %v7300_v44 = vld [vmem:[%s15673_s4 + $0x16e8] sm:$0xff]  ;;  %v7294_v1 = vld [vmem:[%s15673_s4 + $0x16b8] sm:$0xff] }
 0x620   :  { %9924 = vmatpush1.bf16.msra.mxu0 %v9923_v13  ;;  %9956 = vmatpush1.bf16.msra.mxu1 %v9955_v18  ;;  %v7286_v13 = vld [vmem:[%s15673_s4 + $0x1678] sm:$0xff]  ;;  %v9931_v18 = vpack.c.bf16 %v7267_v2, %v7259_v52  ;;  %v9967_v52 = vpack.c.bf16 %v7285_v42, %v7277_v37  ;;  %v7291_v2 = vld [vmem:[%s15673_s4 + $0x16a0] sm:$0xff]  ;;  %v7309_v42 = vld [vmem:[%s15673_s4 + $0x1730] sm:$0xff] }
 0x621   :  { %9926 = vmatprep.subr.bf16.mxu0 %v9925_v45  ;;  %9958 = vmatprep.subr.bf16.mxu1 %v9957_v31  ;;  %v7283_v45 = vld [vmem:[%s15673_s4 + $0x1660] sm:$0xff]  ;;  %v9933_v31 = vpack.c.bf16 %v7284_v0, %v7276_v40  ;;  %v9965_v32 = vpack.c.bf16 %v7286_v13, %v7278_v11  ;;  %v7301_v40 = vld [vmem:[%s15673_s4 + $0x16f0] sm:$0xff]  ;;  %v7308_v0 = vld [vmem:[%s15673_s4 + $0x1728] sm:$0xff] }
 0x622   :  { %v7316_v11 = vld [vmem:[%s15673_s4 + $0x1768] sm:$0xff]  ;;  %v7310_v13 = vld [vmem:[%s15673_s4 + $0x1738] sm:$0xff] }
 0x624   :  { %9928 = vmatpush1.bf16.msra.mxu0 %v9927_v50  ;;  %9960 = vmatpush1.bf16.msra.mxu1 %v9959_v22  ;;  %v7302_v50 = vld [vmem:[%s15673_s4 + $0x16f8] sm:$0xff]  ;;  %v9935_v22 = vpack.c.bf16 %v7283_v45, %v7275_v30  ;;  %v9971_v30 = vpack.c.bf16 %v7301_v40, %v7293_v58  ;;  %v7307_v45 = vld [vmem:[%s15673_s4 + $0x1720] sm:$0xff] }
 0x625   :  { %9930 = vmatprep.subr.bf16.mxu0 %v9929_v57  ;;  %9962 = vmatprep.subr.bf16.mxu1 %v9961_v20  ;;  %v7299_v57 = vld [vmem:[%s15673_s4 + $0x16e0] sm:$0xff]  ;;  %v9937_v20 = vpack.c.bf16 %v7300_v44, %v7292_v43  ;;  %v9969_v62 = vpack.c.bf16 %v7302_v50, %v7294_v1  ;;  %v7317_v43 = vld [vmem:[%s15673_s4 + $0x1770] sm:$0xff]  ;;  %v7324_v44 = vld [vmem:[%s15673_s4 + $0x17a8] sm:$0xff] }
 0x626   :  { %v7332_v1 = vld [vmem:[%s15673_s4 + $0x17e8] sm:$0xff]  ;;  %v7326_v50 = vld [vmem:[%s15673_s4 + $0x17b8] sm:$0xff]  ;;  %v7331_v40 = vld [vmem:[%s15673_s4 + $0x17e0] sm:$0xff] }
 0x628   :  { %9932 = vmatpush1.bf16.msra.mxu0 %v9931_v18  ;;  %9964 = vmatpush1.bf16.msra.mxu1 %v9963_v41  ;;  %v7318_v18 = vld [vmem:[%s15673_s4 + $0x1778] sm:$0xff]  ;;  %v9939_v41 = vpack.c.bf16 %v7299_v57, %v7291_v2  ;;  %v9975_v57 = vpack.c.bf16 %v7317_v43, %v7309_v42  ;;  %v7342_v43 = vld [vmem:[%s15673_s4 + $0x1810] sm:$0xff] }
 0x629   :  { %9934 = vmatprep.subr.bf16.mxu0 %v9933_v31  ;;  %9966 = vmatprep.subr.bf16.mxu1 %v9965_v32  ;;  %v7315_v31 = vld [vmem:[%s15673_s4 + $0x1760] sm:$0xff]  ;;  %v9941_v32 = vpack.c.bf16 %v7316_v11, %v7308_v0  ;;  %v9973_v37 = vpack.c.bf16 %v7318_v18, %v7310_v13  ;;  %v7325_v0 = vld [vmem:[%s15673_s4 + $0x17b0] sm:$0xff] }
 0x62a   :  { %v9943_v2 = vpack.c.bf16 %v7315_v31, %v7307_v45  ;;  %v7333_v11 = vld [vmem:[%s15673_s4 + $0x17f0] sm:$0xff] }
 0x62c   :  { %9936 = vmatpush1.bf16.msra.mxu0 %v9935_v22  ;;  %9968 = vmatpush1.bf16.msra.mxu1 %v9967_v52  ;;  %v7334_v22 = vld [vmem:[%s15673_s4 + $0x17f8] sm:$0xff] }
 0x62d   :  { %9938 = vmatprep.subr.bf16.mxu0 %v9937_v20  ;;  %9970 = vmatprep.subr.bf16.mxu1 %v9969_v62  ;;  %v7335_v52 = vld [vmem:[%s15669_s0 + $0x3c] sm:$0xff]  ;;  %v9945_v62 = vpack.c.bf16 %v7332_v1, %v7324_v44  ;;  %v9977_v58 = vpack.c.bf16 %v7334_v22, %v7326_v50  ;;  %v7350_v44 = vld [vmem:[%s15673_s4 + $0x1850] sm:$0xff] }
 0x62e   :  { %v7323_v20 = vld [vmem:[%s15673_s4 + $0x17a0] sm:$0xff]  ;;  %v4119_v13 = vcombine.high %v7335_v52, %v7335_v52  ;;  %v7359_v1 = vld [vmem:[%s15673_s4 + $0x1898] sm:$0xff]  ;;  %v10091_v22 = vpack.c.bf16 %v7350_v44, %v7342_v43 }
 0x62f   :  { %v9947_v18 = vpack.c.bf16 %v7331_v40, %v7323_v20  ;;  %v7367_v50 = vld [vmem:[%s15673_s4 + $0x18d8] sm:$0xff]  ;;  %v7356_v44 = vld [vmem:[%s15673_s4 + $0x1880] sm:$0xff] }
 0x630   :  { %9940 = vmatpush1.bf16.msra.mxu0 %v9939_v41  ;;  %9972 = vmatpush1.bf16.msra.mxu1 %v9971_v30  ;;  %v9979_v41 = vpack.c.bf16 %v7333_v11, %v7325_v0  ;;  %v4126_v30 = vrot.slane %v7335_v52, %v11090_v14  ;;  %v4133_v45 = vrot.slane %v4119_v13, %v11090_v14  ;;  %v7375_v20 = vld [vmem:[%s15673_s4 + $0x1918] sm:$0xff]  ;;  %v7374_v0 = vld [vmem:[%s15673_s4 + $0x1910] sm:$0xff] }
 0x631   :  { %9942 = vmatprep.subr.bf16.mxu0 %v9941_v32  ;;  %9974 = vmatprep.subr.bf16.mxu1 %v9973_v37  ;;  %v7351_v37 = vld [vmem:[%s15673_s4 + $0x1858] sm:$0xff]  ;;  %v10093_v52 = vpack.c.bf16 %v7367_v50, %v7359_v1  ;;  %v7382_v11 = vld [vmem:[%s15673_s4 + $0x1950] sm:$0xff]  ;;  %v7364_v1 = vld [vmem:[%s15673_s4 + $0x18c0] sm:$0xff] }
 0x632   :  { %v4134_v31 = vcombine.high %v4126_v30, %v4126_v30  ;;  %v4135_v32 = vcombine.high %v4133_v45, %v4133_v45  ;;  %v10099_v13 = vpack.c.bf16 %v7382_v11, %v7374_v0  ;;  %v7373_v50 = vld [vmem:[%s15673_s4 + $0x1908] sm:$0xff]  ;;  %v7391_v0 = vld [vmem:[%s15673_s4 + $0x1998] sm:$0xff] }
 0x634   :  { %9944 = vmatpush1.bf16.msra.mxu0 %v9943_v2  ;;  %9976 = vmatpush1.bf16.msra.mxu1 %v9975_v57  ;;  %v7358_v2 = vld [vmem:[%s15673_s4 + $0x1890] sm:$0xff] }
 0x635   :  { %9946 = vmatprep.subr.bf16.mxu0 %v9945_v62  ;;  %9978 = vmatprep.subr.bf16.mxu1 %v9977_v58  ;;  %v7366_v57 = vld [vmem:[%s15673_s4 + $0x18d0] sm:$0xff]  ;;  %v7383_v62 = vld [vmem:[%s15673_s4 + $0x1958] sm:$0xff] }
 0x636   :  { %v10095_v58 = vpack.c.bf16 %v7366_v57, %v7358_v2  ;;  %v10097_v40 = vpack.c.bf16 %v7383_v62, %v7375_v20  ;;  %v7372_v57 = vld [vmem:[%s15673_s4 + $0x1900] sm:$0xff] }
 0x637   :  { %v7380_v20 = vld [vmem:[%s15673_s4 + $0x1940] sm:$0xff] }
 0x638   :  { %9948 = vmatpush1.bf16.msra.mxu0 %v9947_v18  ;;  %9980 = vmatpush1.bf16.msra.mxu1 %v9979_v41  ;;  %v7341_v18 = vld [vmem:[%s15673_s4 + $0x1808] sm:$0xff]  ;;  %v10067_v62 = vpack.c.bf16 %v7380_v20, %v7372_v57  ;;  %v7406_v57 = vld [vmem:[%s15673_s4 + $0x1a10] sm:$0xff] }
 0x639   :  { %9982 = vmatprep.subr.bf16.mxu0 %v10893_v3  ;;  %10014 = vmatprep.subr.bf16.mxu1 %v10906_v8  ;;  %v7349_v41 = vld [vmem:[%s15673_s4 + $0x1848] sm:$0xff]  ;;  %v7414_v20 = vld [vmem:[%s15673_s4 + $0x1a50] sm:$0xff] }
 0x63b   :  { %4029 = vmatmul.mubr.f32.vlgmr.msra.gmra.mrb[8].mxu0 %v13727_v53  ;;  %4100 = vmatmul.mubr.f32.vlgmr.msra.gmra.mrb[8].mxu1 %v13727_v53  ;;  %v7343_v53 = vld [vmem:[%s15673_s4 + $0x1818] sm:$0xff] }
 0x63c   :  { %9984 = vmatpush3.bf16.msra.mxu0 %v10904_v7  ;;  %10016 = vmatpush3.bf16.msra.mxu1 %v10918_v12  ;;  %v10089_v42 = vpack.c.bf16 %v7351_v37, %v7343_v53  ;;  %v7365_v53 = vld [vmem:[%s15673_s4 + $0x18c8] sm:$0xff]  ;;  %v7337_v37 = vld.sshfl [vmem:[%s15669_s0 + $0x44] sm:$0x3 pattern:$0x76325410] }
 0x63d   :  { %9986 = vmatprep.subr.bf16.mxu0 %v10931_v16  ;;  %10018 = vmatprep.subr.bf16.mxu1 %v10945_v21 }
 0x63e   :  { %4213 = vmatprep.mubr.f32.mxu0 %v4134_v31  ;;  %4283 = vmatprep.mubr.f32.mxu1 %v4135_v32  ;;  %v7348_v31 = vld [vmem:[%s15673_s4 + $0x1840] sm:$0xff]  ;;  %v7357_v32 = vld [vmem:[%s15673_s4 + $0x1888] sm:$0xff] }
 0x63f   :  { %v10061_v43 = vpack.c.bf16 %v7365_v53, %v7357_v32  ;;  %v7398_v32 = vld [vmem:[%s15673_s4 + $0x19d0] sm:$0xff] }
 0x640   :  { %9988 = vmatpush3.bf16.msra.mxu0 %v10933_v17  ;;  %10020 = vmatpush3.bf16.msra.mxu1 %v10957_v25 }
 0x641   :  { %9990 = vmatprep.subr.bf16.mxu0 %v10959_v26  ;;  %10022 = vmatprep.subr.bf16.mxu1 %v10983_v34 }
 0x644   :  { %9992 = vmatpush3.bf16.msra.mxu0 %v10981_v33  ;;  %10024 = vmatpush3.bf16.msra.mxu1 %v10996_v38 }
 0x645   :  { %9994 = vmatprep.subr.bf16.mxu0 %v10998_v39  ;;  %10026 = vmatprep.subr.bf16.mxu1 %v11010_v46 }
 0x648   :  { %9996 = vmatpush3.bf16.msra.mxu0 %v11025_v51  ;;  %10028 = vmatpush3.bf16.msra.mxu1 %v11035_v54 }
 0x649   :  { %9998 = vmatprep.subr.bf16.mxu0 %v11037_v55  ;;  %10030 = vmatprep.subr.bf16.mxu1 %v11051_v61 }
 0x64c   :  { %10000 = vmatpush3.bf16.msra.mxu0 %v11069_v4  ;;  %10032 = vmatpush3.bf16.msra.mxu1 %v11076_v6 }
 0x64d   :  { %10002 = vmatprep.subr.bf16.mxu0 %v11078_v9  ;;  %10034 = vmatprep.subr.bf16.mxu1 %v11093_v15 }
 0x650   :  { %10004 = vmatpush3.bf16.msra.mxu0 %v11108_v23  ;;  %10036 = vmatpush3.bf16.msra.mxu1 %v11110_v24 }
 0x651   :  { %10006 = vmatprep.subr.bf16.mxu0 %v11117_v28  ;;  %10038 = vmatprep.subr.bf16.mxu1 %v11130_v36 }
 0x654   :  { %10008 = vmatpush3.bf16.msra.mxu0 %v11149_v47  ;;  %10040 = vmatpush3.bf16.msra.mxu1 %v11153_v48 }
 0x655   :  { %10010 = vmatprep.subr.bf16.mxu0 %v11155_v49  ;;  %10042 = vmatprep.subr.bf16.mxu1 %v11164_v56 }
 0x658   :  { %10012 = vmatpush3.bf16.msra.mxu0 %v11173_v59  ;;  %10044 = vmatpush3.bf16.msra.mxu1 %v11180_v63 }
 0x659   :  { %10045 = vmatprep.subr.bf16.mxu0 %v10830_v10  ;;  %10090 = vmatprep.subr.bf16.mxu1 %v10089_v42 }
 0x65b   :  { %4214 = vmatmul.mubr.f32.vlgmr.msra.gmra.mrb[22].mxu0 %v4126_v30  ;;  %4284 = vmatmul.mubr.f32.vlgmr.msra.gmra.mrb[22].mxu1 %v4133_v45  ;;  %v10057_v30 = vpack.c.bf16 %v7349_v41, %v7341_v18  ;;  %v7340_v45 = vld [vmem:[%s15673_s4 + $0x1800] sm:$0xff] }
 0x65c   :  { %10047 = vmatpush3.bf16.msra.mxu0 %v11191_v5  ;;  %8716 = vmatprep.mubr.msk.f32.mxu0 %vm10831_vm0, %v10832_v27  ;;  %v10059_v42 = vpack.c.bf16 %v7348_v31, %v7340_v45  ;;  %v7388_v18 = vld [vmem:[%s15673_s4 + $0x1980] sm:$0xff]  ;;  %v7390_v31 = vld [vmem:[%s15673_s4 + $0x1990] sm:$0xff] }
 0x65d   :  { %10048 = vmatprep.subr.bf16.mxu0 %v10830_v10  ;;  %10092 = vmatpush1.bf16.msra.mxu1 %v10091_v22  ;;  %v7381_v22 = vld [vmem:[%s15673_s4 + $0x1948] sm:$0xff]  ;;  %v7396_v41 = vld [vmem:[%s15673_s4 + $0x19c0] sm:$0xff]  ;;  %v10103_v53 = vpack.c.bf16 %v7398_v32, %v7390_v31  ;;  %v7430_v32 = vld [vmem:[%s15673_s4 + $0x1ad0] sm:$0xff] }
 0x65e   :  { %10094 = vmatprep.subr.bf16.mxu1 %v10093_v52  ;;  %4627 = vmatprep.mubr.f32.mxu1 %v10832_v27  ;;  %v10063_v52 = vpack.c.bf16 %v7364_v1, %v7356_v44  ;;  %v10065_v2 = vpack.c.bf16 %v7381_v22, %v7373_v50  ;;  %v10071_v45 = vpack.c.bf16 %v7396_v41, %v7388_v18  ;;  %v7415_v1 = vld [vmem:[%s15673_s4 + $0x1a58] sm:$0xff]  ;;  %v7404_v50 = vld [vmem:[%s15673_s4 + $0x1a00] sm:$0xff] }
 0x65f   :  { %v7412_v22 = vld [vmem:[%s15673_s4 + $0x1a40] sm:$0xff] }
 0x660   :  { %10050 = vmatpush3.bf16.msra.mxu0 %v11203_v19  ;;  %v7420_v41 = vld [vmem:[%s15673_s4 + $0x1a80] sm:$0xff] }
 0x661   :  { %10051 = vmatprep.subr.bf16.mxu0 %v10830_v10  ;;  %10096 = vmatpush1.bf16.msra.mxu1 %v10095_v58  ;;  %v7389_v58 = vld [vmem:[%s15673_s4 + $0x1988] sm:$0xff] }
 0x662   :  { %10098 = vmatprep.subr.bf16.mxu1 %v10097_v40  ;;  %v7397_v40 = vld [vmem:[%s15673_s4 + $0x19c8] sm:$0xff] }
 0x663   :  { %v10069_v11 = vpack.c.bf16 %v7397_v40, %v7389_v58  ;;  %v10107_v58 = vpack.c.bf16 %v7414_v20, %v7406_v57  ;;  %v7429_v40 = vld [vmem:[%s15673_s4 + $0x1ac8] sm:$0xff]  ;;  %v7446_v57 = vld [vmem:[%s15673_s4 + $0x1b50] sm:$0xff] }
 0x664   :  { %10053 = vmatpush3.bf16.msra.mxu0 %v11217_v29 }
 0x665   :  { %10054 = vmatprep.subr.bf16.mxu0 %v10830_v10  ;;  %10100 = vmatpush1.bf16.msra.mxu1 %v10099_v13  ;;  %v7399_v13 = vld [vmem:[%s15673_s4 + $0x19d8] sm:$0xff] }
 0x668   :  { %10056 = vmatpush3.bf16.msra.mxu0 %v11229_v35 }
 0x669   :  { %10058 = vmatprep.subr.bf16.mxu0 %v10057_v30  ;;  %v10101_v30 = vpack.c.bf16 %v7399_v13, %v7391_v0  ;;  %v7423_v0 = vld [vmem:[%s15673_s4 + $0x1a98] sm:$0xff] }
 0x66b   :  { %8717 = vmatmul.mubr.msk.f32.vlgmr.msra.gmra.mrb[24].mxu0 %vm144_vm1, %v7337_v37  ;;  %10102 = vmatprep.subr.bf16.mxu1 %v10101_v30  ;;  %v7405_v37 = vld [vmem:[%s15673_s4 + $0x1a08] sm:$0xff]  ;;  %v7428_v30 = vld [vmem:[%s15673_s4 + $0x1ac0] sm:$0xff] }
 0x66c   :  { %10060 = vmatpush1.bf16.msra.mxu0 %v10059_v42  ;;  %4556 = vmatprep.mubr.f32.mxu0 %v10832_v27  ;;  %v7413_v42 = vld [vmem:[%s15673_s4 + $0x1a48] sm:$0xff]  ;;  %v10079_v31 = vpack.c.bf16 %v7428_v30, %v7420_v41  ;;  %v7460_v41 = vld [vmem:[%s15673_s4 + $0x1bc0] sm:$0xff] }
 0x66d   :  { %10062 = vmatprep.subr.bf16.mxu0 %v10061_v43  ;;  %v7407_v43 = vld [vmem:[%s15673_s4 + $0x1a18] sm:$0xff]  ;;  %10104 = vmatpush1.bf16.msra.mxu1 %v10103_v53  ;;  %v10073_v44 = vpack.c.bf16 %v7413_v42, %v7405_v37  ;;  %v7437_v53 = vld [vmem:[%s15673_s4 + $0x1b08] sm:$0xff] }
 0x66e   :  { %v7445_v37 = vld [vmem:[%s15673_s4 + $0x1b48] sm:$0xff] }
 0x670   :  { %10064 = vmatpush1.bf16.msra.mxu0 %v10063_v52  ;;  %v10105_v52 = vpack.c.bf16 %v7415_v1, %v7407_v43  ;;  %v10081_v43 = vpack.c.bf16 %v7445_v37, %v7437_v53  ;;  %v7447_v1 = vld [vmem:[%s15673_s4 + $0x1b58] sm:$0xff]  ;;  %v7345_v37 = vld [vmem:[%s15673_s4 + $0x1828] sm:$0xff] }
 0x671   :  { %10066 = vmatprep.subr.bf16.mxu0 %v10065_v2  ;;  %v10075_v2 = vpack.c.bf16 %v7412_v22, %v7404_v50  ;;  %v7436_v50 = vld [vmem:[%s15673_s4 + $0x1b00] sm:$0xff] }
 0x672   :  { %10106 = vmatprep.subr.bf16.mxu1 %v10105_v52  ;;  %v7444_v52 = vld [vmem:[%s15673_s4 + $0x1b40] sm:$0xff] }
 0x673   :  { %10108 = vmatpush1.bf16.msra.mxu1 %v10107_v58  ;;  %v10083_v20 = vpack.c.bf16 %v7444_v52, %v7436_v50  ;;  %v7453_v58 = vld [vmem:[%s15673_s4 + $0x1b88] sm:$0xff] }
 0x674   :  { %10068 = vmatpush1.bf16.msra.mxu0 %v10067_v62  ;;  %v7421_v62 = vld [vmem:[%s15673_s4 + $0x1a88] sm:$0xff] }
 0x675   :  { %10070 = vmatprep.subr.bf16.mxu0 %v10069_v11  ;;  %v7431_v11 = vld [vmem:[%s15673_s4 + $0x1ad8] sm:$0xff]  ;;  %v10077_v13 = vpack.c.bf16 %v7429_v40, %v7421_v62  ;;  %v7461_v40 = vld [vmem:[%s15673_s4 + $0x1bc8] sm:$0xff] }
 0x676   :  { %v10109_v18 = vpack.c.bf16 %v7431_v11, %v7423_v0  ;;  %v7455_v0 = vld [vmem:[%s15673_s4 + $0x1b98] sm:$0xff]  ;;  %v10085_v11 = vpack.c.bf16 %v7461_v40, %v7453_v58  ;;  %v14145_v58 = vld [vmem:[%s15671_s2] ss:$0 sm:$0xff] }
 0x678   :  { %10072 = vmatpush1.bf16.msra.mxu0 %v10071_v45  ;;  %v7422_v45 = vld [vmem:[%s15673_s4 + $0x1a90] sm:$0xff]  ;;  %10110 = vmatprep.subr.bf16.mxu1 %v10109_v18  ;;  %v7452_v18 = vld [vmem:[%s15673_s4 + $0x1b80] sm:$0xff] }
 0x679   :  { %10074 = vmatprep.subr.bf16.mxu0 %v10073_v44  ;;  %v10111_v42 = vpack.c.bf16 %v7430_v32, %v7422_v45  ;;  %v7439_v44 = vld [vmem:[%s15673_s4 + $0x1b18] sm:$0xff]  ;;  %v10087_v45 = vpack.c.bf16 %v7460_v41, %v7452_v18  ;;  %v7462_v32 = vld [vmem:[%s15673_s4 + $0x1bd0] sm:$0xff]  ;;  %v7344_v18 = vld [vmem:[%s15673_s4 + $0x1820] sm:$0xff] }
 0x67a   :  { %v10113_v22 = vpack.c.bf16 %v7447_v1, %v7439_v44  ;;  %v7347_v44 = vld [vmem:[%s15673_s4 + $0x1838] sm:$0xff]  ;;  %v7352_v41 = vld [vmem:[%s15673_s4 + $0x1860] sm:$0xff] }
 0x67b   :  { %10112 = vmatpush1.bf16.msra.mxu1 %v10111_v42  ;;  %v7353_v42 = vld [vmem:[%s15673_s4 + $0x1868] sm:$0xff]  ;;  %v7355_v1 = vld [vmem:[%s15673_s4 + $0x1878] sm:$0xff] }
 0x67c   :  { %10076 = vmatpush1.bf16.msra.mxu0 %v10075_v2  ;;  %v7438_v2 = vld [vmem:[%s15673_s4 + $0x1b10] sm:$0xff]  ;;  %10114 = vmatprep.subr.bf16.mxu1 %v10113_v22  ;;  %v10153_v50 = vpack.c.bf16 %v7355_v1, %v7347_v44  ;;  %v10123_v1 = vpack.c.bf16 %v7352_v41, %v7344_v18  ;;  %v7387_v18 = vld [vmem:[%s15673_s4 + $0x1978] sm:$0xff] }
 0x67d   :  { %10078 = vmatprep.subr.bf16.mxu0 %v10077_v13  ;;  %v10115_v62 = vpack.c.bf16 %v7446_v57, %v7438_v2  ;;  %v7463_v13 = vld [vmem:[%s15673_s4 + $0x1bd8] sm:$0xff] }
 0x67e   :  { %v10117_v30 = vpack.c.bf16 %v7463_v13, %v7455_v0  ;;  %v7339_v13 = vld [vmem:[%s15672_s3 + $0xc] sm:$0x3] }
 0x67f   :  { %10116 = vmatpush1.bf16.msra.mxu1 %v10115_v62 }
 0x680   :  { %10080 = vmatpush1.bf16.msra.mxu0 %v10079_v31  ;;  %v7454_v31 = vld [vmem:[%s15673_s4 + $0x1b90] sm:$0xff]  ;;  %10118 = vmatprep.subr.bf16.mxu1 %v10117_v30 }
 0x681   :  { %10082 = vmatprep.subr.bf16.mxu0 %v10081_v43  ;;  %v10119_v53 = vpack.c.bf16 %v7462_v32, %v7454_v31  ;;  %v10121_v43 = vpack.c.bf16 %v7353_v42, %v7345_v37  ;;  %v7346_v31 = vld [vmem:[%s15673_s4 + $0x1830] sm:$0xff]  ;;  %v7369_v37 = vld [vmem:[%s15673_s4 + $0x18e8] sm:$0xff]  ;;  %v7363_v42 = vld [vmem:[%s15673_s4 + $0x18b8] sm:$0xff] }
 0x682   :  { %v7354_v32 = vld [vmem:[%s15673_s4 + $0x1870] sm:$0xff] }
 0x683   :  { %10120 = vmatpush1.bf16.msra.mxu1 %v10119_v53  ;;  %v7361_v53 = vld [vmem:[%s15673_s4 + $0x18a8] sm:$0xff] }
 0x684   :  { %10084 = vmatpush1.bf16.msra.mxu0 %v10083_v20  ;;  %10154 = vmatprep.subr.bf16.mxu1 %v10153_v50  ;;  %v10155_v50 = vpack.c.bf16 %v7354_v32, %v7346_v31  ;;  %v7384_v31 = vld [vmem:[%s15673_s4 + $0x1960] sm:$0xff] }
 0x685   :  { %10086 = vmatprep.subr.bf16.mxu0 %v10085_v11 }
 0x688   :  { %10088 = vmatpush1.bf16.msra.mxu0 %v10087_v45 }
 0x689   :  { %10122 = vmatprep.subr.bf16.mxu0 %v10121_v43  ;;  %v7371_v43 = vld [vmem:[%s15673_s4 + $0x18f8] sm:$0xff] }
 0x72e   :  { %v8241_v22 = vpop.f32.mrb[22].mxu0  ;;  %v8276_v52 = vpop.f32.mrb[22].mxu1 }
 0x72f   :  { %v8242_v2 = vpop.f32.mrb[23].mxu0  ;;  %v8277_v57 = vpop.f32.mrb[23].mxu1 }
 0x730   :  { %v8243_v20 = vadd.f32 %v8242_v2, %v8241_v22  ;;  %v8278_v62 = vadd.f32 %v8277_v57, %v8276_v52  ;;  %v7360_v22 = vld [vmem:[%s15673_s4 + $0x18a0] sm:$0xff]  ;;  %v10125_v57 = vpack.c.bf16 %v7369_v37, %v7361_v53  ;;  %v7378_v37 = vld [vmem:[%s15673_s4 + $0x1930] sm:$0xff] }
 0x731   :  { %v7368_v52 = vld [vmem:[%s15673_s4 + $0x18e0] sm:$0xff] }
 0x732   :  { %v4216_v40 = vadd.f32 %v14145_v58, %v8243_v20  ;;  %v10157_v20 = vpack.c.bf16 %v7371_v43, %v7363_v42  ;;  %v10127_v41 = vpack.c.bf16 %v7368_v52, %v7360_v22  ;;  %v7386_v42 = vld [vmem:[%s15673_s4 + $0x1970] sm:$0xff]  ;;  %v7393_v43 = vld [vmem:[%s15673_s4 + $0x19a8] sm:$0xff] }
 0x733   :  { %v10163_v52 = vpack.c.bf16 %v7386_v42, %v7378_v37 }
 0x734   :  { %v4286_v0 = vadd.f32 %v8278_v62, %v4216_v40  ;;  %v7362_v62 = vld [vmem:[%s15673_s4 + $0x18b0] sm:$0xff] }
 0x735   :  { %v7370_v40 = vld [vmem:[%s15673_s4 + $0x18f0] sm:$0xff] }
 0x73e   :  { %v4355_v11 = vpop.f32.mrb[24].mxu0 }
 0x73f   :  { %v4356_v30 = vadd.f32 %v4355_v11, %v4286_v0  ;;  %v8718_v45 = vpop.f32.mrb[25].mxu0  ;;  %v7377_v0 = vld [vmem:[%s15673_s4 + $0x1928] sm:$0xff] }
 0x740   :  { %v7385_v11 = vld [vmem:[%s15673_s4 + $0x1968] sm:$0xff]  ;;  %v7376_v45 = vld [vmem:[%s15673_s4 + $0x1920] sm:$0xff] }
 0x741   :  { %v4359_v44 = vmax.f32 %v4356_v30, 0.0  ;;  %v10159_v30 = vpack.c.bf16 %v7370_v40, %v7362_v62  ;;  %v10129_v32 = vpack.c.bf16 %v7385_v11, %v7377_v0  ;;  %v10131_v22 = vpack.c.bf16 %v7384_v31, %v7376_v45  ;;  %v7394_v0 = vld [vmem:[%s15673_s4 + $0x19b0] sm:$0xff] }
 0x742   :  { %v7402_v11 = vld [vmem:[%s15673_s4 + $0x19f0] sm:$0xff] }
 0x743   :  { %v14181_v2 = vmul.f32 %v7339_v13, %v4359_v44  ;;  %v7379_v13 = vld [vmem:[%s15673_s4 + $0x1938] sm:$0xff]  ;;  %v7401_v44 = vld [vmem:[%s15673_s4 + $0x19e8] sm:$0xff]  ;;  %v10167_v31 = vpack.c.bf16 %v7402_v11, %v7394_v0 }
 0x744   :  { %v10161_v53 = vpack.c.bf16 %v7387_v18, %v7379_v13  ;;  %v10133_v62 = vpack.c.bf16 %v7401_v44, %v7393_v43  ;;  %v7409_v13 = vld [vmem:[%s15673_s4 + $0x1a28] sm:$0xff]  ;;  %v7410_v43 = vld [vmem:[%s15673_s4 + $0x1a30] sm:$0xff] }
 0x745   :  { %4557 = vmatmul.mubr.f32.vlgmr.msra.gmra.mrb[6].mxu0 %v14181_v2  ;;  %4628 = vmatmul.mubr.f32.vlgmr.msra.gmra.mrb[6].mxu1 %v14181_v2  ;;  %v7417_v18 = vld [vmem:[%s15673_s4 + $0x1a68] sm:$0xff]  ;;  %v7418_v44 = vld [vmem:[%s15673_s4 + $0x1a70] sm:$0xff] }
 0x746   :  { %10124 = vmatpush1.bf16.msra.mxu0 %v10123_v1  ;;  %10156 = vmatpush1.bf16.msra.mxu1 %v10155_v50  ;;  %v7395_v1 = vld [vmem:[%s15673_s4 + $0x19b8] sm:$0xff]  ;;  %v10137_v37 = vpack.c.bf16 %v7417_v18, %v7409_v13  ;;  %v7426_v13 = vld [vmem:[%s15673_s4 + $0x1ab0] sm:$0xff] }
 0x747   :  { %10126 = vmatprep.subr.bf16.mxu0 %v10125_v57  ;;  %10158 = vmatprep.subr.bf16.mxu1 %v10157_v20  ;;  %v7403_v50 = vld [vmem:[%s15673_s4 + $0x19f8] sm:$0xff]  ;;  %v7392_v57 = vld [vmem:[%s15673_s4 + $0x19a0] sm:$0xff]  ;;  %v7434_v18 = vld [vmem:[%s15673_s4 + $0x1af0] sm:$0xff] }
 0x748   :  { %4698 = vmatprep.mubr.f32.mxu0 %v10832_v27  ;;  %4769 = vmatprep.mubr.f32.mxu1 %v10832_v27  ;;  %v7400_v20 = vld [vmem:[%s15673_s4 + $0x19e0] sm:$0xff]  ;;  %v10165_v40 = vpack.c.bf16 %v7403_v50, %v7395_v1  ;;  %v7425_v1 = vld [vmem:[%s15673_s4 + $0x1aa8] sm:$0xff] }
 0x749   :  { %v10135_v45 = vpack.c.bf16 %v7400_v20, %v7392_v57  ;;  %v7433_v50 = vld [vmem:[%s15673_s4 + $0x1ae8] sm:$0xff]  ;;  %v10171_v20 = vpack.c.bf16 %v7418_v44, %v7410_v43 }
 0x74a   :  { %10128 = vmatpush1.bf16.msra.mxu0 %v10127_v41  ;;  %10160 = vmatpush1.bf16.msra.mxu1 %v10159_v30  ;;  %v7411_v41 = vld [vmem:[%s15673_s4 + $0x1a38] sm:$0xff]  ;;  %v10141_v0 = vpack.c.bf16 %v7433_v50, %v7425_v1  ;;  %v7442_v1 = vld [vmem:[%s15673_s4 + $0x1b30] sm:$0xff] }
 0x74b   :  { %10130 = vmatprep.subr.bf16.mxu0 %v10129_v32  ;;  %10162 = vmatprep.subr.bf16.mxu1 %v10161_v53  ;;  %v7419_v30 = vld [vmem:[%s15673_s4 + $0x1a78] sm:$0xff]  ;;  %v7408_v32 = vld [vmem:[%s15673_s4 + $0x1a20] sm:$0xff]  ;;  %v7450_v50 = vld [vmem:[%s15673_s4 + $0x1b70] sm:$0xff] }
 0x74c   :  { %v7416_v53 = vld [vmem:[%s15673_s4 + $0x1a60] sm:$0xff]  ;;  %v10169_v42 = vpack.c.bf16 %v7419_v30, %v7411_v41  ;;  %v7441_v41 = vld [vmem:[%s15673_s4 + $0x1b28] sm:$0xff] }
 0x74d   :  { %v10139_v57 = vpack.c.bf16 %v7416_v53, %v7408_v32  ;;  %v7449_v30 = vld [vmem:[%s15673_s4 + $0x1b68] sm:$0xff]  ;;  %v10175_v53 = vpack.c.bf16 %v7434_v18, %v7426_v13 }
 0x74e   :  { %10132 = vmatpush1.bf16.msra.mxu0 %v10131_v22  ;;  %10164 = vmatpush1.bf16.msra.mxu1 %v10163_v52  ;;  %v7427_v22 = vld [vmem:[%s15673_s4 + $0x1ab8] sm:$0xff]  ;;  %v10145_v43 = vpack.c.bf16 %v7449_v30, %v7441_v41  ;;  %v7464_v41 = vld [vmem:[%s15673_s4 + $0x1be0] sm:$0xff]  ;;  %v7458_v30 = vld [vmem:[%s15673_s4 + $0x1bb0] sm:$0xff] }
 0x74f   :  { %10134 = vmatprep.subr.bf16.mxu0 %v10133_v62  ;;  %10166 = vmatprep.subr.bf16.mxu1 %v10165_v40  ;;  %v7435_v52 = vld [vmem:[%s15673_s4 + $0x1af8] sm:$0xff]  ;;  %v7424_v62 = vld [vmem:[%s15673_s4 + $0x1aa0] sm:$0xff] }
 0x750   :  { %v7432_v40 = vld [vmem:[%s15673_s4 + $0x1ae0] sm:$0xff]  ;;  %v10173_v11 = vpack.c.bf16 %v7435_v52, %v7427_v22  ;;  %v7457_v22 = vld [vmem:[%s15673_s4 + $0x1ba8] sm:$0xff] }
 0x751   :  { %v10143_v32 = vpack.c.bf16 %v7432_v40, %v7424_v62  ;;  %v7465_v52 = vld [vmem:[%s15673_s4 + $0x1be8] sm:$0xff] }
 0x752   :  { %10136 = vmatpush1.bf16.msra.mxu0 %v10135_v45  ;;  %10168 = vmatpush1.bf16.msra.mxu1 %v10167_v31  ;;  %v7443_v45 = vld [vmem:[%s15673_s4 + $0x1b38] sm:$0xff]  ;;  %v7468_v62 = vld [vmem:[%s15669_s0 + $0x46] sm:$0xff]  ;;  %v10149_v13 = vpack.c.bf16 %v7465_v52, %v7457_v22 }
 0x753   :  { %10138 = vmatprep.subr.bf16.mxu0 %v10137_v37  ;;  %10170 = vmatprep.subr.bf16.mxu1 %v10169_v42  ;;  %v7451_v31 = vld [vmem:[%s15673_s4 + $0x1b78] sm:$0xff]  ;;  %v7440_v37 = vld [vmem:[%s15673_s4 + $0x1b20] sm:$0xff] }
 0x754   :  { %v7448_v42 = vld [vmem:[%s15673_s4 + $0x1b60] sm:$0xff]  ;;  %v10177_v44 = vpack.c.bf16 %v7451_v31, %v7443_v45  ;;  %v7466_v45 = vld [vmem:[%s15673_s4 + $0x1bf0] sm:$0xff]  ;;  %v4789_v31 = vcombine.high %v7468_v62, %v7468_v62 }
 0x755   :  { %v10147_v40 = vpack.c.bf16 %v7448_v42, %v7440_v37  ;;  %v4796_v37 = vrot.slane %v7468_v62, %v11090_v14  ;;  %v7473_v22 = vld [vmem:[%s15673_s4 + $0x1c00] sm:$0xff] }
 0x756   :  { %10140 = vmatpush1.bf16.msra.mxu0 %v10139_v57  ;;  %10172 = vmatpush1.bf16.msra.mxu1 %v10171_v20  ;;  %v7459_v57 = vld [vmem:[%s15673_s4 + $0x1bb8] sm:$0xff]  ;;  %v4803_v42 = vrot.slane %v4789_v31, %v11090_v14  ;;  %v7481_v52 = vld [vmem:[%s15673_s4 + $0x1c40] sm:$0xff] }
 0x757   :  { %10142 = vmatprep.subr.bf16.mxu0 %v10141_v0  ;;  %10174 = vmatprep.subr.bf16.mxu1 %v10173_v11  ;;  %v7467_v20 = vld [vmem:[%s15673_s4 + $0x1bf8] sm:$0xff]  ;;  %v10179_v0 = vpack.c.bf16 %v7450_v50, %v7442_v1  ;;  %v7456_v11 = vld [vmem:[%s15673_s4 + $0x1ba0] sm:$0xff]  ;;  %v7482_v1 = vld [vmem:[%s15673_s4 + $0x1c48] sm:$0xff]  ;;  %v10263_v62 = vpack.c.bf16 %v7481_v52, %v7473_v22 }
 0x758   :  { %v10181_v18 = vpack.c.bf16 %v7467_v20, %v7459_v57  ;;  %v7490_v57 = vld [vmem:[%s15673_s4 + $0x1c88] sm:$0xff]  ;;  %v7513_v31 = vld [vmem:[%s15673_s4 + $0x1d40] sm:$0xff] }
 0x759   :  { %v7498_v20 = vld [vmem:[%s15673_s4 + $0x1cc8] sm:$0xff] }
 0x75a   :  { %10144 = vmatpush1.bf16.msra.mxu0 %v10143_v32  ;;  %10176 = vmatpush1.bf16.msra.mxu1 %v10175_v53  ;;  %v10151_v32 = vpack.c.bf16 %v7464_v41, %v7456_v11  ;;  %v10183_v53 = vpack.c.bf16 %v7466_v45, %v7458_v30  ;;  %v7497_v11 = vld [vmem:[%s15673_s4 + $0x1cc0] sm:$0xff] }
 0x75b   :  { %10146 = vmatprep.subr.bf16.mxu0 %v10145_v43  ;;  %10178 = vmatprep.subr.bf16.mxu1 %v10177_v44  ;;  %v4804_v43 = vcombine.high %v4796_v37, %v4796_v37  ;;  %v4805_v44 = vcombine.high %v4803_v42, %v4803_v42  ;;  %v7505_v45 = vld [vmem:[%s15673_s4 + $0x1d00] sm:$0xff] }
 0x75e   :  { %10148 = vmatpush1.bf16.msra.mxu0 %v10147_v40  ;;  %10180 = vmatpush1.bf16.msra.mxu1 %v10179_v0  ;;  %v10265_v40 = vpack.c.bf16 %v7498_v20, %v7490_v57  ;;  %v7489_v0 = vld [vmem:[%s15673_s4 + $0x1c80] sm:$0xff]  ;;  %v7491_v57 = vld [vmem:[%s15673_s4 + $0x1c90] sm:$0xff] }
 0x75f   :  { %10150 = vmatprep.subr.bf16.mxu0 %v10149_v13  ;;  %10182 = vmatprep.subr.bf16.mxu1 %v10181_v18  ;;  %v7506_v13 = vld [vmem:[%s15673_s4 + $0x1d08] sm:$0xff]  ;;  %v10267_v41 = vpack.c.bf16 %v7497_v11, %v7489_v0  ;;  %v7499_v20 = vld [vmem:[%s15673_s4 + $0x1cd0] sm:$0xff] }
 0x760   :  { %v7514_v18 = vld [vmem:[%s15673_s4 + $0x1d48] sm:$0xff]  ;;  %v10299_v0 = vpack.c.bf16 %v7499_v20, %v7491_v57  ;;  %v7540_v57 = vld [vmem:[%s15673_s4 + $0x1e18] sm:$0xff] }
 0x761   :  { %v10269_v30 = vpack.c.bf16 %v7514_v18, %v7506_v13  ;;  %v7507_v13 = vld [vmem:[%s15673_s4 + $0x1d10] sm:$0xff] }
 0x762   :  { %10152 = vmatpush1.bf16.msra.mxu0 %v10151_v32  ;;  %10184 = vmatpush1.bf16.msra.mxu1 %v10183_v53  ;;  %v10271_v32 = vpack.c.bf16 %v7513_v31, %v7505_v45  ;;  %v7476_v53 = vld [vmem:[%s15673_s4 + $0x1c18] sm:$0xff]  ;;  %v7515_v18 = vld [vmem:[%s15673_s4 + $0x1d50] sm:$0xff]  ;;  %v7530_v45 = vld [vmem:[%s15673_s4 + $0x1dc8] sm:$0xff] }
 0x763   :  { %10186 = vmatprep.subr.bf16.mxu1 %v10893_v3  ;;  %10218 = vmatprep.subr.bf16.mxu0 %v10906_v8  ;;  %v7524_v31 = vld [vmem:[%s15673_s4 + $0x1d98] sm:$0xff] }
 0x765   :  { %4699 = vmatmul.mubr.f32.vlgmr.msra.gmra.mrb[8].mxu0 %v14181_v2  ;;  %4770 = vmatmul.mubr.f32.vlgmr.msra.gmra.mrb[8].mxu1 %v14181_v2  ;;  %v7474_v2 = vld [vmem:[%s15673_s4 + $0x1c08] sm:$0xff] }
 0x766   :  { %10188 = vmatpush3.bf16.msra.mxu1 %v10904_v7  ;;  %10220 = vmatpush3.bf16.msra.mxu0 %v10918_v12  ;;  %v10261_v50 = vpack.c.bf16 %v7482_v1, %v7474_v2  ;;  %v7492_v2 = vld [vmem:[%s15673_s4 + $0x1c98] sm:$0xff] }
 0x767   :  { %10190 = vmatprep.subr.bf16.mxu1 %v10931_v16  ;;  %10222 = vmatprep.subr.bf16.mxu0 %v10945_v21  ;;  %v7500_v1 = vld [vmem:[%s15673_s4 + $0x1cd8] sm:$0xff] }
 0x768   :  { %4883 = vmatprep.mubr.f32.mxu1 %v4804_v43  ;;  %4953 = vmatprep.mubr.f32.mxu0 %v4805_v44  ;;  %v7475_v43 = vld [vmem:[%s15673_s4 + $0x1c10] sm:$0xff]  ;;  %v10297_v52 = vpack.c.bf16 %v7500_v1, %v7492_v2 }
 0x769   :  { %v7483_v44 = vld [vmem:[%s15673_s4 + $0x1c50] sm:$0xff] }
 0x76a   :  { %10192 = vmatpush3.bf16.msra.mxu1 %v10933_v17  ;;  %10224 = vmatpush3.bf16.msra.mxu0 %v10957_v25  ;;  %v10295_v22 = vpack.c.bf16 %v7483_v44, %v7475_v43  ;;  %v7523_v2 = vld [vmem:[%s15673_s4 + $0x1d90] sm:$0xff] }
 0x76b   :  { %10194 = vmatprep.subr.bf16.mxu1 %v10959_v26  ;;  %10226 = vmatprep.subr.bf16.mxu0 %v10983_v34  ;;  %v7531_v1 = vld [vmem:[%s15673_s4 + $0x1dd0] sm:$0xff] }
 0x76e   :  { %10196 = vmatpush3.bf16.msra.mxu1 %v10981_v33  ;;  %10228 = vmatpush3.bf16.msra.mxu0 %v10996_v38 }
 0x76f   :  { %10198 = vmatprep.subr.bf16.mxu1 %v10998_v39  ;;  %10230 = vmatprep.subr.bf16.mxu0 %v11010_v46 }
 0x772   :  { %10200 = vmatpush3.bf16.msra.mxu1 %v11025_v51  ;;  %10232 = vmatpush3.bf16.msra.mxu0 %v11035_v54 }
 0x773   :  { %10202 = vmatprep.subr.bf16.mxu1 %v11037_v55  ;;  %10234 = vmatprep.subr.bf16.mxu0 %v11051_v61 }
 0x776   :  { %10204 = vmatpush3.bf16.msra.mxu1 %v11069_v4  ;;  %10236 = vmatpush3.bf16.msra.mxu0 %v11076_v6 }
 0x777   :  { %10206 = vmatprep.subr.bf16.mxu1 %v11078_v9  ;;  %10238 = vmatprep.subr.bf16.mxu0 %v11093_v15 }
 0x77a   :  { %10208 = vmatpush3.bf16.msra.mxu1 %v11108_v23  ;;  %10240 = vmatpush3.bf16.msra.mxu0 %v11110_v24 }
 0x77b   :  { %10210 = vmatprep.subr.bf16.mxu1 %v11117_v28  ;;  %10242 = vmatprep.subr.bf16.mxu0 %v11130_v36 }
 0x77e   :  { %10212 = vmatpush3.bf16.msra.mxu1 %v11149_v47  ;;  %10244 = vmatpush3.bf16.msra.mxu0 %v11153_v48 }
 0x77f   :  { %10214 = vmatprep.subr.bf16.mxu1 %v11155_v49  ;;  %10246 = vmatprep.subr.bf16.mxu0 %v11164_v56 }
 0x782   :  { %10216 = vmatpush3.bf16.msra.mxu1 %v11173_v59  ;;  %10248 = vmatpush3.bf16.msra.mxu0 %v11180_v63 }
 0x783   :  { %10249 = vmatprep.subr.bf16.mxu1 %v10830_v10  ;;  %10262 = vmatprep.subr.bf16.mxu0 %v10261_v50  ;;  %v7470_v50 = vld.sshfl [vmem:[%s15669_s0 + $0x4e] sm:$0x3 pattern:$0x76325410] }
 0x785   :  { %4884 = vmatmul.mubr.f32.vlgmr.msra.gmra.mrb[24].mxu1 %v4796_v37  ;;  %4954 = vmatmul.mubr.f32.vlgmr.msra.gmra.mrb[26].mxu0 %v4803_v42  ;;  %v7484_v37 = vld [vmem:[%s15673_s4 + $0x1c58] sm:$0xff] }
 0x786   :  { %10251 = vmatpush3.bf16.msra.mxu1 %v11191_v5  ;;  %8735 = vmatprep.mubr.msk.f32.mxu1 %vm10831_vm0, %v10832_v27  ;;  %v10293_v42 = vpack.c.bf16 %v7484_v37, %v7476_v53  ;;  %v7532_v53 = vld [vmem:[%s15673_s4 + $0x1dd8] sm:$0xff]  ;;  %v7521_v37 = vld [vmem:[%s15673_s4 + $0x1d80] sm:$0xff] }
 0x787   :  { %10252 = vmatprep.subr.bf16.mxu1 %v10830_v10  ;;  %10264 = vmatpush1.bf16.msra.mxu0 %v10263_v62  ;;  %v7508_v62 = vld [vmem:[%s15673_s4 + $0x1d18] sm:$0xff]  ;;  %v10305_v43 = vpack.c.bf16 %v7532_v53, %v7524_v31  ;;  %v7562_v31 = vld [vmem:[%s15673_s4 + $0x1ec8] sm:$0xff] }
 0x788   :  { %10266 = vmatprep.subr.bf16.mxu0 %v10265_v40  ;;  %5226 = vmatprep.mubr.f32.mxu0 %v10832_v27  ;;  %v7516_v40 = vld [vmem:[%s15673_s4 + $0x1d58] sm:$0xff] }
 0x789   :  { %v10301_v11 = vpack.c.bf16 %v7516_v40, %v7508_v62  ;;  %v7548_v62 = vld [vmem:[%s15673_s4 + $0x1e58] sm:$0xff]  ;;  %v7537_v40 = vld [vmem:[%s15673_s4 + $0x1e00] sm:$0xff] }
 0x78a   :  { %10254 = vmatpush3.bf16.msra.mxu1 %v11203_v19  ;;  %v7564_v53 = vld [vmem:[%s15673_s4 + $0x1ed8] sm:$0xff] }
 0x78b   :  { %10255 = vmatprep.subr.bf16.mxu1 %v10830_v10  ;;  %10268 = vmatpush1.bf16.msra.mxu0 %v10267_v41  ;;  %v10303_v41 = vpack.c.bf16 %v7515_v18, %v7507_v13  ;;  %v7539_v18 = vld [vmem:[%s15673_s4 + $0x1e10] sm:$0xff] }
 0x78c   :  { %10270 = vmatprep.subr.bf16.mxu0 %v10269_v30  ;;  %v7522_v30 = vld [vmem:[%s15673_s4 + $0x1d88] sm:$0xff] }
 0x78e   :  { %10257 = vmatpush3.bf16.msra.mxu1 %v11217_v29 }
 0x78f   :  { %10258 = vmatprep.subr.bf16.mxu1 %v10830_v10  ;;  %10272 = vmatpush1.bf16.msra.mxu0 %v10271_v32  ;;  %v10273_v32 = vpack.c.bf16 %v7530_v45, %v7522_v30  ;;  %v7554_v30 = vld [vmem:[%s15673_s4 + $0x1e88] sm:$0xff] }
 0x791   :  { %10274 = vmatprep.subr.bf16.mxu0 %v10273_v32  ;;  %v7556_v32 = vld [vmem:[%s15673_s4 + $0x1e98] sm:$0xff] }
 0x792   :  { %10260 = vmatpush3.bf16.msra.mxu1 %v11229_v35 }
 0x793   :  { %10294 = vmatprep.subr.bf16.mxu1 %v10293_v42  ;;  %v7529_v42 = vld [vmem:[%s15673_s4 + $0x1dc0] sm:$0xff] }
 0x794   :  { %v10275_v44 = vpack.c.bf16 %v7529_v42, %v7521_v37  ;;  %v10281_v37 = vpack.c.bf16 %v7562_v31, %v7554_v30  ;;  %v10313_v42 = vpack.c.bf16 %v7564_v53, %v7556_v32  ;;  %v7586_v31 = vld [vmem:[%s15673_s4 + $0x1f88] sm:$0xff]  ;;  %v7588_v53 = vld [vmem:[%s15673_s4 + $0x1f98] sm:$0xff] }
 0x795   :  { %8736 = vmatmul.mubr.msk.f32.vlgmr.msra.gmra.mrb[26].mxu1 %vm144_vm1, %v7470_v50  ;;  %v10307_v50 = vpack.c.bf16 %v7531_v1, %v7523_v2  ;;  %v7555_v2 = vld [vmem:[%s15673_s4 + $0x1e90] sm:$0xff]  ;;  %v7594_v32 = vld [vmem:[%s15673_s4 + $0x1fc8] sm:$0xff] }
 0x796   :  { %10296 = vmatpush1.bf16.msra.mxu1 %v10295_v22  ;;  %5297 = vmatprep.mubr.f32.mxu1 %v10832_v27  ;;  %v7538_v22 = vld [vmem:[%s15673_s4 + $0x1e08] sm:$0xff] }
 0x797   :  { %10298 = vmatprep.subr.bf16.mxu1 %v10297_v52  ;;  %10276 = vmatpush1.bf16.msra.mxu0 %v10275_v44  ;;  %v7546_v52 = vld [vmem:[%s15673_s4 + $0x1e48] sm:$0xff]  ;;  %v7561_v44 = vld [vmem:[%s15673_s4 + $0x1ec0] sm:$0xff] }
 0x798   :  { %v10277_v20 = vpack.c.bf16 %v7546_v52, %v7538_v22  ;;  %v7570_v22 = vld [vmem:[%s15673_s4 + $0x1f08] sm:$0xff] }
 0x799   :  { %v7578_v52 = vld [vmem:[%s15673_s4 + $0x1f48] sm:$0xff] }
 0x79a   :  { %10300 = vmatpush1.bf16.msra.mxu1 %v10299_v0  ;;  %v7545_v0 = vld [vmem:[%s15673_s4 + $0x1e40] sm:$0xff]  ;;  %10278 = vmatprep.subr.bf16.mxu0 %v10277_v20  ;;  %v10285_v20 = vpack.c.bf16 %v7578_v52, %v7570_v22  ;;  %v7595_v22 = vld [vmem:[%s15673_s4 + $0x1fd0] sm:$0xff] }
 0x79b   :  { %10302 = vmatprep.subr.bf16.mxu1 %v10301_v11  ;;  %v10309_v11 = vpack.c.bf16 %v7548_v62, %v7540_v57  ;;  %v10279_v13 = vpack.c.bf16 %v7545_v0, %v7537_v40  ;;  %v7572_v62 = vld [vmem:[%s15673_s4 + $0x1f18] sm:$0xff]  ;;  %v7569_v0 = vld [vmem:[%s15673_s4 + $0x1f00] sm:$0xff] }
 0x79c   :  { %v7580_v40 = vld [vmem:[%s15673_s4 + $0x1f58] sm:$0xff] }
 0x79d   :  { %10280 = vmatpush1.bf16.msra.mxu0 %v10279_v13  ;;  %v7577_v13 = vld [vmem:[%s15673_s4 + $0x1f40] sm:$0xff] }
 0x79e   :  { %10304 = vmatpush1.bf16.msra.mxu1 %v10303_v41  ;;  %v7547_v41 = vld [vmem:[%s15673_s4 + $0x1e50] sm:$0xff]  ;;  %10282 = vmatprep.subr.bf16.mxu0 %v10281_v37  ;;  %v10287_v30 = vpack.c.bf16 %v7577_v13, %v7569_v0  ;;  %v10289_v37 = vpack.c.bf16 %v7594_v32, %v7586_v31  ;;  %v7488_v0 = vld [vmem:[%s15673_s4 + $0x1c78] sm:$0xff] }
 0x79f   :  { %10306 = vmatprep.subr.bf16.mxu1 %v10305_v43  ;;  %v10311_v45 = vpack.c.bf16 %v7547_v41, %v7539_v18  ;;  %v7553_v43 = vld [vmem:[%s15673_s4 + $0x1e80] sm:$0xff]  ;;  %v7571_v18 = vld [vmem:[%s15673_s4 + $0x1f10] sm:$0xff] }
 0x7a0   :  { %v10283_v1 = vpack.c.bf16 %v7561_v44, %v7553_v43  ;;  %v7579_v41 = vld [vmem:[%s15673_s4 + $0x1f50] sm:$0xff]  ;;  %v7585_v43 = vld [vmem:[%s15673_s4 + $0x1f80] sm:$0xff] }
 0x7a1   :  { %v7593_v44 = vld [vmem:[%s15673_s4 + $0x1fc0] sm:$0xff] }
 0x7a2   :  { %10308 = vmatpush1.bf16.msra.mxu1 %v10307_v50  ;;  %v7563_v50 = vld [vmem:[%s15673_s4 + $0x1ed0] sm:$0xff]  ;;  %10284 = vmatpush1.bf16.msra.mxu0 %v10283_v1  ;;  %v10291_v1 = vpack.c.bf16 %v7593_v44, %v7585_v43  ;;  %v7477_v43 = vld [vmem:[%s15673_s4 + $0x1c20] sm:$0xff] }
 0x7a3   :  { %10310 = vmatprep.subr.bf16.mxu1 %v10309_v11  ;;  %v10315_v57 = vpack.c.bf16 %v7563_v50, %v7555_v2  ;;  %v10317_v11 = vpack.c.bf16 %v7580_v40, %v7572_v62  ;;  %10286 = vmatprep.subr.bf16.mxu0 %v10285_v20  ;;  %v7587_v50 = vld [vmem:[%s15673_s4 + $0x1f90] sm:$0xff]  ;;  %v7486_v20 = vld [vmem:[%s15673_s4 + $0x1c68] sm:$0xff]  ;;  %v7480_v40 = vld [vmem:[%s15673_s4 + $0x1c38] sm:$0xff] }
 0x7a4   :  { %v10323_v52 = vpack.c.bf16 %v7595_v22, %v7587_v50  ;;  %v7485_v44 = vld [vmem:[%s15673_s4 + $0x1c60] sm:$0xff]  ;;  %v7487_v50 = vld [vmem:[%s15673_s4 + $0x1c70] sm:$0xff]  ;;  %v7494_v22 = vld [vmem:[%s15673_s4 + $0x1ca8] sm:$0xff] }
 0x7a6   :  { %10312 = vmatpush1.bf16.msra.mxu1 %v10311_v45  ;;  %v10319_v45 = vpack.c.bf16 %v7579_v41, %v7571_v18  ;;  %10288 = vmatpush1.bf16.msra.mxu0 %v10287_v30 }
 0x7a7   :  { %10314 = vmatprep.subr.bf16.mxu1 %v10313_v42  ;;  %v7596_v42 = vld [vmem:[%s15673_s4 + $0x1fd8] sm:$0xff]  ;;  %10290 = vmatprep.subr.bf16.mxu0 %v10289_v37 }
 0x7a8   :  { %v10321_v2 = vpack.c.bf16 %v7596_v42, %v7588_v53  ;;  %v7472_v42 = vld [vmem:[%s15672_s3 + $0xe] sm:$0x3] }
 0x7aa   :  { %10316 = vmatpush1.bf16.msra.mxu1 %v10315_v57  ;;  %10292 = vmatpush1.bf16.msra.mxu0 %v10291_v1  ;;  %v7478_v57 = vld [vmem:[%s15673_s4 + $0x1c28] sm:$0xff] }
 0x7ab   :  { %10318 = vmatprep.subr.bf16.mxu1 %v10317_v11  ;;  %v10325_v62 = vpack.c.bf16 %v7486_v20, %v7478_v57  ;;  %v10357_v11 = vpack.c.bf16 %v7488_v0, %v7480_v40  ;;  %v7496_v57 = vld [vmem:[%s15673_s4 + $0x1cb8] sm:$0xff]  ;;  %v10327_v40 = vpack.c.bf16 %v7485_v44, %v7477_v43 }
 0x7ac   :  { %v7504_v20 = vld [vmem:[%s15673_s4 + $0x1cf8] sm:$0xff] }
 0x7ad   :  { %10326 = vmatprep.subr.bf16.mxu0 %v10325_v62 }
 0x7ae   :  { %10320 = vmatpush1.bf16.msra.mxu1 %v10319_v45 }
 0x7af   :  { %10322 = vmatprep.subr.bf16.mxu1 %v10321_v2 }
 0x7b2   :  { %10324 = vmatpush1.bf16.msra.mxu1 %v10323_v52  ;;  %v7502_v52 = vld [vmem:[%s15673_s4 + $0x1ce8] sm:$0xff] }
 0x7b3   :  { %10358 = vmatprep.subr.bf16.mxu1 %v10357_v11  ;;  %v7493_v11 = vld [vmem:[%s15673_s4 + $0x1ca0] sm:$0xff] }
 0x858   :  { %v8320_v13 = vpop.f32.mrb[24].mxu1  ;;  %v8355_v18 = vpop.f32.mrb[26].mxu0 }
 0x859   :  { %v8321_v41 = vpop.f32.mrb[25].mxu1  ;;  %v8356_v30 = vpop.f32.mrb[27].mxu0 }
 0x85a   :  { %v8322_v45 = vadd.f32 %v8321_v41, %v8320_v13  ;;  %v8357_v31 = vadd.f32 %v8356_v30, %v8355_v18  ;;  %v7501_v13 = vld [vmem:[%s15673_s4 + $0x1ce0] sm:$0xff]  ;;  %v10329_v41 = vpack.c.bf16 %v7502_v52, %v7494_v22  ;;  %v10361_v30 = vpack.c.bf16 %v7504_v20, %v7496_v57  ;;  %v7511_v22 = vld [vmem:[%s15673_s4 + $0x1d30] sm:$0xff]  ;;  %v7526_v57 = vld [vmem:[%s15673_s4 + $0x1da8] sm:$0xff] }
 0x85b   :  { %v10331_v43 = vpack.c.bf16 %v7501_v13, %v7493_v11  ;;  %v7519_v52 = vld [vmem:[%s15673_s4 + $0x1d70] sm:$0xff]  ;;  %v7534_v20 = vld [vmem:[%s15673_s4 + $0x1de8] sm:$0xff]  ;;  %v7525_v13 = vld [vmem:[%s15673_s4 + $0x1da0] sm:$0xff] }
 0x85c   :  { %v4886_v32 = vadd.f32 %v14145_v58, %v8322_v45  ;;  %v7479_v58 = vld [vmem:[%s15673_s4 + $0x1c30] sm:$0xff]  ;;  %v10367_v11 = vpack.c.bf16 %v7519_v52, %v7511_v22 }
 0x85d   :  { %v10359_v0 = vpack.c.bf16 %v7487_v50, %v7479_v58  ;;  %v7495_v45 = vld [vmem:[%s15673_s4 + $0x1cb0] sm:$0xff] }
 0x85e   :  { %v4956_v53 = vadd.f32 %v8357_v31, %v4886_v32  ;;  %v7503_v31 = vld [vmem:[%s15673_s4 + $0x1cf0] sm:$0xff]  ;;  %v7510_v32 = vld [vmem:[%s15673_s4 + $0x1d28] sm:$0xff] }
 0x85f   :  { %v10363_v44 = vpack.c.bf16 %v7503_v31, %v7495_v45  ;;  %v7527_v31 = vld [vmem:[%s15673_s4 + $0x1db0] sm:$0xff] }
 0x860   :  { %v7543_v52 = vld [vmem:[%s15673_s4 + $0x1e30] sm:$0xff] }
 0x868   :  { %v5025_v37 = vpop.f32.mrb[26].mxu1 }
 0x869   :  { %v5026_v2 = vadd.f32 %v5025_v37, %v4956_v53  ;;  %v8737_v1 = vpop.f32.mrb[27].mxu1  ;;  %v7518_v53 = vld [vmem:[%s15673_s4 + $0x1d68] sm:$0xff]  ;;  %v7512_v37 = vld [vmem:[%s15673_s4 + $0x1d38] sm:$0xff] }
 0x86a   :  { %v7517_v1 = vld [vmem:[%s15673_s4 + $0x1d60] sm:$0xff]  ;;  %v10333_v58 = vpack.c.bf16 %v7518_v53, %v7510_v32  ;;  %v7535_v32 = vld [vmem:[%s15673_s4 + $0x1df0] sm:$0xff]  ;;  %v7542_v53 = vld [vmem:[%s15673_s4 + $0x1e28] sm:$0xff] }
 0x86b   :  { %v5029_v62 = vmax.f32 %v5026_v2, 0.0  ;;  %v7509_v2 = vld [vmem:[%s15673_s4 + $0x1d20] sm:$0xff] }
 0x86d   :  { %v14630_v18 = vmul.f32 %v7472_v42, %v5029_v62  ;;  %v7520_v42 = vld [vmem:[%s15673_s4 + $0x1d78] sm:$0xff] }
 0x86e   :  { %v10365_v50 = vpack.c.bf16 %v7520_v42, %v7512_v37  ;;  %v7528_v62 = vld [vmem:[%s15673_s4 + $0x1db8] sm:$0xff]  ;;  %v7550_v37 = vld [vmem:[%s15673_s4 + $0x1e68] sm:$0xff] }
 0x86f   :  { %5227 = vmatmul.mubr.f32.vlgmr.msra.gmra.mrb[6].mxu0 %v14630_v18  ;;  %5298 = vmatmul.mubr.f32.vlgmr.msra.gmra.mrb[6].mxu1 %v14630_v18  ;;  %v7544_v42 = vld [vmem:[%s15673_s4 + $0x1e38] sm:$0xff] }
 0x870   :  { %10328 = vmatpush1.bf16.msra.mxu0 %v10327_v40  ;;  %10360 = vmatpush1.bf16.msra.mxu1 %v10359_v0  ;;  %v7536_v40 = vld [vmem:[%s15673_s4 + $0x1df8] sm:$0xff]  ;;  %v10335_v0 = vpack.c.bf16 %v7517_v1, %v7509_v2  ;;  %v10371_v2 = vpack.c.bf16 %v7535_v32, %v7527_v31  ;;  %v7541_v1 = vld [vmem:[%s15673_s4 + $0x1e20] sm:$0xff]  ;;  %v7559_v32 = vld [vmem:[%s15673_s4 + $0x1eb0] sm:$0xff] }
 0x871   :  { %10330 = vmatprep.subr.bf16.mxu0 %v10329_v41  ;;  %10362 = vmatprep.subr.bf16.mxu1 %v10361_v30  ;;  %v7533_v41 = vld [vmem:[%s15673_s4 + $0x1de0] sm:$0xff]  ;;  %v10337_v30 = vpack.c.bf16 %v7534_v20, %v7526_v57  ;;  %v10369_v45 = vpack.c.bf16 %v7536_v40, %v7528_v62  ;;  %v7551_v57 = vld [vmem:[%s15673_s4 + $0x1e70] sm:$0xff]  ;;  %v7558_v20 = vld [vmem:[%s15673_s4 + $0x1ea8] sm:$0xff] }
 0x872   :  { %5368 = vmatprep.mubr.f32.mxu0 %v10832_v27  ;;  %5439 = vmatprep.mubr.f32.mxu1 %v10832_v27  ;;  %v7566_v62 = vld [vmem:[%s15673_s4 + $0x1ee8] sm:$0xff]  ;;  %v7560_v40 = vld [vmem:[%s15673_s4 + $0x1eb8] sm:$0xff] }
 0x874   :  { %10332 = vmatpush1.bf16.msra.mxu0 %v10331_v43  ;;  %10364 = vmatpush1.bf16.msra.mxu1 %v10363_v44  ;;  %v7552_v43 = vld [vmem:[%s15673_s4 + $0x1e78] sm:$0xff]  ;;  %v10339_v44 = vpack.c.bf16 %v7533_v41, %v7525_v13  ;;  %v10375_v13 = vpack.c.bf16 %v7551_v57, %v7543_v52  ;;  %v7557_v41 = vld [vmem:[%s15673_s4 + $0x1ea0] sm:$0xff]  ;;  %v7575_v57 = vld [vmem:[%s15673_s4 + $0x1f30] sm:$0xff] }
 0x875   :  { %10334 = vmatprep.subr.bf16.mxu0 %v10333_v58  ;;  %10366 = vmatprep.subr.bf16.mxu1 %v10365_v50  ;;  %v7549_v58 = vld [vmem:[%s15673_s4 + $0x1e60] sm:$0xff]  ;;  %v10341_v50 = vpack.c.bf16 %v7550_v37, %v7542_v53  ;;  %v10373_v22 = vpack.c.bf16 %v7552_v43, %v7544_v42  ;;  %v7567_v53 = vld [vmem:[%s15673_s4 + $0x1ef0] sm:$0xff]  ;;  %v7574_v37 = vld [vmem:[%s15673_s4 + $0x1f28] sm:$0xff] }
 0x876   :  { %v7582_v42 = vld [vmem:[%s15673_s4 + $0x1f68] sm:$0xff]  ;;  %v7576_v43 = vld [vmem:[%s15673_s4 + $0x1f38] sm:$0xff] }
 0x878   :  { %10336 = vmatpush1.bf16.msra.mxu0 %v10335_v0  ;;  %10368 = vmatpush1.bf16.msra.mxu1 %v10367_v11  ;;  %v7568_v0 = vld [vmem:[%s15673_s4 + $0x1ef8] sm:$0xff]  ;;  %v10343_v11 = vpack.c.bf16 %v7549_v58, %v7541_v1  ;;  %v10379_v1 = vpack.c.bf16 %v7567_v53, %v7559_v32  ;;  %v7573_v58 = vld [vmem:[%s15673_s4 + $0x1f20] sm:$0xff] }
 0x879   :  { %10338 = vmatprep.subr.bf16.mxu0 %v10337_v30  ;;  %10370 = vmatprep.subr.bf16.mxu1 %v10369_v45  ;;  %v7565_v30 = vld [vmem:[%s15673_s4 + $0x1ee0] sm:$0xff]  ;;  %v10345_v45 = vpack.c.bf16 %v7566_v62, %v7558_v20  ;;  %v10377_v31 = vpack.c.bf16 %v7568_v0, %v7560_v40  ;;  %v7583_v20 = vld [vmem:[%s15673_s4 + $0x1f70] sm:$0xff]  ;;  %v7590_v62 = vld [vmem:[%s15673_s4 + $0x1fa8] sm:$0xff] }
 0x87a   :  { %v7598_v40 = vld [vmem:[%s15673_s4 + $0x1fe8] sm:$0xff]  ;;  %v7592_v0 = vld [vmem:[%s15673_s4 + $0x1fb8] sm:$0xff]  ;;  %v7597_v53 = vld [vmem:[%s15673_s4 + $0x1fe0] sm:$0xff] }
 0x87c   :  { %10340 = vmatpush1.bf16.msra.mxu0 %v10339_v44  ;;  %10372 = vmatpush1.bf16.msra.mxu1 %v10371_v2  ;;  %v7584_v44 = vld [vmem:[%s15673_s4 + $0x1f78] sm:$0xff]  ;;  %v10347_v2 = vpack.c.bf16 %v7565_v30, %v7557_v41  ;;  %v10383_v30 = vpack.c.bf16 %v7583_v20, %v7575_v57 }
 0x87d   :  { %10342 = vmatprep.subr.bf16.mxu0 %v10341_v50  ;;  %10374 = vmatprep.subr.bf16.mxu1 %v10373_v22  ;;  %v7581_v50 = vld [vmem:[%s15673_s4 + $0x1f60] sm:$0xff]  ;;  %v10349_v22 = vpack.c.bf16 %v7582_v42, %v7574_v37  ;;  %v10381_v52 = vpack.c.bf16 %v7584_v44, %v7576_v43  ;;  %v7591_v37 = vld [vmem:[%s15673_s4 + $0x1fb0] sm:$0xff]  ;;  %v7657_v57 = vld [vmem:[%s15673_s4 + $0x2198] sm:$0xff] }
 0x87e   :  { %v10351_v41 = vpack.c.bf16 %v7581_v50, %v7573_v58  ;;  %v7599_v42 = vld [vmem:[%s15673_s4 + $0x1ff0] sm:$0xff] }
 0x880   :  { %10344 = vmatpush1.bf16.msra.mxu0 %v10343_v11  ;;  %10376 = vmatpush1.bf16.msra.mxu1 %v10375_v13  ;;  %v7600_v11 = vld [vmem:[%s15673_s4 + $0x1ff8] sm:$0xff]  ;;  %v7601_v13 = vld [vmem:[%s15669_s0 + $0x50] sm:$0xff] }
 0x881   :  { %10346 = vmatprep.subr.bf16.mxu0 %v10345_v45  ;;  %10378 = vmatprep.subr.bf16.mxu1 %v10377_v31  ;;  %v7589_v45 = vld [vmem:[%s15673_s4 + $0x1fa0] sm:$0xff]  ;;  %v10353_v31 = vpack.c.bf16 %v7598_v40, %v7590_v62  ;;  %v10385_v32 = vpack.c.bf16 %v7600_v11, %v7592_v0  ;;  %v5459_v43 = vcombine.high %v7601_v13, %v7601_v13  ;;  %v7665_v62 = vld [vmem:[%s15673_s4 + $0x21d8] sm:$0xff] }
 0x882   :  { %v10355_v44 = vpack.c.bf16 %v7597_v53, %v7589_v45  ;;  %v7654_v40 = vld [vmem:[%s15673_s4 + $0x2180] sm:$0xff]  ;;  %v10509_v11 = vpack.c.bf16 %v7665_v62, %v7657_v57  ;;  %v7673_v53 = vld [vmem:[%s15673_s4 + $0x2218] sm:$0xff] }
 0x883   :  { %v5473_v58 = vrot.slane %v5459_v43, %v11090_v14  ;;  %v7662_v0 = vld [vmem:[%s15673_s4 + $0x21c0] sm:$0xff]  ;;  %v7613_v57 = vld [vmem:[%s15673_s4 + $0x2038] sm:$0xff] }
 0x884   :  { %10348 = vmatpush1.bf16.msra.mxu0 %v10347_v2  ;;  %10380 = vmatpush1.bf16.msra.mxu1 %v10379_v1  ;;  %v10387_v2 = vpack.c.bf16 %v7599_v42, %v7591_v37  ;;  %v5466_v1 = vrot.slane %v7601_v13, %v11090_v14  ;;  %v10479_v13 = vpack.c.bf16 %v7662_v0, %v7654_v40  ;;  %v7681_v42 = vld [vmem:[%s15673_s4 + $0x2258] sm:$0xff]  ;;  %v7670_v43 = vld [vmem:[%s15673_s4 + $0x2200] sm:$0xff] }
 0x885   :  { %10350 = vmatprep.subr.bf16.mxu0 %v10349_v22  ;;  %10382 = vmatprep.subr.bf16.mxu1 %v10381_v52  ;;  %v5475_v22 = vcombine.high %v5473_v58, %v5473_v58  ;;  %v7663_v52 = vld [vmem:[%s15673_s4 + $0x21c8] sm:$0xff] }
 0x886   :  { %v5474_v50 = vcombine.high %v5466_v1, %v5466_v1 }
 0x888   :  { %10352 = vmatpush1.bf16.msra.mxu0 %v10351_v41  ;;  %10384 = vmatpush1.bf16.msra.mxu1 %v10383_v30  ;;  %v7656_v41 = vld [vmem:[%s15673_s4 + $0x2190] sm:$0xff] }
 0x889   :  { %10354 = vmatprep.subr.bf16.mxu0 %v10353_v31  ;;  %10386 = vmatprep.subr.bf16.mxu1 %v10385_v32  ;;  %v7664_v30 = vld [vmem:[%s15673_s4 + $0x21d0] sm:$0xff]  ;;  %v7671_v31 = vld [vmem:[%s15673_s4 + $0x2208] sm:$0xff] }
 0x88a   :  { %v10511_v45 = vpack.c.bf16 %v7664_v30, %v7656_v41  ;;  %v7679_v32 = vld [vmem:[%s15673_s4 + $0x2248] sm:$0xff] }
 0x88b   :  { %v10481_v37 = vpack.c.bf16 %v7679_v32, %v7671_v31 }
 0x88c   :  { %10356 = vmatpush1.bf16.msra.mxu0 %v10355_v44  ;;  %10388 = vmatpush1.bf16.msra.mxu1 %v10387_v2  ;;  %v7678_v44 = vld [vmem:[%s15673_s4 + $0x2240] sm:$0xff]  ;;  %v10513_v2 = vpack.c.bf16 %v7681_v42, %v7673_v53 }
 0x88d   :  { %10390 = vmatprep.subr.bf16.mxu0 %v10893_v3  ;;  %10422 = vmatprep.subr.bf16.mxu1 %v10906_v8  ;;  %v7609_v3 = vld [vmem:[%s15673_s4 + $0x2018] sm:$0xff]  ;;  %v7610_v42 = vld [vmem:[%s15673_s4 + $0x2020] sm:$0xff] }
 0x88f   :  { %5369 = vmatmul.mubr.f32.vlgmr.msra.gmra.mrb[8].mxu0 %v14630_v18  ;;  %5440 = vmatmul.mubr.f32.vlgmr.msra.gmra.mrb[8].mxu1 %v14630_v18  ;;  %v7655_v18 = vld [vmem:[%s15673_s4 + $0x2188] sm:$0xff] }
 0x890   :  { %10392 = vmatpush3.bf16.msra.mxu0 %v10904_v7  ;;  %10424 = vmatpush3.bf16.msra.mxu1 %v10918_v12  ;;  %v7617_v7 = vld [vmem:[%s15673_s4 + $0x2058] sm:$0xff]  ;;  %v7608_v12 = vld [vmem:[%s15673_s4 + $0x2010] sm:$0xff]  ;;  %v10477_v20 = vpack.c.bf16 %v7663_v52, %v7655_v18  ;;  %v7619_v18 = vld [vmem:[%s15673_s4 + $0x2068] sm:$0xff] }
 0x891   :  { %10394 = vmatprep.subr.bf16.mxu0 %v10931_v16  ;;  %10426 = vmatprep.subr.bf16.mxu1 %v10945_v21  ;;  %v10497_v8 = vpack.c.bf16 %v7617_v7, %v7609_v3  ;;  %v7616_v16 = vld [vmem:[%s15673_s4 + $0x2050] sm:$0xff]  ;;  %v7633_v21 = vld [vmem:[%s15673_s4 + $0x20d8] sm:$0xff]  ;;  %v7695_v7 = vld [vmem:[%s15673_s4 + $0x22c8] sm:$0xff] }
 0x892   :  { %5553 = vmatprep.mubr.f32.mxu0 %v5474_v50  ;;  %5623 = vmatprep.mubr.f32.mxu1 %v5475_v22  ;;  %v7680_v50 = vld [vmem:[%s15673_s4 + $0x2250] sm:$0xff]  ;;  %v7687_v22 = vld [vmem:[%s15673_s4 + $0x2288] sm:$0xff] }
 0x894   :  { %10396 = vmatpush3.bf16.msra.mxu0 %v10933_v17  ;;  %10428 = vmatpush3.bf16.msra.mxu1 %v10957_v25  ;;  %v7625_v17 = vld [vmem:[%s15673_s4 + $0x2098] sm:$0xff]  ;;  %v10499_v25 = vpack.c.bf16 %v7616_v16, %v7608_v12  ;;  %v10485_v16 = vpack.c.bf16 %v7695_v7, %v7687_v22  ;;  %v7635_v22 = vld [vmem:[%s15673_s4 + $0x20e8] sm:$0xff] }
 0x895   :  { %10398 = vmatprep.subr.bf16.mxu0 %v10959_v26  ;;  %10430 = vmatprep.subr.bf16.mxu1 %v10983_v34  ;;  %v10501_v26 = vpack.c.bf16 %v7633_v21, %v7625_v17  ;;  %v7632_v34 = vld [vmem:[%s15673_s4 + $0x20d0] sm:$0xff]  ;;  %v7697_v12 = vld [vmem:[%s15673_s4 + $0x22d8] sm:$0xff]  ;;  %v7686_v21 = vld [vmem:[%s15673_s4 + $0x2280] sm:$0xff] }
 0x896   :  { %v7637_v7 = vld [vmem:[%s15673_s4 + $0x20f8] sm:$0xff] }
 0x898   :  { %10400 = vmatpush3.bf16.msra.mxu0 %v10981_v33  ;;  %10432 = vmatpush3.bf16.msra.mxu1 %v10996_v38  ;;  %v7624_v33 = vld [vmem:[%s15673_s4 + $0x2090] sm:$0xff]  ;;  %v7641_v38 = vld [vmem:[%s15673_s4 + $0x2118] sm:$0xff] }
 0x899   :  { %10402 = vmatprep.subr.bf16.mxu0 %v10998_v39  ;;  %10434 = vmatprep.subr.bf16.mxu1 %v11010_v46  ;;  %v7649_v39 = vld [vmem:[%s15673_s4 + $0x2158] sm:$0xff]  ;;  %v10503_v46 = vpack.c.bf16 %v7632_v34, %v7624_v33  ;;  %v7696_v34 = vld [vmem:[%s15673_s4 + $0x22d0] sm:$0xff] }
 0x89c   :  { %10404 = vmatpush3.bf16.msra.mxu0 %v11025_v51  ;;  %10436 = vmatpush3.bf16.msra.mxu1 %v11035_v54  ;;  %v10505_v51 = vpack.c.bf16 %v7649_v39, %v7641_v38  ;;  %v7640_v54 = vld [vmem:[%s15673_s4 + $0x2110] sm:$0xff]  ;;  %v7703_v38 = vld [vmem:[%s15673_s4 + $0x2308] sm:$0xff] }
 0x89d   :  { %10406 = vmatprep.subr.bf16.mxu0 %v11037_v55  ;;  %10438 = vmatprep.subr.bf16.mxu1 %v11051_v61  ;;  %v7648_v55 = vld [vmem:[%s15673_s4 + $0x2150] sm:$0xff]  ;;  %v7711_v39 = vld [vmem:[%s15673_s4 + $0x2348] sm:$0xff] }
 0x89e   :  { %v10507_v61 = vpack.c.bf16 %v7648_v55, %v7640_v54  ;;  %v7705_v54 = vld [vmem:[%s15673_s4 + $0x2318] sm:$0xff] }
 0x89f   :  { %v7713_v55 = vld [vmem:[%s15673_s4 + $0x2358] sm:$0xff] }
 0x8a0   :  { %10408 = vmatpush3.bf16.msra.mxu0 %v11069_v4  ;;  %10440 = vmatpush3.bf16.msra.mxu1 %v11076_v6  ;;  %v7607_v4 = vld [vmem:[%s15673_s4 + $0x2008] sm:$0xff] }
 0x8a1   :  { %10410 = vmatprep.subr.bf16.mxu0 %v11078_v9  ;;  %10442 = vmatprep.subr.bf16.mxu1 %v11093_v15  ;;  %v7615_v6 = vld [vmem:[%s15673_s4 + $0x2048] sm:$0xff]  ;;  %v7606_v15 = vld [vmem:[%s15673_s4 + $0x2000] sm:$0xff] }
 0x8a2   :  { %v10465_v9 = vpack.c.bf16 %v7615_v6, %v7607_v4  ;;  %v10521_v4 = vpack.c.bf16 %v7713_v55, %v7705_v54  ;;  %v7710_v6 = vld [vmem:[%s15673_s4 + $0x2340] sm:$0xff]  ;;  %v7653_v54 = vld [vmem:[%s15673_s4 + $0x2178] sm:$0xff] }
 0x8a4   :  { %10412 = vmatpush3.bf16.msra.mxu0 %v11108_v23  ;;  %10444 = vmatpush3.bf16.msra.mxu1 %v11110_v24  ;;  %v7614_v23 = vld [vmem:[%s15673_s4 + $0x2040] sm:$0xff]  ;;  %v7623_v24 = vld [vmem:[%s15673_s4 + $0x2088] sm:$0xff] }
 0x8a5   :  { %10414 = vmatprep.subr.bf16.mxu0 %v11117_v28  ;;  %10446 = vmatprep.subr.bf16.mxu1 %v11130_v36  ;;  %v7631_v28 = vld [vmem:[%s15673_s4 + $0x20c8] sm:$0xff]  ;;  %v7603_v36 = vld.sshfl [vmem:[%s15669_s0 + $0x58] sm:$0x3 pattern:$0x76325410] }
 0x8a8   :  { %10416 = vmatpush3.bf16.msra.mxu0 %v11149_v47  ;;  %10448 = vmatpush3.bf16.msra.mxu1 %v11153_v48  ;;  %v10467_v47 = vpack.c.bf16 %v7614_v23, %v7606_v15  ;;  %v10469_v48 = vpack.c.bf16 %v7631_v28, %v7623_v24  ;;  %v7712_v15 = vld [vmem:[%s15673_s4 + $0x2350] sm:$0xff]  ;;  %v7719_v28 = vld [vmem:[%s15673_s4 + $0x2388] sm:$0xff] }
 0x8a9   :  { %10418 = vmatprep.subr.bf16.mxu0 %v11155_v49  ;;  %10450 = vmatprep.subr.bf16.mxu1 %v11164_v56  ;;  %v7622_v49 = vld [vmem:[%s15673_s4 + $0x2080] sm:$0xff] }
 0x8aa   :  { %v7630_v56 = vld [vmem:[%s15673_s4 + $0x20c0] sm:$0xff] }
 0x8ac   :  { %10420 = vmatpush3.bf16.msra.mxu0 %v11173_v59  ;;  %10452 = vmatpush3.bf16.msra.mxu1 %v11180_v63  ;;  %v7639_v59 = vld [vmem:[%s15673_s4 + $0x2108] sm:$0xff] }
 0x8ad   :  { %10453 = vmatprep.subr.bf16.mxu0 %v10830_v10  ;;  %10498 = vmatprep.subr.bf16.mxu1 %v10497_v8  ;;  %v7647_v63 = vld [vmem:[%s15673_s4 + $0x2148] sm:$0xff]  ;;  %v7689_v8 = vld [vmem:[%s15673_s4 + $0x2298] sm:$0xff] }
 0x8ae   :  { %v10517_v17 = vpack.c.bf16 %v7697_v12, %v7689_v8 }
 0x8af   :  { %5554 = vmatmul.mubr.f32.vlgmr.msra.gmra.mrb[28].mxu0 %v5466_v1  ;;  %5624 = vmatmul.mubr.f32.vlgmr.msra.gmra.mrb[28].mxu1 %v5473_v58  ;;  %v10483_v1 = vpack.c.bf16 %v7678_v44, %v7670_v43  ;;  %v7672_v58 = vld [vmem:[%s15673_s4 + $0x2210] sm:$0xff]  ;;  %v7618_v43 = vld [vmem:[%s15673_s4 + $0x2060] sm:$0xff] }
 0x8b0   :  { %10455 = vmatpush3.bf16.msra.mxu0 %v11191_v5  ;;  %8754 = vmatprep.mubr.msk.f32.mxu0 %vm10831_vm0, %v10832_v27  ;;  %v10471_v5 = vpack.c.bf16 %v7630_v56, %v7622_v49  ;;  %v10515_v3 = vpack.c.bf16 %v7680_v50, %v7672_v58  ;;  %v7729_v49 = vld [vmem:[%s15673_s4 + $0x23d8] sm:$0xff]  ;;  %v7718_v56 = vld [vmem:[%s15673_s4 + $0x2380] sm:$0xff]  ;;  %v7620_v58 = vld [vmem:[%s15673_s4 + $0x2070] sm:$0xff]  ;;  %v10531_v12 = vpack.c.bf16 %v7618_v43, %v7610_v42 }
 0x8b1   :  { %10456 = vmatprep.subr.bf16.mxu0 %v10830_v10  ;;  %10500 = vmatpush1.bf16.msra.mxu1 %v10499_v25  ;;  %v7694_v25 = vld [vmem:[%s15673_s4 + $0x22c0] sm:$0xff]  ;;  %v7627_v50 = vld [vmem:[%s15673_s4 + $0x20a8] sm:$0xff] }
 0x8b2   :  { %10502 = vmatprep.subr.bf16.mxu1 %v10501_v26  ;;  %5967 = vmatprep.mubr.f32.mxu1 %v10832_v27  ;;  %v7688_v26 = vld [vmem:[%s15673_s4 + $0x2290] sm:$0xff]  ;;  %v10487_v33 = vpack.c.bf16 %v7694_v25, %v7686_v21  ;;  %v7634_v21 = vld [vmem:[%s15673_s4 + $0x20e0] sm:$0xff] }
 0x8b3   :  { %v7690_v42 = vld [vmem:[%s15673_s4 + $0x22a0] sm:$0xff] }
 0x8b4   :  { %10458 = vmatpush3.bf16.msra.mxu0 %v11203_v19  ;;  %v7638_v19 = vld [vmem:[%s15673_s4 + $0x2100] sm:$0xff] }
 0x8b5   :  { %10459 = vmatprep.subr.bf16.mxu0 %v10830_v10  ;;  %10504 = vmatpush1.bf16.msra.mxu1 %v10503_v46  ;;  %v10519_v46 = vpack.c.bf16 %v7696_v34, %v7688_v26  ;;  %v10533_v26 = vpack.c.bf16 %v7635_v22, %v7627_v50  ;;  %v7628_v34 = vld [vmem:[%s15673_s4 + $0x20b0] sm:$0xff]  ;;  %v7698_v43 = vld [vmem:[%s15673_s4 + $0x22e0] sm:$0xff]  ;;  %v7707_v50 = vld [vmem:[%s15673_s4 + $0x2328] sm:$0xff] }
 0x8b6   :  { %10506 = vmatprep.subr.bf16.mxu1 %v10505_v51  ;;  %v10489_v51 = vpack.c.bf16 %v7711_v39, %v7703_v38  ;;  %v7636_v38 = vld [vmem:[%s15673_s4 + $0x20f0] sm:$0xff]  ;;  %v7643_v39 = vld [vmem:[%s15673_s4 + $0x2128] sm:$0xff] }
 0x8b7   :  { %v7715_v22 = vld [vmem:[%s15673_s4 + $0x2368] sm:$0xff] }
 0x8b8   :  { %10461 = vmatpush3.bf16.msra.mxu0 %v11217_v29  ;;  %v7646_v29 = vld [vmem:[%s15673_s4 + $0x2140] sm:$0xff] }
 0x8b9   :  { %10462 = vmatprep.subr.bf16.mxu0 %v10830_v10  ;;  %10508 = vmatpush1.bf16.msra.mxu1 %v10507_v61  ;;  %v10473_v10 = vpack.c.bf16 %v7647_v63, %v7639_v59  ;;  %v7702_v61 = vld [vmem:[%s15673_s4 + $0x2300] sm:$0xff] }
 0x8ba   :  { %10510 = vmatprep.subr.bf16.mxu1 %v10509_v11  ;;  %v10491_v23 = vpack.c.bf16 %v7710_v6, %v7702_v61  ;;  %v7726_v59 = vld [vmem:[%s15673_s4 + $0x23c0] sm:$0xff]  ;;  %v10567_v61 = vpack.c.bf16 %v7636_v38, %v7628_v34  ;;  %v7716_v34 = vld [vmem:[%s15673_s4 + $0x2370] sm:$0xff]  ;;  %v7723_v38 = vld [vmem:[%s15673_s4 + $0x23a8] sm:$0xff] }
 0x8bb   :  { %v7650_v6 = vld [vmem:[%s15673_s4 + $0x2160] sm:$0xff] }
 0x8bc   :  { %10464 = vmatpush3.bf16.msra.mxu0 %v11229_v35  ;;  %v10475_v35 = vpack.c.bf16 %v7646_v29, %v7638_v19  ;;  %v7728_v19 = vld [vmem:[%s15673_s4 + $0x23d0] sm:$0xff] }
 0x8bd   :  { %10466 = vmatprep.subr.bf16.mxu0 %v10465_v9  ;;  %10512 = vmatpush1.bf16.msra.mxu1 %v10511_v45  ;;  %v7704_v9 = vld [vmem:[%s15673_s4 + $0x2310] sm:$0xff]  ;;  %v10804_v45 = vld [vmem:[%s15671_s2] ss:$0 sm:$0xff] }
 0x8be   :  { %10514 = vmatprep.subr.bf16.mxu1 %v10513_v2  ;;  %v10523_v24 = vpack.c.bf16 %v7712_v15, %v7704_v9 }
 0x8bf   :  { %8755 = vmatmul.mubr.msk.f32.vlgmr.msra.gmra.mrb[30].mxu0 %vm144_vm1, %v7603_v36  ;;  %v7727_v36 = vld [vmem:[%s15673_s4 + $0x23c8] sm:$0xff] }
 0x8c0   :  { %10468 = vmatpush1.bf16.msra.mxu0 %v10467_v47  ;;  %5896 = vmatprep.mubr.f32.mxu0 %v10832_v27  ;;  %v7721_v47 = vld [vmem:[%s15673_s4 + $0x2398] sm:$0xff] }
 0x8c1   :  { %10470 = vmatprep.subr.bf16.mxu0 %v10469_v48  ;;  %10516 = vmatpush1.bf16.msra.mxu1 %v10515_v3  ;;  %v10493_v48 = vpack.c.bf16 %v7727_v36, %v7719_v28  ;;  %v10525_v63 = vpack.c.bf16 %v7729_v49, %v7721_v47  ;;  %v7629_v3 = vld [vmem:[%s15673_s4 + $0x20b8] sm:$0xff]  ;;  %v7659_v28 = vld [vmem:[%s15673_s4 + $0x21a8] sm:$0xff] }
 0x8c2   :  { %10518 = vmatprep.subr.bf16.mxu1 %v10517_v17  ;;  %v7626_v17 = vld [vmem:[%s15673_s4 + $0x20a0] sm:$0xff]  ;;  %v7667_v36 = vld [vmem:[%s15673_s4 + $0x21e8] sm:$0xff]  ;;  %v7661_v47 = vld [vmem:[%s15673_s4 + $0x21b8] sm:$0xff] }
 0x8c3   :  { %v10535_v55 = vpack.c.bf16 %v7634_v21, %v7626_v17  ;;  %v7714_v17 = vld [vmem:[%s15673_s4 + $0x2360] sm:$0xff]  ;;  %v10553_v21 = vpack.c.bf16 %v7715_v22, %v7707_v50  ;;  %v6290_v50 = vld [vmem:[%s15676_s7 + $0x1b0] sm:$0xff]  ;;  %v6291_v22 = vld [vmem:[%s15676_s7 + $0x1b8] sm:$0xff] }
 0x8c4   :  { %10472 = vmatpush1.bf16.msra.mxu0 %v10471_v5  ;;  %v10495_v5 = vpack.c.bf16 %v7726_v59, %v7718_v56  ;;  %v7658_v59 = vld [vmem:[%s15673_s4 + $0x21a0] sm:$0xff] }
 0x8c5   :  { %10474 = vmatprep.subr.bf16.mxu0 %v10473_v10  ;;  %10520 = vmatpush1.bf16.msra.mxu1 %v10519_v46  ;;  %v7720_v10 = vld [vmem:[%s15673_s4 + $0x2390] sm:$0xff]  ;;  %v7651_v46 = vld [vmem:[%s15673_s4 + $0x2168] sm:$0xff] }
 0x8c6   :  { %10522 = vmatprep.subr.bf16.mxu1 %v10521_v4  ;;  %v10527_v29 = vpack.c.bf16 %v7728_v19, %v7720_v10  ;;  %v7642_v4 = vld [vmem:[%s15673_s4 + $0x2120] sm:$0xff]  ;;  %v10537_v9 = vpack.c.bf16 %v7651_v46, %v7643_v39  ;;  %v7668_v19 = vld [vmem:[%s15673_s4 + $0x21f0] sm:$0xff]  ;;  %v7731_v39 = vld [vmem:[%s15673_s4 + $0x23e8] sm:$0xff] }
 0x8c7   :  { %v10539_v49 = vpack.c.bf16 %v7650_v6, %v7642_v4  ;;  %v7725_v46 = vld [vmem:[%s15673_s4 + $0x23b8] sm:$0xff]  ;;  %v7730_v4 = vld [vmem:[%s15673_s4 + $0x23e0] sm:$0xff]  ;;  %v10557_v6 = vpack.c.bf16 %v7731_v39, %v7723_v38  ;;  %v6293_v39 = vld [vmem:[%s15676_s7 + $0x1c8] sm:$0xff] }
 0x8c8   :  { %10476 = vmatpush1.bf16.msra.mxu0 %v10475_v35  ;;  %v7611_v35 = vld [vmem:[%s15673_s4 + $0x2028] sm:$0xff]  ;;  %v6292_v38 = vld [vmem:[%s15676_s7 + $0x1c0] sm:$0xff] }
 0x8c9   :  { %10478 = vmatprep.subr.bf16.mxu0 %v10477_v20  ;;  %10524 = vmatpush1.bf16.msra.mxu1 %v10523_v24  ;;  %v10529_v52 = vpack.c.bf16 %v7619_v18, %v7611_v35  ;;  %v7621_v20 = vld [vmem:[%s15673_s4 + $0x2078] sm:$0xff]  ;;  %v7652_v24 = vld [vmem:[%s15673_s4 + $0x2170] sm:$0xff]  ;;  %v7683_v35 = vld [vmem:[%s15673_s4 + $0x2268] sm:$0xff] }
 0x8ca   :  { %10526 = vmatprep.subr.bf16.mxu1 %v10525_v63  ;;  %v10561_v62 = vpack.c.bf16 %v7621_v20, %v7613_v57  ;;  %v7666_v63 = vld [vmem:[%s15673_s4 + $0x21e0] sm:$0xff]  ;;  %v7677_v18 = vld [vmem:[%s15673_s4 + $0x2238] sm:$0xff] }
 0x8cb   :  { %v10543_v57 = vpack.c.bf16 %v7666_v63, %v7658_v59  ;;  %v6237_v59 = vld [vmem:[%s15676_s7 + $0x8] sm:$0xff] }
 0x8cc   :  { %10480 = vmatpush1.bf16.msra.mxu0 %v10479_v13 }
 0x8cd   :  { %10482 = vmatprep.subr.bf16.mxu0 %v10481_v37  ;;  %10528 = vmatpush1.bf16.msra.mxu1 %v10527_v29  ;;  %v7605_v37 = vld [vmem:[%s15672_s3 + $0x10] sm:$0x3]  ;;  %v7675_v29 = vld [vmem:[%s15673_s4 + $0x2228] sm:$0xff] }
 0x8ce   :  { %10562 = vmatprep.subr.bf16.mxu1 %v10561_v62  ;;  %v7674_v62 = vld [vmem:[%s15673_s4 + $0x2220] sm:$0xff] }
 0x8d0   :  { %10484 = vmatpush1.bf16.msra.mxu0 %v10483_v1  ;;  %v7612_v1 = vld [vmem:[%s15673_s4 + $0x2030] sm:$0xff] }
 0x8d1   :  { %10486 = vmatprep.subr.bf16.mxu0 %v10485_v16  ;;  %v10563_v16 = vpack.c.bf16 %v7620_v58, %v7612_v1  ;;  %v7692_v1 = vld [vmem:[%s15673_s4 + $0x22b0] sm:$0xff] }
 0x8d2   :  { %v7700_v58 = vld [vmem:[%s15673_s4 + $0x22f0] sm:$0xff] }
 0x8d4   :  { %10488 = vmatpush1.bf16.msra.mxu0 %v10487_v33  ;;  %v10565_v33 = vpack.c.bf16 %v7637_v7, %v7629_v3  ;;  %v7709_v3 = vld [vmem:[%s15673_s4 + $0x2338] sm:$0xff] }
 0x8d5   :  { %10490 = vmatprep.subr.bf16.mxu0 %v10489_v51  ;;  %v7645_v51 = vld [vmem:[%s15673_s4 + $0x2138] sm:$0xff] }
 0x8d6   :  { %v10569_v15 = vpack.c.bf16 %v7653_v54, %v7645_v51  ;;  %v7717_v7 = vld [vmem:[%s15673_s4 + $0x2378] sm:$0xff] }
 0x8d7   :  { %v7733_v51 = vld [vmem:[%s15673_s4 + $0x23f8] sm:$0xff] }
 0x8d8   :  { %10492 = vmatpush1.bf16.msra.mxu0 %v10491_v23  ;;  %v7644_v23 = vld [vmem:[%s15673_s4 + $0x2130] sm:$0xff] }
 0x8d9   :  { %10494 = vmatprep.subr.bf16.mxu0 %v10493_v48  ;;  %v7669_v48 = vld [vmem:[%s15673_s4 + $0x21f8] sm:$0xff]  ;;  %v10571_v56 = vpack.c.bf16 %v7652_v24, %v7644_v23  ;;  %v7732_v23 = vld [vmem:[%s15673_s4 + $0x23f0] sm:$0xff]  ;;  %v6252_v24 = vld [vmem:[%s15676_s7 + $0x80] sm:$0xff] }
 0x8da   :  { %v10573_v10 = vpack.c.bf16 %v7669_v48, %v7661_v47  ;;  %v6285_v47 = vld [vmem:[%s15676_s7 + $0x188] sm:$0xff] }
 0x8dc   :  { %10496 = vmatpush1.bf16.msra.mxu0 %v10495_v5  ;;  %v10541_v5 = vpack.c.bf16 %v7667_v36, %v7659_v28  ;;  %v6253_v28 = vld [vmem:[%s15676_s7 + $0x88] sm:$0xff]  ;;  %v6284_v36 = vld [vmem:[%s15676_s7 + $0x180] sm:$0xff] }
 0x8dd   :  { %10530 = vmatprep.subr.bf16.mxu0 %v10529_v52  ;;  %v7685_v52 = vld [vmem:[%s15673_s4 + $0x2278] sm:$0xff]  ;;  %v10593_v63 = vpack.c.bf16 %v6253_v28, %v6252_v24  ;;  %v6294_v24 = vld [vmem:[%s15676_s7 + $0x1d0] sm:$0xff] }
 0x8de   :  { %v6295_v28 = vld [vmem:[%s15676_s7 + $0x1d8] sm:$0xff] }
 0x982   :  { %v8399_v40 = vpop.f32.mrb[28].mxu0  ;;  %v8434_v0 = vpop.f32.mrb[28].mxu1 }
 0x983   :  { %v8400_v11 = vpop.f32.mrb[29].mxu0  ;;  %v8435_v13 = vpop.f32.mrb[29].mxu1 }
 0x984   :  { %v8401_v41 = vadd.f32 %v8400_v11, %v8399_v40  ;;  %v8436_v30 = vadd.f32 %v8435_v13, %v8434_v0  ;;  %v7682_v40 = vld [vmem:[%s15673_s4 + $0x2260] sm:$0xff]  ;;  %v10545_v0 = vpack.c.bf16 %v7683_v35, %v7675_v29  ;;  %v10577_v11 = vpack.c.bf16 %v7685_v52, %v7677_v18  ;;  %v7676_v13 = vld [vmem:[%s15673_s4 + $0x2230] sm:$0xff]  ;;  %v6255_v29 = vld [vmem:[%s15676_s7 + $0x98] sm:$0xff] }
 0x985   :  { %v6286_v35 = vld [vmem:[%s15676_s7 + $0x190] sm:$0xff]  ;;  %v6287_v18 = vld [vmem:[%s15676_s7 + $0x198] sm:$0xff] }
 0x986   :  { %v5556_v31 = vadd.f32 %v10804_v45, %v8401_v41  ;;  %v7684_v41 = vld [vmem:[%s15673_s4 + $0x2270] sm:$0xff]  ;;  %v7699_v45 = vld [vmem:[%s15673_s4 + $0x22e8] sm:$0xff] }
 0x988   :  { %v5626_v32 = vadd.f32 %v8436_v30, %v5556_v31  ;;  %v7691_v30 = vld [vmem:[%s15673_s4 + $0x22a8] sm:$0xff]  ;;  %v7693_v31 = vld [vmem:[%s15673_s4 + $0x22b8] sm:$0xff] }
 0x992   :  { %v5695_v53 = vpop.f32.mrb[30].mxu0 }
 0x993   :  { %v5696_v44 = vadd.f32 %v5695_v53, %v5626_v32  ;;  %v8756_v2 = vpop.f32.mrb[31].mxu0  ;;  %v7701_v32 = vld [vmem:[%s15673_s4 + $0x22f8] sm:$0xff]  ;;  %v10547_v53 = vpack.c.bf16 %v7682_v40, %v7674_v62 }
 0x994   :  { %v10581_v2 = vpack.c.bf16 %v7701_v32, %v7693_v31  ;;  %v6239_v62 = vld [vmem:[%s15676_s7 + $0x18] sm:$0xff]  ;;  %v6289_v31 = vld [vmem:[%s15676_s7 + $0x1a8] sm:$0xff] }
 0x995   :  { %v5699_v8 = vmax.f32 %v5696_v44, 0.0  ;;  %v10549_v44 = vpack.c.bf16 %v7699_v45, %v7691_v30  ;;  %v6257_v30 = vld [vmem:[%s15676_s7 + $0xa8] sm:$0xff]  ;;  %v6288_v45 = vld [vmem:[%s15676_s7 + $0x1a0] sm:$0xff] }
 0x997   :  { %v15081_v25 = vmul.f32 %v7605_v37, %v5699_v8  ;;  %v10579_v37 = vpack.c.bf16 %v7684_v41, %v7676_v13  ;;  %v10551_v8 = vpack.c.bf16 %v7698_v43, %v7690_v42  ;;  %v6271_v13 = vld [vmem:[%s15676_s7 + $0x118] sm:$0xff]  ;;  %v6256_v41 = vld [vmem:[%s15676_s7 + $0xa0] sm:$0xff]  ;;  %v6241_v42 = vld [vmem:[%s15676_s7 + $0x28] sm:$0xff] }
 0x998   :  { %v10601_v43 = vpack.c.bf16 %v6257_v30, %v6256_v41  ;;  %v6266_v41 = vld [vmem:[%s15676_s7 + $0xf0] sm:$0xff]  ;;  %v6267_v30 = vld [vmem:[%s15676_s7 + $0xf8] sm:$0xff] }
 0x999   :  { %5897 = vmatmul.mubr.f32.vlgmr.msra.gmra.mrb[6].mxu0 %v15081_v25  ;;  %5968 = vmatmul.mubr.f32.vlgmr.msra.gmra.mrb[6].mxu1 %v15081_v25 }
 0x99a   :  { %10532 = vmatpush1.bf16.msra.mxu0 %v10531_v12  ;;  %10564 = vmatpush1.bf16.msra.mxu1 %v10563_v16  ;;  %v10583_v12 = vpack.c.bf16 %v7700_v58, %v7692_v1  ;;  %v7706_v16 = vld [vmem:[%s15673_s4 + $0x2320] sm:$0xff]  ;;  %v6258_v1 = vld [vmem:[%s15676_s7 + $0xb0] sm:$0xff]  ;;  %v6259_v58 = vld [vmem:[%s15676_s7 + $0xb8] sm:$0xff] }
 0x99b   :  { %10534 = vmatprep.subr.bf16.mxu0 %v10533_v26  ;;  %10566 = vmatprep.subr.bf16.mxu1 %v10565_v33  ;;  %v10585_v26 = vpack.c.bf16 %v7717_v7, %v7709_v3  ;;  %v7708_v33 = vld [vmem:[%s15673_s4 + $0x2330] sm:$0xff]  ;;  %v10555_v54 = vpack.c.bf16 %v7714_v17, %v7706_v16  ;;  %v10605_v16 = vpack.c.bf16 %v6259_v58, %v6258_v1  ;;  %v6316_v1 = vld [vmem:[%s15676_s7 + $0x280] sm:$0xff]  ;;  %v6317_v58 = vld [vmem:[%s15676_s7 + $0x288] sm:$0xff] }
 0x99c   :  { %6038 = vmatprep.mubr.f32.mxu0 %v10832_v27  ;;  %6109 = vmatprep.mubr.f32.mxu1 %v10832_v27  ;;  %v7660_v27 = vld [vmem:[%s15673_s4 + $0x21b0] sm:$0xff]  ;;  %v10637_v17 = vpack.c.bf16 %v6291_v22, %v6290_v50  ;;  %v6348_v50 = vld [vmem:[%s15676_s7 + $0x380] sm:$0xff]  ;;  %v10657_v22 = vpack.c.bf16 %v6317_v58, %v6316_v1 }
 0x99d   :  { %v10575_v20 = vpack.c.bf16 %v7668_v19, %v7660_v27  ;;  %v6269_v27 = vld [vmem:[%s15676_s7 + $0x108] sm:$0xff]  ;;  %v6254_v19 = vld [vmem:[%s15676_s7 + $0x90] sm:$0xff]  ;;  %v6336_v58 = vld [vmem:[%s15676_s7 + $0x320] sm:$0xff] }
 0x99e   :  { %10536 = vmatpush1.bf16.msra.mxu0 %v10535_v55  ;;  %10568 = vmatpush1.bf16.msra.mxu1 %v10567_v61  ;;  %v10587_v55 = vpack.c.bf16 %v7716_v34, %v7708_v33  ;;  %v7722_v61 = vld [vmem:[%s15673_s4 + $0x23a0] sm:$0xff]  ;;  %v10597_v40 = vpack.c.bf16 %v6255_v29, %v6254_v19  ;;  %v6261_v34 = vld [vmem:[%s15676_s7 + $0xc8] sm:$0xff] }
 0x99f   :  { %10538 = vmatprep.subr.bf16.mxu0 %v10537_v9  ;;  %10570 = vmatprep.subr.bf16.mxu1 %v10569_v15  ;;  %v10589_v9 = vpack.c.bf16 %v7733_v51, %v7725_v46  ;;  %v7724_v15 = vld [vmem:[%s15673_s4 + $0x23b0] sm:$0xff]  ;;  %v10559_v48 = vpack.c.bf16 %v7730_v4, %v7722_v61  ;;  %v6260_v33 = vld [vmem:[%s15676_s7 + $0xc0] sm:$0xff]  ;;  %v10641_v4 = vpack.c.bf16 %v6293_v39, %v6292_v38  ;;  %v6265_v29 = vld [vmem:[%s15676_s7 + $0xe8] sm:$0xff] }
 0x9a0   :  { %v10609_v61 = vpack.c.bf16 %v6261_v34, %v6260_v33  ;;  %v6264_v19 = vld [vmem:[%s15676_s7 + $0xe0] sm:$0xff]  ;;  %v6140_v33 = vsub.s32 3, %v11048_v60 }
 0x9a2   :  { %10540 = vmatpush1.bf16.msra.mxu0 %v10539_v49  ;;  %10572 = vmatpush1.bf16.msra.mxu1 %v10571_v56  ;;  %v10591_v49 = vpack.c.bf16 %v7732_v23, %v7724_v15  ;;  %v6236_v56 = vld [vmem:[%s15676_s7] sm:$0xff]  ;;  %v6262_v15 = vld [vmem:[%s15676_s7 + $0xd0] sm:$0xff]  ;;  %v6263_v23 = vld [vmem:[%s15676_s7 + $0xd8] sm:$0xff] }
 0x9a3   :  { %10542 = vmatprep.subr.bf16.mxu0 %v10541_v5  ;;  %10574 = vmatprep.subr.bf16.mxu1 %v10573_v10  ;;  %v10625_v5 = vpack.c.bf16 %v6285_v47, %v6284_v36  ;;  %v6268_v10 = vld [vmem:[%s15676_s7 + $0x100] sm:$0xff]  ;;  %v10595_v52 = vpack.c.bf16 %v6237_v59, %v6236_v56  ;;  %v10645_v56 = vpack.c.bf16 %v6295_v28, %v6294_v24  ;;  %v6247_v59 = vld [vmem:[%s15676_s7 + $0x58] sm:$0xff] }
 0x9a6   :  { %10544 = vmatpush1.bf16.msra.mxu0 %v10543_v57  ;;  %10576 = vmatpush1.bf16.msra.mxu1 %v10575_v20  ;;  %v10627_v57 = vpack.c.bf16 %v6269_v27, %v6268_v10  ;;  %v6238_v20 = vld [vmem:[%s15676_s7 + $0x10] sm:$0xff] }
 0x9a7   :  { %10546 = vmatprep.subr.bf16.mxu0 %v10545_v0  ;;  %10578 = vmatprep.subr.bf16.mxu1 %v10577_v11  ;;  %v10629_v0 = vpack.c.bf16 %v6287_v18, %v6286_v35  ;;  %v6270_v11 = vld [vmem:[%s15676_s7 + $0x110] sm:$0xff]  ;;  %v10599_v32 = vpack.c.bf16 %v6239_v62, %v6238_v20  ;;  %v6296_v35 = vld [vmem:[%s15676_s7 + $0x1e0] sm:$0xff]  ;;  %v10617_v18 = vpack.c.bf16 %v6265_v29, %v6264_v19  ;;  %v6249_v62 = vld [vmem:[%s15676_s7 + $0x68] sm:$0xff] }
 0x9a8   :  { %v6319_v19 = vld [vmem:[%s15676_s7 + $0x298] sm:$0xff]  ;;  %v6350_v29 = vld [vmem:[%s15676_s7 + $0x390] sm:$0xff] }
 0x9aa   :  { %10548 = vmatpush1.bf16.msra.mxu0 %v10547_v53  ;;  %10580 = vmatpush1.bf16.msra.mxu1 %v10579_v37  ;;  %v10631_v53 = vpack.c.bf16 %v6271_v13, %v6270_v11  ;;  %v6240_v37 = vld [vmem:[%s15676_s7 + $0x20] sm:$0xff]  ;;  %v6281_v11 = vld [vmem:[%s15676_s7 + $0x168] sm:$0xff] }
 0x9ab   :  { %10550 = vmatprep.subr.bf16.mxu0 %v10549_v44  ;;  %10582 = vmatprep.subr.bf16.mxu1 %v10581_v2  ;;  %v10633_v44 = vpack.c.bf16 %v6289_v31, %v6288_v45  ;;  %v6273_v2 = vld [vmem:[%s15676_s7 + $0x128] sm:$0xff]  ;;  %v10603_v3 = vpack.c.bf16 %v6241_v42, %v6240_v37  ;;  %v6298_v45 = vld [vmem:[%s15676_s7 + $0x1f0] sm:$0xff]  ;;  %v10621_v31 = vpack.c.bf16 %v6267_v30, %v6266_v41  ;;  %v6251_v37 = vld [vmem:[%s15676_s7 + $0x78] sm:$0xff] }
 0x9ac   :  { %v6334_v30 = vld [vmem:[%s15676_s7 + $0x310] sm:$0xff] }
 0x9ae   :  { %10552 = vmatpush1.bf16.msra.mxu0 %v10551_v8  ;;  %10584 = vmatpush1.bf16.msra.mxu1 %v10583_v12  ;;  %v6242_v8 = vld [vmem:[%s15676_s7 + $0x30] sm:$0xff]  ;;  %v6243_v12 = vld [vmem:[%s15676_s7 + $0x38] sm:$0xff] }
 0x9af   :  { %10554 = vmatprep.subr.bf16.mxu0 %v10553_v21  ;;  %10586 = vmatprep.subr.bf16.mxu1 %v10585_v26  ;;  %v6274_v21 = vld [vmem:[%s15676_s7 + $0x130] sm:$0xff]  ;;  %v6275_v26 = vld [vmem:[%s15676_s7 + $0x138] sm:$0xff]  ;;  %v10607_v46 = vpack.c.bf16 %v6243_v12, %v6242_v8  ;;  %v6182_v8 = vld [vmem:[%s15675_s6] sm:$0xff]  ;;  %v6128_v12 = vsub.s32 0, %v11048_v60 }
 0x9b0   :  { %v10639_v51 = vpack.c.bf16 %v6275_v26, %v6274_v21  ;;  %v6186_v21 = vcombine.high %v6182_v8, %v6182_v8  ;;  %v6132_v26 = vsub.s32 1, %v11048_v60  ;;  %v6193_v39 = vrot.slane %v6182_v8, %v11090_v14  ;;  %v6355_v8 = vld [vmem:[%s15676_s7 + $0x3b8] sm:$0xff] }
 0x9b2   :  { %10556 = vmatpush1.bf16.msra.mxu0 %v10555_v54  ;;  %10588 = vmatpush1.bf16.msra.mxu1 %v10587_v55  ;;  %v6244_v54 = vld [vmem:[%s15676_s7 + $0x40] sm:$0xff]  ;;  %v6245_v55 = vld [vmem:[%s15676_s7 + $0x48] sm:$0xff]  ;;  %v6201_v24 = vcombine.high %v6193_v39, %v6193_v39 }
 0x9b3   :  { %10558 = vmatprep.subr.bf16.mxu0 %v10557_v6  ;;  %10590 = vmatprep.subr.bf16.mxu1 %v10589_v9  ;;  %v6276_v6 = vld [vmem:[%s15676_s7 + $0x140] sm:$0xff]  ;;  %v6277_v9 = vld [vmem:[%s15676_s7 + $0x148] sm:$0xff]  ;;  %v10611_v36 = vpack.c.bf16 %v6245_v55, %v6244_v54 }
 0x9b4   :  { %v10643_v47 = vpack.c.bf16 %v6277_v9, %v6276_v6 }
 0x9b6   :  { %10560 = vmatpush1.bf16.msra.mxu0 %v10559_v48  ;;  %10592 = vmatpush1.bf16.msra.mxu1 %v10591_v49  ;;  %v6246_v48 = vld [vmem:[%s15676_s7 + $0x50] sm:$0xff]  ;;  %v10613_v49 = vpack.c.bf16 %v6263_v23, %v6262_v15 }
 0x9b7   :  { %10594 = vmatprep.subr.bf16.mxu1 %v10593_v63  ;;  %10626 = vmatprep.subr.bf16.mxu0 %v10625_v5  ;;  %v6278_v63 = vld [vmem:[%s15676_s7 + $0x150] sm:$0xff]  ;;  %v6279_v5 = vld [vmem:[%s15676_s7 + $0x158] sm:$0xff]  ;;  %v10615_v10 = vpack.c.bf16 %v6247_v59, %v6246_v48  ;;  %v6301_v48 = vld [vmem:[%s15676_s7 + $0x208] sm:$0xff] }
 0x9b8   :  { %v10647_v27 = vpack.c.bf16 %v6279_v5, %v6278_v63  ;;  %v6332_v59 = vld [vmem:[%s15676_s7 + $0x300] sm:$0xff]  ;;  %v6333_v63 = vld [vmem:[%s15676_s7 + $0x308] sm:$0xff]  ;;  %v6318_v5 = vld [vmem:[%s15676_s7 + $0x290] sm:$0xff] }
 0x9b9   :  { %6039 = vmatmul.mubr.f32.vlgmr.msra.gmra.mrb[8].mxu0 %v15081_v25  ;;  %6110 = vmatmul.mubr.f32.vlgmr.msra.gmra.mrb[8].mxu1 %v15081_v25  ;;  %v6272_v25 = vld [vmem:[%s15676_s7 + $0x120] sm:$0xff] }
 0x9ba   :  { %10596 = vmatpush3.bf16.msra.mxu1 %v10595_v52  ;;  %10628 = vmatpush3.bf16.msra.mxu0 %v10627_v57  ;;  %v10635_v7 = vpack.c.bf16 %v6273_v2, %v6272_v25  ;;  %v6297_v52 = vld [vmem:[%s15676_s7 + $0x1e8] sm:$0xff]  ;;  %v6248_v57 = vld [vmem:[%s15676_s7 + $0x60] sm:$0xff]  ;;  %v6283_v25 = vld [vmem:[%s15676_s7 + $0x178] sm:$0xff] }
 0x9bb   :  { %10598 = vmatprep.subr.bf16.mxu1 %v10597_v40  ;;  %10630 = vmatprep.subr.bf16.mxu0 %v10629_v0  ;;  %v10649_v20 = vpack.c.bf16 %v6297_v52, %v6296_v35  ;;  %v6280_v40 = vld [vmem:[%s15676_s7 + $0x160] sm:$0xff]  ;;  %v10619_v0 = vpack.c.bf16 %v6249_v62, %v6248_v57  ;;  %v6351_v35 = vld [vmem:[%s15676_s7 + $0x398] sm:$0xff]  ;;  %v6302_v62 = vld [vmem:[%s15676_s7 + $0x210] sm:$0xff] }
 0x9bc   :  { %v10651_v13 = vpack.c.bf16 %v6281_v11, %v6280_v40  ;;  %v6303_v40 = vld [vmem:[%s15676_s7 + $0x218] sm:$0xff]  ;;  %v10693_v41 = vpack.c.bf16 %v6351_v35, %v6350_v29  ;;  %v6342_v29 = vld [vmem:[%s15676_s7 + $0x350] sm:$0xff] }
 0x9bd   :  { %v6343_v35 = vld [vmem:[%s15676_s7 + $0x358] sm:$0xff] }
 0x9be   :  { %10600 = vmatpush3.bf16.msra.mxu1 %v10599_v32  ;;  %10632 = vmatpush3.bf16.msra.mxu0 %v10631_v53  ;;  %v6299_v32 = vld [vmem:[%s15676_s7 + $0x1f8] sm:$0xff]  ;;  %v6250_v53 = vld [vmem:[%s15676_s7 + $0x70] sm:$0xff] }
 0x9bf   :  { %10602 = vmatprep.subr.bf16.mxu1 %v10601_v43  ;;  %10634 = vmatprep.subr.bf16.mxu0 %v10633_v44  ;;  %v10653_v42 = vpack.c.bf16 %v6299_v32, %v6298_v45  ;;  %v10623_v43 = vpack.c.bf16 %v6251_v37, %v6250_v53  ;;  %v6282_v44 = vld [vmem:[%s15676_s7 + $0x170] sm:$0xff]  ;;  %v6335_v45 = vld [vmem:[%s15676_s7 + $0x318] sm:$0xff]  ;;  %v6321_v32 = vld [vmem:[%s15676_s7 + $0x2a8] sm:$0xff] }
 0x9c0   :  { %v10655_v2 = vpack.c.bf16 %v6283_v25, %v6282_v44  ;;  %v6352_v53 = vld [vmem:[%s15676_s7 + $0x3a0] sm:$0xff]  ;;  %v6353_v37 = vld [vmem:[%s15676_s7 + $0x3a8] sm:$0xff] }
 0x9c1   :  { %v6304_v44 = vld [vmem:[%s15676_s7 + $0x220] sm:$0xff]  ;;  %v6305_v25 = vld [vmem:[%s15676_s7 + $0x228] sm:$0xff]  ;;  %v10697_v1 = vpack.c.bf16 %v6353_v37, %v6352_v53 }
 0x9c2   :  { %10604 = vmatpush3.bf16.msra.mxu1 %v10603_v3  ;;  %10636 = vmatpush3.bf16.msra.mxu0 %v10635_v7  ;;  %v6349_v3 = vld [vmem:[%s15676_s7 + $0x388] sm:$0xff]  ;;  %v6344_v37 = vld [vmem:[%s15676_s7 + $0x360] sm:$0xff] }
 0x9c3   :  { %10606 = vmatprep.subr.bf16.mxu1 %v10605_v16  ;;  %10638 = vmatprep.subr.bf16.mxu0 %v10637_v17  ;;  %v10689_v7 = vpack.c.bf16 %v6349_v3, %v6348_v50  ;;  %v6136_v16 = vsub.s32 2, %v11048_v60  ;;  %v15451_v17 = vld [vmem:[%s15674_s5] sm:$0xff]  ;;  %v6337_v50 = vld [vmem:[%s15676_s7 + $0x328] sm:$0xff]  ;;  %v6323_v3 = vld [vmem:[%s15676_s7 + $0x2b8] sm:$0xff] }
 0x9c4   :  { %v6129_v34 = vrot.slane %v15451_v17, %v6128_v12  ;;  %v6141_v54 = vrot.slane %v15451_v17, %v6140_v33  ;;  %v10667_v12 = vpack.c.bf16 %v6305_v25, %v6304_v44  ;;  %v6331_v44 = vld [vmem:[%s15676_s7 + $0x2f8] sm:$0xff]  ;;  %v6362_v25 = vld [vmem:[%s15676_s7 + $0x3f0] sm:$0xff] }
 0x9c5   :  { %v6137_v38 = vrot.slane %v15451_v17, %v6136_v16  ;;  %v10699_v16 = vpack.c.bf16 %v6337_v50, %v6336_v58 }
 0x9c6   :  { %10608 = vmatpush3.bf16.msra.mxu1 %v10607_v46  ;;  %10640 = vmatpush3.bf16.msra.mxu0 %v10639_v51  ;;  %v6200_v46 = vrot.slane %v6186_v21, %v11090_v14  ;;  %v6133_v51 = vrot.slane %v15451_v17, %v6132_v26  ;;  %v6306_v21 = vld [vmem:[%s15676_s7 + $0x230] sm:$0xff]  ;;  %v6307_v26 = vld [vmem:[%s15676_s7 + $0x238] sm:$0xff] }
 0x9c7   :  { %10610 = vmatprep.subr.bf16.mxu1 %v10609_v61  ;;  %10642 = vmatprep.subr.bf16.mxu0 %v10641_v4 }
 0x9ca   :  { %10612 = vmatpush3.bf16.msra.mxu1 %v10611_v36  ;;  %10644 = vmatpush3.bf16.msra.mxu0 %v10643_v47  ;;  %v6202_v36 = vcombine.high %v6200_v46, %v6200_v46  ;;  %v6300_v47 = vld [vmem:[%s15676_s7 + $0x200] sm:$0xff] }
 0x9cb   :  { %10614 = vmatprep.subr.bf16.mxu1 %v10613_v49  ;;  %10646 = vmatprep.subr.bf16.mxu0 %v10645_v56  ;;  %v10659_v57 = vpack.c.bf16 %v6301_v48, %v6300_v47  ;;  %v6327_v47 = vld [vmem:[%s15676_s7 + $0x2d8] sm:$0xff]  ;;  %v6358_v48 = vld [vmem:[%s15676_s7 + $0x3d0] sm:$0xff] }
 0x9ce   :  { %10616 = vmatpush3.bf16.msra.mxu1 %v10615_v10  ;;  %10648 = vmatpush3.bf16.msra.mxu0 %v10647_v27 }
 0x9cf   :  { %10618 = vmatprep.subr.bf16.mxu1 %v10617_v18  ;;  %10650 = vmatprep.subr.bf16.mxu0 %v10649_v20  ;;  %v10691_v20 = vpack.c.bf16 %v6333_v63, %v6332_v59  ;;  %v6310_v63 = vld [vmem:[%s15676_s7 + $0x250] sm:$0xff] }
 0x9d2   :  { %10620 = vmatpush3.bf16.msra.mxu1 %v10619_v0  ;;  %10652 = vmatpush3.bf16.msra.mxu0 %v10651_v13  ;;  %v10661_v13 = vpack.c.bf16 %v6319_v19, %v6318_v5  ;;  %v6311_v5 = vld [vmem:[%s15676_s7 + $0x258] sm:$0xff] }
 0x9d3   :  { %10622 = vmatprep.subr.bf16.mxu1 %v10621_v31  ;;  %10654 = vmatprep.subr.bf16.mxu0 %v10653_v42  ;;  %v6320_v31 = vld [vmem:[%s15676_s7 + $0x2a0] sm:$0xff]  ;;  %v10663_v42 = vpack.c.bf16 %v6303_v40, %v6302_v62  ;;  %v6144_v62 = vsub.s32 4, %v11048_v60  ;;  %v6152_v40 = vsub.s32 6, %v11048_v60 }
 0x9d5   :  { %v6153_v58 = vrot.slane %v15451_v17, %v6152_v40 }
 0x9d6   :  { %10624 = vmatpush3.bf16.msra.mxu1 %v10623_v43  ;;  %10656 = vmatpush3.bf16.msra.mxu0 %v10655_v2  ;;  %v10695_v43 = vpack.c.bf16 %v6335_v45, %v6334_v30  ;;  %v10665_v2 = vpack.c.bf16 %v6321_v32, %v6320_v31  ;;  %v6156_v30 = vsub.s32 7, %v11048_v60  ;;  %v6312_v45 = vld [vmem:[%s15676_s7 + $0x260] sm:$0xff]  ;;  %v6313_v31 = vld [vmem:[%s15676_s7 + $0x268] sm:$0xff] }
 0x9d7   :  { %10658 = vmatprep.subr.bf16.mxu1 %v10657_v22  ;;  %10690 = vmatprep.subr.bf16.mxu0 %v10689_v7  ;;  %v6322_v22 = vld [vmem:[%s15676_s7 + $0x2b0] sm:$0xff] }
 0x9d8   :  { %v6354_v7 = vld [vmem:[%s15676_s7 + $0x3b0] sm:$0xff]  ;;  %v10669_v33 = vpack.c.bf16 %v6323_v3, %v6322_v22  ;;  %v6157_v3 = vrot.slane %v15451_v17, %v6156_v30 }
 0xa6c   :  { %v5898_v55 = vpop.f32.mrb[6].mxu0  ;;  %v5969_v61 = vpop.f32.mrb[6].mxu1 }
 0xa6d   :  { %v6166_v4 = vadd.f32 %v6129_v34, %v5898_v55  ;;  %v6168_v6 = vadd.f32 %v6137_v38, %v5969_v61  ;;  %v5900_v9 = vpop.f32.mrb[7].mxu0  ;;  %v5971_v15 = vpop.f32.mrb[7].mxu1  ;;  %v10701_v34 = vpack.c.bf16 %v6355_v8, %v6354_v7  ;;  %v6338_v38 = vld [vmem:[%s15676_s7 + $0x330] sm:$0xff]  ;;  %v6357_v55 = vld [vmem:[%s15676_s7 + $0x3c8] sm:$0xff]  ;;  %v10671_v61 = vpack.c.bf16 %v6307_v26, %v6306_v21 }
 0xa6e   :  { %v6167_v23 = vadd.f32 %v6133_v51, %v5900_v9  ;;  %v6169_v28 = vadd.f32 %v6141_v54, %v5971_v15  ;;  %v6325_v51 = vld [vmem:[%s15676_s7 + $0x2c8] sm:$0xff]  ;;  %v6356_v54 = vld [vmem:[%s15676_s7 + $0x3c0] sm:$0xff]  ;;  %v10683_v7 = vpack.c.bf16 %v6313_v31, %v6312_v45  ;;  %v6346_v26 = vld [vmem:[%s15676_s7 + $0x370] sm:$0xff] }
 0xa6f   :  { %v6174_v49 = vmax.f32 %v6166_v4, 0.0  ;;  %v6176_v56 = vmax.f32 %v6168_v6, 0.0  ;;  %v6308_v6 = vld [vmem:[%s15676_s7 + $0x240] sm:$0xff]  ;;  %v6309_v9 = vld [vmem:[%s15676_s7 + $0x248] sm:$0xff] }
 0xa70   :  { %v6175_v10 = vmax.f32 %v6167_v23, 0.0  ;;  %v6177_v27 = vmax.f32 %v6169_v28, 0.0  ;;  %v10705_v23 = vpack.c.bf16 %v6357_v55, %v6356_v54  ;;  %v6341_v28 = vld [vmem:[%s15676_s7 + $0x348] sm:$0xff] }
 0xa71   :  { %v6228_v0 = vmul.f32 %v6193_v39, %v6174_v49  ;;  %v6230_v11 = vmul.f32 %v6200_v46, %v6176_v56  ;;  %v6339_v39 = vld [vmem:[%s15676_s7 + $0x338] sm:$0xff]  ;;  %v6324_v46 = vld [vmem:[%s15676_s7 + $0x2c0] sm:$0xff]  ;;  %v10675_v56 = vpack.c.bf16 %v6309_v9, %v6308_v6 }
 0xa72   :  { %v6229_v18 = vmul.f32 %v6201_v24, %v6175_v10  ;;  %v6231_v52 = vmul.f32 %v6202_v36, %v6177_v27  ;;  %v10703_v4 = vpack.c.bf16 %v6339_v39, %v6338_v38  ;;  %v10673_v15 = vpack.c.bf16 %v6325_v51, %v6324_v46  ;;  %v6340_v24 = vld [vmem:[%s15676_s7 + $0x340] sm:$0xff]  ;;  %v6326_v36 = vld [vmem:[%s15676_s7 + $0x2d0] sm:$0xff]  ;;  %v6359_v49 = vld [vmem:[%s15676_s7 + $0x3d8] sm:$0xff] }
 0xa73   :  { %v10707_v59 = vpack.c.bf16 %v6341_v28, %v6340_v24  ;;  %v6183_v10 = vld [vmem:[%s15675_s6 + $0x8] sm:$0xff]  ;;  %v10677_v27 = vpack.c.bf16 %v6327_v47, %v6326_v36  ;;  %v10709_v19 = vpack.c.bf16 %v6359_v49, %v6358_v48 }
 0xa74   :  { %6435 = vmatprep.mubr.f32.mxu1 %v6229_v18  ;;  %6505 = vmatprep.mubr.f32.mxu0 %v6231_v52  ;;  %v6328_v18 = vld [vmem:[%s15676_s7 + $0x2e0] sm:$0xff]  ;;  %v6329_v52 = vld [vmem:[%s15676_s7 + $0x2e8] sm:$0xff] }
 0xa75   :  { %6436 = vmatmul.mubr.f32.vlgmr.msra.gmra.mrb[30].mxu1 %v6228_v0  ;;  %6506 = vmatmul.mubr.f32.vlgmr.msra.gmra.mrb[32].mxu0 %v6230_v11  ;;  %v6203_v0 = vcombine.high %v6183_v10, %v6183_v10  ;;  %v6148_v11 = vsub.s32 5, %v11048_v60  ;;  %v10681_v32 = vpack.c.bf16 %v6329_v52, %v6328_v18  ;;  %v6345_v60 = vld [vmem:[%s15676_s7 + $0x368] sm:$0xff] }
 0xa76   :  { %10660 = vmatpush3.bf16.msra.mxu1 %v10659_v57  ;;  %10692 = vmatpush3.bf16.msra.mxu0 %v10691_v20  ;;  %v6360_v57 = vld [vmem:[%s15676_s7 + $0x3e0] sm:$0xff]  ;;  %v6361_v20 = vld [vmem:[%s15676_s7 + $0x3e8] sm:$0xff]  ;;  %v10715_v8 = vpack.c.bf16 %v6345_v60, %v6344_v37 }
 0xa77   :  { %10662 = vmatprep.subr.bf16.mxu1 %v10661_v13  ;;  %10694 = vmatprep.subr.bf16.mxu0 %v10693_v41  ;;  %v10679_v13 = vpack.c.bf16 %v6311_v5, %v6310_v63  ;;  %v10711_v41 = vpack.c.bf16 %v6343_v35, %v6342_v29  ;;  %v10713_v53 = vpack.c.bf16 %v6361_v20, %v6360_v57  ;;  %v7734_v63 = vld [vmem:[%s15677_s8] ss:$0 sm:$0xff]  ;;  %s10805_s8 = scalar_lea.vmem %s6660_s19, 32 }
 0xa78   :  { %v6217_v50 = vrot.slane %v6203_v0, %v11090_v14  ;;  %v6149_v22 = vrot.slane %v15451_v17, %v6148_v11  ;;  %p10806_p0 = scmp.ne.s32.totalorder %s6660_s19, %s10805_s8  ;;  %p10811_p2 = scmp.lt.s32.totalorder %s10805_s8, %s10805_s8 }
 0xa7a   :  { %10664 = vmatpush3.bf16.msra.mxu1 %v10663_v42  ;;  %10696 = vmatpush3.bf16.msra.mxu0 %v10695_v43  ;;  %v6330_v42 = vld [vmem:[%s15676_s7 + $0x2f0] sm:$0xff]  ;;  %v6210_v43 = vrot.slane %v6183_v10, %v11090_v14  ;;  %v6219_v55 = vcombine.high %v6217_v50, %v6217_v50  ;;  %p10812_p3 = por %p10811_p2, %p10810_p1 }
 0xa7b   :  { %10666 = vmatprep.subr.bf16.mxu1 %v10665_v2  ;;  %10698 = vmatprep.subr.bf16.mxu0 %v10697_v1  ;;  %v6363_v2 = vld [vmem:[%s15676_s7 + $0x3f8] sm:$0xff]  ;;  %v6145_v1 = vrot.slane %v15451_v17, %v6144_v62  ;;  %v10685_v21 = vpack.c.bf16 %v6331_v44, %v6330_v42 }
 0xa7c   :  { %v10717_v14 = vpack.c.bf16 %v6363_v2, %v6362_v25  ;;  %v6347_v17 = vld [vmem:[%s15676_s7 + $0x378] sm:$0xff]  ;;  %v6218_v38 = vcombine.high %v6210_v43, %v6210_v43  ;;  %p10813_p4 = pnand %p10812_p3, %p10806_p0 }
 0xa7d   :  { %v10719_v9 = vpack.c.bf16 %v6347_v17, %v6346_v26 }
 0xa7e   :  { %10668 = vmatpush3.bf16.msra.mxu1 %v10667_v12  ;;  %10700 = vmatpush3.bf16.msra.mxu0 %v10699_v16  ;;  %v6314_v12 = vld [vmem:[%s15676_s7 + $0x270] sm:$0xff]  ;;  %v6315_v16 = vld [vmem:[%s15676_s7 + $0x278] sm:$0xff] }
 0xa7f   :  { %10670 = vmatprep.subr.bf16.mxu1 %v10669_v33  ;;  %10702 = vmatprep.subr.bf16.mxu0 %v10701_v34 }
 0xa82   :  { %10672 = vmatpush3.bf16.msra.mxu1 %v10671_v61  ;;  %10704 = vmatpush3.bf16.msra.mxu0 %v10703_v4  ;;  %v10687_v61 = vpack.c.bf16 %v6315_v16, %v6314_v12 }
 0xa83   :  { %10674 = vmatprep.subr.bf16.mxu1 %v10673_v15  ;;  %10706 = vmatprep.subr.bf16.mxu0 %v10705_v23 }
 0xa86   :  { %10676 = vmatpush3.bf16.msra.mxu1 %v10675_v56  ;;  %10708 = vmatpush3.bf16.msra.mxu0 %v10707_v59 }
 0xa87   :  { %10678 = vmatprep.subr.bf16.mxu1 %v10677_v27  ;;  %10710 = vmatprep.subr.bf16.mxu0 %v10709_v19 }
 0xa8a   :  { %10680 = vmatpush3.bf16.msra.mxu1 %v10679_v13  ;;  %10712 = vmatpush3.bf16.msra.mxu0 %v10711_v41 }
 0xa8b   :  { %10682 = vmatprep.subr.bf16.mxu1 %v10681_v32  ;;  %10714 = vmatprep.subr.bf16.mxu0 %v10713_v53 }
 0xa8c   :  { %v6040_v33 = vpop.f32.mrb[8].mxu0  ;;  %v6111_v34 = vpop.f32.mrb[8].mxu1 }
 0xa8d   :  { %v6170_v39 = vadd.f32 %v6145_v1, %v6040_v33  ;;  %v6172_v46 = vadd.f32 %v6153_v58, %v6111_v34  ;;  %v6042_v51 = vpop.f32.mrb[9].mxu0  ;;  %v6113_v54 = vpop.f32.mrb[9].mxu1 }
 0xa8e   :  { %v6171_v4 = vadd.f32 %v6149_v22, %v6042_v51  ;;  %v6173_v6 = vadd.f32 %v6157_v3, %v6113_v54  ;;  %10684 = vmatpush3.bf16.msra.mxu1 %v10683_v7  ;;  %10716 = vmatpush3.bf16.msra.mxu0 %v10715_v8 }
 0xa8f   :  { %v6178_v15 = vmax.f32 %v6170_v39, 0.0  ;;  %v6180_v23 = vmax.f32 %v6172_v46, 0.0  ;;  %10686 = vmatprep.subr.bf16.mxu1 %v10685_v21  ;;  %10718 = vmatprep.subr.bf16.mxu0 %v10717_v14 }
 0xa90   :  { %v6179_v24 = vmax.f32 %v6171_v4, 0.0  ;;  %v6181_v28 = vmax.f32 %v6173_v6, 0.0 }
 0xa91   :  { %v6232_v48 = vmul.f32 %v6210_v43, %v6178_v15  ;;  %v6234_v49 = vmul.f32 %v6217_v50, %v6180_v23 }
 0xa92   :  { %v6233_v36 = vmul.f32 %v6218_v38, %v6179_v24  ;;  %v6235_v47 = vmul.f32 %v6219_v55, %v6181_v28  ;;  %10688 = vmatpush3.bf16.msra.mxu1 %v10687_v61  ;;  %10720 = vmatpush3.bf16.msra.mxu0 %v10719_v9 }
 0xa94   :  { %6575 = vmatprep.mubr.f32.mxu1 %v6233_v36  ;;  %6645 = vmatprep.mubr.f32.mxu0 %v6235_v47 }
 0xa95   :  { %6576 = vmatmul.mubr.f32.vlgmr.msra.gmra.mrb[32].mxu1 %v6232_v48  ;;  %6646 = vmatmul.mubr.f32.vlgmr.msra.gmra.mrb[34].mxu0 %v6234_v49 }
 0xb48   :  { %v8478_v56 = vpop.f32.mrb[30].mxu1  ;;  %v8513_v59 = vpop.f32.mrb[32].mxu0 }
 0xb49   :  { %v8479_v5 = vpop.f32.mrb[31].mxu1  ;;  %v8514_v10 = vpop.f32.mrb[33].mxu0 }
 0xb4a   :  { %v8480_v27 = vadd.f32 %v8479_v5, %v8478_v56  ;;  %v8515_v19 = vadd.f32 %v8514_v10, %v8513_v59 }
 0xb4c   :  { %v6438_v29 = vadd.f32 %v8480_v27, %v7734_v63 }
 0xb4e   :  { %v6508_v35 = vadd.f32 %v8515_v19, %v6438_v29 }
 0xb68   :  { %v8548_v18 = vpop.f32.mrb[32].mxu1  ;;  %v8583_v52 = vpop.f32.mrb[34].mxu0 }
 0xb69   :  { %v8549_v57 = vpop.f32.mrb[33].mxu1  ;;  %v8584_v20 = vpop.f32.mrb[35].mxu0 }
 0xb6a   :  { %v8550_v62 = vadd.f32 %v8549_v57, %v8548_v18  ;;  %v8585_v40 = vadd.f32 %v8584_v20, %v8583_v52 }
 0xb6c   :  { %v6578_v0 = vadd.f32 %v8550_v62, %v6508_v35 }
 0xb6e   :  { %v6648_v11 = vadd.f32 %v8585_v40, %v6578_v0 }
 0xb70   :  { %6652 = vst.msk [vmem:[#allocation2] sm:$0x3] %vm6651_vm2, %v6648_v11 }
 0xb71   :  { %10816 = shalt.err (!%p10813_p4)
}
 0xb72   :  { %s10817_s22 = scalar_lea.hbm %s15678_s9, 32 }
 0xb73   :  { %p10818_p5 = scmp.ne.s32.totalorder %s15678_s9, %s10817_s22  ;;  %p10821_p6 = scmp.lt.u32.totalorder %s10817_s22, %s15678_s9 }
 0xb75   :  { %p10823_p7 = pnand %p10821_p6, %p10818_p5 }
 0xb77   :  { %10826 = shalt.err (!%p10823_p7)
}
 0xb78   :  { %6662 = dma.vmem_to_hbm [thread:$0]  %s6660_s19, 32, %s15678_s9, [#allocation3]  }
 0xb79   :  { %10827 = dma.done.wait [#allocation3], 32  }
 0xb7a   :  { %10828 = vsyncadd [#allocation3], 4294967264 }
 0xb7b   :  { %6666 = vsyncpa [#allocation3], 1 }

</bundles_post_ra>
